<compile_context>
chip_gen: v7x
topology: tpu7x:2x2x1
jax: 0.10.0
libtpu: 0.0.40
codegen_flags: <defaults>
</compile_context>

<pallas_src>
import functools
import math

import jax
import jax.numpy as jnp
from jax import lax
from jax.experimental import pallas as pl
from jax.experimental.pallas import tpu as pltpu


def _gelu(x, approximate=False):
    if approximate:
        # tanh approximation (EUP path); numerics differ from nn.GELU() default.
        return jax.nn.gelu(x, approximate=True)
    # nn.GELU() default: 0.5 * x * (1 + erf(x / sqrt(2)))
    return 0.5 * x * (1.0 + lax.erf(x * (1.0 / math.sqrt(2.0))))


def _round_up(x, m):
    return ((x + m - 1) // m) * m


def _mixer_kernel(xpad_hbm, wdw_ref, wcm_ref, prm_ref, out_ref,
                  xbuf, ybuf, sem, *, TH, W, K, p, lpad, sr_rows, approx_gelu):
    """One (batch, row-tile) per grid step.

    xpad_hbm : (N, Hp, Wp, C) padded activations, left in HBM (pl.ANY).
    wdw_ref  : (K, K, C)   depthwise weights (VMEM, grid-constant).
    wcm_ref  : (C, C)      1x1-conv weights, (Cin, Cout) (VMEM, grid-constant).
    prm_ref  : (6, C)      rows: b_dw, scale1, shift1, b_cm, scale2, shift2.
    out_ref  : (1, TH, W, C) output row tile.
    xbuf     : (2, TH+2p, Wp, C) VMEM double buffer for the haloed input tile.
    ybuf     : (TH, W, C) VMEM staging buffer for the channel-mix matmul input.
    sem      : (2,) DMA semaphores.
    """
    n = pl.program_id(0)
    t = pl.program_id(1)
    num_n = pl.num_programs(0)
    num_t = pl.num_programs(1)

    THp = xbuf.shape[1]           # TH + 2p
    Wp = xbuf.shape[2]            # lane-padded / aligned width
    C = xbuf.shape[3]

    def start_copy(img, row0, slot_):
        pltpu.make_async_copy(
            xpad_hbm.at[img, pl.ds(row0, THp)], xbuf.at[slot_], sem.at[slot_]
        ).start()

    def wait_copy(slot_):
        # src indices irrelevant for the wait (size + semaphore only).
        pltpu.make_async_copy(
            xpad_hbm.at[n, pl.ds(0, THp)], xbuf.at[slot_], sem.at[slot_]
        ).wait()

    g = n * num_t + t             # global step -> globally consistent ping-pong
    slot = lax.rem(g, 2)
    nxt = 1 - slot

    # Cold prime: only the very first grid step has an exposed DMA.
    @pl.when(jnp.logical_and(n == 0, t == 0))
    def _():
        start_copy(0, 0, slot)

    wait_copy(slot)

    # Prefetch the next row tile (same image, or the first tile of the next
    # image) into the other slot while computing on the current one.
    @pl.when(t + 1 < num_t)
    def _():
        row0 = pl.multiple_of((t + 1) * TH, TH)
        start_copy(n, row0, nxt)

    @pl.when(jnp.logical_and(t + 1 == num_t, n + 1 < num_n))
    def _():
        start_copy(n + 1, 0, nxt)

    # ---- depthwise K x K conv ----
    # One roll of the full haloed block per dx (K rolls total, XLU), sliced
    # once to the 8-aligned valid width; dy taps are free leading-axis slices.
    # Roll wrap-around never lands inside the aligned valid window.
    xblk = xbuf[slot].astype(jnp.float32)                  # (THp, Wp, C)
    shifted = []
    for dx in range(K):
        sh = (p - dx) % Wp
        blk = xblk if sh == 0 else pltpu.roll(xblk, sh, axis=1)
        shifted.append(blk[:, lpad:lpad + W, :])           # (THp, W, C)

    resid_blk = shifted[p]        # zero-shift block == valid-width input

    # Per-channel weights / BN params (loaded once).
    wtaps = [[wdw_ref[dy, dx:dx + 1, :].astype(jnp.float32)   # (1, C)
              for dx in range(K)] for dy in range(K)]
    b_dw, scale1, shift1 = prm_ref[0:1, :], prm_ref[1:2, :], prm_ref[2:3, :]
    b_cm, scale2, shift2 = prm_ref[3:4, :], prm_ref[4:5, :], prm_ref[5:6, :]

    # Strip-mined tap accumulation: each strip's accumulator is small enough
    # to stay register-resident across all K*K taps (no VMEM spill traffic).
    for r0 in range(0, TH, sr_rows):
        sr = min(sr_rows, TH - r0)
        acc = jnp.zeros((sr, W, C), jnp.float32)
        for dy in range(K):
            for dx in range(K):
                tap = shifted[dx][r0 + dy:r0 + dy + sr]    # (sr, W, C), free slice
                acc = acc + tap * wtaps[dy][dx]
        # GELU + BN1 + residual on the valid window only.
        y = (_gelu(acc + b_dw, approx_gelu) * scale1 + shift1
             + resid_blk[p + r0:p + r0 + sr])
        ybuf[r0:r0 + sr] = y.astype(ybuf.dtype)

    # ---- channel mix: 1x1 conv as a single lane-dense 2-D MXU matmul ----
    y2 = ybuf[...].reshape(TH * W, C)
    z = jnp.dot(y2, wcm_ref[...], preferred_element_type=jnp.float32)
    z = _gelu(z + b_cm, approx_gelu) * scale2 + shift2

    out_ref[0] = z.reshape(TH, W, C).astype(out_ref.dtype)


def mixer_block(x, w_dw, w_cm_t, params, kernel_size, *,
                row_tile=16, strip_rows=None,
                stream_dtype=jnp.bfloat16, matmul_dtype=jnp.bfloat16,
                approximate_gelu=False, vmem_limit_bytes=None):
    """x: (N, H, W, C) f32.  w_dw: (K, K, C).  w_cm_t: (Cin, Cout).  params: (6, C).

    For best lane/sublane utilisation C should be a multiple of 128 and W a
    multiple of 8 (real ConvMixer dims are); correctness does not depend on it.
    On v7x (64 MiB VMEM) lower row_tile if the derived VMEM estimate is large.
    """
    N, H, W, C = x.shape
    K = int(kernel_size)
    if K % 2 != 1:
        raise ValueError(f"kernel_size must be odd for symmetric 'same' padding, got {K}")
    p = K // 2

    # Row tile: prefer a divisor of H so no over-allocation / wrapper slice.
    TH = max(1, min(row_tile, H))
    if H % TH != 0:
        best = max(d for d in range(1, TH + 1) if H % d == 0)
        if best >= max(1, TH // 2):
            TH = best
    H_r = _round_up(H, TH)
    T = H_r // TH
    THp = TH + 2 * p

    # 8-aligned left halo so the valid window / residual slices are aligned.
    lpad = _round_up(p, 8) if p > 0 else 0
    Wp = lpad + _round_up(W + p, 8) if p > 0 else _round_up(W, 8)

    if strip_rows is None:
        # ~64 KiB of f32 accumulator per strip (stays in vregs).
        strip_rows = max(1, min(TH, (64 * 1024) // max(1, W * C * 4)))

    # Single padded activation tensor: 'same' halo + row/width round-up,
    # streamed at stream_dtype (bf16 by default -> half the HBM traffic).
    x_pad = jnp.pad(x, ((0, 0), (p, p + (H_r - H)), (lpad, Wp - lpad - W), (0, 0)))
    x_pad = x_pad.astype(stream_dtype)
    w_cm_use = w_cm_t.astype(matmul_dtype)

    # Derive the VMEM budget from actual usage instead of a fixed number.
    sb = jnp.dtype(stream_dtype).itemsize
    mb = jnp.dtype(matmul_dtype).itemsize
    est = (2 * THp * Wp * C * sb            # haloed input double buffer
           + 2 * TH * W * C * 4             # output block double buffer (f32)
           + TH * W * C * mb                # ybuf staging scratch
           + 2 * (K * K * C * 4 + C * C * mb + 6 * C * 4)  # weights / params
           + K * THp * W * C * 4            # rolled f32 temporaries
           + 4 * TH * W * C * 4)            # epilogue / matmul temporaries
    if vmem_limit_bytes is None:
        vmem_limit_bytes = min(110 * 1024 * 1024, int(est * 1.3) + (8 << 20))

    kernel = functools.partial(_mixer_kernel, TH=TH, W=W, K=K, p=p, lpad=lpad,
                               sr_rows=strip_rows, approx_gelu=approximate_gelu)

    out = pl.pallas_call(
        kernel,
        out_shape=jax.ShapeDtypeStruct((N, H_r, W, C), x.dtype),
        grid_spec=pltpu.PrefetchScalarGridSpec(
            num_scalar_prefetch=0,
            grid=(N, T),
            in_specs=[
                pl.BlockSpec(memory_space=pl.ANY),                # padded x stays in HBM
                pl.BlockSpec((K, K, C), lambda n, t: (0, 0, 0)),  # grid-constant
                pl.BlockSpec((C, C), lambda n, t: (0, 0)),        # grid-constant
                pl.BlockSpec((6, C), lambda n, t: (0, 0)),        # grid-constant
            ],
            out_specs=pl.BlockSpec((1, TH, W, C), lambda n, t: (n, t, 0, 0)),
            scratch_shapes=[
                pltpu.VMEM((2, THp, Wp, C), stream_dtype),        # haloed input tiles
                pltpu.VMEM((TH, W, C), matmul_dtype),             # channel-mix input
                pltpu.SemaphoreType.DMA((2,)),
            ],
        ),
        compiler_params=pltpu.CompilerParams(
            # Both axes "arbitrary": the manual double-buffer chain spans image
            # boundaries (cross-image prefetch), so no grid axis may be split
            # across cores without also fixing the prime.
            dimension_semantics=("arbitrary", "arbitrary"),
            vmem_limit_bytes=int(vmem_limit_bytes),
        ),
    )(x_pad, w_dw, w_cm_use, params)

    return out if H_r == H else out[:, :H]


def mixer_block_reference(x, w_dw, w_cm_t, params, kernel_size):
    """Pure-JAX f32 reference with identical math (for verification)."""
    N, H, W, C = x.shape
    K = kernel_size
    p = K // 2
    b_dw, scale1, shift1, b_cm, scale2, shift2 = [params[i] for i in range(6)]
    xpad = jnp.pad(x, ((0, 0), (p, p), (p, p), (0, 0)))
    acc = jnp.zeros_like(x)
    for dy in range(K):
        for dx in range(K):
            acc = acc + xpad[:, dy:dy + H, dx:dx + W, :] * w_dw[dy, dx, :]
    y = _gelu(acc + b_dw)
    y = y * scale1 + shift1 + x
    z = jnp.einsum("nhwc,cd->nhwd", y, w_cm_t) + b_cm
    z = _gelu(z)
    return z * scale2 + shift2


def fold_bn(gamma, beta, mean, var, eps=1e-5):
    scale = gamma / jnp.sqrt(var + eps)
    shift = beta - mean * scale
    return scale, shift


if __name__ == "__main__":
    # Small but lane-dense demo: C multiple of 128, K=5 (odd -> 'same' padding).
    N, H, W, C = 2, 16, 16, 128
    K = 5

    key = jax.random.PRNGKey(0)
    ks = jax.random.split(key, 12)

    x = jax.random.normal(ks[0], (N, H, W, C), dtype=jnp.float32)

    # Depthwise conv: PyTorch weight (C, 1, K, K) -> stored as (K, K, C).
    w_dw = 0.2 * jax.random.normal(ks[1], (K, K, C), dtype=jnp.float32)
    b_dw = 0.1 * jax.random.normal(ks[2], (C,), dtype=jnp.float32)

    # BN1 (inference-form) params / running stats.
    gamma1 = 1.0 + 0.1 * jax.random.normal(ks[3], (C,), dtype=jnp.float32)
    beta1 = 0.1 * jax.random.normal(ks[4], (C,), dtype=jnp.float32)
    mean1 = 0.1 * jax.random.normal(ks[5], (C,), dtype=jnp.float32)
    var1 = 1.0 + 0.1 * jax.nn.softplus(jax.random.normal(ks[6], (C,), dtype=jnp.float32))
    scale1, shift1 = fold_bn(gamma1, beta1, mean1, var1)

    # 1x1 conv: PyTorch weight (Cout, Cin, 1, 1) -> matmul as x @ W^T, store (Cin, Cout).
    w_cm = 0.2 * jax.random.normal(ks[7], (C, C), dtype=jnp.float32)   # (Cout, Cin)
    w_cm_t = w_cm.T                                                    # (Cin, Cout)
    b_cm = 0.1 * jax.random.normal(ks[8], (C,), dtype=jnp.float32)

    # BN2 params / running stats.
    gamma2 = 1.0 + 0.1 * jax.random.normal(ks[9], (C,), dtype=jnp.float32)
    beta2 = 0.1 * jax.random.normal(ks[10], (C,), dtype=jnp.float32)
    mean2 = 0.1 * jax.random.normal(ks[11], (C,), dtype=jnp.float32)
    var2 = jnp.ones((C,), dtype=jnp.float32)
    scale2, shift2 = fold_bn(gamma2, beta2, mean2, var2)

    params = jnp.stack([b_dw, scale1, shift1, b_cm, scale2, shift2], axis=0)  # (6, C)

    ref = mixer_block_reference(x, w_dw, w_cm_t, params, K)

    # 1) Exact-semantics path: f32 streaming + f32 matmul, tight tolerance.
    out_f32 = mixer_block(x, w_dw, w_cm_t, params, K,
                          stream_dtype=jnp.float32, matmul_dtype=jnp.float32)
    out_f32 = jax.block_until_ready(out_f32)
    assert out_f32.shape == (N, H, W, C)
    assert jnp.allclose(out_f32, ref, atol=2e-3, rtol=2e-3), "f32 path mismatch vs reference"

    # 2) Performance path (default): bf16 activation streaming + bf16 MXU
    #    inputs with f32 accumulation.
    out = mixer_block(x, w_dw, w_cm_t, params, K)
    out = jax.block_until_ready(out)
    assert out.shape == (N, H, W, C)
    assert jnp.allclose(out, ref, atol=2e-1, rtol=1e-1), "bf16 path deviates too much"

    print("KERNEL_OK")
</pallas_src>

<mosaic_0001>
module attributes {stable_mosaic.version = 11 : i64} {
  func.func @_mixer_kernel(%arg0: i32, %arg1: i32, %arg2: memref<2x20x32x128xf32, #tpu.memory_space<any>>, %arg3: memref<5x5x128xf32, #tpu.memory_space<vmem>>, %arg4: memref<128x128xf32, #tpu.memory_space<vmem>>, %arg5: memref<6x128xf32, #tpu.memory_space<vmem>>, %arg6: memref<1x16x16x128xf32, #tpu.memory_space<vmem>>, %arg7: memref<2x20x32x128xf32, #tpu.memory_space<vmem>>, %arg8: memref<16x16x128xf32, #tpu.memory_space<vmem>>, %arg9: memref<2x!tpu.dma_semaphore, #tpu.memory_space<semaphore_mem>>) attributes {dimension_semantics = [#tpu.dimension_semantics<arbitrary>, #tpu.dimension_semantics<arbitrary>], iteration_bounds = array<i64: 2, 1>, scalar_prefetch = 0 : i64, scratch_operands = 3 : i64, tpu.core_type = #tpu.core_type<tc>, window_params = [{}, {pipeline_mode = #tpu.pipeline_mode<synchronous>, transform_indices = @transform_1, window_bounds = array<i64: 5, 5, 128>}, {pipeline_mode = #tpu.pipeline_mode<synchronous>, transform_indices = @transform_2, window_bounds = array<i64: 128, 128>}, {pipeline_mode = #tpu.pipeline_mode<synchronous>, transform_indices = @transform_3, window_bounds = array<i64: 6, 128>}, {transform_indices = @transform_4, window_bounds = array<i64: 1, 16, 16, 128>}]} {
    %c1_i32 = arith.constant 1 : i32
    %0 = arith.muli %arg0, %c1_i32 : i32
    %1 = arith.addi %0, %arg1 : i32
    %c2_i32 = arith.constant 2 : i32
    %2 = arith.remsi %1, %c2_i32 : i32
    %c1_i32_0 = arith.constant 1 : i32
    %3 = arith.subi %c1_i32_0, %2 : i32
    %c0_i32 = arith.constant 0 : i32
    %4 = arith.cmpi eq, %arg0, %c0_i32 : i32
    %c0_i32_1 = arith.constant 0 : i32
    %5 = arith.cmpi eq, %arg1, %c0_i32_1 : i32
    %6 = arith.andi %4, %5 : i1
    %7 = arith.extui %6 : i1 to i32
    %c0_i32_2 = arith.constant 0 : i32
    %8 = arith.cmpi ne, %7, %c0_i32_2 : i32
    scf.if %8 {
      %c0_i32_128 = arith.constant 0 : i32
      %c0_i32_129 = arith.constant 0 : i32
      %c0_i32_130 = arith.constant 0 : i32
      %c0_i32_131 = arith.constant 0 : i32
      %408 = tpu.memref_slice %arg2[%c0_i32_128, %c0_i32_129, %c0_i32_130, %c0_i32_131] : memref<2x20x32x128xf32, #tpu.memory_space<any>> -> memref<1x20x32x128xf32, #tpu.memory_space<any>>
      %409 = tpu.memref_squeeze %408 : memref<1x20x32x128xf32, #tpu.memory_space<any>> -> memref<20x32x128xf32, #tpu.memory_space<any>>
      %c0_i32_132 = arith.constant 0 : i32
      %c0_i32_133 = arith.constant 0 : i32
      %c0_i32_134 = arith.constant 0 : i32
      %410 = tpu.memref_slice %arg7[%2, %c0_i32_132, %c0_i32_133, %c0_i32_134] : memref<2x20x32x128xf32, #tpu.memory_space<vmem>> -> memref<1x20x32x128xf32, #tpu.memory_space<vmem>>
      %411 = tpu.memref_squeeze %410 : memref<1x20x32x128xf32, #tpu.memory_space<vmem>> -> memref<20x32x128xf32, #tpu.memory_space<vmem>>
      %412 = tpu.memref_slice %arg9[%2] : memref<2x!tpu.dma_semaphore, #tpu.memory_space<semaphore_mem>> -> memref<1x!tpu.dma_semaphore, #tpu.memory_space<semaphore_mem>>
      %413 = tpu.memref_squeeze %412 : memref<1x!tpu.dma_semaphore, #tpu.memory_space<semaphore_mem>> -> memref<!tpu.dma_semaphore, #tpu.memory_space<semaphore_mem>>
      tpu.enqueue_dma source(%409 : memref<20x32x128xf32, #tpu.memory_space<any>>) target(%411 : memref<20x32x128xf32, #tpu.memory_space<vmem>>) target_semaphore(%413 : memref<!tpu.dma_semaphore, #tpu.memory_space<semaphore_mem>>)
    } else {
    }
    %c0_i32_3 = arith.constant 0 : i32
    %c0_i32_4 = arith.constant 0 : i32
    %c0_i32_5 = arith.constant 0 : i32
    %9 = tpu.memref_slice %arg2[%arg0, %c0_i32_3, %c0_i32_4, %c0_i32_5] : memref<2x20x32x128xf32, #tpu.memory_space<any>> -> memref<1x20x32x128xf32, #tpu.memory_space<any>>
    %10 = tpu.memref_squeeze %9 : memref<1x20x32x128xf32, #tpu.memory_space<any>> -> memref<20x32x128xf32, #tpu.memory_space<any>>
    %c0_i32_6 = arith.constant 0 : i32
    %c0_i32_7 = arith.constant 0 : i32
    %c0_i32_8 = arith.constant 0 : i32
    %11 = tpu.memref_slice %arg7[%2, %c0_i32_6, %c0_i32_7, %c0_i32_8] : memref<2x20x32x128xf32, #tpu.memory_space<vmem>> -> memref<1x20x32x128xf32, #tpu.memory_space<vmem>>
    %12 = tpu.memref_squeeze %11 : memref<1x20x32x128xf32, #tpu.memory_space<vmem>> -> memref<20x32x128xf32, #tpu.memory_space<vmem>>
    %13 = tpu.memref_slice %arg9[%2] : memref<2x!tpu.dma_semaphore, #tpu.memory_space<semaphore_mem>> -> memref<1x!tpu.dma_semaphore, #tpu.memory_space<semaphore_mem>>
    %14 = tpu.memref_squeeze %13 : memref<1x!tpu.dma_semaphore, #tpu.memory_space<semaphore_mem>> -> memref<!tpu.dma_semaphore, #tpu.memory_space<semaphore_mem>>
    tpu.wait_dma2 semaphore(%14 : memref<!tpu.dma_semaphore, #tpu.memory_space<semaphore_mem>>) src(%10 : memref<20x32x128xf32, #tpu.memory_space<any>>) dst(%12 : memref<20x32x128xf32, #tpu.memory_space<vmem>>)
    %c1_i32_9 = arith.constant 1 : i32
    %15 = arith.addi %arg1, %c1_i32_9 : i32
    %c1_i32_10 = arith.constant 1 : i32
    %16 = arith.cmpi slt, %15, %c1_i32_10 : i32
    %17 = arith.extui %16 : i1 to i32
    %c0_i32_11 = arith.constant 0 : i32
    %18 = arith.cmpi ne, %17, %c0_i32_11 : i32
    scf.if %18 {
      %c1_i32_128 = arith.constant 1 : i32
      %408 = arith.addi %arg1, %c1_i32_128 : i32
      %c16_i32 = arith.constant 16 : i32
      %409 = arith.muli %408, %c16_i32 : i32
      %410 = tpu.assume_multiple %409, 16 : i32
      %c0_i32_129 = arith.constant 0 : i32
      %c0_i32_130 = arith.constant 0 : i32
      %411 = tpu.memref_slice %arg2[%arg0, %410, %c0_i32_129, %c0_i32_130] : memref<2x20x32x128xf32, #tpu.memory_space<any>> -> memref<1x20x32x128xf32, #tpu.memory_space<any>>
      %412 = tpu.memref_squeeze %411 : memref<1x20x32x128xf32, #tpu.memory_space<any>> -> memref<20x32x128xf32, #tpu.memory_space<any>>
      %c0_i32_131 = arith.constant 0 : i32
      %c0_i32_132 = arith.constant 0 : i32
      %c0_i32_133 = arith.constant 0 : i32
      %413 = tpu.memref_slice %arg7[%3, %c0_i32_131, %c0_i32_132, %c0_i32_133] : memref<2x20x32x128xf32, #tpu.memory_space<vmem>> -> memref<1x20x32x128xf32, #tpu.memory_space<vmem>>
      %414 = tpu.memref_squeeze %413 : memref<1x20x32x128xf32, #tpu.memory_space<vmem>> -> memref<20x32x128xf32, #tpu.memory_space<vmem>>
      %415 = tpu.memref_slice %arg9[%3] : memref<2x!tpu.dma_semaphore, #tpu.memory_space<semaphore_mem>> -> memref<1x!tpu.dma_semaphore, #tpu.memory_space<semaphore_mem>>
      %416 = tpu.memref_squeeze %415 : memref<1x!tpu.dma_semaphore, #tpu.memory_space<semaphore_mem>> -> memref<!tpu.dma_semaphore, #tpu.memory_space<semaphore_mem>>
      tpu.enqueue_dma source(%412 : memref<20x32x128xf32, #tpu.memory_space<any>>) target(%414 : memref<20x32x128xf32, #tpu.memory_space<vmem>>) target_semaphore(%416 : memref<!tpu.dma_semaphore, #tpu.memory_space<semaphore_mem>>)
    } else {
    }
    %c1_i32_12 = arith.constant 1 : i32
    %19 = arith.addi %arg1, %c1_i32_12 : i32
    %c1_i32_13 = arith.constant 1 : i32
    %20 = arith.cmpi eq, %19, %c1_i32_13 : i32
    %c1_i32_14 = arith.constant 1 : i32
    %21 = arith.addi %arg0, %c1_i32_14 : i32
    %c2_i32_15 = arith.constant 2 : i32
    %22 = arith.cmpi slt, %21, %c2_i32_15 : i32
    %23 = arith.andi %20, %22 : i1
    %24 = arith.extui %23 : i1 to i32
    %c0_i32_16 = arith.constant 0 : i32
    %25 = arith.cmpi ne, %24, %c0_i32_16 : i32
    scf.if %25 {
      %c1_i32_128 = arith.constant 1 : i32
      %408 = arith.addi %arg0, %c1_i32_128 : i32
      %c0_i32_129 = arith.constant 0 : i32
      %c0_i32_130 = arith.constant 0 : i32
      %c0_i32_131 = arith.constant 0 : i32
      %409 = tpu.memref_slice %arg2[%408, %c0_i32_129, %c0_i32_130, %c0_i32_131] : memref<2x20x32x128xf32, #tpu.memory_space<any>> -> memref<1x20x32x128xf32, #tpu.memory_space<any>>
      %410 = tpu.memref_squeeze %409 : memref<1x20x32x128xf32, #tpu.memory_space<any>> -> memref<20x32x128xf32, #tpu.memory_space<any>>
      %c0_i32_132 = arith.constant 0 : i32
      %c0_i32_133 = arith.constant 0 : i32
      %c0_i32_134 = arith.constant 0 : i32
      %411 = tpu.memref_slice %arg7[%3, %c0_i32_132, %c0_i32_133, %c0_i32_134] : memref<2x20x32x128xf32, #tpu.memory_space<vmem>> -> memref<1x20x32x128xf32, #tpu.memory_space<vmem>>
      %412 = tpu.memref_squeeze %411 : memref<1x20x32x128xf32, #tpu.memory_space<vmem>> -> memref<20x32x128xf32, #tpu.memory_space<vmem>>
      %413 = tpu.memref_slice %arg9[%3] : memref<2x!tpu.dma_semaphore, #tpu.memory_space<semaphore_mem>> -> memref<1x!tpu.dma_semaphore, #tpu.memory_space<semaphore_mem>>
      %414 = tpu.memref_squeeze %413 : memref<1x!tpu.dma_semaphore, #tpu.memory_space<semaphore_mem>> -> memref<!tpu.dma_semaphore, #tpu.memory_space<semaphore_mem>>
      tpu.enqueue_dma source(%410 : memref<20x32x128xf32, #tpu.memory_space<any>>) target(%412 : memref<20x32x128xf32, #tpu.memory_space<vmem>>) target_semaphore(%414 : memref<!tpu.dma_semaphore, #tpu.memory_space<semaphore_mem>>)
    } else {
    }
    %26 = arith.index_cast %2 : i32 to index
    %c0 = arith.constant 0 : index
    %c0_17 = arith.constant 0 : index
    %c0_18 = arith.constant 0 : index
    %27 = vector.load %arg7[%26, %c0, %c0_17, %c0_18] : memref<2x20x32x128xf32, #tpu.memory_space<vmem>>, vector<1x20x32x128xf32>
    %28 = vector.shape_cast %27 : vector<1x20x32x128xf32> to vector<20x32x128xf32>
    %c2_i32_19 = arith.constant 2 : i32
    %29 = tpu.dynamic_rotate %28 by %c2_i32_19 dim 1 : vector<20x32x128xf32>, i32 -> vector<20x32x128xf32>
    %30 = vector.extract_strided_slice %29 {offsets = [0, 8, 0], sizes = [20, 16, 128], strides = [1, 1, 1]} : vector<20x32x128xf32> to vector<20x16x128xf32>
    %c1_i32_20 = arith.constant 1 : i32
    %31 = tpu.dynamic_rotate %28 by %c1_i32_20 dim 1 : vector<20x32x128xf32>, i32 -> vector<20x32x128xf32>
    %32 = vector.extract_strided_slice %31 {offsets = [0, 8, 0], sizes = [20, 16, 128], strides = [1, 1, 1]} : vector<20x32x128xf32> to vector<20x16x128xf32>
    %33 = vector.extract_strided_slice %28 {offsets = [0, 8, 0], sizes = [20, 16, 128], strides = [1, 1, 1]} : vector<20x32x128xf32> to vector<20x16x128xf32>
    %c31_i32 = arith.constant 31 : i32
    %34 = tpu.dynamic_rotate %28 by %c31_i32 dim 1 : vector<20x32x128xf32>, i32 -> vector<20x32x128xf32>
    %35 = vector.extract_strided_slice %34 {offsets = [0, 8, 0], sizes = [20, 16, 128], strides = [1, 1, 1]} : vector<20x32x128xf32> to vector<20x16x128xf32>
    %c30_i32 = arith.constant 30 : i32
    %36 = tpu.dynamic_rotate %28 by %c30_i32 dim 1 : vector<20x32x128xf32>, i32 -> vector<20x32x128xf32>
    %37 = vector.extract_strided_slice %36 {offsets = [0, 8, 0], sizes = [20, 16, 128], strides = [1, 1, 1]} : vector<20x32x128xf32> to vector<20x16x128xf32>
    %c0_21 = arith.constant 0 : index
    %c0_22 = arith.constant 0 : index
    %c0_23 = arith.constant 0 : index
    %38 = vector.load %arg3[%c0_21, %c0_22, %c0_23] : memref<5x5x128xf32, #tpu.memory_space<vmem>>, vector<1x1x128xf32>
    %39 = vector.shape_cast %38 : vector<1x1x128xf32> to vector<1x128xf32>
    %c0_24 = arith.constant 0 : index
    %c1 = arith.constant 1 : index
    %c0_25 = arith.constant 0 : index
    %40 = vector.load %arg3[%c0_24, %c1, %c0_25] : memref<5x5x128xf32, #tpu.memory_space<vmem>>, vector<1x1x128xf32>
    %41 = vector.shape_cast %40 : vector<1x1x128xf32> to vector<1x128xf32>
    %c0_26 = arith.constant 0 : index
    %c2 = arith.constant 2 : index
    %c0_27 = arith.constant 0 : index
    %42 = vector.load %arg3[%c0_26, %c2, %c0_27] : memref<5x5x128xf32, #tpu.memory_space<vmem>>, vector<1x1x128xf32>
    %43 = vector.shape_cast %42 : vector<1x1x128xf32> to vector<1x128xf32>
    %c0_28 = arith.constant 0 : index
    %c3 = arith.constant 3 : index
    %c0_29 = arith.constant 0 : index
    %44 = vector.load %arg3[%c0_28, %c3, %c0_29] : memref<5x5x128xf32, #tpu.memory_space<vmem>>, vector<1x1x128xf32>
    %45 = vector.shape_cast %44 : vector<1x1x128xf32> to vector<1x128xf32>
    %c0_30 = arith.constant 0 : index
    %c4 = arith.constant 4 : index
    %c0_31 = arith.constant 0 : index
    %46 = vector.load %arg3[%c0_30, %c4, %c0_31] : memref<5x5x128xf32, #tpu.memory_space<vmem>>, vector<1x1x128xf32>
    %47 = vector.shape_cast %46 : vector<1x1x128xf32> to vector<1x128xf32>
    %c1_32 = arith.constant 1 : index
    %c0_33 = arith.constant 0 : index
    %c0_34 = arith.constant 0 : index
    %48 = vector.load %arg3[%c1_32, %c0_33, %c0_34] : memref<5x5x128xf32, #tpu.memory_space<vmem>>, vector<1x1x128xf32>
    %49 = vector.shape_cast %48 : vector<1x1x128xf32> to vector<1x128xf32>
    %c1_35 = arith.constant 1 : index
    %c1_36 = arith.constant 1 : index
    %c0_37 = arith.constant 0 : index
    %50 = vector.load %arg3[%c1_35, %c1_36, %c0_37] : memref<5x5x128xf32, #tpu.memory_space<vmem>>, vector<1x1x128xf32>
    %51 = vector.shape_cast %50 : vector<1x1x128xf32> to vector<1x128xf32>
    %c1_38 = arith.constant 1 : index
    %c2_39 = arith.constant 2 : index
    %c0_40 = arith.constant 0 : index
    %52 = vector.load %arg3[%c1_38, %c2_39, %c0_40] : memref<5x5x128xf32, #tpu.memory_space<vmem>>, vector<1x1x128xf32>
    %53 = vector.shape_cast %52 : vector<1x1x128xf32> to vector<1x128xf32>
    %c1_41 = arith.constant 1 : index
    %c3_42 = arith.constant 3 : index
    %c0_43 = arith.constant 0 : index
    %54 = vector.load %arg3[%c1_41, %c3_42, %c0_43] : memref<5x5x128xf32, #tpu.memory_space<vmem>>, vector<1x1x128xf32>
    %55 = vector.shape_cast %54 : vector<1x1x128xf32> to vector<1x128xf32>
    %c1_44 = arith.constant 1 : index
    %c4_45 = arith.constant 4 : index
    %c0_46 = arith.constant 0 : index
    %56 = vector.load %arg3[%c1_44, %c4_45, %c0_46] : memref<5x5x128xf32, #tpu.memory_space<vmem>>, vector<1x1x128xf32>
    %57 = vector.shape_cast %56 : vector<1x1x128xf32> to vector<1x128xf32>
    %c2_47 = arith.constant 2 : index
    %c0_48 = arith.constant 0 : index
    %c0_49 = arith.constant 0 : index
    %58 = vector.load %arg3[%c2_47, %c0_48, %c0_49] : memref<5x5x128xf32, #tpu.memory_space<vmem>>, vector<1x1x128xf32>
    %59 = vector.shape_cast %58 : vector<1x1x128xf32> to vector<1x128xf32>
    %c2_50 = arith.constant 2 : index
    %c1_51 = arith.constant 1 : index
    %c0_52 = arith.constant 0 : index
    %60 = vector.load %arg3[%c2_50, %c1_51, %c0_52] : memref<5x5x128xf32, #tpu.memory_space<vmem>>, vector<1x1x128xf32>
    %61 = vector.shape_cast %60 : vector<1x1x128xf32> to vector<1x128xf32>
    %c2_53 = arith.constant 2 : index
    %c2_54 = arith.constant 2 : index
    %c0_55 = arith.constant 0 : index
    %62 = vector.load %arg3[%c2_53, %c2_54, %c0_55] : memref<5x5x128xf32, #tpu.memory_space<vmem>>, vector<1x1x128xf32>
    %63 = vector.shape_cast %62 : vector<1x1x128xf32> to vector<1x128xf32>
    %c2_56 = arith.constant 2 : index
    %c3_57 = arith.constant 3 : index
    %c0_58 = arith.constant 0 : index
    %64 = vector.load %arg3[%c2_56, %c3_57, %c0_58] : memref<5x5x128xf32, #tpu.memory_space<vmem>>, vector<1x1x128xf32>
    %65 = vector.shape_cast %64 : vector<1x1x128xf32> to vector<1x128xf32>
    %c2_59 = arith.constant 2 : index
    %c4_60 = arith.constant 4 : index
    %c0_61 = arith.constant 0 : index
    %66 = vector.load %arg3[%c2_59, %c4_60, %c0_61] : memref<5x5x128xf32, #tpu.memory_space<vmem>>, vector<1x1x128xf32>
    %67 = vector.shape_cast %66 : vector<1x1x128xf32> to vector<1x128xf32>
    %c3_62 = arith.constant 3 : index
    %c0_63 = arith.constant 0 : index
    %c0_64 = arith.constant 0 : index
    %68 = vector.load %arg3[%c3_62, %c0_63, %c0_64] : memref<5x5x128xf32, #tpu.memory_space<vmem>>, vector<1x1x128xf32>
    %69 = vector.shape_cast %68 : vector<1x1x128xf32> to vector<1x128xf32>
    %c3_65 = arith.constant 3 : index
    %c1_66 = arith.constant 1 : index
    %c0_67 = arith.constant 0 : index
    %70 = vector.load %arg3[%c3_65, %c1_66, %c0_67] : memref<5x5x128xf32, #tpu.memory_space<vmem>>, vector<1x1x128xf32>
    %71 = vector.shape_cast %70 : vector<1x1x128xf32> to vector<1x128xf32>
    %c3_68 = arith.constant 3 : index
    %c2_69 = arith.constant 2 : index
    %c0_70 = arith.constant 0 : index
    %72 = vector.load %arg3[%c3_68, %c2_69, %c0_70] : memref<5x5x128xf32, #tpu.memory_space<vmem>>, vector<1x1x128xf32>
    %73 = vector.shape_cast %72 : vector<1x1x128xf32> to vector<1x128xf32>
    %c3_71 = arith.constant 3 : index
    %c3_72 = arith.constant 3 : index
    %c0_73 = arith.constant 0 : index
    %74 = vector.load %arg3[%c3_71, %c3_72, %c0_73] : memref<5x5x128xf32, #tpu.memory_space<vmem>>, vector<1x1x128xf32>
    %75 = vector.shape_cast %74 : vector<1x1x128xf32> to vector<1x128xf32>
    %c3_74 = arith.constant 3 : index
    %c4_75 = arith.constant 4 : index
    %c0_76 = arith.constant 0 : index
    %76 = vector.load %arg3[%c3_74, %c4_75, %c0_76] : memref<5x5x128xf32, #tpu.memory_space<vmem>>, vector<1x1x128xf32>
    %77 = vector.shape_cast %76 : vector<1x1x128xf32> to vector<1x128xf32>
    %c4_77 = arith.constant 4 : index
    %c0_78 = arith.constant 0 : index
    %c0_79 = arith.constant 0 : index
    %78 = vector.load %arg3[%c4_77, %c0_78, %c0_79] : memref<5x5x128xf32, #tpu.memory_space<vmem>>, vector<1x1x128xf32>
    %79 = vector.shape_cast %78 : vector<1x1x128xf32> to vector<1x128xf32>
    %c4_80 = arith.constant 4 : index
    %c1_81 = arith.constant 1 : index
    %c0_82 = arith.constant 0 : index
    %80 = vector.load %arg3[%c4_80, %c1_81, %c0_82] : memref<5x5x128xf32, #tpu.memory_space<vmem>>, vector<1x1x128xf32>
    %81 = vector.shape_cast %80 : vector<1x1x128xf32> to vector<1x128xf32>
    %c4_83 = arith.constant 4 : index
    %c2_84 = arith.constant 2 : index
    %c0_85 = arith.constant 0 : index
    %82 = vector.load %arg3[%c4_83, %c2_84, %c0_85] : memref<5x5x128xf32, #tpu.memory_space<vmem>>, vector<1x1x128xf32>
    %83 = vector.shape_cast %82 : vector<1x1x128xf32> to vector<1x128xf32>
    %c4_86 = arith.constant 4 : index
    %c3_87 = arith.constant 3 : index
    %c0_88 = arith.constant 0 : index
    %84 = vector.load %arg3[%c4_86, %c3_87, %c0_88] : memref<5x5x128xf32, #tpu.memory_space<vmem>>, vector<1x1x128xf32>
    %85 = vector.shape_cast %84 : vector<1x1x128xf32> to vector<1x128xf32>
    %c4_89 = arith.constant 4 : index
    %c4_90 = arith.constant 4 : index
    %c0_91 = arith.constant 0 : index
    %86 = vector.load %arg3[%c4_89, %c4_90, %c0_91] : memref<5x5x128xf32, #tpu.memory_space<vmem>>, vector<1x1x128xf32>
    %87 = vector.shape_cast %86 : vector<1x1x128xf32> to vector<1x128xf32>
    %c0_92 = arith.constant 0 : index
    %c0_93 = arith.constant 0 : index
    %88 = vector.load %arg5[%c0_92, %c0_93] : memref<6x128xf32, #tpu.memory_space<vmem>>, vector<1x128xf32>
    %c1_94 = arith.constant 1 : index
    %c0_95 = arith.constant 0 : index
    %89 = vector.load %arg5[%c1_94, %c0_95] : memref<6x128xf32, #tpu.memory_space<vmem>>, vector<1x128xf32>
    %c2_96 = arith.constant 2 : index
    %c0_97 = arith.constant 0 : index
    %90 = vector.load %arg5[%c2_96, %c0_97] : memref<6x128xf32, #tpu.memory_space<vmem>>, vector<1x128xf32>
    %c3_98 = arith.constant 3 : index
    %c0_99 = arith.constant 0 : index
    %91 = vector.load %arg5[%c3_98, %c0_99] : memref<6x128xf32, #tpu.memory_space<vmem>>, vector<1x128xf32>
    %c4_100 = arith.constant 4 : index
    %c0_101 = arith.constant 0 : index
    %92 = vector.load %arg5[%c4_100, %c0_101] : memref<6x128xf32, #tpu.memory_space<vmem>>, vector<1x128xf32>
    %c5 = arith.constant 5 : index
    %c0_102 = arith.constant 0 : index
    %93 = vector.load %arg5[%c5, %c0_102] : memref<6x128xf32, #tpu.memory_space<vmem>>, vector<1x128xf32>
    %cst = arith.constant 0.000000e+00 : f32
    %94 = vector.broadcast %cst : f32 to vector<8x16x128xf32>
    %95 = vector.extract_strided_slice %30 {offsets = [0, 0, 0], sizes = [8, 16, 128], strides = [1, 1, 1]} : vector<20x16x128xf32> to vector<8x16x128xf32>
    %96 = vector.shape_cast %39 : vector<1x128xf32> to vector<1x1x128xf32>
    %97 = vector.broadcast %96 : vector<1x1x128xf32> to vector<8x16x128xf32>
    %98 = arith.mulf %95, %97 : vector<8x16x128xf32>
    %99 = arith.addf %94, %98 : vector<8x16x128xf32>
    %100 = vector.extract_strided_slice %32 {offsets = [0, 0, 0], sizes = [8, 16, 128], strides = [1, 1, 1]} : vector<20x16x128xf32> to vector<8x16x128xf32>
    %101 = vector.shape_cast %41 : vector<1x128xf32> to vector<1x1x128xf32>
    %102 = vector.broadcast %101 : vector<1x1x128xf32> to vector<8x16x128xf32>
    %103 = arith.mulf %100, %102 : vector<8x16x128xf32>
    %104 = arith.addf %99, %103 : vector<8x16x128xf32>
    %105 = vector.extract_strided_slice %33 {offsets = [0, 0, 0], sizes = [8, 16, 128], strides = [1, 1, 1]} : vector<20x16x128xf32> to vector<8x16x128xf32>
    %106 = vector.shape_cast %43 : vector<1x128xf32> to vector<1x1x128xf32>
    %107 = vector.broadcast %106 : vector<1x1x128xf32> to vector<8x16x128xf32>
    %108 = arith.mulf %105, %107 : vector<8x16x128xf32>
    %109 = arith.addf %104, %108 : vector<8x16x128xf32>
    %110 = vector.extract_strided_slice %35 {offsets = [0, 0, 0], sizes = [8, 16, 128], strides = [1, 1, 1]} : vector<20x16x128xf32> to vector<8x16x128xf32>
    %111 = vector.shape_cast %45 : vector<1x128xf32> to vector<1x1x128xf32>
    %112 = vector.broadcast %111 : vector<1x1x128xf32> to vector<8x16x128xf32>
    %113 = arith.mulf %110, %112 : vector<8x16x128xf32>
    %114 = arith.addf %109, %113 : vector<8x16x128xf32>
    %115 = vector.extract_strided_slice %37 {offsets = [0, 0, 0], sizes = [8, 16, 128], strides = [1, 1, 1]} : vector<20x16x128xf32> to vector<8x16x128xf32>
    %116 = vector.shape_cast %47 : vector<1x128xf32> to vector<1x1x128xf32>
    %117 = vector.broadcast %116 : vector<1x1x128xf32> to vector<8x16x128xf32>
    %118 = arith.mulf %115, %117 : vector<8x16x128xf32>
    %119 = arith.addf %114, %118 : vector<8x16x128xf32>
    %120 = vector.extract_strided_slice %30 {offsets = [1, 0, 0], sizes = [8, 16, 128], strides = [1, 1, 1]} : vector<20x16x128xf32> to vector<8x16x128xf32>
    %121 = vector.shape_cast %49 : vector<1x128xf32> to vector<1x1x128xf32>
    %122 = vector.broadcast %121 : vector<1x1x128xf32> to vector<8x16x128xf32>
    %123 = arith.mulf %120, %122 : vector<8x16x128xf32>
    %124 = arith.addf %119, %123 : vector<8x16x128xf32>
    %125 = vector.extract_strided_slice %32 {offsets = [1, 0, 0], sizes = [8, 16, 128], strides = [1, 1, 1]} : vector<20x16x128xf32> to vector<8x16x128xf32>
    %126 = vector.shape_cast %51 : vector<1x128xf32> to vector<1x1x128xf32>
    %127 = vector.broadcast %126 : vector<1x1x128xf32> to vector<8x16x128xf32>
    %128 = arith.mulf %125, %127 : vector<8x16x128xf32>
    %129 = arith.addf %124, %128 : vector<8x16x128xf32>
    %130 = vector.extract_strided_slice %33 {offsets = [1, 0, 0], sizes = [8, 16, 128], strides = [1, 1, 1]} : vector<20x16x128xf32> to vector<8x16x128xf32>
    %131 = vector.shape_cast %53 : vector<1x128xf32> to vector<1x1x128xf32>
    %132 = vector.broadcast %131 : vector<1x1x128xf32> to vector<8x16x128xf32>
    %133 = arith.mulf %130, %132 : vector<8x16x128xf32>
    %134 = arith.addf %129, %133 : vector<8x16x128xf32>
    %135 = vector.extract_strided_slice %35 {offsets = [1, 0, 0], sizes = [8, 16, 128], strides = [1, 1, 1]} : vector<20x16x128xf32> to vector<8x16x128xf32>
    %136 = vector.shape_cast %55 : vector<1x128xf32> to vector<1x1x128xf32>
    %137 = vector.broadcast %136 : vector<1x1x128xf32> to vector<8x16x128xf32>
    %138 = arith.mulf %135, %137 : vector<8x16x128xf32>
    %139 = arith.addf %134, %138 : vector<8x16x128xf32>
    %140 = vector.extract_strided_slice %37 {offsets = [1, 0, 0], sizes = [8, 16, 128], strides = [1, 1, 1]} : vector<20x16x128xf32> to vector<8x16x128xf32>
    %141 = vector.shape_cast %57 : vector<1x128xf32> to vector<1x1x128xf32>
    %142 = vector.broadcast %141 : vector<1x1x128xf32> to vector<8x16x128xf32>
    %143 = arith.mulf %140, %142 : vector<8x16x128xf32>
    %144 = arith.addf %139, %143 : vector<8x16x128xf32>
    %145 = vector.extract_strided_slice %30 {offsets = [2, 0, 0], sizes = [8, 16, 128], strides = [1, 1, 1]} : vector<20x16x128xf32> to vector<8x16x128xf32>
    %146 = vector.shape_cast %59 : vector<1x128xf32> to vector<1x1x128xf32>
    %147 = vector.broadcast %146 : vector<1x1x128xf32> to vector<8x16x128xf32>
    %148 = arith.mulf %145, %147 : vector<8x16x128xf32>
    %149 = arith.addf %144, %148 : vector<8x16x128xf32>
    %150 = vector.extract_strided_slice %32 {offsets = [2, 0, 0], sizes = [8, 16, 128], strides = [1, 1, 1]} : vector<20x16x128xf32> to vector<8x16x128xf32>
    %151 = vector.shape_cast %61 : vector<1x128xf32> to vector<1x1x128xf32>
    %152 = vector.broadcast %151 : vector<1x1x128xf32> to vector<8x16x128xf32>
    %153 = arith.mulf %150, %152 : vector<8x16x128xf32>
    %154 = arith.addf %149, %153 : vector<8x16x128xf32>
    %155 = vector.extract_strided_slice %33 {offsets = [2, 0, 0], sizes = [8, 16, 128], strides = [1, 1, 1]} : vector<20x16x128xf32> to vector<8x16x128xf32>
    %156 = vector.shape_cast %63 : vector<1x128xf32> to vector<1x1x128xf32>
    %157 = vector.broadcast %156 : vector<1x1x128xf32> to vector<8x16x128xf32>
    %158 = arith.mulf %155, %157 : vector<8x16x128xf32>
    %159 = arith.addf %154, %158 : vector<8x16x128xf32>
    %160 = vector.extract_strided_slice %35 {offsets = [2, 0, 0], sizes = [8, 16, 128], strides = [1, 1, 1]} : vector<20x16x128xf32> to vector<8x16x128xf32>
    %161 = vector.shape_cast %65 : vector<1x128xf32> to vector<1x1x128xf32>
    %162 = vector.broadcast %161 : vector<1x1x128xf32> to vector<8x16x128xf32>
    %163 = arith.mulf %160, %162 : vector<8x16x128xf32>
    %164 = arith.addf %159, %163 : vector<8x16x128xf32>
    %165 = vector.extract_strided_slice %37 {offsets = [2, 0, 0], sizes = [8, 16, 128], strides = [1, 1, 1]} : vector<20x16x128xf32> to vector<8x16x128xf32>
    %166 = vector.shape_cast %67 : vector<1x128xf32> to vector<1x1x128xf32>
    %167 = vector.broadcast %166 : vector<1x1x128xf32> to vector<8x16x128xf32>
    %168 = arith.mulf %165, %167 : vector<8x16x128xf32>
    %169 = arith.addf %164, %168 : vector<8x16x128xf32>
    %170 = vector.extract_strided_slice %30 {offsets = [3, 0, 0], sizes = [8, 16, 128], strides = [1, 1, 1]} : vector<20x16x128xf32> to vector<8x16x128xf32>
    %171 = vector.shape_cast %69 : vector<1x128xf32> to vector<1x1x128xf32>
    %172 = vector.broadcast %171 : vector<1x1x128xf32> to vector<8x16x128xf32>
    %173 = arith.mulf %170, %172 : vector<8x16x128xf32>
    %174 = arith.addf %169, %173 : vector<8x16x128xf32>
    %175 = vector.extract_strided_slice %32 {offsets = [3, 0, 0], sizes = [8, 16, 128], strides = [1, 1, 1]} : vector<20x16x128xf32> to vector<8x16x128xf32>
    %176 = vector.shape_cast %71 : vector<1x128xf32> to vector<1x1x128xf32>
    %177 = vector.broadcast %176 : vector<1x1x128xf32> to vector<8x16x128xf32>
    %178 = arith.mulf %175, %177 : vector<8x16x128xf32>
    %179 = arith.addf %174, %178 : vector<8x16x128xf32>
    %180 = vector.extract_strided_slice %33 {offsets = [3, 0, 0], sizes = [8, 16, 128], strides = [1, 1, 1]} : vector<20x16x128xf32> to vector<8x16x128xf32>
    %181 = vector.shape_cast %73 : vector<1x128xf32> to vector<1x1x128xf32>
    %182 = vector.broadcast %181 : vector<1x1x128xf32> to vector<8x16x128xf32>
    %183 = arith.mulf %180, %182 : vector<8x16x128xf32>
    %184 = arith.addf %179, %183 : vector<8x16x128xf32>
    %185 = vector.extract_strided_slice %35 {offsets = [3, 0, 0], sizes = [8, 16, 128], strides = [1, 1, 1]} : vector<20x16x128xf32> to vector<8x16x128xf32>
    %186 = vector.shape_cast %75 : vector<1x128xf32> to vector<1x1x128xf32>
    %187 = vector.broadcast %186 : vector<1x1x128xf32> to vector<8x16x128xf32>
    %188 = arith.mulf %185, %187 : vector<8x16x128xf32>
    %189 = arith.addf %184, %188 : vector<8x16x128xf32>
    %190 = vector.extract_strided_slice %37 {offsets = [3, 0, 0], sizes = [8, 16, 128], strides = [1, 1, 1]} : vector<20x16x128xf32> to vector<8x16x128xf32>
    %191 = vector.shape_cast %77 : vector<1x128xf32> to vector<1x1x128xf32>
    %192 = vector.broadcast %191 : vector<1x1x128xf32> to vector<8x16x128xf32>
    %193 = arith.mulf %190, %192 : vector<8x16x128xf32>
    %194 = arith.addf %189, %193 : vector<8x16x128xf32>
    %195 = vector.extract_strided_slice %30 {offsets = [4, 0, 0], sizes = [8, 16, 128], strides = [1, 1, 1]} : vector<20x16x128xf32> to vector<8x16x128xf32>
    %196 = vector.shape_cast %79 : vector<1x128xf32> to vector<1x1x128xf32>
    %197 = vector.broadcast %196 : vector<1x1x128xf32> to vector<8x16x128xf32>
    %198 = arith.mulf %195, %197 : vector<8x16x128xf32>
    %199 = arith.addf %194, %198 : vector<8x16x128xf32>
    %200 = vector.extract_strided_slice %32 {offsets = [4, 0, 0], sizes = [8, 16, 128], strides = [1, 1, 1]} : vector<20x16x128xf32> to vector<8x16x128xf32>
    %201 = vector.shape_cast %81 : vector<1x128xf32> to vector<1x1x128xf32>
    %202 = vector.broadcast %201 : vector<1x1x128xf32> to vector<8x16x128xf32>
    %203 = arith.mulf %200, %202 : vector<8x16x128xf32>
    %204 = arith.addf %199, %203 : vector<8x16x128xf32>
    %205 = vector.extract_strided_slice %33 {offsets = [4, 0, 0], sizes = [8, 16, 128], strides = [1, 1, 1]} : vector<20x16x128xf32> to vector<8x16x128xf32>
    %206 = vector.shape_cast %83 : vector<1x128xf32> to vector<1x1x128xf32>
    %207 = vector.broadcast %206 : vector<1x1x128xf32> to vector<8x16x128xf32>
    %208 = arith.mulf %205, %207 : vector<8x16x128xf32>
    %209 = arith.addf %204, %208 : vector<8x16x128xf32>
    %210 = vector.extract_strided_slice %35 {offsets = [4, 0, 0], sizes = [8, 16, 128], strides = [1, 1, 1]} : vector<20x16x128xf32> to vector<8x16x128xf32>
    %211 = vector.shape_cast %85 : vector<1x128xf32> to vector<1x1x128xf32>
    %212 = vector.broadcast %211 : vector<1x1x128xf32> to vector<8x16x128xf32>
    %213 = arith.mulf %210, %212 : vector<8x16x128xf32>
    %214 = arith.addf %209, %213 : vector<8x16x128xf32>
    %215 = vector.extract_strided_slice %37 {offsets = [4, 0, 0], sizes = [8, 16, 128], strides = [1, 1, 1]} : vector<20x16x128xf32> to vector<8x16x128xf32>
    %216 = vector.shape_cast %87 : vector<1x128xf32> to vector<1x1x128xf32>
    %217 = vector.broadcast %216 : vector<1x1x128xf32> to vector<8x16x128xf32>
    %218 = arith.mulf %215, %217 : vector<8x16x128xf32>
    %219 = arith.addf %214, %218 : vector<8x16x128xf32>
    %220 = vector.shape_cast %88 : vector<1x128xf32> to vector<1x1x128xf32>
    %221 = vector.broadcast %220 : vector<1x1x128xf32> to vector<8x16x128xf32>
    %222 = arith.addf %219, %221 : vector<8x16x128xf32>
    %cst_103 = arith.constant 5.000000e-01 : f32
    %223 = vector.broadcast %cst_103 : f32 to vector<8x16x128xf32>
    %224 = arith.mulf %223, %222 : vector<8x16x128xf32>
    %cst_104 = arith.constant 0.707106769 : f32
    %225 = vector.broadcast %cst_104 : f32 to vector<8x16x128xf32>
    %226 = arith.mulf %222, %225 : vector<8x16x128xf32>
    %227 = math.erf %226 : vector<8x16x128xf32>
    %cst_105 = arith.constant 1.000000e+00 : f32
    %228 = vector.broadcast %cst_105 : f32 to vector<8x16x128xf32>
    %229 = arith.addf %228, %227 : vector<8x16x128xf32>
    %230 = arith.mulf %224, %229 : vector<8x16x128xf32>
    %231 = vector.shape_cast %89 : vector<1x128xf32> to vector<1x1x128xf32>
    %232 = vector.broadcast %231 : vector<1x1x128xf32> to vector<8x16x128xf32>
    %233 = arith.mulf %230, %232 : vector<8x16x128xf32>
    %234 = vector.shape_cast %90 : vector<1x128xf32> to vector<1x1x128xf32>
    %235 = vector.broadcast %234 : vector<1x1x128xf32> to vector<8x16x128xf32>
    %236 = arith.addf %233, %235 : vector<8x16x128xf32>
    %237 = vector.extract_strided_slice %33 {offsets = [2, 0, 0], sizes = [8, 16, 128], strides = [1, 1, 1]} : vector<20x16x128xf32> to vector<8x16x128xf32>
    %238 = arith.addf %236, %237 : vector<8x16x128xf32>
    %c0_106 = arith.constant 0 : index
    %c0_107 = arith.constant 0 : index
    %c0_108 = arith.constant 0 : index
    %239 = vector.load %arg8[%c0_106, %c0_107, %c0_108] : memref<16x16x128xf32, #tpu.memory_space<vmem>>, vector<8x16x128xf32>
    tpu.vector_store %arg8[%c0_106, %c0_107, %c0_108], %238 {strides = array<i32>} : memref<16x16x128xf32, #tpu.memory_space<vmem>>, vector<8x16x128xf32>,
    %cst_109 = arith.constant 0.000000e+00 : f32
    %240 = vector.broadcast %cst_109 : f32 to vector<8x16x128xf32>
    %241 = vector.extract_strided_slice %30 {offsets = [8, 0, 0], sizes = [8, 16, 128], strides = [1, 1, 1]} : vector<20x16x128xf32> to vector<8x16x128xf32>
    %242 = vector.shape_cast %39 : vector<1x128xf32> to vector<1x1x128xf32>
    %243 = vector.broadcast %242 : vector<1x1x128xf32> to vector<8x16x128xf32>
    %244 = arith.mulf %241, %243 : vector<8x16x128xf32>
    %245 = arith.addf %240, %244 : vector<8x16x128xf32>
    %246 = vector.extract_strided_slice %32 {offsets = [8, 0, 0], sizes = [8, 16, 128], strides = [1, 1, 1]} : vector<20x16x128xf32> to vector<8x16x128xf32>
    %247 = vector.shape_cast %41 : vector<1x128xf32> to vector<1x1x128xf32>
    %248 = vector.broadcast %247 : vector<1x1x128xf32> to vector<8x16x128xf32>
    %249 = arith.mulf %246, %248 : vector<8x16x128xf32>
    %250 = arith.addf %245, %249 : vector<8x16x128xf32>
    %251 = vector.extract_strided_slice %33 {offsets = [8, 0, 0], sizes = [8, 16, 128], strides = [1, 1, 1]} : vector<20x16x128xf32> to vector<8x16x128xf32>
    %252 = vector.shape_cast %43 : vector<1x128xf32> to vector<1x1x128xf32>
    %253 = vector.broadcast %252 : vector<1x1x128xf32> to vector<8x16x128xf32>
    %254 = arith.mulf %251, %253 : vector<8x16x128xf32>
    %255 = arith.addf %250, %254 : vector<8x16x128xf32>
    %256 = vector.extract_strided_slice %35 {offsets = [8, 0, 0], sizes = [8, 16, 128], strides = [1, 1, 1]} : vector<20x16x128xf32> to vector<8x16x128xf32>
    %257 = vector.shape_cast %45 : vector<1x128xf32> to vector<1x1x128xf32>
    %258 = vector.broadcast %257 : vector<1x1x128xf32> to vector<8x16x128xf32>
    %259 = arith.mulf %256, %258 : vector<8x16x128xf32>
    %260 = arith.addf %255, %259 : vector<8x16x128xf32>
    %261 = vector.extract_strided_slice %37 {offsets = [8, 0, 0], sizes = [8, 16, 128], strides = [1, 1, 1]} : vector<20x16x128xf32> to vector<8x16x128xf32>
    %262 = vector.shape_cast %47 : vector<1x128xf32> to vector<1x1x128xf32>
    %263 = vector.broadcast %262 : vector<1x1x128xf32> to vector<8x16x128xf32>
    %264 = arith.mulf %261, %263 : vector<8x16x128xf32>
    %265 = arith.addf %260, %264 : vector<8x16x128xf32>
    %266 = vector.extract_strided_slice %30 {offsets = [9, 0, 0], sizes = [8, 16, 128], strides = [1, 1, 1]} : vector<20x16x128xf32> to vector<8x16x128xf32>
    %267 = vector.shape_cast %49 : vector<1x128xf32> to vector<1x1x128xf32>
    %268 = vector.broadcast %267 : vector<1x1x128xf32> to vector<8x16x128xf32>
    %269 = arith.mulf %266, %268 : vector<8x16x128xf32>
    %270 = arith.addf %265, %269 : vector<8x16x128xf32>
    %271 = vector.extract_strided_slice %32 {offsets = [9, 0, 0], sizes = [8, 16, 128], strides = [1, 1, 1]} : vector<20x16x128xf32> to vector<8x16x128xf32>
    %272 = vector.shape_cast %51 : vector<1x128xf32> to vector<1x1x128xf32>
    %273 = vector.broadcast %272 : vector<1x1x128xf32> to vector<8x16x128xf32>
    %274 = arith.mulf %271, %273 : vector<8x16x128xf32>
    %275 = arith.addf %270, %274 : vector<8x16x128xf32>
    %276 = vector.extract_strided_slice %33 {offsets = [9, 0, 0], sizes = [8, 16, 128], strides = [1, 1, 1]} : vector<20x16x128xf32> to vector<8x16x128xf32>
    %277 = vector.shape_cast %53 : vector<1x128xf32> to vector<1x1x128xf32>
    %278 = vector.broadcast %277 : vector<1x1x128xf32> to vector<8x16x128xf32>
    %279 = arith.mulf %276, %278 : vector<8x16x128xf32>
    %280 = arith.addf %275, %279 : vector<8x16x128xf32>
    %281 = vector.extract_strided_slice %35 {offsets = [9, 0, 0], sizes = [8, 16, 128], strides = [1, 1, 1]} : vector<20x16x128xf32> to vector<8x16x128xf32>
    %282 = vector.shape_cast %55 : vector<1x128xf32> to vector<1x1x128xf32>
    %283 = vector.broadcast %282 : vector<1x1x128xf32> to vector<8x16x128xf32>
    %284 = arith.mulf %281, %283 : vector<8x16x128xf32>
    %285 = arith.addf %280, %284 : vector<8x16x128xf32>
    %286 = vector.extract_strided_slice %37 {offsets = [9, 0, 0], sizes = [8, 16, 128], strides = [1, 1, 1]} : vector<20x16x128xf32> to vector<8x16x128xf32>
    %287 = vector.shape_cast %57 : vector<1x128xf32> to vector<1x1x128xf32>
    %288 = vector.broadcast %287 : vector<1x1x128xf32> to vector<8x16x128xf32>
    %289 = arith.mulf %286, %288 : vector<8x16x128xf32>
    %290 = arith.addf %285, %289 : vector<8x16x128xf32>
    %291 = vector.extract_strided_slice %30 {offsets = [10, 0, 0], sizes = [8, 16, 128], strides = [1, 1, 1]} : vector<20x16x128xf32> to vector<8x16x128xf32>
    %292 = vector.shape_cast %59 : vector<1x128xf32> to vector<1x1x128xf32>
    %293 = vector.broadcast %292 : vector<1x1x128xf32> to vector<8x16x128xf32>
    %294 = arith.mulf %291, %293 : vector<8x16x128xf32>
    %295 = arith.addf %290, %294 : vector<8x16x128xf32>
    %296 = vector.extract_strided_slice %32 {offsets = [10, 0, 0], sizes = [8, 16, 128], strides = [1, 1, 1]} : vector<20x16x128xf32> to vector<8x16x128xf32>
    %297 = vector.shape_cast %61 : vector<1x128xf32> to vector<1x1x128xf32>
    %298 = vector.broadcast %297 : vector<1x1x128xf32> to vector<8x16x128xf32>
    %299 = arith.mulf %296, %298 : vector<8x16x128xf32>
    %300 = arith.addf %295, %299 : vector<8x16x128xf32>
    %301 = vector.extract_strided_slice %33 {offsets = [10, 0, 0], sizes = [8, 16, 128], strides = [1, 1, 1]} : vector<20x16x128xf32> to vector<8x16x128xf32>
    %302 = vector.shape_cast %63 : vector<1x128xf32> to vector<1x1x128xf32>
    %303 = vector.broadcast %302 : vector<1x1x128xf32> to vector<8x16x128xf32>
    %304 = arith.mulf %301, %303 : vector<8x16x128xf32>
    %305 = arith.addf %300, %304 : vector<8x16x128xf32>
    %306 = vector.extract_strided_slice %35 {offsets = [10, 0, 0], sizes = [8, 16, 128], strides = [1, 1, 1]} : vector<20x16x128xf32> to vector<8x16x128xf32>
    %307 = vector.shape_cast %65 : vector<1x128xf32> to vector<1x1x128xf32>
    %308 = vector.broadcast %307 : vector<1x1x128xf32> to vector<8x16x128xf32>
    %309 = arith.mulf %306, %308 : vector<8x16x128xf32>
    %310 = arith.addf %305, %309 : vector<8x16x128xf32>
    %311 = vector.extract_strided_slice %37 {offsets = [10, 0, 0], sizes = [8, 16, 128], strides = [1, 1, 1]} : vector<20x16x128xf32> to vector<8x16x128xf32>
    %312 = vector.shape_cast %67 : vector<1x128xf32> to vector<1x1x128xf32>
    %313 = vector.broadcast %312 : vector<1x1x128xf32> to vector<8x16x128xf32>
    %314 = arith.mulf %311, %313 : vector<8x16x128xf32>
    %315 = arith.addf %310, %314 : vector<8x16x128xf32>
    %316 = vector.extract_strided_slice %30 {offsets = [11, 0, 0], sizes = [8, 16, 128], strides = [1, 1, 1]} : vector<20x16x128xf32> to vector<8x16x128xf32>
    %317 = vector.shape_cast %69 : vector<1x128xf32> to vector<1x1x128xf32>
    %318 = vector.broadcast %317 : vector<1x1x128xf32> to vector<8x16x128xf32>
    %319 = arith.mulf %316, %318 : vector<8x16x128xf32>
    %320 = arith.addf %315, %319 : vector<8x16x128xf32>
    %321 = vector.extract_strided_slice %32 {offsets = [11, 0, 0], sizes = [8, 16, 128], strides = [1, 1, 1]} : vector<20x16x128xf32> to vector<8x16x128xf32>
    %322 = vector.shape_cast %71 : vector<1x128xf32> to vector<1x1x128xf32>
    %323 = vector.broadcast %322 : vector<1x1x128xf32> to vector<8x16x128xf32>
    %324 = arith.mulf %321, %323 : vector<8x16x128xf32>
    %325 = arith.addf %320, %324 : vector<8x16x128xf32>
    %326 = vector.extract_strided_slice %33 {offsets = [11, 0, 0], sizes = [8, 16, 128], strides = [1, 1, 1]} : vector<20x16x128xf32> to vector<8x16x128xf32>
    %327 = vector.shape_cast %73 : vector<1x128xf32> to vector<1x1x128xf32>
    %328 = vector.broadcast %327 : vector<1x1x128xf32> to vector<8x16x128xf32>
    %329 = arith.mulf %326, %328 : vector<8x16x128xf32>
    %330 = arith.addf %325, %329 : vector<8x16x128xf32>
    %331 = vector.extract_strided_slice %35 {offsets = [11, 0, 0], sizes = [8, 16, 128], strides = [1, 1, 1]} : vector<20x16x128xf32> to vector<8x16x128xf32>
    %332 = vector.shape_cast %75 : vector<1x128xf32> to vector<1x1x128xf32>
    %333 = vector.broadcast %332 : vector<1x1x128xf32> to vector<8x16x128xf32>
    %334 = arith.mulf %331, %333 : vector<8x16x128xf32>
    %335 = arith.addf %330, %334 : vector<8x16x128xf32>
    %336 = vector.extract_strided_slice %37 {offsets = [11, 0, 0], sizes = [8, 16, 128], strides = [1, 1, 1]} : vector<20x16x128xf32> to vector<8x16x128xf32>
    %337 = vector.shape_cast %77 : vector<1x128xf32> to vector<1x1x128xf32>
    %338 = vector.broadcast %337 : vector<1x1x128xf32> to vector<8x16x128xf32>
    %339 = arith.mulf %336, %338 : vector<8x16x128xf32>
    %340 = arith.addf %335, %339 : vector<8x16x128xf32>
    %341 = vector.extract_strided_slice %30 {offsets = [12, 0, 0], sizes = [8, 16, 128], strides = [1, 1, 1]} : vector<20x16x128xf32> to vector<8x16x128xf32>
    %342 = vector.shape_cast %79 : vector<1x128xf32> to vector<1x1x128xf32>
    %343 = vector.broadcast %342 : vector<1x1x128xf32> to vector<8x16x128xf32>
    %344 = arith.mulf %341, %343 : vector<8x16x128xf32>
    %345 = arith.addf %340, %344 : vector<8x16x128xf32>
    %346 = vector.extract_strided_slice %32 {offsets = [12, 0, 0], sizes = [8, 16, 128], strides = [1, 1, 1]} : vector<20x16x128xf32> to vector<8x16x128xf32>
    %347 = vector.shape_cast %81 : vector<1x128xf32> to vector<1x1x128xf32>
    %348 = vector.broadcast %347 : vector<1x1x128xf32> to vector<8x16x128xf32>
    %349 = arith.mulf %346, %348 : vector<8x16x128xf32>
    %350 = arith.addf %345, %349 : vector<8x16x128xf32>
    %351 = vector.extract_strided_slice %33 {offsets = [12, 0, 0], sizes = [8, 16, 128], strides = [1, 1, 1]} : vector<20x16x128xf32> to vector<8x16x128xf32>
    %352 = vector.shape_cast %83 : vector<1x128xf32> to vector<1x1x128xf32>
    %353 = vector.broadcast %352 : vector<1x1x128xf32> to vector<8x16x128xf32>
    %354 = arith.mulf %351, %353 : vector<8x16x128xf32>
    %355 = arith.addf %350, %354 : vector<8x16x128xf32>
    %356 = vector.extract_strided_slice %35 {offsets = [12, 0, 0], sizes = [8, 16, 128], strides = [1, 1, 1]} : vector<20x16x128xf32> to vector<8x16x128xf32>
    %357 = vector.shape_cast %85 : vector<1x128xf32> to vector<1x1x128xf32>
    %358 = vector.broadcast %357 : vector<1x1x128xf32> to vector<8x16x128xf32>
    %359 = arith.mulf %356, %358 : vector<8x16x128xf32>
    %360 = arith.addf %355, %359 : vector<8x16x128xf32>
    %361 = vector.extract_strided_slice %37 {offsets = [12, 0, 0], sizes = [8, 16, 128], strides = [1, 1, 1]} : vector<20x16x128xf32> to vector<8x16x128xf32>
    %362 = vector.shape_cast %87 : vector<1x128xf32> to vector<1x1x128xf32>
    %363 = vector.broadcast %362 : vector<1x1x128xf32> to vector<8x16x128xf32>
    %364 = arith.mulf %361, %363 : vector<8x16x128xf32>
    %365 = arith.addf %360, %364 : vector<8x16x128xf32>
    %366 = vector.shape_cast %88 : vector<1x128xf32> to vector<1x1x128xf32>
    %367 = vector.broadcast %366 : vector<1x1x128xf32> to vector<8x16x128xf32>
    %368 = arith.addf %365, %367 : vector<8x16x128xf32>
    %cst_110 = arith.constant 5.000000e-01 : f32
    %369 = vector.broadcast %cst_110 : f32 to vector<8x16x128xf32>
    %370 = arith.mulf %369, %368 : vector<8x16x128xf32>
    %cst_111 = arith.constant 0.707106769 : f32
    %371 = vector.broadcast %cst_111 : f32 to vector<8x16x128xf32>
    %372 = arith.mulf %368, %371 : vector<8x16x128xf32>
    %373 = math.erf %372 : vector<8x16x128xf32>
    %cst_112 = arith.constant 1.000000e+00 : f32
    %374 = vector.broadcast %cst_112 : f32 to vector<8x16x128xf32>
    %375 = arith.addf %374, %373 : vector<8x16x128xf32>
    %376 = arith.mulf %370, %375 : vector<8x16x128xf32>
    %377 = vector.shape_cast %89 : vector<1x128xf32> to vector<1x1x128xf32>
    %378 = vector.broadcast %377 : vector<1x1x128xf32> to vector<8x16x128xf32>
    %379 = arith.mulf %376, %378 : vector<8x16x128xf32>
    %380 = vector.shape_cast %90 : vector<1x128xf32> to vector<1x1x128xf32>
    %381 = vector.broadcast %380 : vector<1x1x128xf32> to vector<8x16x128xf32>
    %382 = arith.addf %379, %381 : vector<8x16x128xf32>
    %383 = vector.extract_strided_slice %33 {offsets = [10, 0, 0], sizes = [8, 16, 128], strides = [1, 1, 1]} : vector<20x16x128xf32> to vector<8x16x128xf32>
    %384 = arith.addf %382, %383 : vector<8x16x128xf32>
    %c8 = arith.constant 8 : index
    %c0_113 = arith.constant 0 : index
    %c0_114 = arith.constant 0 : index
    %385 = vector.load %arg8[%c8, %c0_113, %c0_114] : memref<16x16x128xf32, #tpu.memory_space<vmem>>, vector<8x16x128xf32>
    tpu.vector_store %arg8[%c8, %c0_113, %c0_114], %384 {strides = array<i32>} : memref<16x16x128xf32, #tpu.memory_space<vmem>>, vector<8x16x128xf32>,
    %c0_115 = arith.constant 0 : index
    %c0_116 = arith.constant 0 : index
    %c0_117 = arith.constant 0 : index
    %386 = vector.load %arg8[%c0_115, %c0_116, %c0_117] : memref<16x16x128xf32, #tpu.memory_space<vmem>>, vector<16x16x128xf32>
    %387 = vector.shape_cast %386 : vector<16x16x128xf32> to vector<256x128xf32>
    %c0_118 = arith.constant 0 : index
    %c0_119 = arith.constant 0 : index
    %388 = vector.load %arg4[%c0_118, %c0_119] : memref<128x128xf32, #tpu.memory_space<vmem>>, vector<128x128xf32>
    %cst_120 = arith.constant dense<0.000000e+00> : vector<256x128xf32>
    %389 = tpu.matmul %387, %388, %cst_120 {dimension_numbers = #tpu.dot_dimension_numbers<[1], [0], [0], [1], [0, 0, 1, 1], [], []>} : vector<256x128xf32>, vector<128x128xf32>, vector<256x128xf32> -> vector<256x128xf32>
    %390 = vector.broadcast %91 : vector<1x128xf32> to vector<256x128xf32>
    %391 = arith.addf %389, %390 : vector<256x128xf32>
    %cst_121 = arith.constant 5.000000e-01 : f32
    %392 = vector.broadcast %cst_121 : f32 to vector<256x128xf32>
    %393 = arith.mulf %392, %391 : vector<256x128xf32>
    %cst_122 = arith.constant 0.707106769 : f32
    %394 = vector.broadcast %cst_122 : f32 to vector<256x128xf32>
    %395 = arith.mulf %391, %394 : vector<256x128xf32>
    %396 = math.erf %395 : vector<256x128xf32>
    %cst_123 = arith.constant 1.000000e+00 : f32
    %397 = vector.broadcast %cst_123 : f32 to vector<256x128xf32>
    %398 = arith.addf %397, %396 : vector<256x128xf32>
    %399 = arith.mulf %393, %398 : vector<256x128xf32>
    %400 = vector.broadcast %92 : vector<1x128xf32> to vector<256x128xf32>
    %401 = arith.mulf %399, %400 : vector<256x128xf32>
    %402 = vector.broadcast %93 : vector<1x128xf32> to vector<256x128xf32>
    %403 = arith.addf %401, %402 : vector<256x128xf32>
    %404 = vector.shape_cast %403 : vector<256x128xf32> to vector<16x16x128xf32>
    %c0_124 = arith.constant 0 : index
    %c0_125 = arith.constant 0 : index
    %c0_126 = arith.constant 0 : index
    %c0_127 = arith.constant 0 : index
    %405 = vector.load %arg6[%c0_124, %c0_125, %c0_126, %c0_127] : memref<1x16x16x128xf32, #tpu.memory_space<vmem>>, vector<1x16x16x128xf32>
    %406 = vector.shape_cast %405 : vector<1x16x16x128xf32> to vector<16x16x128xf32>
    %407 = vector.shape_cast %404 : vector<16x16x128xf32> to vector<1x16x16x128xf32>
    tpu.vector_store %arg6[%c0_124, %c0_125, %c0_126, %c0_127], %407 {strides = array<i32>} : memref<1x16x16x128xf32, #tpu.memory_space<vmem>>, vector<1x16x16x128xf32>,
    return
  }
  func.func @transform_1(%arg0: i32, %arg1: i32) -> (i32, i32, i32) {
    %c0_i32 = arith.constant 0 : i32
    %c0_i32_0 = arith.constant 0 : i32
    %c0_i32_1 = arith.constant 0 : i32
    %c0_i32_2 = arith.constant 0 : i32
    return %c0_i32, %c0_i32_0, %c0_i32_1 : i32, i32, i32
  }
  func.func @transform_2(%arg0: i32, %arg1: i32) -> (i32, i32) {
    %c0_i32 = arith.constant 0 : i32
    %c0_i32_0 = arith.constant 0 : i32
    %c0_i32_1 = arith.constant 0 : i32
    return %c0_i32, %c0_i32_0 : i32, i32
  }
  func.func @transform_3(%arg0: i32, %arg1: i32) -> (i32, i32) {
    %c0_i32 = arith.constant 0 : i32
    %c0_i32_0 = arith.constant 0 : i32
    %c0_i32_1 = arith.constant 0 : i32
    return %c0_i32, %c0_i32_0 : i32, i32
  }
  func.func @transform_4(%arg0: i32, %arg1: i32) -> (i32, i32, i32, i32) {
    %c0_i32 = arith.constant 0 : i32
    %c0_i32_0 = arith.constant 0 : i32
    %c0_i32_1 = arith.constant 0 : i32
    return %arg0, %arg1, %c0_i32, %c0_i32_0 : i32, i32, i32, i32
  }
}

</mosaic_0001>

<bundles_post_ra>
// kernel: tpu_custom_call.1
= control target key start
LH: loop header
LB: loop body
LE: loop exit
PB: predicated region body
PF: predicated region fallthrough
CT: control target
= control target key end

     0   :  { %s8490_s0 = inlined_call_operand.hbm [shape: f32[2,20,32,128], index: 0, kind: input, shape index: {}]   ;;  %s8491_s1 = inlined_call_operand.hbm [shape: f32[5,5,128], index: 1, kind: input, shape index: {}]   ;;  %s8492_s2 = inlined_call_operand.hbm [shape: f32[128,128], index: 2, kind: input, shape index: {}]   ;;  %s8493_s3 = inlined_call_operand.vmem [shape: f32[6,128], index: 3, kind: input, shape index: {}]   ;;  %s8494_s4 = inlined_call_operand.hbm [shape: f32[2,16,16,128], index: 4, kind: output, shape index: {}]  }
   0x1   :  { %8799 = sst [smem:[#allocation118_spill]] %s8491_s1 }
   0x2   :  { %8800 = sst [smem:[#allocation119_spill]] %s8492_s2 }
   0x3   :  { %9 = vsyncpa [#allocation6], 0 }
   0x4   :  { %10 = vsyncpa [#allocation9], 0 }
   0x5   :  { %11 = vsyncpa [#allocation7], 0 }
   0x6   :  { %13 = vsyncpa [#allocation7 + $0x1], 0  ;;  %s4307_s15 = smov 0   ;;  %s4309_s16 = smov 0  }
   0x7   :  { %s4311_s17 = smov 0   ;;  %s4313_s18 = smov 0  }
   0x8   :  { %s4315_s19 = smov 0   ;;  %s4317_s20 = smov 0  }
   0x9 LB: > { %8801 = sst [smem:[#allocation23_spill]] %s4268_s19  ;;  %s3508_s21 = sadd.s32 4294967295, %s4272_s20   ;;  %s4272_s20 = sphi %s4317_s20, %s19_s20   ;;  %s4268_s19 = sphi %s4315_s19, %s9447_s19   ;;  %s4264_s18 = sphi %s4313_s18, %s9446_s18   ;;  %s4260_s17 = sphi %s4311_s17, %s9450_s17   ;;  %s4256_s16 = sphi %s4309_s16, %s9449_s16   ;;  %s4252_s15 = sphi %s4307_s15, %s9448_s15  }
   0xa   : > { %s3509_s22 = sadd.s32 4294967294, %s4272_s20   ;;  %s31_s23 = sadd.s32 1, %s4268_s19 }
   0xb   : > { %s103_s24 = sadd.s32 1, %s4260_s17  ;;  %p33_p0 = scmp.ge.s32.totalorder %s31_s23, 2 }
   0xc   : > { %p113_p1 = scmp.ne.s32.totalorder %s4260_s17, %s4256_s16  ;;  %p114_p2 = scmp.eq.s32.totalorder %s3508_s21, 1 }
   0xd   : > { %p119_p3 = scmp.ne.s32.totalorder %s4256_s16, %s4252_s15  ;;  %s9452_s23 = smov (%p33_p0, %s31_s23), 0 }
   0xe   : > { %8802 = sst [smem:[#allocation24_spill]] %s9452_s23  ;;  %p4347_p4 = por %p114_p2, %p113_p1 }
   0xf   : > { %p120_p5 = scmp.eq.s32.totalorder %s3509_s22, 1  ;;  %s98_s26 = ssub.s32 %s4268_s19, %s9452_s23 }
  0x10   : > { %s8803_s25 = scalar_select %p4347_p4, 1, 0 }
  0x11   : > { %p3510_p6 = scmp.ge.s32.totalorder %s4272_s20, 1  ;;  %p101_p7 = scmp.eq.s32.totalorder %s98_s26, 0 }
  0x12   : > { %p4354_p8 = por %p120_p5, %p119_p3  ;;  %p127_p9 = scmp.lt.s32.totalorder %s4272_s20, 3 }
  0x13   : > { %s4360_s28 = scalar_select %p101_p7, %s4260_s17, %s103_s24  }
  0x14   : > { %s8804_s27 = scalar_select %p4354_p8, 1, 0 }
  0x15   : > { %p4362_p10 = pnand %p3510_p6, %p127_p9  ;;  %p4366_p11 = scmp.eq.s32.totalorder %s3508_s21, 0 }
  0x16   : > { %s4274_s5 = smov [#allocation5]   ;;  %s4275_s8 = smov [#allocation8]  }
  0x17   : > { %s8805_s29 = scalar_select %p4362_p10, 1, 0 }
  0x18   : > { %s8806_s30 = scalar_select %p4366_p11, 1, 0 }
  0x19   : > { %p3750_p12 = pneg %p4362_p10  ;;  %s139_s6 = sshll.u32 %s4274_s5, 4  ;;  %s140_s6 = int_to_ptr.vmem [resolvable:$true] %s139_s6 }
  0x1a   : > { %s152_s9 = sshll.u32 %s4275_s8, 4  ;;  %s8808_s1 = sld [smem:[#allocation118_spill]]  ;;  %s4378_s9 = int_to_ptr.vmem [resolvable:$true] %s152_s9 }
  0x1b   : > { %p4374_p13 = pnand %p4366_p11, %p3750_p12 }
  0x1d   : > { %p4075_p1 = pneg %p4374_p13 }
  0x20   : > { %s4073_s12 = scalar_lea.hbm %s8808_s1, 640 }
  0x21   : > { %p4074_p0 = scmp.ne.s32.totalorder %s8808_s1, %s4073_s12  ;;  %p4080_p5 = scmp.lt.u32.totalorder %s4073_s12, %s8808_s1 }
  0x23   : > { %p4076_p2 = pnand %p4075_p1, %p4074_p0 }
  0x25   : > { %p4077_p3 = pneg %p4076_p2 }
  0x27   : > { %p4082_p6 = pnand %p4080_p5, %p4077_p3 }
  0x29   : > { %4085 = shalt.err (!%p4082_p6)
}
  0x2a   : > { %s4086_s24 = scalar_lea.vmem %s140_s6, 640  ;;  %p4094_p8 = scmp.lt.s32.totalorder %s140_s6, %s140_s6 }
  0x2b   : > { %p4087_p7 = scmp.ne.s32.totalorder %s140_s6, %s4086_s24  ;;  %p4095_p4 = scmp.lt.s32.totalorder %s4086_s24, %s4086_s24 }
  0x2d   : > { %p4089_p9 = pnand %p4087_p7, %p4075_p1  ;;  %p4096_p11 = por %p4095_p4, %p4094_p8 }
  0x2f   : > { %p4090_p12 = pneg %p4089_p9 }
  0x31   : > { %p4097_p10 = pnand %p4096_p11, %p4090_p12 }
  0x33   : > { %4100 = shalt.err (!%p4097_p10)
}
  0x34   : > { %s4276_s26 = smov 128   ;;  %s4277_s5 = smov 8  }
  0x35   : > { %3753 = dma.hbm_to_vmem [thread:$0]  (!%p4374_p13), %s8808_s1, 640, %s140_s6, [#allocation6], %s4276_s26, %s4276_s26, %s4277_s5  }
  0x36   : > { %s8809_s2 = sld [smem:[#allocation119_spill]] }
  0x3c   : > { %s4101_s13 = scalar_lea.hbm %s8809_s2, 2048 }
  0x3d   : > { %p4102_p0 = scmp.ne.s32.totalorder %s8809_s2, %s4101_s13  ;;  %p4108_p10 = scmp.lt.u32.totalorder %s4101_s13, %s8809_s2 }
  0x3f   : > { %p4104_p4 = pnand %p4102_p0, %p4075_p1 }
  0x41   : > { %p4105_p8 = pneg %p4104_p4 }
  0x43   : > { %p4110_p11 = pnand %p4108_p10, %p4105_p8 }
  0x45   : > { %4113 = shalt.err (!%p4110_p11)
}
  0x46   : > { %s4114_s6 = scalar_lea.vmem %s4378_s9, 2048  ;;  %p4122_p6 = scmp.lt.s32.totalorder %s4378_s9, %s4378_s9 }
  0x47   : > { %p4115_p2 = scmp.ne.s32.totalorder %s4378_s9, %s4114_s6  ;;  %p4123_p7 = scmp.lt.s32.totalorder %s4114_s6, %s4114_s6 }
  0x49   : > { %p4117_p3 = pnand %p4115_p2, %p4075_p1  ;;  %p4124_p9 = por %p4123_p7, %p4122_p6 }
  0x4b   : > { %p4118_p5 = pneg %p4117_p3 }
  0x4d   : > { %p4125_p12 = pnand %p4124_p9, %p4118_p5 }
  0x4f   : > { %4128 = shalt.err (!%p4125_p12)
}
  0x50   : > { %3756 = dma.hbm_to_vmem [thread:$0]  (!%p4374_p13), %s8809_s2, 2048, %s4378_s9, [#allocation9], %s4276_s26, %s4276_s26, %s4277_s5  }
  0x51   : > { %p8810_p0 = scmp.ne.s32.totalorder %s8805_s29, 0 }
  0x53   : > { %171 = sbr.rel (%p8810_p0) target bundleno = 1023 (0x3ff), region = 32 }
  0x5a   : > { %p8811_p4 = scmp.ne.s32.totalorder %s8806_s30, 0 }
  0x5c   : > { %4237 = dma.done.wait (%p8811_p4), [#allocation6], 640  }
  0x5d   : > { %4239 = vsyncadd (%p8811_p4), [#allocation6], 4294966656 }
  0x5e   : > { %4241 = dma.done.wait (%p8811_p4), [#allocation9], 2048  }
  0x5f   : > { %4243 = vsyncadd (%p8811_p4), [#allocation9], 4294965248  ;;  %s8499_s29 = sand.u32 1, %s4256_s16   ;;  %p196_p13 = scmp.lt.s32.totalorder %s4264_s18, 0 }
  0x60   : > { %s4441_s7 = sshll.u32 %s8499_s29, 8  ;;  %s197_s9 = ssub.s32 0, %s4264_s18 }
  0x61   : > { %s3517_s26 = smin.u32 %s4264_s18, %s197_s9  ;;  %p203_p1 = scmp.eq.s32.totalorder %s4264_s18, 0 }
  0x62   : > { %s199_s5 = sand.u32 1, %s3517_s26   ;;  %s4129_s6 = scalar_lea.hbm %s8490_s0, 10240 }
  0x63   : > { %s200_s11 = ssub.s32 0, %s199_s5  ;;  %p4130_p8 = scmp.ne.s32.totalorder %s8490_s0, %s4129_s6 }
  0x64   : > { %s9454_s11 = smov (!%p196_p13, %s200_s11), %s199_s5  ;;  %s8501_s5 = scalar_lea.hbm %s8490_s0, 20480 }
  0x65   : > { %s209_s12 = smul.u32 640, %s9454_s11  ;;  %s211_s21 = scalar_lea.sflag [#allocation4], %s9454_s11 }
  0x66   : > { %p4131_p10 = pnand %p4130_p8, %p203_p1  ;;  %p4134_p2 = scmp.lt.u32.totalorder %s8501_s5, %s4129_s6 }
  0x67   : > { %s4450_s13 = scalar_lea.vmem [#allocation2], %s209_s12  ;;  %p4135_p3 = scmp.lt.u32.totalorder %s4129_s6, %s8490_s0 }
  0x68   : > { %s219_s14 = sshll.u32 %s4450_s13, 4  ;;  %p4132_p11 = pneg %p4131_p10  ;;  %s220_s14 = int_to_ptr.vmem [resolvable:$true] %s219_s14 }
  0x69   : > { %p4136_p5 = por %p4135_p3, %p4134_p2 }
  0x6b   : > { %p4137_p6 = pnand %p4136_p5, %p4132_p11 }
  0x6d   : > { %4140 = shalt.err (!%p4137_p6)  }
  0x6e   : > { %s4141_s22 = scalar_lea.vmem %s220_s14, 10240  ;;  %s4278_s24 = smov [#allocation2]  }
  0x6f   : > { %p4142_p7 = scmp.ne.s32.totalorder %s220_s14, %s4141_s22  ;;  %s4145_s8 = sshll.u32 %s4278_s24, 4  ;;  %s4474_s8 = int_to_ptr.vmem [resolvable:$false] %s4145_s8 }
  0x70   : > { %s8500_s29 = scalar_lea.vmem %s4474_s8, 20480  ;;  %p4148_p0 = scmp.lt.s32.totalorder %s220_s14, %s4474_s8 }
  0x71   : > { %p4143_p9 = pnand %p4142_p7, %p203_p1  ;;  %p4149_p4 = scmp.lt.s32.totalorder %s8500_s29, %s4141_s22 }
  0x73   : > { %p4144_p12 = pneg %p4143_p9  ;;  %p4150_p13 = por %p4149_p4, %p4148_p0 }
  0x75   : > { %p4151_p8 = pnand %p4150_p13, %p4144_p12 }
  0x77   : > { %4154 = shalt.err (!%p4151_p8)  }
  0x78   : > { %3746 = dma.hbm_to_vmem [thread:$0]  (%p203_p1), %s8490_s0, 10240, %s220_s14, %s211_s21 }
  0x79   : > { %s4486_s6 = scalar_lea.vmem [#allocation10], %s4441_s7 }
  0x7a   : > { %4244 = dma.done.wait %s211_s21, 10240 }
  0x7b   : > { %4245 = vsyncadd %s211_s21, 4294957056  ;;  %s256_s10 = sadd.s32 1, %s4264_s18  ;;  %s3450_s9 = smul.u32 10240, %s4264_s18  ;;  %v419_v0 = vlaneseq }
  0x7c   : > { %p4490_p10 = scmp.lt.s32.totalorder %s256_s10, 2  ;;  %s8813_s12 = ssub.s32 1, %s9454_s11 }
  0x7d   : > { %s265_s22 = smul.u32 640, %s8813_s12  ;;  %s3451_s7 = scalar_lea.hbm %s8490_s0, %s3450_s9 }
  0x7e   : > { %s3452_s14 = scalar_lea.hbm %s3451_s7, 10240  ;;  %s8814_s29 = smov %s8813_s12 }
  0x7f   : > { %s266_s30 = scalar_lea.vmem [#allocation2], %s265_s22  ;;  %s267_s5 = scalar_lea.sflag [#allocation4], %s8814_s29 }
  0x80   : > { %s275_s21 = sshll.u32 %s266_s30, 4  ;;  %s4183_s2 = scalar_lea.hbm %s3451_s7, 20480  ;;  %s276_s21 = int_to_ptr.vmem [resolvable:$true] %s275_s21 }
  0x81   : > { %p4156_p1 = scmp.ne.s32.totalorder %s3452_s14, %s4183_s2  ;;  %p4160_p3 = scmp.lt.u32.totalorder %s3452_s14, %s8490_s0 }
  0x82   : > { %s8815_s9 = scalar_lea.hbm %s8490_s0, 20480  ;;  %p4163_p7 = scmp.lt.u32.totalorder %s4183_s2, %s3452_s14 }
  0x83   : > { %p4157_p11 = pnand %p4156_p1, %p4490_p10  ;;  %p4161_p5 = scmp.lt.u32.totalorder %s8815_s9, %s4183_s2 }
  0x85   : > { %p4158_p2 = pneg %p4157_p11  ;;  %p4162_p6 = por %p4161_p5, %p4160_p3 }
  0x87   : > { %p4164_p9 = por %p4163_p7, %p4162_p6 }
  0x89   : > { %p4165_p12 = pnand %p4164_p9, %p4158_p2 }
  0x8b   : > { %4168 = shalt.err (!%p4165_p12)  }
  0x8c   : > { %s4169_s11 = scalar_lea.vmem %s276_s21, 10240  ;;  %p4176_p8 = scmp.lt.s32.totalorder %s276_s21, %s4474_s8 }
  0x8d   : > { %p4170_p0 = scmp.ne.s32.totalorder %s276_s21, %s4169_s11  ;;  %s8816_s23 = scalar_lea.vmem %s4474_s8, 20480 }
  0x8e   : > { %p4177_p1 = scmp.lt.s32.totalorder %s8816_s23, %s4169_s11 }
  0x8f   : > { %p4171_p4 = pnand %p4170_p0, %p4490_p10 }
  0x90   : > { %p4178_p11 = por %p4177_p1, %p4176_p8 }
  0x91   : > { %p4172_p13 = pneg %p4171_p4 }
  0x93   : > { %p4179_p3 = pnand %p4178_p11, %p4172_p13 }
  0x95   : > { %4182 = shalt.err (!%p4179_p3)  }
  0x96   : > { %3747 = dma.hbm_to_vmem [thread:$0]  (%p4490_p10), %s3452_s14, 10240, %s276_s21, %s267_s5  ;;  %v2865_v1 = vld [vmem:[#allocation8] sm:$0xff]  ;;  %v2866_v2 = vld [vmem:[#allocation8 + $0x8] sm:$0xff]  ;;  %v2867_v3 = vld [vmem:[#allocation8 + $0x10] sm:$0xff]  ;;  %v4517_v9 = vshrl.u32 %v419_v0, 7 }
  0x97   : > { %v3690_v4 = vpack.c.bf16 %v2866_v2, %v2865_v1  ;;  %v2868_v5 = vld [vmem:[#allocation8 + $0x18] sm:$0xff]  ;;  %v2869_v7 = vld [vmem:[#allocation8 + $0x20] sm:$0xff]  ;;  %v2870_v8 = vld [vmem:[#allocation8 + $0x28] sm:$0xff]  ;;  %s3391_s21 = sshll.u32 %s4486_s6, 4  ;;  %p9444_p2 = scmp.ne.s32.totalorder %s8803_s25, 0  ;;  %s8437_s21 = int_to_ptr.vmem [resolvable:$true] %s3391_s21 }
  0x98   : > { %v3694_v6 = vpack.c.bf16 %v2868_v5, %v2867_v3  ;;  %v2871_v10 = vld [vmem:[#allocation8 + $0x30] sm:$0xff]  ;;  %v2872_v11 = vld [vmem:[#allocation8 + $0x38] sm:$0xff]  ;;  %v2873_v12 = vld [vmem:[#allocation8 + $0x40] sm:$0xff]  ;;  %v3698_v16 = vpack.c.bf16 %v2870_v8, %v2869_v7  ;;  %vm421_vm0 = vcmp.lt.s32.totalorder %v4517_v9, 2  ;;  %vm522_vm1 = vcmp.lt.s32.totalorder %v4517_v9, 1  ;;  %s4184_s23 = scalar_lea.vmem %s8437_s21, 4096 }
  0x99   : > { %3691 = vmatprep.subr.bf16.mxu0 %v3690_v4  ;;  %3722 = vmatprep.subr.bf16.mxu1 %v3690_v4  ;;  %v2874_v13 = vld [vmem:[#allocation8 + $0x48] sm:$0xff]  ;;  %v2875_v14 = vld [vmem:[#allocation8 + $0x50] sm:$0xff]  ;;  %v2876_v15 = vld [vmem:[#allocation8 + $0x58] sm:$0xff]  ;;  %v3702_v23 = vpack.c.bf16 %v2872_v11, %v2871_v10  ;;  %vm623_vm2 = vcmp.lt.s32.totalorder %v4517_v9, 7  ;;  %vm724_vm3 = vcmp.lt.s32.totalorder %v4517_v9, 6  ;;  %p4185_p10 = scmp.ne.s32.totalorder %s8437_s21, %s4184_s23  ;;  %s4279_s2 = smov [#allocation10]  }
  0x9a   : > { %3693 = vmatpush3.bf16.msra.mxu0 %v3690_v4  ;;  %3730 = vmatpush3.bf16.msra.mxu1 %v3690_v4  ;;  %v2877_v17 = vld [vmem:[#allocation8 + $0x60] sm:$0xff]  ;;  %v2878_v18 = vld [vmem:[#allocation8 + $0x68] sm:$0xff]  ;;  %v2879_v19 = vld [vmem:[#allocation8 + $0x70] sm:$0xff]  ;;  %v4538_v29 = vpack.c.bf16 %v2874_v13, %v2873_v12  ;;  %v4549_v35 = vpack.c.bf16 %v2876_v15, %v2875_v14  ;;  %s4188_s19 = sshll.u32 %s4279_s2, 4  ;;  %s4189_s19 = int_to_ptr.vmem [resolvable:$false] %s4188_s19 }
  0x9b   : > { %3695 = vmatprep.subr.bf16.mxu0 %v3694_v6  ;;  %3723 = vmatprep.subr.bf16.mxu1 %v3694_v6  ;;  %v4520_v20 = vld [vmem:[%s4450_s13] sm:$0xff]  ;;  %v4523_v21 = vld [vmem:[%s4450_s13 + $0x8] sm:$0xff]  ;;  %v4526_v22 = vld [vmem:[%s4450_s13 + $0x10] sm:$0xff]  ;;  %v4551_v36 = vpack.c.bf16 %v2878_v18, %v2877_v17  ;;  %p4186_p5 = pnand %p4185_p10, %p9444_p2  ;;  %s4190_s5 = scalar_lea.vmem %s4189_s19, 8192 }
  0x9c   : > { %v2880_v24 = vld [vmem:[#allocation8 + $0x78] sm:$0xff]  ;;  %v4533_v26 = vld [vmem:[%s4450_s13 + $0x28] sm:$0xff]  ;;  %v379_v27 = vrot.slane %v4523_v21, 6  ;;  %v399_v28 = vrot.slane %v4526_v22, 6  ;;  %v4541_v30 = vld [vmem:[%s4450_s13 + $0x30] sm:$0xff]  ;;  %v359_v32 = vrot.slane %v4520_v20, 6  ;;  %p4191_p7 = scmp.lt.s32.totalorder %s8437_s21, %s4189_s19  ;;  %p4192_p9 = scmp.lt.s32.totalorder %s4190_s5, %s4184_s23 }
  0x9d   : > { %v4530_v25 = vld [vmem:[%s4450_s13 + $0x20] sm:$0xff]  ;;  %v380_v34 = vrot.slane %v4533_v26, 6  ;;  %v4554_v37 = vld [vmem:[%s4450_s13 + $0x48] sm:$0xff]  ;;  %v4557_v38 = vld [vmem:[%s4450_s13 + $0x50] sm:$0xff]  ;;  %v400_v40 = vrot.slane %v4541_v30, 6  ;;  %v4565_v42 = vpack.c.bf16 %v2880_v24, %v2879_v19  ;;  %v462_v53 = vrot.slane %v4520_v20, 7  ;;  %p4187_p6 = pneg %p4186_p5 }
  0x9e   : > { %3697 = vmatpush3.bf16.msra.mxu0 %v3694_v6  ;;  %3731 = vmatpush3.bf16.msra.mxu1 %v3694_v6  ;;  %v4544_v31 = vld [vmem:[%s4450_s13 + $0x40] sm:$0xff]  ;;  %v360_v33 = vrot.slane %v4530_v25, 6  ;;  %8817 = vst [vmem:[#allocation25_spill] sm:$0xff] %v4557_v38  ;;  %v4563_v41 = vsel %vm421_vm0, %v379_v27, %v399_v28  ;;  %v4568_v43 = vld [vmem:[%s4450_s13 + $0x68] sm:$0xff]  ;;  %v381_v46 = vrot.slane %v4554_v37, 6  ;;  %v401_v47 = vrot.slane %v4557_v38, 6  ;;  %p4193_p12 = por %p4192_p9, %p4191_p7 }
  0x9f   : > { %3699 = vmatprep.subr.bf16.mxu0 %v3698_v16  ;;  %3724 = vmatprep.subr.bf16.mxu1 %v3698_v16  ;;  %v291_v39 = vld [vmem:[%s4450_s13 + $0x60] sm:$0xff]  ;;  %8818 = vst [vmem:[#allocation26_spill] sm:$0xff] %v4568_v43  ;;  %v361_v45 = vrot.slane %v4544_v31, 6  ;;  %v4577_v48 = vld [vmem:[%s4450_s13 + $0x88] sm:$0xff]  ;;  %v8514_v51 = vrot.slane %v4568_v43, 6  ;;  %v4583_v52 = vsel %vm421_vm0, %v380_v34, %v400_v40  ;;  %v4593_v57 = vsel %vm421_vm0, %v359_v32, %v379_v27  ;;  %v4662_v20 = vld [vmem:[%s4450_s13 + $0x18] sm:$0xff] }
  0xa0   : > { %v4571_v44 = vld [vmem:[%s4450_s13 + $0x80] sm:$0xff]  ;;  %8819 = vst [vmem:[#allocation27_spill] sm:$0xff] %v4577_v48  ;;  %v362_v50 = vrot.slane %v291_v39, 6  ;;  %v4587_v54 = vld [vmem:[%s4450_s13 + $0xa8] sm:$0xff]  ;;  %v8513_v56 = vrot.slane %v4577_v48, 6  ;;  %v4597_v58 = vsel %vm421_vm0, %v360_v33, %v380_v34  ;;  %v4603_v61 = vsel %vm421_vm0, %v381_v46, %v401_v47  ;;  %v4691_v40 = vld [vmem:[%s4450_s13 + $0x90] sm:$0xff]  ;;  %p4194_p0 = pnand %p4193_p12, %p4187_p6 }
  0xa1   : > { %v299_v49 = vld [vmem:[%s4450_s13 + $0xa0] sm:$0xff]  ;;  %8820 = vst [vmem:[#allocation28_spill] sm:$0xff] %v4587_v54  ;;  %v363_v55 = vrot.slane %v4571_v44, 6  ;;  %v8504_v60 = vrot.slane %v4587_v54, 6  ;;  %v463_v62 = vrot.slane %v4530_v25, 7  ;;  %v4608_v63 = vsel %vm421_vm0, %v361_v45, %v381_v46  ;;  %8824 = vst [vmem:[#allocation32_spill] sm:$0xff] %v4691_v40 }
  0xa2   : > { %3701 = vmatpush3.bf16.msra.mxu0 %v3698_v16  ;;  %3732 = vmatpush3.bf16.msra.mxu1 %v3698_v16  ;;  %v364_v59 = vrot.slane %v299_v49, 6  ;;  %v464_v0 = vrot.slane %v4544_v31, 7  ;;  %v482_v1 = vrot.slane %v4523_v21, 7  ;;  %v483_v2 = vrot.slane %v4533_v26, 7  ;;  %v4679_v31 = vld [vmem:[%s4450_s13 + $0x70] sm:$0xff] }
  0xa3   : > { %3703 = vmatprep.subr.bf16.mxu0 %v3702_v23  ;;  %3725 = vmatprep.subr.bf16.mxu1 %v3702_v23  ;;  %v4617_v3 = vsel %vm421_vm0, %v362_v50, %v8514_v51  ;;  %v465_v4 = vrot.slane %v291_v39, 7  ;;  %v484_v5 = vrot.slane %v4554_v37, 7  ;;  %v8512_v6 = vrot.slane %v4568_v43, 7  ;;  %8823 = vst [vmem:[#allocation31_spill] sm:$0xff] %v4679_v31 }
  0xa4   : > { %v4625_v7 = vsel %vm421_vm0, %v363_v55, %v8513_v56  ;;  %v502_v8 = vrot.slane %v4526_v22, 7  ;;  %v503_v10 = vrot.slane %v4541_v30, 7  ;;  %v504_v11 = vrot.slane %v4557_v38, 7 }
  0xa5   : > { %v4637_v12 = vsel %vm421_vm0, %v364_v59, %v8504_v60  ;;  %v466_v13 = vrot.slane %v4571_v44, 7  ;;  %v8511_v14 = vrot.slane %v4577_v48, 7  ;;  %v4643_v15 = vsel %vm522_vm1, %v462_v53, %v482_v1 }
  0xa6   : > { %3705 = vmatpush3.bf16.msra.mxu0 %v3702_v23  ;;  %3733 = vmatpush3.bf16.msra.mxu1 %v3702_v23  ;;  %8821 = vst [vmem:[#allocation29_spill] sm:$0xff] %v4637_v12  ;;  %v4647_v16 = vsel %vm522_vm1, %v482_v1, %v502_v8  ;;  %v4651_v17 = vsel %vm522_vm1, %v483_v2, %v503_v10  ;;  %v4665_v23 = vld [vmem:[%s4450_s13 + $0x38] sm:$0xff]  ;;  %v563_v25 = vrot.slane %v4523_v21, 1  ;;  %v564_v27 = vrot.slane %v4533_v26, 1  ;;  %v4727_v8 = vld [vmem:[#allocation5] ss:$0 sm:$0xff] }
  0xa7   : > { %3707 = vmatprep.subr.bf16.mxu0 %v4538_v29  ;;  %3726 = vmatprep.subr.bf16.mxu1 %v4538_v29  ;;  %v4655_v18 = vsel %vm522_vm1, %v463_v62, %v483_v2  ;;  %v4659_v19 = vsel %vm522_vm1, %v464_v0, %v484_v5  ;;  %v4671_v24 = vsel %vm522_vm1, %v465_v4, %v8512_v6  ;;  %v565_v28 = vrot.slane %v4554_v37, 1 }
  0xa8   : > { %8822 = vst [vmem:[#allocation30_spill] sm:$0xff] %v4671_v24  ;;  %v4683_v32 = vsel %vm522_vm1, %v484_v5, %v504_v11  ;;  %v583_v33 = vrot.slane %v4526_v22, 1  ;;  %v584_v34 = vrot.slane %v4541_v30, 1  ;;  %v8505_v39 = vrot.slane %v4557_v38, 1  ;;  %8825 = vst [vmem:[#allocation33_spill] sm:$0xff] %v4727_v8 }
  0xa9   : > { %v566_v44 = vrot.slane %v4568_v43, 1  ;;  %v567_v45 = vrot.slane %v4577_v48, 1  ;;  %v8510_v46 = vrot.slane %v4679_v31, 1  ;;  %v8509_v47 = vrot.slane %v4691_v40, 1 }
  0xaa   : > { %3709 = vmatpush3.bf16.msra.mxu0 %v4538_v29  ;;  %3734 = vmatpush3.bf16.msra.mxu1 %v4538_v29  ;;  %v4697_v29 = vsel %vm522_vm1, %v466_v13, %v8511_v14  ;;  %v603_v49 = vrot.slane %v4662_v20, 1  ;;  %v604_v50 = vrot.slane %v4665_v23, 1  ;;  %v664_v53 = vrot.slane %v4523_v21, 2  ;;  %v4815_v14 = vld [vmem:[#allocation5 + $0x2] ss:$0 sm:$0xff] }
  0xab   : > { %3711 = vmatprep.subr.bf16.mxu0 %v4549_v35  ;;  %3727 = vmatprep.subr.bf16.mxu1 %v4549_v35  ;;  %v4708_v55 = vsel %vm623_vm2, %v563_v25, %v583_v33  ;;  %v4712_v59 = vsel %vm623_vm2, %v564_v27, %v584_v34  ;;  %v4718_v62 = vsel %vm623_vm2, %v565_v28, %v8505_v39  ;;  %v665_v0 = vrot.slane %v4533_v26, 2 }
  0xac   : > { %v666_v1 = vrot.slane %v4554_v37, 2  ;;  %v667_v2 = vrot.slane %v4568_v43, 2  ;;  %v668_v4 = vrot.slane %v4577_v48, 2  ;;  %v684_v5 = vrot.slane %v4526_v22, 2 }
  0xad   : > { %v685_v10 = vrot.slane %v4541_v30, 2  ;;  %v8508_v11 = vrot.slane %v4557_v38, 2  ;;  %v8506_v13 = vrot.slane %v4691_v40, 2  ;;  %v624_v25 = vsel %vm623_vm2, %v583_v33, %v603_v49 }
  0xae   : > { %3713 = vmatpush3.bf16.msra.mxu0 %v4549_v35  ;;  %3735 = vmatpush3.bf16.msra.mxu1 %v4549_v35  ;;  %v8507_v35 = vrot.slane %v4679_v31, 2  ;;  %v4739_v27 = vsel %vm623_vm2, %v584_v34, %v604_v50  ;;  %v4745_v28 = vsel %vm623_vm2, %v566_v44, %v8510_v46  ;;  %v4751_v60 = vsel %vm623_vm2, %v567_v45, %v8509_v47  ;;  %v4767_v44 = vld [vmem:[#allocation5 + $0x1] ss:$0 sm:$0xff] }
  0xaf   : > { %3715 = vmatprep.subr.bf16.mxu0 %v4551_v36  ;;  %3728 = vmatprep.subr.bf16.mxu1 %v4551_v36  ;;  %v4755_v39 = vsel %vm724_vm3, %v664_v53, %v684_v5  ;;  %v4759_v33 = vsel %vm724_vm3, %v665_v0, %v685_v10  ;;  %v4765_v34 = vsel %vm724_vm3, %v666_v1, %v8508_v11  ;;  %v705_v46 = vrot.slane %v4665_v23, 2 }
  0xb0   : > { %v804_v45 = vmul.f32 %v4727_v8, %v4593_v57  ;;  %v4777_v49 = vsel %vm724_vm3, %v667_v2, %v8507_v35  ;;  %v4783_v50 = vsel %vm724_vm3, %v668_v4, %v8506_v13  ;;  %v805_v53 = vmul.f32 %v4727_v8, %v4563_v41 }
  0xb1   : > { %v806_v57 = vmul.f32 %v4727_v8, %v4597_v58  ;;  %v807_v0 = vmul.f32 %v4727_v8, %v4583_v52  ;;  %v808_v1 = vmul.f32 %v4727_v8, %v4608_v63  ;;  %v809_v2 = vmul.f32 %v4727_v8, %v4603_v61 }
  0xb2   : > { %3717 = vmatpush3.bf16.msra.mxu0 %v4551_v36  ;;  %3736 = vmatpush3.bf16.msra.mxu1 %v4551_v36  ;;  %v704_v36 = vrot.slane %v4662_v20, 2  ;;  %v810_v41 = vmul.f32 %v4727_v8, %v4617_v3  ;;  %v812_v4 = vmul.f32 %v4727_v8, %v4625_v7  ;;  %v840_v20 = vmul.f32 %v4767_v44, %v4643_v15 }
  0xb3   : > { %3719 = vmatprep.subr.bf16.mxu0 %v4565_v42  ;;  %3729 = vmatprep.subr.bf16.mxu1 %v4565_v42  ;;  %v841_v13 = vmul.f32 %v4767_v44, %v4647_v16  ;;  %v842_v35 = vmul.f32 %v4767_v44, %v4655_v18  ;;  %v843_v11 = vmul.f32 %v4767_v44, %v4651_v17 }
  0xb4   : > { %v844_v47 = vmul.f32 %v4767_v44, %v4659_v19  ;;  %v845_v15 = vmul.f32 %v4767_v44, %v4683_v32  ;;  %v846_v16 = vmul.f32 %v4767_v44, %v4671_v24  ;;  %v848_v6 = vmul.f32 %v4767_v44, %v4697_v29 }
  0xb5   : > { %v856_v56 = vadd.f32 %v840_v20, %v804_v45  ;;  %v857_v51 = vadd.f32 %v841_v13, %v805_v53  ;;  %v858_v54 = vadd.f32 %v842_v35, %v806_v57  ;;  %v859_v40 = vadd.f32 %v843_v11, %v807_v0  ;;  %v4843_v35 = vld [vmem:[#allocation5 + $0x4] ss:$0 sm:$0xff] }
  0xb6   : > { %3721 = vmatpush3.bf16.msra.mxu0 %v4565_v42  ;;  %3737 = vmatpush3.bf16.msra.mxu1 %v4565_v42  ;;  %v860_v31 = vadd.f32 %v844_v47, %v808_v1  ;;  %v4823_v8 = vadd.f32 %v845_v15, %v809_v2  ;;  %v862_v42 = vadd.f32 %v846_v16, %v810_v41  ;;  %v4835_v47 = vld [vmem:[#allocation5 + $0x3] ss:$0 sm:$0xff] }
  0xb7   : > { %v864_v23 = vadd.f32 %v848_v6, %v812_v4  ;;  %v876_v12 = vmul.f32 %v4815_v14, %v4523_v21  ;;  %v877_v38 = vmul.f32 %v4815_v14, %v4526_v22  ;;  %v878_v24 = vmul.f32 %v4815_v14, %v4533_v26 }
  0xb8   : > { %v879_v45 = vmul.f32 %v4815_v14, %v4541_v30  ;;  %v725_v11 = vsel %vm724_vm3, %v684_v5, %v704_v36  ;;  %v880_v6 = vmul.f32 %v4815_v14, %v4554_v37  ;;  %v882_v21 = vmul.f32 %v4815_v14, %v4568_v43 }
  0xb9   : > { %v884_v22 = vmul.f32 %v4815_v14, %v4577_v48  ;;  %v892_v13 = vadd.f32 %v876_v12, %v856_v56  ;;  %v893_v53 = vadd.f32 %v877_v38, %v857_v51  ;;  %v894_v57 = vadd.f32 %v878_v24, %v858_v54  ;;  %v4864_v24 = vld [vmem:[#allocation5 + $0x8] ss:$0 sm:$0xff] }
  0xba   : > { %v895_v0 = vadd.f32 %v879_v45, %v859_v40  ;;  %v4847_v5 = vsel %vm724_vm3, %v685_v10, %v705_v46  ;;  %v896_v36 = vadd.f32 %v880_v6, %v860_v31  ;;  %v898_v1 = vadd.f32 %v882_v21, %v862_v42 }
  0xbb   : > { %v900_v2 = vadd.f32 %v884_v22, %v864_v23  ;;  %v912_v41 = vmul.f32 %v4835_v47, %v4708_v55  ;;  %v913_v4 = vmul.f32 %v4835_v47, %v624_v25  ;;  %v914_v20 = vmul.f32 %v4835_v47, %v4712_v59 }
  0xbc   : > { %v915_v38 = vmul.f32 %v4835_v47, %v4739_v27  ;;  %v916_v51 = vmul.f32 %v4835_v47, %v4718_v62  ;;  %v918_v54 = vmul.f32 %v4835_v47, %v4745_v28  ;;  %v920_v56 = vmul.f32 %v4835_v47, %v4751_v60 }
  0xbd   : > { %v948_v12 = vmul.f32 %v4843_v35, %v4755_v39  ;;  %v928_v31 = vadd.f32 %v912_v41, %v892_v13  ;;  %v929_v40 = vadd.f32 %v913_v4, %v893_v53  ;;  %v930_v46 = vadd.f32 %v914_v20, %v894_v57  ;;  %v4880_v13 = vld [vmem:[%s4450_s13 + $0x100] sm:$0xff]  ;;  %v4882_v53 = vld [vmem:[#allocation5 + $0x9] ss:$0 sm:$0xff] }
  0xbe   : > { %v931_v55 = vadd.f32 %v915_v38, %v895_v0  ;;  %v932_v10 = vadd.f32 %v916_v51, %v896_v36  ;;  %v934_v25 = vadd.f32 %v918_v54, %v898_v1  ;;  %v936_v15 = vadd.f32 %v920_v56, %v900_v2  ;;  %v331_v56 = vld [vmem:[%s4450_s13 + $0x1a0] sm:$0xff] }
  0xbf   : > { %v949_v16 = vmul.f32 %v4843_v35, %v725_v11  ;;  %v950_v42 = vmul.f32 %v4843_v35, %v4759_v33  ;;  %v951_v23 = vmul.f32 %v4843_v35, %v4847_v5  ;;  %v952_v39 = vmul.f32 %v4843_v35, %v4765_v34 }
  0xc0   : > { %v954_v45 = vmul.f32 %v4843_v35, %v4777_v49  ;;  %v956_v6 = vmul.f32 %v4843_v35, %v4783_v50  ;;  %v964_v21 = vadd.f32 %v948_v12, %v928_v31  ;;  %v984_v11 = vmul.f32 %v4864_v24, %v4597_v58  ;;  %v4893_v58 = vld [vmem:[%s4450_s13 + $0x120] sm:$0xff]  ;;  %v4900_v12 = vld [vmem:[#allocation5 + $0xa] ss:$0 sm:$0xff] }
  0xc1   : > { %v965_v22 = vadd.f32 %v949_v16, %v929_v40  ;;  %v966_v57 = vadd.f32 %v950_v42, %v930_v46  ;;  %v967_v0 = vadd.f32 %v951_v23, %v931_v55  ;;  %v968_v36 = vadd.f32 %v952_v39, %v932_v10  ;;  %v8826_v23 = vld [vmem:[#allocation30_spill] sm:$0xff] }
  0xc2   : > { %v970_v1 = vadd.f32 %v954_v45, %v934_v25  ;;  %v4884_v2 = vadd.f32 %v956_v6, %v936_v15  ;;  %v985_v41 = vmul.f32 %v4864_v24, %v4583_v52  ;;  %v986_v4 = vmul.f32 %v4864_v24, %v4608_v63  ;;  %v5095_v15 = vld [vmem:[%s4450_s13 + $0x188] sm:$0xff] }
  0xc3   : > { %v987_v20 = vmul.f32 %v4864_v24, %v4603_v61  ;;  %v988_v38 = vmul.f32 %v4864_v24, %v4617_v3  ;;  %v990_v51 = vmul.f32 %v4864_v24, %v4625_v7  ;;  %v1000_v54 = vadd.f32 %v984_v11, %v964_v21  ;;  %8849 = vst [vmem:[#allocation53_spill] sm:$0xff] %v5095_v15 }
  0xc4   : > { %v1001_v52 = vadd.f32 %v985_v41, %v965_v22  ;;  %v1002_v31 = vadd.f32 %v986_v4, %v966_v57  ;;  %v1020_v46 = vmul.f32 %v4882_v53, %v4655_v18  ;;  %v1021_v25 = vmul.f32 %v4882_v53, %v4651_v17  ;;  %v4915_v18 = vld [vmem:[#allocation5 + $0xb] ss:$0 sm:$0xff] }
  0xc5   : > { %v1003_v40 = vadd.f32 %v987_v20, %v967_v0  ;;  %v1004_v55 = vadd.f32 %v988_v38, %v968_v36  ;;  %v1006_v10 = vadd.f32 %v990_v51, %v970_v1  ;;  %v1022_v16 = vmul.f32 %v4882_v53, %v4659_v19  ;;  %v8827_v1 = vld [vmem:[#allocation25_spill] sm:$0xff] }
  0xc6   : > { %v1023_v42 = vmul.f32 %v4882_v53, %v4683_v32  ;;  %v1024_v39 = vmul.f32 %v4882_v53, %v8826_v23  ;;  %v1026_v45 = vmul.f32 %v4882_v53, %v4697_v29  ;;  %v1036_v6 = vadd.f32 %v1020_v46, %v1000_v54  ;;  %v4933_v38 = vld [vmem:[#allocation5 + $0xc] ss:$0 sm:$0xff] }
  0xc7   : > { %v1037_v21 = vadd.f32 %v1021_v25, %v1001_v52  ;;  %v1056_v17 = vmul.f32 %v4900_v12, %v4533_v26  ;;  %v1057_v22 = vmul.f32 %v4900_v12, %v4541_v30  ;;  %v1038_v11 = vadd.f32 %v1022_v16, %v1002_v31  ;;  %v8828_v31 = vld [vmem:[#allocation29_spill] sm:$0xff]  ;;  %v4943_v25 = vld [vmem:[#allocation5 + $0x10] ss:$0 sm:$0xff] }
  0xc8   : > { %v4921_v57 = vadd.f32 %v1023_v42, %v1003_v40  ;;  %v1040_v0 = vadd.f32 %v1024_v39, %v1004_v55  ;;  %v1042_v36 = vadd.f32 %v1026_v45, %v1006_v10  ;;  %v4925_v41 = vmul.f32 %v4815_v14, %v8827_v1 }
  0xc9   : > { %v1058_v4 = vmul.f32 %v4900_v12, %v4554_v37  ;;  %v1060_v20 = vmul.f32 %v4900_v12, %v4568_v43  ;;  %v1062_v26 = vmul.f32 %v4900_v12, %v4577_v48  ;;  %v1072_v30 = vadd.f32 %v1056_v17, %v1036_v6 }
  0xca   : > { %v1073_v51 = vadd.f32 %v1057_v22, %v1037_v21  ;;  %v1092_v54 = vmul.f32 %v4915_v18, %v4712_v59  ;;  %v1093_v52 = vmul.f32 %v4915_v18, %v4739_v27  ;;  %v4941_v40 = vmul.f32 %v4864_v24, %v8828_v31 }
  0xcb   : > { %v1074_v46 = vadd.f32 %v1058_v4, %v1038_v11  ;;  %v1076_v55 = vadd.f32 %v1060_v20, %v1040_v0  ;;  %v1078_v10 = vadd.f32 %v1062_v26, %v1042_v36  ;;  %v1094_v16 = vmul.f32 %v4915_v18, %v4718_v62  ;;  %v4959_v36 = vld [vmem:[#allocation5 + $0x11] ss:$0 sm:$0xff] }
  0xcc   : > { %v1096_v42 = vmul.f32 %v4915_v18, %v4745_v28  ;;  %v1098_v59 = vmul.f32 %v4915_v18, %v4751_v60  ;;  %v1108_v39 = vadd.f32 %v1092_v54, %v1072_v30  ;;  %v1109_v27 = vadd.f32 %v1093_v52, %v1073_v51  ;;  %v4969_v52 = vld [vmem:[#allocation5 + $0x12] ss:$0 sm:$0xff] }
  0xcd   : > { %v1128_v45 = vmul.f32 %v4933_v38, %v4759_v33  ;;  %v1129_v6 = vmul.f32 %v4933_v38, %v4847_v5  ;;  %v1130_v21 = vmul.f32 %v4933_v38, %v4765_v34  ;;  %v1110_v17 = vadd.f32 %v1094_v16, %v1074_v46 }
  0xce   : > { %v1112_v22 = vadd.f32 %v1096_v42, %v1076_v55  ;;  %v1114_v11 = vadd.f32 %v1098_v59, %v1078_v10  ;;  %v1132_v0 = vmul.f32 %v4933_v38, %v4777_v49  ;;  %v1134_v4 = vmul.f32 %v4933_v38, %v4783_v50  ;;  %v4975_v42 = vld [vmem:[#allocation5 + $0x13] ss:$0 sm:$0xff] }
  0xcf   : > { %v1144_v20 = vadd.f32 %v1128_v45, %v1108_v39  ;;  %v1145_v26 = vadd.f32 %v1129_v6, %v1109_v27  ;;  %v1164_v33 = vmul.f32 %v4943_v25, %v4608_v63  ;;  %v1146_v5 = vadd.f32 %v1130_v21, %v1110_v17  ;;  %v4981_v27 = vld [vmem:[#allocation5 + $0x14] ss:$0 sm:$0xff] }
  0xd0   : > { %v1148_v30 = vadd.f32 %v1132_v0, %v1112_v22  ;;  %v1165_v51 = vmul.f32 %v4943_v25, %v4603_v61  ;;  %v1166_v54 = vmul.f32 %v4943_v25, %v4617_v3  ;;  %v1059_v46 = vmul.f32 %v4900_v12, %v8827_v1  ;;  %8829 = vst [vmem:[#allocation30_spill] sm:$0xff] %v4981_v27  ;;  %v4995_v0 = vld [vmem:[#allocation5 + $0x18] ss:$0 sm:$0xff] }
  0xd1   : > { %v1150_v55 = vadd.f32 %v1134_v4, %v1114_v11  ;;  %v1168_v10 = vmul.f32 %v4943_v25, %v4625_v7  ;;  %v1180_v16 = vadd.f32 %v1164_v33, %v1144_v20  ;;  %v1200_v61 = vmul.f32 %v4959_v36, %v4659_v19  ;;  %8831 = vst [vmem:[#allocation35_spill] sm:$0xff] %v4995_v0 }
  0xd2   : > { %v1181_v63 = vadd.f32 %v1165_v51, %v1145_v26  ;;  %v1182_v59 = vadd.f32 %v1166_v54, %v1146_v5  ;;  %v1201_v39 = vmul.f32 %v4959_v36, %v4683_v32  ;;  %v1170_v45 = vmul.f32 %v4943_v25, %v8828_v31  ;;  %v5002_v5 = vld [vmem:[%s4450_s13 + $0x140] sm:$0xff] }
  0xd3   : > { %v1184_v6 = vadd.f32 %v1168_v10, %v1148_v30  ;;  %v1202_v21 = vmul.f32 %v4959_v36, %v8826_v23  ;;  %v1204_v17 = vmul.f32 %v4959_v36, %v4697_v29  ;;  %v1216_v22 = vadd.f32 %v1200_v61, %v1180_v16  ;;  %v5010_v16 = vld [vmem:[#allocation5 + $0x19] ss:$0 sm:$0xff] }
  0xd4   : > { %v4989_v11 = vadd.f32 %v1201_v39, %v1181_v63  ;;  %v1236_v19 = vmul.f32 %v4969_v52, %v4554_v37  ;;  %v1238_v32 = vmul.f32 %v4969_v52, %v4568_v43  ;;  %v1240_v26 = vmul.f32 %v4969_v52, %v4577_v48  ;;  %8832 = vst [vmem:[#allocation36_spill] sm:$0xff] %v5010_v16 }
  0xd5   : > { %v1218_v4 = vadd.f32 %v1202_v21, %v1182_v59  ;;  %v1220_v20 = vadd.f32 %v1204_v17, %v1184_v6  ;;  %v1272_v33 = vmul.f32 %v4975_v42, %v4718_v62  ;;  %v1274_v51 = vmul.f32 %v4975_v42, %v4745_v28  ;;  %v5023_v17 = vld [vmem:[#allocation5 + $0x1a] ss:$0 sm:$0xff] }
  0xd6   : > { %8830 = vst [vmem:[#allocation34_spill] sm:$0xff] %v4989_v11  ;;  %v1252_v30 = vadd.f32 %v1236_v19, %v1216_v22  ;;  %v1276_v54 = vmul.f32 %v4975_v42, %v4751_v60  ;;  %v1308_v10 = vmul.f32 %v4981_v27, %v4765_v34  ;;  %v1310_v62 = vmul.f32 %v4981_v27, %v4777_v49  ;;  %v5025_v22 = vld [vmem:[#allocation5 + $0x1b] ss:$0 sm:$0xff] }
  0xd7   : > { %v1254_v63 = vadd.f32 %v1238_v32, %v1218_v4  ;;  %v1256_v59 = vadd.f32 %v1240_v26, %v1220_v20  ;;  %v1312_v61 = vmul.f32 %v4981_v27, %v4783_v50  ;;  %v5018_v39 = vadd.f32 %v4925_v41, %v4823_v8  ;;  %8834 = vst [vmem:[#allocation38_spill] sm:$0xff] %v5023_v17  ;;  %v5035_v4 = vld [vmem:[%s4450_s13 + $0x108] sm:$0xff]  ;;  %v5039_v20 = vld [vmem:[#allocation5 + $0x20] ss:$0 sm:$0xff]  ;;  %v5041_v26 = vld [vmem:[#allocation5 + $0x21] ss:$0 sm:$0xff] }
  0xd8   : > { %v1288_v6 = vadd.f32 %v1272_v33, %v1252_v30  ;;  %v1344_v21 = vmul.f32 %v4995_v0, %v4617_v3  ;;  %v369_v34 = vrot.slane %v5002_v5, 6  ;;  %8835 = vst [vmem:[#allocation39_spill] sm:$0xff] %v5025_v22  ;;  %v5029_v19 = vadd.f32 %v4941_v40, %v4884_v2  ;;  %8838 = vst [vmem:[#allocation42_spill] sm:$0xff] %v5035_v4  ;;  %v5037_v3 = vld [vmem:[#allocation5 + $0x1c] ss:$0 sm:$0xff] }
  0xd9   : > { %8833 = vst [vmem:[#allocation37_spill] sm:$0xff] %v5018_v39  ;;  %v5032_v32 = vadd.f32 %v1059_v46, %v4921_v57  ;;  %v1290_v8 = vadd.f32 %v1274_v51, %v1254_v63  ;;  %v1292_v41 = vadd.f32 %v1276_v54, %v1256_v59  ;;  %8839 = vst [vmem:[#allocation43_spill] sm:$0xff] %v5037_v3  ;;  %v5051_v46 = vld [vmem:[#allocation5 + $0x22] ss:$0 sm:$0xff]  ;;  %v5062_v54 = vld [vmem:[%s4450_s13 + $0x128] sm:$0xff]  ;;  %v8530_v39 = vrot.slane %v5095_v15, 6 }
  0xda   : > { %8836 = vst [vmem:[#allocation40_spill] sm:$0xff] %v5029_v19  ;;  %8840 = vst [vmem:[#allocation44_spill] sm:$0xff] %v5039_v20  ;;  %v5043_v33 = vadd.f32 %v1170_v45, %v1150_v55  ;;  %v1324_v2 = vadd.f32 %v1308_v10, %v1288_v6  ;;  %v5047_v57 = vmul.f32 %v4995_v0, %v4625_v7  ;;  %v5065_v10 = vld [vmem:[%s4450_s13 + $0x160] sm:$0xff]  ;;  %v5079_v6 = vld [vmem:[%s4450_s13 + $0x168] sm:$0xff]  ;;  %v8855_v19 = vrot.slane %v4880_v13, 6 }
  0xdb   : > { %8837 = vst [vmem:[#allocation41_spill] sm:$0xff] %v5032_v32  ;;  %8841 = vst [vmem:[#allocation45_spill] sm:$0xff] %v5041_v26  ;;  %v1380_v40 = vmul.f32 %v5010_v16, %v8826_v23  ;;  %v5053_v30 = vadd.f32 %v1310_v62, %v1290_v8  ;;  %v1328_v51 = vadd.f32 %v1312_v61, %v1292_v41  ;;  %v5076_v61 = vld [vmem:[%s4450_s13 + $0x148] sm:$0xff]  ;;  %v5082_v8 = vld [vmem:[%s4450_s13 + $0x180] sm:$0xff]  ;;  %v372_v32 = vrot.slane %v331_v56, 6 }
  0xdc   : > { %8842 = vst [vmem:[#allocation46_spill] sm:$0xff] %v5043_v33  ;;  %8843 = vst [vmem:[#allocation47_spill] sm:$0xff] %v5047_v57  ;;  %v1348_v55 = vmul.f32 %v4995_v0, %v8828_v31  ;;  %v5059_v45 = vmul.f32 %v5010_v16, %v4697_v29  ;;  %v1360_v23 = vadd.f32 %v1344_v21, %v1324_v2  ;;  %v5103_v33 = vld [vmem:[#allocation5 + $0x24] ss:$0 sm:$0xff]  ;;  %v8529_v31 = vrot.slane %v5079_v6, 6 }
  0xdd   : > { %8844 = vst [vmem:[#allocation48_spill] sm:$0xff] %v5051_v46  ;;  %8845 = vst [vmem:[#allocation49_spill] sm:$0xff] %v5053_v30  ;;  %v1416_v63 = vmul.f32 %v5023_v17, %v4568_v43  ;;  %v1452_v59 = vmul.f32 %v5025_v22, %v4745_v28  ;;  %v5073_v62 = vmul.f32 %v5025_v22, %v4751_v60  ;;  %v371_v30 = vrot.slane %v5082_v8, 6  ;;  %v8883_v43 = vld [vmem:[#allocation33_spill] sm:$0xff] }
  0xde   : > { %8846 = vst [vmem:[#allocation50_spill] sm:$0xff] %v5059_v45  ;;  %v1488_v41 = vmul.f32 %v5037_v3, %v4777_v49  ;;  %v5088_v21 = vmul.f32 %v5037_v3, %v4783_v50  ;;  %v1524_v28 = vmul.f32 %v5039_v20, %v4625_v7  ;;  %v1560_v2 = vmul.f32 %v5041_v26, %v4697_v29  ;;  %v5101_v45 = vld [vmem:[#allocation5 + $0x23] ss:$0 sm:$0xff] }
  0xdf   : > { %8847 = vst [vmem:[#allocation51_spill] sm:$0xff] %v5073_v62  ;;  %v5099_v62 = vld [vmem:[%s4450_s13 + $0x1a8] sm:$0xff]  ;;  %8851 = vst [vmem:[#allocation55_spill] sm:$0xff] %v5101_v45  ;;  %v1396_v49 = vadd.f32 %v1380_v40, %v1360_v23  ;;  %v1596_v57 = vmul.f32 %v5051_v46, %v4577_v48  ;;  %v5115_v23 = vadd.f32 %v1348_v55, %v1328_v51  ;;  %v8854_v29 = vrot.slane %v5035_v4, 6 }
  0xe0   : > { %8848 = vst [vmem:[#allocation52_spill] sm:$0xff] %v5088_v21  ;;  %8850 = vst [vmem:[#allocation54_spill] sm:$0xff] %v5099_v62  ;;  %v370_v21 = vrot.slane %v5065_v10, 6  ;;  %v1632_v1 = vmul.f32 %v5101_v45, %v4751_v60  ;;  %v1668_v7 = vmul.f32 %v5103_v33, %v4783_v50  ;;  %v8858_v51 = vrot.slane %v4893_v58, 6 }
  0xe1   : > { %8852 = vst [vmem:[#allocation56_spill] sm:$0xff] %v5103_v33  ;;  %v1432_v11 = vadd.f32 %v1416_v63, %v1396_v49  ;;  %8853 = vst [vmem:[#allocation57_spill] sm:$0xff] %v5115_v23  ;;  %v5127_v63 = vsel %vm421_vm0, %v8855_v19, %v8854_v29  ;;  %v8857_v49 = vrot.slane %v5062_v54, 6  ;;  %v8860_v60 = vrot.slane %v5076_v61, 6 }
  0xe2   : > { %8856 = vst [vmem:[#allocation58_spill] sm:$0xff] %v5127_v63  ;;  %v470_v40 = vrot.slane %v4880_v13, 7  ;;  %v471_v19 = vrot.slane %v4893_v58, 7  ;;  %v8533_v29 = vrot.slane %v5062_v54, 7  ;;  %v5157_v13 = vsel %vm421_vm0, %v371_v30, %v8530_v39  ;;  %v5171_v30 = vld [vmem:[%s4450_s13 + $0x110] sm:$0xff] }
  0xe3   : > { %v1468_v56 = vadd.f32 %v1452_v59, %v1432_v11  ;;  %v5135_v55 = vsel %vm421_vm0, %v8858_v51, %v8857_v49  ;;  %v5141_v50 = vsel %vm421_vm0, %v369_v34, %v8860_v60  ;;  %v5148_v11 = vsel %vm421_vm0, %v370_v21, %v8529_v31  ;;  %8865 = vst [vmem:[#allocation63_spill] sm:$0xff] %v5171_v30 }
  0xe4   : > { %8859 = vst [vmem:[#allocation59_spill] sm:$0xff] %v5135_v55  ;;  %8861 = vst [vmem:[#allocation60_spill] sm:$0xff] %v5141_v50  ;;  %v8531_v59 = vrot.slane %v5035_v4, 7  ;;  %v8863_v34 = vrot.slane %v5099_v62, 6  ;;  %v472_v58 = vrot.slane %v5002_v5, 7  ;;  %v473_v51 = vrot.slane %v5065_v10, 7 }
  0xe5   : > { %8862 = vst [vmem:[#allocation61_spill] sm:$0xff] %v5148_v11  ;;  %v1504_v49 = vadd.f32 %v1488_v41, %v1468_v56  ;;  %v474_v60 = vrot.slane %v5082_v8, 7  ;;  %v5182_v10 = vld [vmem:[%s4450_s13 + $0x150] sm:$0xff]  ;;  %v572_v56 = vrot.slane %v5062_v54, 1  ;;  %v8872_v33 = vrot.slane %v5079_v6, 7 }
  0xe6   : > { %v5163_v21 = vsel %vm421_vm0, %v372_v32, %v8863_v34  ;;  %v5178_v5 = vsel %vm522_vm1, %v470_v40, %v8531_v59  ;;  %v571_v32 = vrot.slane %v5035_v4, 1  ;;  %8867 = vst [vmem:[#allocation65_spill] sm:$0xff] %v5182_v10  ;;  %v5185_v8 = vld [vmem:[%s4450_s13 + $0x170] sm:$0xff]  ;;  %v574_v34 = vrot.slane %v5079_v6, 1 }
  0xe7   : > { %8864 = vst [vmem:[#allocation62_spill] sm:$0xff] %v5163_v21  ;;  %v1540_v31 = vadd.f32 %v1524_v28, %v1504_v49  ;;  %8866 = vst [vmem:[#allocation64_spill] sm:$0xff] %v5178_v5  ;;  %v5191_v28 = vsel %vm522_vm1, %v471_v19, %v8533_v29  ;;  %v573_v49 = vrot.slane %v5076_v61, 1  ;;  %v5197_v59 = vld [vmem:[%s4450_s13 + $0x190] sm:$0xff]  ;;  %v8870_v19 = vrot.slane %v5076_v61, 7 }
  0xe8   : > { %8868 = vst [vmem:[#allocation66_spill] sm:$0xff] %v5185_v8  ;;  %8869 = vst [vmem:[#allocation67_spill] sm:$0xff] %v5191_v28  ;;  %v5203_v62 = vld [vmem:[%s4450_s13 + $0x130] sm:$0xff]  ;;  %v8874_v23 = vrot.slane %v5095_v15, 7  ;;  %v1872_v46 = vmul.f32 %v8883_v43, %v5127_v63  ;;  %v1876_v26 = vmul.f32 %v8883_v43, %v5141_v50  ;;  %v8886_v41 = vrot.slane %v5182_v10, 2 }
  0xe9   : > { %v1576_v40 = vadd.f32 %v1560_v2, %v1540_v31  ;;  %v5209_v29 = vsel %vm522_vm1, %v472_v58, %v8870_v19  ;;  %v5215_v31 = vsel %vm522_vm1, %v473_v51, %v8872_v33  ;;  %v575_v2 = vrot.slane %v5095_v15, 1 }
  0xea   : > { %8871 = vst [vmem:[#allocation68_spill] sm:$0xff] %v5209_v29  ;;  %8873 = vst [vmem:[#allocation69_spill] sm:$0xff] %v5215_v31  ;;  %v5223_v45 = vsel %vm522_vm1, %v474_v60, %v8874_v23  ;;  %v8875_v19 = vrot.slane %v5171_v30, 1  ;;  %v8877_v33 = vrot.slane %v5182_v10, 1  ;;  %v672_v60 = vrot.slane %v5035_v4, 2 }
  0xeb   : > { %v1612_v39 = vadd.f32 %v1596_v57, %v1576_v40  ;;  %v8879_v57 = vrot.slane %v5185_v8, 1  ;;  %v673_v40 = vrot.slane %v5062_v54, 2  ;;  %v1904_v20 = vmul.f32 %v4767_v44, %v5178_v5 }
  0xec   : > { %v5230_v48 = vsel %vm623_vm2, %v571_v32, %v8875_v19  ;;  %v5236_v51 = vsel %vm623_vm2, %v573_v49, %v8877_v33  ;;  %v674_v32 = vrot.slane %v5076_v61, 2  ;;  %v5252_v49 = vld [vmem:[%s8493_s3] ss:$0 sm:$0xff]  ;;  %v8882_v33 = vrot.slane %v5197_v59, 1 }
  0xed   : > { %8876 = vst [vmem:[#allocation70_spill] sm:$0xff] %v5230_v48  ;;  %8878 = vst [vmem:[#allocation71_spill] sm:$0xff] %v5236_v51  ;;  %v5242_v23 = vsel %vm623_vm2, %v574_v34, %v8879_v57  ;;  %v1648_v58 = vadd.f32 %v1632_v1, %v1612_v39  ;;  %v675_v57 = vrot.slane %v5079_v6, 2  ;;  %v676_v1 = vrot.slane %v5095_v15, 2 }
  0xee   : > { %8880 = vst [vmem:[#allocation72_spill] sm:$0xff] %v5242_v23  ;;  %8881 = vst [vmem:[#allocation73_spill] sm:$0xff] %v5252_v49  ;;  %v5258_v34 = vsel %vm623_vm2, %v575_v2, %v8882_v33  ;;  %v8884_v2 = vrot.slane %v5171_v30, 2  ;;  %v1878_v39 = vmul.f32 %v8883_v43, %v5148_v11  ;;  %v5284_v63 = vsel %vm724_vm3, %v674_v32, %v8886_v41 }
  0xef   : > { %v1684_v19 = vadd.f32 %v1668_v7, %v1648_v58  ;;  %v1880_v7 = vmul.f32 %v8883_v43, %v5157_v13  ;;  %8887 = vst [vmem:[#allocation75_spill] sm:$0xff] %v5284_v63  ;;  %v1912_v30 = vmul.f32 %v4767_v44, %v5223_v45  ;;  %v1940_v10 = vmul.f32 %v4815_v14, %v5076_v61 }
  0xf0   : > { %v5273_v33 = vsel %vm724_vm3, %v672_v60, %v8884_v2  ;;  %v1908_v60 = vmul.f32 %v4767_v44, %v5209_v29  ;;  %v1910_v2 = vmul.f32 %v4767_v44, %v5215_v31  ;;  %v8888_v32 = vrot.slane %v5185_v8, 2 }
  0xf1   : > { %8885 = vst [vmem:[#allocation74_spill] sm:$0xff] %v5273_v33  ;;  %v1704_v58 = vadd.f32 %v5252_v49, %v1684_v19  ;;  %v1936_v19 = vmul.f32 %v4815_v14, %v5035_v4  ;;  %v1920_v49 = vadd.f32 %v1904_v20, %v1872_v46  ;;  %v1928_v22 = vadd.f32 %v1912_v30, %v1880_v7 }
  0xf2   : > { %v5302_v5 = vsel %vm724_vm3, %v675_v57, %v8888_v32  ;;  %v1924_v43 = vadd.f32 %v1908_v60, %v1876_v26  ;;  %v1926_v3 = vadd.f32 %v1910_v2, %v1878_v39  ;;  %v1942_v17 = vmul.f32 %v4815_v14, %v5079_v6 }
  0xf3   : > { %v1736_v41 = vmul.f32 0.70710677, %v1704_v58  ;;  %8889 = vst [vmem:[#allocation76_spill] sm:$0xff] %v5302_v5  ;;  %v1944_v4 = vmul.f32 %v4815_v14, %v5095_v15  ;;  %v1952_v16 = vadd.f32 %v1936_v19, %v1920_v49  ;;  %v1968_v8 = vmul.f32 %v4835_v47, %v5230_v48  ;;  %v8917_v48 = vld [vmem:[#allocation39_spill] sm:$0xff] }
  0xf4   : > { %v1956_v0 = vadd.f32 %v1940_v10, %v1924_v43  ;;  %v8890_v27 = vrot.slane %v5197_v59, 2  ;;  %v1958_v26 = vadd.f32 %v1942_v17, %v1926_v3  ;;  %v1972_v30 = vmul.f32 %v4835_v47, %v5236_v51 }
  0xf5   : > { %3820 = verf.f32 %v1736_v41  ;;  %v1960_v46 = vadd.f32 %v1944_v4, %v1928_v22  ;;  %v1974_v57 = vmul.f32 %v4835_v47, %v5242_v23  ;;  %v1976_v43 = vmul.f32 %v4835_v47, %v5258_v34 }
  0xf6   : > { %v5314_v20 = vsel %vm724_vm3, %v676_v1, %v8890_v27  ;;  %v1984_v10 = vadd.f32 %v1968_v8, %v1952_v16  ;;  %v2000_v49 = vmul.f32 %v4843_v35, %v5273_v33  ;;  %v8891_v39 = vrot.slane %v5203_v62, 1 }
  0xf7   : > { %v1988_v17 = vadd.f32 %v1972_v30, %v1956_v0  ;;  %v2004_v22 = vmul.f32 %v4843_v35, %v5284_v63  ;;  %v2006_v4 = vmul.f32 %v4843_v35, %v5302_v5  ;;  %v1990_v3 = vadd.f32 %v1974_v57, %v1958_v26 }
  0xf8   : > { %v5328_v27 = vsel %vm623_vm2, %v572_v56, %v8891_v39  ;;  %v1992_v1 = vadd.f32 %v1976_v43, %v1960_v46  ;;  %v2008_v16 = vmul.f32 %v4843_v35, %v5314_v20  ;;  %v2016_v8 = vadd.f32 %v2000_v49, %v1984_v10 }
  0xf9   : > { %8892 = vst [vmem:[#allocation77_spill] sm:$0xff] %v5328_v27  ;;  %v8893_v7 = vrot.slane %v5203_v62, 2  ;;  %v2020_v56 = vadd.f32 %v2004_v22, %v1988_v17  ;;  %v2032_v0 = vmul.f32 %v4864_v24, %v5135_v55  ;;  %v2036_v2 = vmul.f32 %v4864_v24, %v5148_v11 }
  0xfa   : > { %v5348_v19 = vmul.f32 %v4767_v44, %v5191_v28  ;;  %v2022_v41 = vadd.f32 %v2006_v4, %v1990_v3  ;;  %v2024_v32 = vadd.f32 %v2008_v16, %v1992_v1  ;;  %v2038_v26 = vmul.f32 %v4864_v24, %v5157_v13 }
  0xfb   : > { %v5340_v60 = vsel %vm724_vm3, %v673_v40, %v8893_v7  ;;  %v1720_v46 = vmul.f32 0.5, %v1704_v58  ;;  %v2048_v30 = vadd.f32 %v2032_v0, %v2016_v8  ;;  %v2052_v40 = vadd.f32 %v2036_v2, %v2020_v56 }
  0xfc   : > { %8894 = vst [vmem:[#allocation78_spill] sm:$0xff] %v5340_v60  ;;  %8895 = vst [vmem:[#allocation79_spill] sm:$0xff] %v5348_v19  ;;  %v2064_v57 = vmul.f32 %v4882_v53, %v5191_v28  ;;  %v5356_v43 = vmul.f32 %v4835_v47, %v5328_v27  ;;  %v2054_v10 = vadd.f32 %v2038_v26, %v2022_v41  ;;  %v5381_v26 = vld [vmem:[%s8493_s3 + $0x1] ss:$0 sm:$0xff] }
  0xfd   : > { %v2068_v49 = vmul.f32 %v4882_v53, %v5215_v31  ;;  %v2070_v39 = vmul.f32 %v4882_v53, %v5223_v45  ;;  %v5364_v17 = vmul.f32 %v4843_v35, %v5340_v60  ;;  %v2096_v22 = vmul.f32 %v4900_v12, %v5062_v54  ;;  %8898 = vst [vmem:[#allocation82_spill] sm:$0xff] %v5381_v26 }
  0xfe   : > { %8896 = vst [vmem:[#allocation80_spill] sm:$0xff] %v5356_v43  ;;  %v2080_v58 = vadd.f32 %v2064_v57, %v2048_v30  ;;  %v2100_v4 = vmul.f32 %v4900_v12, %v5079_v6  ;;  %v2102_v8 = vmul.f32 %v4900_v12, %v5095_v15  ;;  %v2128_v7 = vmul.f32 %v4915_v18, %v5328_v27 }
  0xff   : > { %8897 = vst [vmem:[#allocation81_spill] sm:$0xff] %v5364_v17  ;;  %v3821_v3 = vpop.eup %3820  ;;  %v2084_v1 = vadd.f32 %v2068_v49, %v2052_v40  ;;  %v2086_v16 = vadd.f32 %v2070_v39, %v2054_v10  ;;  %v2040_v0 = vmul.f32 %v4864_v24, %v5163_v21  ;;  %v2132_v41 = vmul.f32 %v4915_v18, %v5242_v23 }
 0x100   : > { %v1768_v56 = vadd.f32 1.0, %v3821_v3  ;;  %v2112_v2 = vadd.f32 %v2096_v22, %v2080_v58  ;;  %v2134_v57 = vmul.f32 %v4915_v18, %v5258_v34  ;;  %v2160_v10 = vmul.f32 %v4933_v38, %v5340_v60 }
 0x101   : > { %v2116_v30 = vadd.f32 %v2100_v4, %v2084_v1  ;;  %v2118_v40 = vadd.f32 %v2102_v8, %v2086_v16  ;;  %v5389_v39 = vmul.f32 %v4864_v24, %v5141_v50  ;;  %v2164_v22 = vmul.f32 %v4933_v38, %v5302_v5  ;;  %v5396_v4 = vld [vmem:[%s8493_s3 + $0x2] ss:$0 sm:$0xff] }
 0x102   : > { %v1784_v49 = vmul.f32 %v1768_v56, %v1720_v46  ;;  %v2144_v58 = vadd.f32 %v2128_v7, %v2112_v2  ;;  %8900 = vst [vmem:[#allocation84_spill] sm:$0xff] %v5396_v4  ;;  %v2166_v16 = vmul.f32 %v4933_v38, %v5314_v20  ;;  %v2192_v46 = vmul.f32 %v4943_v25, %v5141_v50 }
 0x103   : > { %8899 = vst [vmem:[#allocation83_spill] sm:$0xff] %v5389_v39  ;;  %v2148_v3 = vadd.f32 %v2132_v41, %v2116_v30  ;;  %v2150_v1 = vadd.f32 %v2134_v57, %v2118_v40  ;;  %v5405_v7 = vmul.f32 %v4882_v53, %v5209_v29  ;;  %v2196_v2 = vmul.f32 %v4943_v25, %v5157_v13  ;;  %v8923_v39 = vld [vmem:[#allocation45_spill] sm:$0xff] }
 0x104   : > { %v1804_v8 = vmul.f32 %v5381_v26, %v1784_v49  ;;  %v2176_v56 = vadd.f32 %v2160_v10, %v2144_v58  ;;  %v5409_v60 = vadd.f32 %v2040_v0, %v2024_v32  ;;  %v2224_v40 = vmul.f32 %v4959_v36, %v5209_v29 }
 0x105   : > { %8901 = vst [vmem:[#allocation85_spill] sm:$0xff] %v5405_v7  ;;  %v2180_v41 = vadd.f32 %v2164_v22, %v2148_v3  ;;  %v2182_v30 = vadd.f32 %v2166_v16, %v2150_v1  ;;  %v2198_v49 = vmul.f32 %v4943_v25, %v5163_v21  ;;  %v2228_v27 = vmul.f32 %v4959_v36, %v5223_v45 }
 0x106   : > { %8902 = vst [vmem:[#allocation86_spill] sm:$0xff] %v5409_v60  ;;  %v1824_v57 = vadd.f32 %v5396_v4, %v1804_v8  ;;  %v2208_v50 = vadd.f32 %v2192_v46, %v2176_v56  ;;  %v5420_v10 = vmul.f32 %v4900_v12, %v5076_v61  ;;  %v2256_v0 = vmul.f32 %v4969_v52, %v5076_v61 }
 0x107   : > { %v2212_v32 = vadd.f32 %v2196_v2, %v2180_v41  ;;  %v2260_v58 = vmul.f32 %v4969_v52, %v5095_v15  ;;  %v5429_v3 = vmul.f32 %v4915_v18, %v5236_v51  ;;  %v2288_v16 = vmul.f32 %v4975_v42, %v5236_v51 }
 0x108   : > { %8903 = vst [vmem:[#allocation87_spill] sm:$0xff] %v5420_v10  ;;  %v1840_v22 = vadd.f32 %v1824_v57, %v4554_v37  ;;  %v2240_v1 = vadd.f32 %v2224_v40, %v2208_v50  ;;  %v5435_v46 = vmul.f32 %v4933_v38, %v5284_v63  ;;  %v5439_v8 = vmul.f32 %v4943_v25, %v5148_v11  ;;  %v8909_v40 = vld [vmem:[#allocation30_spill] sm:$0xff] }
 0x109   : > { %8904 = vst [vmem:[#allocation88_spill] sm:$0xff] %v5429_v3  ;;  %v2244_v56 = vadd.f32 %v2228_v27, %v2212_v32  ;;  %v2292_v37 = vmul.f32 %v4975_v42, %v5258_v34  ;;  %v5443_v2 = vadd.f32 %v2198_v49, %v2182_v30  ;;  %v5447_v50 = vmul.f32 %v4959_v36, %v5215_v31  ;;  %v8912_v32 = vld [vmem:[#allocation35_spill] sm:$0xff] }
 0x10a   : > { %8905 = vst [vmem:[#allocation89_spill] sm:$0xff] %v5435_v46  ;;  %8906 = vst [vmem:[#allocation90_spill] sm:$0xff] %v5439_v8  ;;  %3642 = vmatprep.mubr.f32.mxu0 %v1840_v22  ;;  %v2272_v41 = vadd.f32 %v2256_v0, %v2240_v1  ;;  %v2320_v57 = vmul.f32 %v8909_v40, %v5284_v63  ;;  %v5453_v29 = vmul.f32 %v4975_v42, %v5242_v23  ;;  %v298_v8 = vld [vmem:[%s4450_s13 + $0x98] sm:$0xff] }
 0x10b   : > { %8907 = vst [vmem:[#allocation91_spill] sm:$0xff] %v5443_v2  ;;  %8908 = vst [vmem:[#allocation92_spill] sm:$0xff] %v5447_v50  ;;  %v2276_v51 = vadd.f32 %v2260_v58, %v2244_v56  ;;  %v5457_v27 = vmul.f32 %v8909_v40, %v5302_v5  ;;  %v2324_v30 = vmul.f32 %v8909_v40, %v5314_v20  ;;  %v8914_v56 = vld [vmem:[#allocation36_spill] sm:$0xff]  ;;  %v8921_v46 = vld [vmem:[#allocation31_spill] sm:$0xff]  ;;  %v607_v55 = vrot.slane %v298_v8, 1 }
 0x10c   : > { %8910 = vst [vmem:[#allocation30_spill] sm:$0xff] %v5453_v29  ;;  %v2304_v49 = vadd.f32 %v2288_v16, %v2272_v41  ;;  %v2352_v0 = vmul.f32 %v8912_v32, %v5148_v11  ;;  %v5465_v58 = vmul.f32 %v8912_v32, %v5157_v13  ;;  %v5469_v22 = vmul.f32 %v8912_v32, %v5163_v21  ;;  %v8916_v16 = vld [vmem:[#allocation38_spill] sm:$0xff]  ;;  %v290_v11 = vld [vmem:[%s4450_s13 + $0x58] sm:$0xff] }
 0x10d   : > { %8911 = vst [vmem:[#allocation93_spill] sm:$0xff] %v5457_v27  ;;  %v2308_v1 = vadd.f32 %v2292_v37, %v2276_v51  ;;  %v2384_v63 = vmul.f32 %v8914_v56, %v5215_v31  ;;  %v5475_v28 = vmul.f32 %v8914_v56, %v5223_v45  ;;  %v2416_v41 = vmul.f32 %v8916_v16, %v5079_v6  ;;  %v8919_v51 = vld [vmem:[#allocation43_spill] sm:$0xff]  ;;  %v8925_v2 = vld [vmem:[#allocation26_spill] sm:$0xff] }
 0x10e   : > { %8913 = vst [vmem:[#allocation35_spill] sm:$0xff] %v5465_v58  ;;  %v2336_v33 = vadd.f32 %v2320_v57, %v2304_v49  ;;  %v2448_v58 = vmul.f32 %v8917_v48, %v5242_v23  ;;  %v5484_v27 = vmul.f32 %v8917_v48, %v5258_v34  ;;  %v2480_v37 = vmul.f32 %v8919_v51, %v5302_v5  ;;  %v294_v31 = vld [vmem:[%s4450_s13 + $0x78] sm:$0xff]  ;;  %v8922_v57 = vld [vmem:[#allocation32_spill] sm:$0xff] }
 0x10f   : > { %8915 = vst [vmem:[#allocation36_spill] sm:$0xff] %v5475_v28  ;;  %v5489_v29 = vadd.f32 %v2324_v30, %v2308_v1  ;;  %v8920_v28 = vld [vmem:[#allocation44_spill] sm:$0xff]  ;;  %v402_v3 = vrot.slane %v8921_v46, 6  ;;  %v403_v49 = vrot.slane %v8922_v57, 6  ;;  %v505_v23 = vrot.slane %v8921_v46, 7 }
 0x110   : > { %8918 = vst [vmem:[#allocation38_spill] sm:$0xff] %v5484_v27  ;;  %v2512_v50 = vmul.f32 %v8920_v28, %v5157_v13  ;;  %v2368_v10 = vadd.f32 %v2352_v0, %v2336_v33  ;;  %v506_v7 = vrot.slane %v8922_v57, 7  ;;  %v605_v27 = vrot.slane %v290_v11, 1  ;;  %v8924_v30 = vld [vmem:[#allocation48_spill] sm:$0xff]  ;;  %v8927_v33 = vld [vmem:[#allocation27_spill] sm:$0xff] }
 0x111   : > { %v2544_v5 = vmul.f32 %v8923_v39, %v5223_v45  ;;  %v2576_v1 = vmul.f32 %v8924_v30, %v5095_v15  ;;  %v8926_v17 = vrot.slane %v8925_v2, 6  ;;  %v606_v60 = vrot.slane %v294_v31, 1 }
 0x112   : > { %v2400_v43 = vadd.f32 %v2384_v63, %v2368_v10  ;;  %v8928_v0 = vrot.slane %v8927_v33, 6  ;;  %v8930_v21 = vrot.slane %v8925_v2, 7  ;;  %v8931_v4 = vrot.slane %v8927_v33, 7  ;;  %v8933_v63 = vld [vmem:[#allocation25_spill] sm:$0xff] }
 0x113   : > { %v5506_v13 = vsel %vm421_vm0, %v8926_v17, %v402_v3  ;;  %v8934_v10 = vrot.slane %v8933_v63, 1  ;;  %v8935_v26 = vrot.slane %v8921_v46, 1 }
 0x114   : > { %v5512_v19 = vsel %vm421_vm0, %v8928_v0, %v403_v49  ;;  %v5518_v45 = vsel %vm522_vm1, %v8930_v21, %v505_v23  ;;  %v5524_v17 = vsel %vm522_vm1, %v8931_v4, %v506_v7  ;;  %v706_v49 = vrot.slane %v290_v11, 2  ;;  %v8938_v7 = vld [vmem:[#allocation33_spill] sm:$0xff] }
 0x115   : > { %8929 = vst [vmem:[#allocation39_spill] sm:$0xff] %v5512_v19  ;;  %8932 = vst [vmem:[#allocation43_spill] sm:$0xff] %v5524_v17  ;;  %v5530_v3 = vsel %vm623_vm2, %v8934_v10, %v605_v27  ;;  %v707_v0 = vrot.slane %v294_v31, 2  ;;  %v2432_v2 = vadd.f32 %v2416_v41, %v2400_v43  ;;  %v5536_v21 = vsel %vm623_vm2, %v8935_v26, %v606_v60 }
 0x116   : > { %v8936_v23 = vrot.slane %v8922_v57, 1  ;;  %v811_v33 = vmul.f32 %v8938_v7, %v5506_v13  ;;  %v708_v27 = vrot.slane %v298_v8, 2  ;;  %v8939_v11 = vrot.slane %v8933_v63, 2 }
 0x117   : > { %v813_v60 = vmul.f32 %v8938_v7, %v5512_v19  ;;  %v847_v43 = vmul.f32 %v4767_v44, %v5518_v45  ;;  %v2464_v26 = vadd.f32 %v2448_v58, %v2432_v2  ;;  %v849_v8 = vmul.f32 %v4767_v44, %v5524_v17 }
 0x118   : > { %v5542_v4 = vsel %vm623_vm2, %v8936_v23, %v607_v55  ;;  %v5550_v31 = vsel %vm724_vm3, %v8939_v11, %v706_v49  ;;  %v8940_v55 = vrot.slane %v8921_v46, 2  ;;  %v883_v63 = vmul.f32 %v4815_v14, %v8921_v46  ;;  %v8943_v11 = vld [vmem:[#allocation37_spill] sm:$0xff] }
 0x119   : > { %8937 = vst [vmem:[#allocation44_spill] sm:$0xff] %v5542_v4  ;;  %v863_v10 = vadd.f32 %v847_v43, %v811_v33  ;;  %v885_v49 = vmul.f32 %v4815_v14, %v8922_v57  ;;  %v917_v23 = vmul.f32 %v4835_v47, %v5530_v3  ;;  %v919_v58 = vmul.f32 %v4835_v47, %v5536_v21 }
 0x11a   : > { %v5560_v41 = vsel %vm724_vm3, %v8940_v55, %v707_v0  ;;  %v2496_v2 = vadd.f32 %v2480_v37, %v2464_v26  ;;  %v865_v7 = vadd.f32 %v849_v8, %v813_v60  ;;  %v921_v0 = vmul.f32 %v4835_v47, %v5542_v4  ;;  %v8944_v26 = vld [vmem:[#allocation55_spill] sm:$0xff] }
 0x11b   : > { %v953_v44 = vmul.f32 %v4843_v35, %v5550_v31  ;;  %v8941_v46 = vrot.slane %v8922_v57, 2  ;;  %v899_v14 = vadd.f32 %v883_v63, %v863_v10  ;;  %v933_v43 = vadd.f32 %v917_v23, %v8943_v11 }
 0x11c   : > { %v955_v37 = vmul.f32 %v4843_v35, %v5560_v41  ;;  %v2528_v60 = vadd.f32 %v2512_v50, %v2496_v2  ;;  %v2608_v47 = vmul.f32 %v8944_v26, %v5258_v34  ;;  %v901_v55 = vadd.f32 %v885_v49, %v865_v7  ;;  %v5598_v7 = vld [vmem:[%s4450_s13 + $0x70] sm:$0xff] }
 0x11d   : > { %v5580_v33 = vsel %vm724_vm3, %v8941_v46, %v708_v27  ;;  %v989_v8 = vmul.f32 %v4864_v24, %v5506_v13  ;;  %v935_v57 = vadd.f32 %v919_v58, %v899_v14  ;;  %v969_v15 = vadd.f32 %v953_v44, %v933_v43  ;;  %8945 = vst [vmem:[#allocation32_spill] sm:$0xff] %v5598_v7  ;;  %v5607_v46 = vld [vmem:[%s4450_s13 + $0x90] sm:$0xff]  ;;  %v8948_v43 = vld [vmem:[#allocation41_spill] sm:$0xff] }
 0x11e   : > { %8942 = vst [vmem:[#allocation31_spill] sm:$0xff] %v5580_v33  ;;  %v991_v27 = vmul.f32 %v4864_v24, %v5512_v19  ;;  %v1025_v63 = vmul.f32 %v4882_v53, %v5518_v45  ;;  %v2560_v10 = vadd.f32 %v2544_v5, %v2528_v60  ;;  %v937_v23 = vadd.f32 %v921_v0, %v901_v55  ;;  %v8946_v5 = vld [vmem:[#allocation56_spill] sm:$0xff] }
 0x11f   : > { %v957_v50 = vmul.f32 %v4843_v35, %v5580_v33  ;;  %v1027_v34 = vmul.f32 %v4882_v53, %v5524_v17  ;;  %v971_v49 = vadd.f32 %v955_v37, %v935_v57  ;;  %v1005_v2 = vadd.f32 %v989_v8, %v969_v15  ;;  %8947 = vst [vmem:[#allocation45_spill] sm:$0xff] %v5607_v46 }
 0x120   : > { %v1061_v58 = vmul.f32 %v5598_v7, %v4900_v12  ;;  %v1095_v24 = vmul.f32 %v4915_v18, %v5530_v3  ;;  %v2592_v44 = vadd.f32 %v2576_v1, %v2560_v10  ;;  %v2640_v0 = vmul.f32 %v8946_v5, %v5314_v20 }
 0x121   : > { %v1063_v35 = vmul.f32 %v5607_v46, %v4900_v12  ;;  %v1131_v53 = vmul.f32 %v4933_v38, %v5550_v31  ;;  %v1007_v15 = vadd.f32 %v991_v27, %v971_v49  ;;  %v1041_v14 = vadd.f32 %v1025_v63, %v1005_v2  ;;  %v8953_v2 = vld [vmem:[#allocation73_spill] sm:$0xff] }
 0x122   : > { %v1097_v11 = vmul.f32 %v4915_v18, %v5536_v21  ;;  %v1111_v37 = vadd.f32 %v1095_v24, %v8948_v43  ;;  %v5618_v1 = vadd.f32 %v5469_v22, %v5489_v29  ;;  %v5622_v60 = vmul.f32 %v8919_v51, %v5314_v20  ;;  %v5637_v20 = vld [vmem:[%s4450_s13 + $0x50] sm:$0xff] }
 0x123   : > { %v2624_v12 = vadd.f32 %v2608_v47, %v2592_v44  ;;  %v5624_v55 = vadd.f32 %v957_v50, %v937_v23  ;;  %v1043_v8 = vadd.f32 %v1027_v34, %v1007_v15  ;;  %v1077_v57 = vadd.f32 %v1061_v58, %v1041_v14 }
 0x124   : > { %8949 = vst [vmem:[#allocation48_spill] sm:$0xff] %v5618_v1  ;;  %8950 = vst [vmem:[#allocation26_spill] sm:$0xff] %v5622_v60  ;;  %v1133_v27 = vmul.f32 %v4933_v38, %v5560_v41  ;;  %v5628_v63 = vadd.f32 %v1131_v53, %v1111_v37  ;;  %v1099_v49 = vmul.f32 %v4915_v18, %v5542_v4  ;;  %v8969_v1 = vrot.slane %v5079_v6, 6 }
 0x125   : > { %8951 = vst [vmem:[#allocation27_spill] sm:$0xff] %v5624_v55  ;;  %v2656_v10 = vadd.f32 %v2640_v0, %v2624_v12  ;;  %v5634_v29 = vmul.f32 %v4933_v38, %v5580_v33  ;;  %v1237_v22 = vmul.f32 %v5637_v20, %v4969_v52  ;;  %v1079_v47 = vadd.f32 %v1063_v35, %v1043_v8  ;;  %v8955_v38 = vld [vmem:[#allocation34_spill] sm:$0xff]  ;;  %v5865_v55 = vld [vmem:[#allocation5 + $0x3] ss:$0 sm:$0xff] }
 0x126   : > { %8952 = vst [vmem:[#allocation25_spill] sm:$0xff] %v5628_v63  ;;  %v1113_v23 = vadd.f32 %v1097_v11, %v1077_v57  ;;  %v1169_v50 = vmul.f32 %v4943_v25, %v5512_v19  ;;  %v1273_v34 = vmul.f32 %v4975_v42, %v5530_v3  ;;  %v5648_v18 = vmul.f32 %v4943_v25, %v5506_v13 }
 0x127   : > { %v2672_v58 = vadd.f32 %v8953_v2, %v2656_v10  ;;  %v1253_v24 = vadd.f32 %v1237_v22, %v8955_v38  ;;  %v1309_v44 = vmul.f32 %v8909_v40, %v5550_v31  ;;  %v5655_v35 = vmul.f32 %v4959_v36, %v5518_v45 }
 0x128   : > { %8954 = vst [vmem:[#allocation33_spill] sm:$0xff] %v5648_v18  ;;  %v1149_v0 = vadd.f32 %v1133_v27, %v1113_v23  ;;  %v1205_v53 = vmul.f32 %v4959_v36, %v5524_v17  ;;  %v1241_v3 = vmul.f32 %v5607_v46, %v4969_v52  ;;  %v5663_v25 = vmul.f32 %v4975_v42, %v5536_v21  ;;  %v8960_v23 = vld [vmem:[#allocation65_spill] sm:$0xff] }
 0x129   : > { %8956 = vst [vmem:[#allocation37_spill] sm:$0xff] %v5655_v35  ;;  %v2704_v15 = vmul.f32 0.70710677, %v2672_v58  ;;  %v1289_v14 = vadd.f32 %v1273_v34, %v1253_v24  ;;  %v1345_v31 = vmul.f32 %v8912_v32, %v5506_v13  ;;  %v5667_v11 = vadd.f32 %v1099_v49, %v1079_v47  ;;  %v8959_v49 = vld [vmem:[#allocation63_spill] sm:$0xff]  ;;  %v8961_v34 = vld [vmem:[#allocation66_spill] sm:$0xff] }
 0x12a   : > { %8957 = vst [vmem:[#allocation55_spill] sm:$0xff] %v5663_v25  ;;  %v1185_v43 = vadd.f32 %v1169_v50, %v1149_v0  ;;  %v1277_v37 = vmul.f32 %v4975_v42, %v5542_v4  ;;  %v5673_v36 = vmul.f32 %v8909_v40, %v5560_v41  ;;  %v5677_v52 = vmul.f32 %v8909_v40, %v5580_v33  ;;  %v314_v24 = vld [vmem:[%s4450_s13 + $0x118] sm:$0xff] }
 0x12b   : > { %3822 = verf.f32 %v2704_v15  ;;  %v1325_v12 = vadd.f32 %v1309_v44, %v1289_v14  ;;  %v1381_v8 = vmul.f32 %v8914_v56, %v5518_v45  ;;  %v2688_v32 = vmul.f32 0.5, %v2672_v58  ;;  %v8962_v44 = vld [vmem:[#allocation42_spill] sm:$0xff]  ;;  %v5715_v14 = vld [vmem:[%s4450_s13 + $0x138] sm:$0xff] }
 0x12c   : > { %8958 = vst [vmem:[#allocation56_spill] sm:$0xff] %v5673_v36  ;;  %v1221_v13 = vadd.f32 %v1205_v53, %v1185_v43  ;;  %v1417_v57 = vmul.f32 %v5598_v7, %v8916_v16  ;;  %v1453_v42 = vmul.f32 %v8917_v48, %v5536_v21  ;;  %v1489_v10 = vmul.f32 %v8919_v51, %v5560_v41 }
 0x12d   : > { %v1361_v27 = vadd.f32 %v1345_v31, %v1325_v12  ;;  %v1525_v40 = vmul.f32 %v8920_v28, %v5512_v19  ;;  %v407_v22 = vrot.slane %v8959_v49, 6  ;;  %v1561_v45 = vmul.f32 %v8923_v39, %v5524_v17  ;;  %v322_v31 = vld [vmem:[%s4450_s13 + $0x158] sm:$0xff] }
 0x12e   : > { %v1257_v56 = vadd.f32 %v1241_v3, %v1221_v13  ;;  %v408_v47 = vrot.slane %v5203_v62, 6  ;;  %v409_v50 = vrot.slane %v8960_v23, 6  ;;  %v1597_v41 = vmul.f32 %v5607_v46, %v8924_v30  ;;  %v5722_v13 = vld [vmem:[%s4450_s13 + $0x198] sm:$0xff] }
 0x12f   : > { %v1397_v21 = vadd.f32 %v1381_v8, %v1361_v27  ;;  %v410_v28 = vrot.slane %v8961_v34, 6  ;;  %v411_v58 = vrot.slane %v5197_v59, 6  ;;  %v1633_v38 = vmul.f32 %v8944_v26, %v5542_v4  ;;  %v326_v8 = vld [vmem:[%s4450_s13 + $0x178] sm:$0xff] }
 0x130   : > { %v5702_v39 = vmul.f32 %v8946_v5, %v5580_v33  ;;  %v8963_v0 = vrot.slane %v8962_v44, 6  ;;  %v510_v30 = vrot.slane %v8959_v49, 7  ;;  %v5712_v3 = vadd.f32 %v1277_v37, %v1257_v56  ;;  %v8971_v33 = vld [vmem:[#allocation53_spill] sm:$0xff] }
 0x131   : > { %v1433_v15 = vadd.f32 %v1417_v57, %v1397_v21  ;;  %v511_v43 = vrot.slane %v5203_v62, 7  ;;  %v512_v12 = vrot.slane %v8960_v23, 7  ;;  %v8965_v27 = vrot.slane %v5062_v54, 6 }
 0x132   : > { %v5709_v53 = vsel %vm421_vm0, %v8963_v0, %v407_v22  ;;  %v8967_v37 = vrot.slane %v5076_v61, 6  ;;  %v513_v56 = vrot.slane %v8961_v34, 7  ;;  %v514_v21 = vrot.slane %v5197_v59, 7 }
 0x133   : > { %8964 = vst [vmem:[#allocation41_spill] sm:$0xff] %v5709_v53  ;;  %v5728_v22 = vsel %vm421_vm0, %v8965_v27, %v408_v47  ;;  %v1469_v0 = vadd.f32 %v1453_v42, %v1433_v15  ;;  %v5742_v60 = vsel %vm421_vm0, %v8969_v1, %v410_v28  ;;  %v8972_v47 = vrot.slane %v8971_v33, 6 }
 0x134   : > { %8966 = vst [vmem:[#allocation73_spill] sm:$0xff] %v5728_v22  ;;  %v5734_v57 = vsel %vm421_vm0, %v8967_v37, %v409_v50  ;;  %8970 = vst [vmem:[#allocation63_spill] sm:$0xff] %v5742_v60  ;;  %v611_v4 = vrot.slane %v314_v24, 1  ;;  %v8974_v50 = vrot.slane %v8962_v44, 7  ;;  %v8976_v42 = vrot.slane %v5062_v54, 7 }
 0x135   : > { %8968 = vst [vmem:[#allocation34_spill] sm:$0xff] %v5734_v57  ;;  %v5748_v27 = vsel %vm421_vm0, %v8972_v47, %v411_v58  ;;  %v612_v1 = vrot.slane %v5715_v14, 1  ;;  %v613_v28 = vrot.slane %v322_v31, 1  ;;  %v3823_v36 = vpop.eup %3822  ;;  %v1505_v46 = vadd.f32 %v1489_v10, %v1469_v0 }
 0x136   : > { %8973 = vst [vmem:[#allocation65_spill] sm:$0xff] %v5748_v27  ;;  %v5754_v37 = vsel %vm522_vm1, %v8974_v50, %v510_v30  ;;  %v5760_v15 = vsel %vm522_vm1, %v8976_v42, %v511_v43  ;;  %v8978_v58 = vrot.slane %v5076_v61, 7  ;;  %v614_v47 = vrot.slane %v326_v8, 1 }
 0x137   : > { %8975 = vst [vmem:[#allocation66_spill] sm:$0xff] %v5754_v37  ;;  %8977 = vst [vmem:[#allocation42_spill] sm:$0xff] %v5760_v15  ;;  %v615_v30 = vrot.slane %v5722_v13, 1  ;;  %v2736_v50 = vadd.f32 1.0, %v3823_v36  ;;  %v8980_v54 = vrot.slane %v5079_v6, 7  ;;  %v8982_v42 = vrot.slane %v8971_v33, 7 }
 0x138   : > { %v5767_v44 = vsel %vm522_vm1, %v8978_v58, %v512_v12  ;;  %v712_v0 = vrot.slane %v314_v24, 2  ;;  %v1541_v17 = vadd.f32 %v1525_v40, %v1505_v46  ;;  %v8984_v12 = vrot.slane %v8959_v49, 1 }
 0x139   : > { %8979 = vst [vmem:[#allocation53_spill] sm:$0xff] %v5767_v44  ;;  %v5774_v43 = vsel %vm522_vm1, %v8980_v54, %v513_v56  ;;  %v5780_v10 = vsel %vm522_vm1, %v8982_v42, %v514_v21  ;;  %v8986_v6 = vrot.slane %v5203_v62, 1  ;;  %v8988_v33 = vrot.slane %v8960_v23, 1 }
 0x13a   : > { %8981 = vst [vmem:[#allocation94_spill] sm:$0xff] %v5774_v43  ;;  %8983 = vst [vmem:[#allocation95_spill] sm:$0xff] %v5780_v10  ;;  %v5786_v58 = vsel %vm623_vm2, %v8984_v12, %v611_v4  ;;  %v2752_v24 = vmul.f32 %v2736_v50, %v2688_v32  ;;  %v8990_v46 = vrot.slane %v8961_v34, 1  ;;  %v714_v4 = vrot.slane %v322_v31, 2  ;;  %v8996_v50 = vld [vmem:[#allocation82_spill] sm:$0xff] }
 0x13b   : > { %8985 = vst [vmem:[#allocation96_spill] sm:$0xff] %v5786_v58  ;;  %v5792_v36 = vsel %vm623_vm2, %v8986_v6, %v612_v1  ;;  %v5798_v56 = vsel %vm623_vm2, %v8988_v33, %v613_v28  ;;  %v715_v21 = vrot.slane %v326_v8, 2  ;;  %v1577_v54 = vadd.f32 %v1561_v45, %v1541_v17 }
 0x13c   : > { %8987 = vst [vmem:[#allocation97_spill] sm:$0xff] %v5792_v36  ;;  %8989 = vst [vmem:[#allocation98_spill] sm:$0xff] %v5798_v56  ;;  %v5804_v40 = vsel %vm623_vm2, %v8990_v46, %v614_v47  ;;  %v8992_v42 = vrot.slane %v5197_v59, 1  ;;  %v716_v12 = vrot.slane %v5722_v13, 2  ;;  %v8994_v28 = vrot.slane %v8959_v49, 2  ;;  %v9001_v46 = vld [vmem:[#allocation84_spill] sm:$0xff] }
 0x13d   : > { %8991 = vst [vmem:[#allocation99_spill] sm:$0xff] %v5804_v40  ;;  %v2768_v47 = vmul.f32 %v8996_v50, %v2752_v24  ;;  %v8997_v31 = vrot.slane %v8960_v23, 2  ;;  %v8999_v45 = vrot.slane %v8961_v34, 2  ;;  %v5832_v13 = vld [vmem:[#allocation5] ss:$0 sm:$0xff] }
 0x13e   : > { %v5810_v1 = vsel %vm623_vm2, %v8992_v42, %v615_v30  ;;  %v5817_v32 = vsel %vm724_vm3, %v8994_v28, %v712_v0  ;;  %v1873_v30 = vmul.f32 %v5832_v13, %v5709_v53  ;;  %v1613_v0 = vadd.f32 %v1597_v41, %v1577_v54  ;;  %v5843_v42 = vld [vmem:[#allocation5 + $0x1] ss:$0 sm:$0xff] }
 0x13f   : > { %8993 = vst [vmem:[#allocation100_spill] sm:$0xff] %v5810_v1  ;;  %8995 = vst [vmem:[#allocation101_spill] sm:$0xff] %v5817_v32  ;;  %v5824_v17 = vsel %vm724_vm3, %v8997_v31, %v714_v4  ;;  %v5830_v8 = vsel %vm724_vm3, %v8999_v45, %v715_v21  ;;  %v1877_v6 = vmul.f32 %v5832_v13, %v5734_v57  ;;  %v5853_v45 = vld [vmem:[#allocation5 + $0x2] ss:$0 sm:$0xff] }
 0x140   : > { %8998 = vst [vmem:[#allocation82_spill] sm:$0xff] %v5824_v17  ;;  %9000 = vst [vmem:[#allocation102_spill] sm:$0xff] %v5830_v8  ;;  %v1879_v33 = vmul.f32 %v5832_v13, %v5742_v60  ;;  %v1881_v24 = vmul.f32 %v5832_v13, %v5748_v27  ;;  %v2784_v4 = vadd.f32 %v9001_v46, %v2768_v47 }
 0x141   : > { %v1905_v21 = vmul.f32 %v5843_v42, %v5754_v37  ;;  %v1909_v28 = vmul.f32 %v5843_v42, %v5767_v44  ;;  %v1911_v41 = vmul.f32 %v5843_v42, %v5774_v43  ;;  %v1649_v54 = vadd.f32 %v1633_v38, %v1613_v0 }
 0x142   : > { %v1913_v31 = vmul.f32 %v5843_v42, %v5780_v10  ;;  %v1937_v47 = vmul.f32 %v5853_v45, %v8959_v49  ;;  %v1941_v53 = vmul.f32 %v5853_v45, %v8960_v23  ;;  %v2800_v37 = vadd.f32 %v2784_v4, %v5076_v61 }
 0x143   : > { %v1921_v19 = vadd.f32 %v1905_v21, %v1873_v30  ;;  %v1925_v25 = vadd.f32 %v1909_v28, %v1877_v6  ;;  %v1927_v35 = vadd.f32 %v1911_v41, %v1879_v33  ;;  %v1685_v7 = vadd.f32 %v5702_v39, %v1649_v54 }
 0x144   : > { %v1929_v18 = vadd.f32 %v1913_v31, %v1881_v24  ;;  %v1943_v38 = vmul.f32 %v5853_v45, %v8961_v34  ;;  %v1945_v0 = vmul.f32 %v5853_v45, %v5197_v59  ;;  %3666 = vmatprep.mubr.f32.mxu1 %v2800_v37  ;;  %v1969_v61 = vmul.f32 %v5865_v55, %v5786_v58 }
 0x145   : > { %v1953_v63 = vadd.f32 %v1937_v47, %v1921_v19  ;;  %v1957_v49 = vadd.f32 %v1941_v53, %v1925_v25  ;;  %v1973_v30 = vmul.f32 %v5865_v55, %v5798_v56  ;;  %v1705_v39 = vadd.f32 %v8953_v2, %v1685_v7  ;;  %v5876_v53 = vld [vmem:[#allocation5 + $0x4] ss:$0 sm:$0xff]  ;;  %v5891_v47 = vld [vmem:[#allocation5 + $0x8] ss:$0 sm:$0xff] }
 0x146   : > { %v1959_v6 = vadd.f32 %v1943_v38, %v1927_v35  ;;  %v1961_v33 = vadd.f32 %v1945_v0, %v1929_v18  ;;  %v1975_v24 = vmul.f32 %v5865_v55, %v5804_v40  ;;  %v1977_v37 = vmul.f32 %v5865_v55, %v5810_v1  ;;  %9002 = vst [vmem:[#allocation84_spill] sm:$0xff] %v5876_v53 }
 0x147   : > { %v1985_v19 = vadd.f32 %v1969_v61, %v1953_v63  ;;  %v1989_v25 = vadd.f32 %v1973_v30, %v1957_v49  ;;  %v2001_v4 = vmul.f32 %v5876_v53, %v5817_v32  ;;  %v1737_v21 = vmul.f32 0.70710677, %v1705_v39  ;;  %v5901_v61 = vld [vmem:[#allocation5 + $0x9] ss:$0 sm:$0xff] }
 0x148   : > { %v9003_v28 = vrot.slane %v5197_v59, 2  ;;  %v1991_v2 = vadd.f32 %v1975_v24, %v1959_v6  ;;  %v2005_v18 = vmul.f32 %v5876_v53, %v5824_v17  ;;  %v713_v35 = vrot.slane %v5715_v14, 2 }
 0x149   : > { %v1993_v63 = vadd.f32 %v1977_v37, %v1961_v33  ;;  %v2007_v41 = vmul.f32 %v5876_v53, %v5830_v8  ;;  %v2017_v54 = vadd.f32 %v2001_v4, %v1985_v19  ;;  %3824 = verf.f32 %v1737_v21 }
 0x14a   : > { %v5884_v7 = vsel %vm724_vm3, %v9003_v28, %v716_v12  ;;  %v2021_v31 = vadd.f32 %v2005_v18, %v1989_v25  ;;  %v2033_v38 = vmul.f32 %v5891_v47, %v5728_v22  ;;  %v2037_v12 = vmul.f32 %v5891_v47, %v5742_v60  ;;  %v5909_v25 = vld [vmem:[#allocation5 + $0xa] ss:$0 sm:$0xff] }
 0x14b   : > { %9004 = vst [vmem:[#allocation103_spill] sm:$0xff] %v5884_v7  ;;  %v2009_v0 = vmul.f32 %v5876_v53, %v5884_v7  ;;  %v2023_v49 = vadd.f32 %v2007_v41, %v1991_v2  ;;  %v2039_v14 = vmul.f32 %v5891_v47, %v5748_v27  ;;  %v2065_v30 = vmul.f32 %v5901_v61, %v5760_v15  ;;  %v5917_v41 = vld [vmem:[#allocation5 + $0xb] ss:$0 sm:$0xff]  ;;  %v6151_v15 = vld [vmem:[#allocation5 + $0x24] ss:$0 sm:$0xff] }
 0x14c   : > { %v2049_v6 = vadd.f32 %v2033_v38, %v2017_v54  ;;  %v2053_v33 = vadd.f32 %v2037_v12, %v2021_v31  ;;  %v2069_v24 = vmul.f32 %v5901_v61, %v5774_v43  ;;  %v2071_v37 = vmul.f32 %v5901_v61, %v5780_v10 }
 0x14d   : > { %v2055_v19 = vadd.f32 %v2039_v14, %v2023_v49  ;;  %v2097_v4 = vmul.f32 %v5909_v25, %v5203_v62  ;;  %v2101_v21 = vmul.f32 %v5909_v25, %v8961_v34  ;;  %v2103_v28 = vmul.f32 %v5909_v25, %v5197_v59 }
 0x14e   : > { %v2081_v2 = vadd.f32 %v2065_v30, %v2049_v6  ;;  %v2085_v18 = vadd.f32 %v2069_v24, %v2053_v33  ;;  %v2129_v54 = vmul.f32 %v5917_v41, %v5792_v36  ;;  %v2133_v31 = vmul.f32 %v5917_v41, %v5804_v40  ;;  %v5935_v24 = vld [vmem:[#allocation5 + $0xc] ss:$0 sm:$0xff] }
 0x14f   : > { %v5925_v38 = vadd.f32 %v5634_v29, %v5667_v11  ;;  %v9005_v12 = vrot.slane %v5203_v62, 2  ;;  %v2087_v14 = vadd.f32 %v2071_v37, %v2055_v19  ;;  %v2135_v30 = vmul.f32 %v5917_v41, %v5810_v1  ;;  %9007 = vst [vmem:[#allocation105_spill] sm:$0xff] %v5935_v24 }
 0x150   : > { %v2113_v6 = vadd.f32 %v2097_v4, %v2081_v2  ;;  %v2117_v33 = vadd.f32 %v2101_v21, %v2085_v18  ;;  %v2165_v29 = vmul.f32 %v5935_v24, %v5830_v8  ;;  %v5943_v62 = vadd.f32 %v5677_v52, %v5712_v3  ;;  %v5947_v4 = vld [vmem:[#allocation5 + $0x10] ss:$0 sm:$0xff]  ;;  %v5955_v52 = vld [vmem:[#allocation5 + $0x11] ss:$0 sm:$0xff] }
 0x151   : > { %v5931_v49 = vsel %vm724_vm3, %v9005_v12, %v713_v35  ;;  %v1721_v11 = vmul.f32 0.5, %v1705_v39  ;;  %v5945_v35 = vadd.f32 %v2009_v0, %v1993_v63  ;;  %v2119_v37 = vadd.f32 %v2103_v28, %v2087_v14  ;;  %9010 = vst [vmem:[#allocation108_spill] sm:$0xff] %v5947_v4 }
 0x152   : > { %9006 = vst [vmem:[#allocation104_spill] sm:$0xff] %v5931_v49  ;;  %v2161_v32 = vmul.f32 %v5935_v24, %v5931_v49  ;;  %9008 = vst [vmem:[#allocation106_spill] sm:$0xff] %v5943_v62  ;;  %v2145_v19 = vadd.f32 %v2129_v54, %v2113_v6  ;;  %v2149_v12 = vadd.f32 %v2133_v31, %v2117_v33  ;;  %v5961_v54 = vld [vmem:[#allocation5 + $0x12] ss:$0 sm:$0xff]  ;;  %v5967_v6 = vld [vmem:[#allocation5 + $0x13] ss:$0 sm:$0xff] }
 0x153   : > { %9009 = vst [vmem:[#allocation107_spill] sm:$0xff] %v5945_v35  ;;  %v2193_v21 = vmul.f32 %v5947_v4, %v5734_v57  ;;  %v2197_v2 = vmul.f32 %v5947_v4, %v5748_v27  ;;  %v2151_v18 = vadd.f32 %v2135_v30, %v2119_v37  ;;  %v2167_v58 = vmul.f32 %v5935_v24, %v5884_v7  ;;  %v3825_v63 = vpop.eup %3824  ;;  %v5973_v62 = vld [vmem:[#allocation5 + $0x14] ss:$0 sm:$0xff]  ;;  %v5985_v35 = vld [vmem:[#allocation5 + $0x19] ss:$0 sm:$0xff] }
 0x154   : > { %v2225_v3 = vmul.f32 %v5955_v52, %v5767_v44  ;;  %v2229_v39 = vmul.f32 %v5955_v52, %v5780_v10  ;;  %v2177_v0 = vadd.f32 %v2161_v32, %v2145_v19  ;;  %v2181_v28 = vadd.f32 %v2165_v29, %v2149_v12  ;;  %9011 = vst [vmem:[#allocation109_spill] sm:$0xff] %v5961_v54  ;;  %v5979_v12 = vld [vmem:[#allocation5 + $0x18] ss:$0 sm:$0xff]  ;;  %v9036_v49 = vld [vmem:[#allocation62_spill] sm:$0xff] }
 0x155   : > { %v2257_v31 = vmul.f32 %v5961_v54, %v8960_v23  ;;  %v2261_v14 = vmul.f32 %v5961_v54, %v5197_v59  ;;  %v1769_v30 = vadd.f32 1.0, %v3825_v63  ;;  %v2289_v33 = vmul.f32 %v5967_v6, %v5798_v56  ;;  %9012 = vst [vmem:[#allocation110_spill] sm:$0xff] %v5979_v12  ;;  %9014 = vst [vmem:[#allocation112_spill] sm:$0xff] %v5985_v35 }
 0x156   : > { %v2293_v37 = vmul.f32 %v5967_v6, %v5810_v1  ;;  %v2321_v32 = vmul.f32 %v5973_v62, %v5824_v17  ;;  %v2209_v29 = vadd.f32 %v2193_v21, %v2177_v0  ;;  %v2213_v23 = vadd.f32 %v2197_v2, %v2181_v28 }
 0x157   : > { %v2325_v19 = vmul.f32 %v5973_v62, %v5884_v7  ;;  %v2353_v63 = vmul.f32 %v5979_v12, %v5742_v60  ;;  %v1785_v56 = vmul.f32 %v1769_v30, %v1721_v11  ;;  %v5983_v44 = vadd.f32 %v2167_v58, %v2151_v18  ;;  %v6001_v11 = vld [vmem:[%s4450_s13 + $0xb0] sm:$0xff]  ;;  %v3968_v18 = vld [vmem:[%s4450_s13 + $0xa0] sm:$0xff] }
 0x158   : > { %v2385_v17 = vmul.f32 %v5985_v35, %v5774_v43  ;;  %v2417_v21 = vmul.f32 %v8916_v16, %v8961_v34  ;;  %v2241_v2 = vadd.f32 %v2225_v3, %v2209_v29  ;;  %v2245_v0 = vadd.f32 %v2229_v39, %v2213_v23  ;;  %9015 = vst [vmem:[#allocation113_spill] sm:$0xff] %v6001_v11  ;;  %v6005_v43 = vld [vmem:[%s4450_s13 + $0xa8] sm:$0xff] }
 0x159   : > { %9013 = vst [vmem:[#allocation111_spill] sm:$0xff] %v5983_v44  ;;  %v5993_v28 = vmul.f32 %v8917_v48, %v5804_v40  ;;  %v5997_v60 = vmul.f32 %v8919_v51, %v5830_v8  ;;  %v1805_v58 = vmul.f32 %v8996_v50, %v1785_v56  ;;  %v467_v30 = vrot.slane %v3968_v18, 7  ;;  %9016 = vst [vmem:[#allocation114_spill] sm:$0xff] %v6005_v43  ;;  %v9018_v23 = vld [vmem:[#allocation29_spill] sm:$0xff]  ;;  %v6044_v50 = vld [vmem:[#allocation5 + $0x22] ss:$0 sm:$0xff] }
 0x15a   : > { %v8633_v16 = vrot.slane %v6005_v43, 7  ;;  %v568_v34 = vrot.slane %v6005_v43, 1  ;;  %v2273_v3 = vadd.f32 %v2257_v31, %v2241_v2  ;;  %v2277_v39 = vadd.f32 %v2261_v14, %v2245_v0  ;;  %v6021_v31 = vld [vmem:[#allocation5 + $0x20] ss:$0 sm:$0xff]  ;;  %v6027_v2 = vld [vmem:[#allocation5 + $0x21] ss:$0 sm:$0xff] }
 0x15b   : > { %v8635_v48 = vrot.slane %v6001_v11, 1  ;;  %v669_v29 = vrot.slane %v6005_v43, 2  ;;  %v1825_v51 = vadd.f32 %v9001_v46, %v1805_v58  ;;  %v814_v18 = vmul.f32 %v5832_v13, %v9018_v23  ;;  %v6087_v40 = vld [vmem:[#allocation5 + $0x1a] ss:$0 sm:$0xff] }
 0x15c   : > { %v6016_v56 = vsel %vm522_vm1, %v467_v30, %v8633_v16  ;;  %v2305_v8 = vadd.f32 %v2289_v33, %v2273_v3  ;;  %v6025_v14 = vmul.f32 %v6021_v31, %v5748_v27  ;;  %v6031_v46 = vmul.f32 %v6027_v2, %v5780_v10 }
 0x15d   : > { %9017 = vst [vmem:[#allocation115_spill] sm:$0xff] %v6016_v56  ;;  %v850_v0 = vmul.f32 %v5843_v42, %v6016_v56  ;;  %v1841_v58 = vadd.f32 %v5637_v20, %v1825_v51  ;;  %v2309_v30 = vadd.f32 %v2293_v37, %v2277_v39  ;;  %v6040_v33 = vsel %vm623_vm2, %v568_v34, %v8635_v48 }
 0x15e   : > { %9019 = vst [vmem:[#allocation29_spill] sm:$0xff] %v6040_v33  ;;  %v886_v3 = vmul.f32 %v6005_v43, %v5853_v45  ;;  %v2337_v16 = vadd.f32 %v2321_v32, %v2305_v8  ;;  %v6048_v10 = vmul.f32 %v6044_v50, %v5197_v59  ;;  %v6052_v20 = vmul.f32 %v8944_v26, %v5810_v1 }
 0x15f   : > { %v866_v37 = vadd.f32 %v850_v0, %v814_v18  ;;  %3643 = vmatmul.mubr.f32.vlgmr.msra.gmra.mrb[0].mxu0 %v1841_v58  ;;  %v6056_v34 = vmul.f32 %v8946_v5, %v5884_v7  ;;  %v9020_v39 = vrot.slane %v6001_v11, 2  ;;  %v1028_v59 = vmul.f32 %v5901_v61, %v6016_v56  ;;  %v9023_v58 = vld [vmem:[#allocation40_spill] sm:$0xff]  ;;  %v9025_v7 = vld [vmem:[#allocation47_spill] sm:$0xff] }
 0x160   : > { %v1064_v26 = vmul.f32 %v6005_v43, %v5909_v25  ;;  %v2369_v32 = vadd.f32 %v2353_v63, %v2337_v16  ;;  %v922_v18 = vmul.f32 %v5865_v55, %v6040_v33  ;;  %v1206_v5 = vmul.f32 %v5955_v52, %v6016_v56  ;;  %v9026_v16 = vld [vmem:[#allocation46_spill] sm:$0xff] }
 0x161   : > { %v6062_v8 = vsel %vm724_vm3, %v669_v29, %v9020_v39  ;;  %v902_v51 = vadd.f32 %v886_v3, %v866_v37  ;;  %v6072_v0 = vadd.f32 %v2325_v19, %v2309_v30  ;;  %v1044_v48 = vadd.f32 %v1028_v59, %v9023_v58  ;;  %v9024_v39 = vld [vmem:[#allocation49_spill] sm:$0xff]  ;;  %v9028_v59 = vld [vmem:[#allocation50_spill] sm:$0xff] }
 0x162   : > { %9021 = vst [vmem:[#allocation116_spill] sm:$0xff] %v6062_v8  ;;  %v1242_v29 = vmul.f32 %v6005_v43, %v5961_v54  ;;  %v1362_v1 = vadd.f32 %v9025_v7, %v9024_v39  ;;  %v2401_v27 = vadd.f32 %v2385_v17, %v2369_v32  ;;  %v6081_v63 = vmul.f32 %v5876_v53, %v6062_v8  ;;  %v6085_v37 = vld [vmem:[%s4450_s13 + $0x88] sm:$0xff] }
 0x163   : > { %9022 = vst [vmem:[#allocation117_spill] sm:$0xff] %v6072_v0  ;;  %v1222_v3 = vadd.f32 %v1206_v5, %v9026_v16  ;;  %9027 = vst [vmem:[#allocation40_spill] sm:$0xff] %v6085_v37  ;;  %v1418_v19 = vmul.f32 %v6087_v40, %v6085_v37  ;;  %v1080_v30 = vadd.f32 %v1064_v26, %v1044_v48 }
 0x164   : > { %v1100_v7 = vmul.f32 %v5917_v41, %v6040_v33  ;;  %v6095_v17 = vmul.f32 %v5935_v24, %v6062_v8  ;;  %v1398_v32 = vadd.f32 %v9028_v59, %v1362_v1  ;;  %v2433_v5 = vadd.f32 %v2417_v21, %v2401_v27  ;;  %v6112_v1 = vld [vmem:[%s4450_s13 + $0x1b0] sm:$0xff]  ;;  %v3975_v21 = vld [vmem:[%s4450_s13 + $0x1a0] sm:$0xff] }
 0x165   : > { %v938_v58 = vadd.f32 %v922_v18, %v902_v51  ;;  %v1278_v39 = vmul.f32 %v5967_v6, %v6040_v33  ;;  %v6102_v16 = vmul.f32 %v5973_v62, %v6062_v8  ;;  %v1258_v48 = vadd.f32 %v1242_v29, %v1222_v3  ;;  %9029 = vst [vmem:[#allocation49_spill] sm:$0xff] %v6112_v1  ;;  %v6116_v18 = vld [vmem:[%s4450_s13 + $0x1a8] sm:$0xff] }
 0x166   : > { %v1434_v26 = vadd.f32 %v1418_v19, %v1398_v32  ;;  %v1526_v0 = vmul.f32 %v6021_v31, %v9018_v23  ;;  %v1562_v37 = vmul.f32 %v6027_v2, %v6016_v56  ;;  %v2465_v44 = vadd.f32 %v5993_v28, %v2433_v5  ;;  %9030 = vst [vmem:[#allocation47_spill] sm:$0xff] %v6116_v18  ;;  %v9031_v19 = vld [vmem:[#allocation51_spill] sm:$0xff]  ;;  %v6123_v5 = vld [vmem:[#allocation5 + $0x23] ss:$0 sm:$0xff] }
 0x167   : > { %v1598_v27 = vmul.f32 %v6044_v50, %v6005_v43  ;;  %v475_v51 = vrot.slane %v3975_v21, 7  ;;  %v8648_v29 = vrot.slane %v6116_v18, 7  ;;  %v1116_v3 = vadd.f32 %v1100_v7, %v1080_v30  ;;  %v9033_v7 = vld [vmem:[#allocation52_spill] sm:$0xff] }
 0x168   : > { %v1470_v23 = vadd.f32 %v9031_v19, %v1434_v26  ;;  %v576_v59 = vrot.slane %v6116_v18, 1  ;;  %v8653_v32 = vrot.slane %v6112_v1, 1  ;;  %v2497_v28 = vadd.f32 %v5997_v60, %v2465_v44  ;;  %v9035_v19 = vld [vmem:[#allocation59_spill] sm:$0xff] }
 0x169   : > { %v1634_v56 = vmul.f32 %v6123_v5, %v6040_v33  ;;  %v6131_v21 = vsel %vm522_vm1, %v475_v51, %v8648_v29  ;;  %v677_v30 = vrot.slane %v6116_v18, 2  ;;  %v1874_v33 = vmul.f32 %v5832_v13, %v9035_v19 }
 0x16a   : > { %9032 = vst [vmem:[#allocation46_spill] sm:$0xff] %v6131_v21  ;;  %v1506_v26 = vadd.f32 %v9033_v7, %v1470_v23  ;;  %v6139_v60 = vsel %vm623_vm2, %v576_v59, %v8653_v32  ;;  %v2529_v57 = vadd.f32 %v6025_v14, %v2497_v28  ;;  %v1882_v51 = vmul.f32 %v5832_v13, %v9036_v49  ;;  %v3978_v23 = vld [vmem:[%s4450_s13 + $0x128] sm:$0xff]  ;;  %v9037_v32 = vld [vmem:[#allocation79_spill] sm:$0xff] }
 0x16b   : > { %9034 = vst [vmem:[#allocation50_spill] sm:$0xff] %v6139_v60  ;;  %v1914_v29 = vmul.f32 %v5843_v42, %v6131_v21  ;;  %v1938_v7 = vmul.f32 %v3978_v23, %v5853_v45  ;;  %v1670_v59 = vmul.f32 %v6151_v15, %v6062_v8  ;;  %v1922_v44 = vadd.f32 %v9037_v32, %v1874_v33 }
 0x16c   : > { %v1542_v36 = vadd.f32 %v1526_v0, %v1506_v26  ;;  %v1946_v14 = vmul.f32 %v6116_v18, %v5853_v45  ;;  %v2561_v28 = vadd.f32 %v6031_v46, %v2529_v57  ;;  %v9038_v19 = vrot.slane %v6112_v1, 2  ;;  %v9041_v1 = vld [vmem:[#allocation86_spill] sm:$0xff] }
 0x16d   : > { %v1930_v23 = vadd.f32 %v1914_v29, %v1882_v51  ;;  %v1978_v0 = vmul.f32 %v5865_v55, %v6139_v60  ;;  %v1954_v35 = vadd.f32 %v1938_v7, %v1922_v44  ;;  %v2072_v33 = vmul.f32 %v5901_v61, %v6131_v21  ;;  %v9040_v29 = vld [vmem:[#allocation80_spill] sm:$0xff] }
 0x16e   : > { %v6163_v22 = vsel %vm724_vm3, %v677_v30, %v9038_v19  ;;  %v1578_v26 = vadd.f32 %v1562_v37, %v1542_v36  ;;  %v2104_v32 = vmul.f32 %v6116_v18, %v5909_v25  ;;  %v2593_v57 = vadd.f32 %v6048_v10, %v2561_v28 }
 0x16f   : > { %9039 = vst [vmem:[#allocation51_spill] sm:$0xff] %v6163_v22  ;;  %v1294_v46 = vadd.f32 %v1278_v39, %v1258_v48  ;;  %v1962_v8 = vadd.f32 %v1946_v14, %v1930_v23  ;;  %v2136_v30 = vmul.f32 %v5917_v41, %v6139_v60  ;;  %v1986_v51 = vadd.f32 %v9040_v29, %v1954_v35  ;;  %v9042_v48 = vld [vmem:[#allocation81_spill] sm:$0xff]  ;;  %v9043_v35 = vld [vmem:[#allocation91_spill] sm:$0xff] }
 0x170   : > { %v1614_v19 = vadd.f32 %v1598_v27, %v1578_v26  ;;  %v2088_v12 = vadd.f32 %v2072_v33, %v9041_v1  ;;  %v2230_v36 = vmul.f32 %v5955_v52, %v6131_v21  ;;  %v2625_v37 = vadd.f32 %v6052_v20, %v2593_v57  ;;  %v9051_v29 = vld [vmem:[#allocation85_spill] sm:$0xff] }
 0x171   : > { %v1994_v44 = vadd.f32 %v1978_v0, %v1962_v8  ;;  %v2010_v7 = vmul.f32 %v5876_v53, %v6163_v22  ;;  %v2262_v10 = vmul.f32 %v6116_v18, %v5961_v54  ;;  %v2018_v27 = vadd.f32 %v9042_v48, %v1986_v51 }
 0x172   : > { %v1650_v39 = vadd.f32 %v1634_v56, %v1614_v19  ;;  %v2120_v14 = vadd.f32 %v2104_v32, %v2088_v12  ;;  %v2246_v28 = vadd.f32 %v2230_v36, %v9043_v35  ;;  %v2657_v1 = vadd.f32 %v6056_v34, %v2625_v37  ;;  %v9045_v56 = vld [vmem:[#allocation83_spill] sm:$0xff]  ;;  %v6197_v12 = vld [vmem:[%s8493_s3] ss:$0 sm:$0xff]  ;;  %v6207_v32 = vld [vmem:[%s4450_s13 + $0x168] sm:$0xff] }
 0x173   : > { %v6187_v23 = vadd.f32 %v6081_v63, %v938_v58  ;;  %v2168_v20 = vmul.f32 %v5935_v24, %v6163_v22  ;;  %v2294_v8 = vmul.f32 %v5967_v6, %v6139_v60  ;;  %v2050_v26 = vadd.f32 %v9045_v56, %v2018_v27  ;;  %9046 = vst [vmem:[#allocation62_spill] sm:$0xff] %v6197_v12 }
 0x174   : > { %v1686_v0 = vadd.f32 %v1670_v59, %v1650_v39  ;;  %v2152_v33 = vadd.f32 %v2136_v30, %v2120_v14  ;;  %v2278_v57 = vadd.f32 %v2262_v10, %v2246_v28  ;;  %v2673_v34 = vadd.f32 %v6197_v12, %v2657_v1  ;;  %9049 = vst [vmem:[#allocation86_spill] sm:$0xff] %v6207_v32  ;;  %v9053_v10 = vld [vmem:[#allocation87_spill] sm:$0xff] }
 0x175   : > { %9044 = vst [vmem:[#allocation52_spill] sm:$0xff] %v6187_v23  ;;  %v6201_v63 = vadd.f32 %v6095_v17, %v1116_v3  ;;  %v6204_v58 = vadd.f32 %v6102_v16, %v1294_v46  ;;  %v2258_v59 = vmul.f32 %v6207_v32, %v5961_v54  ;;  %v6212_v19 = vadd.f32 %v2010_v7, %v1994_v44  ;;  %v6218_v17 = vld [vmem:[%s4450_s13 + $0x188] sm:$0xff]  ;;  %v302_v44 = vld [vmem:[%s4450_s13 + $0xb8] sm:$0xff]  ;;  %v9071_v32 = vld [vmem:[#allocation32_spill] sm:$0xff] }
 0x176   : > { %v1706_v30 = vadd.f32 %v6197_v12, %v1686_v0  ;;  %v2082_v51 = vadd.f32 %v9051_v29, %v2050_v26  ;;  %v2326_v36 = vmul.f32 %v5973_v62, %v6163_v22  ;;  %v2705_v37 = vmul.f32 0.70710677, %v2673_v34  ;;  %9052 = vst [vmem:[#allocation91_spill] sm:$0xff] %v6218_v17 }
 0x177   : > { %9047 = vst [vmem:[#allocation79_spill] sm:$0xff] %v6201_v63  ;;  %9048 = vst [vmem:[#allocation80_spill] sm:$0xff] %v6204_v58  ;;  %v6222_v16 = vmul.f32 %v6218_v17, %v6087_v40  ;;  %v6226_v3 = vmul.f32 %v6021_v31, %v9036_v49  ;;  %v6230_v46 = vmul.f32 %v6027_v2, %v6131_v21  ;;  %v2689_v14 = vmul.f32 0.5, %v2673_v34  ;;  %v9055_v49 = vld [vmem:[#allocation88_spill] sm:$0xff]  ;;  %v9069_v21 = vld [vmem:[#allocation33_spill] sm:$0xff] }
 0x178   : > { %9050 = vst [vmem:[#allocation81_spill] sm:$0xff] %v6212_v19  ;;  %v1738_v7 = vmul.f32 0.70710677, %v1706_v30  ;;  %v2114_v39 = vadd.f32 %v9053_v10, %v2082_v51  ;;  %v6234_v48 = vadd.f32 %v2168_v20, %v2152_v33  ;;  %v2310_v27 = vadd.f32 %v2294_v8, %v2278_v57  ;;  %v9056_v8 = vld [vmem:[#allocation28_spill] sm:$0xff]  ;;  %v9061_v51 = vld [vmem:[#allocation89_spill] sm:$0xff] }
 0x179   : > { %3826 = verf.f32 %v2705_v37  ;;  %v404_v35 = vrot.slane %v6001_v11, 6  ;;  %v507_v28 = vrot.slane %v6001_v11, 7  ;;  %v608_v0 = vrot.slane %v302_v44, 1  ;;  %v9070_v19 = vld [vmem:[#allocation92_spill] sm:$0xff] }
 0x17a   : > { %9054 = vst [vmem:[#allocation83_spill] sm:$0xff] %v6234_v48  ;;  %3828 = verf.f32 %v1738_v7  ;;  %v2146_v1 = vadd.f32 %v9055_v49, %v2114_v39  ;;  %v709_v56 = vrot.slane %v302_v44, 2  ;;  %v6241_v26 = vmul.f32 %v6116_v18, %v6044_v50 }
 0x17b   : > { %v6245_v20 = vmul.f32 %v6123_v5, %v6139_v60  ;;  %v9057_v33 = vrot.slane %v9056_v8, 6  ;;  %v9059_v34 = vrot.slane %v6005_v43, 7  ;;  %v9062_v44 = vrot.slane %v6001_v11, 1  ;;  %v9066_v8 = vld [vmem:[#allocation90_spill] sm:$0xff]  ;;  %v9068_v60 = vld [vmem:[#allocation25_spill] sm:$0xff] }
 0x17c   : > { %v2178_v37 = vadd.f32 %v9061_v51, %v2146_v1  ;;  %v887_v39 = vmul.f32 %v5853_v45, %v6001_v11  ;;  %v1183_v48 = vadd.f32 %v9069_v21, %v9068_v60  ;;  %v1239_v43 = vmul.f32 %v5961_v54, %v9071_v32 }
 0x17d   : > { %v6251_v57 = vsel %vm421_vm0, %v9057_v33, %v404_v35  ;;  %v6257_v29 = vsel %vm522_vm1, %v9059_v34, %v507_v28  ;;  %v6264_v7 = vsel %vm623_vm2, %v9062_v44, %v608_v0  ;;  %v9064_v35 = vrot.slane %v6001_v11, 2 }
 0x17e   : > { %9058 = vst [vmem:[#allocation85_spill] sm:$0xff] %v6251_v57  ;;  %9060 = vst [vmem:[#allocation87_spill] sm:$0xff] %v6257_v29  ;;  %v815_v10 = vmul.f32 %v5832_v13, %v6251_v57  ;;  %v851_v49 = vmul.f32 %v5843_v42, %v6257_v29  ;;  %v993_v1 = vmul.f32 %v5891_v47, %v6251_v57  ;;  %v1722_v12 = vmul.f32 0.5, %v1706_v30 }
 0x17f   : > { %9063 = vst [vmem:[#allocation88_spill] sm:$0xff] %v6264_v7  ;;  %v6274_v28 = vsel %vm724_vm3, %v9064_v35, %v709_v56  ;;  %v1065_v0 = vmul.f32 %v5909_v25, %v6001_v11  ;;  %v2210_v33 = vadd.f32 %v9066_v8, %v2178_v37  ;;  %v923_v34 = vmul.f32 %v5865_v55, %v6264_v7  ;;  %v9067_v35 = vld [vmem:[#allocation27_spill] sm:$0xff] }
 0x180   : > { %9065 = vst [vmem:[#allocation28_spill] sm:$0xff] %v6274_v28  ;;  %v1029_v51 = vmul.f32 %v5901_v61, %v6257_v29  ;;  %v1101_v56 = vmul.f32 %v5917_v41, %v6264_v7  ;;  %v867_v44 = vadd.f32 %v851_v49, %v815_v10  ;;  %v1009_v58 = vadd.f32 %v993_v1, %v9067_v35  ;;  %v9072_v35 = vld [vmem:[#allocation37_spill] sm:$0xff] }
 0x181   : > { %v1171_v17 = vmul.f32 %v5947_v4, %v6251_v57  ;;  %v2242_v37 = vadd.f32 %v9070_v19, %v2210_v33  ;;  %v1207_v8 = vmul.f32 %v5955_v52, %v6257_v29  ;;  %v1243_v63 = vmul.f32 %v5961_v54, %v6001_v11 }
 0x182   : > { %v903_v10 = vadd.f32 %v887_v39, %v867_v44  ;;  %v1045_v49 = vadd.f32 %v1029_v51, %v1009_v58  ;;  %v1219_v23 = vadd.f32 %v9072_v35, %v1183_v48  ;;  %v6303_v21 = vadd.f32 %v2326_v36, %v2310_v27  ;;  %v9075_v35 = vld [vmem:[#allocation93_spill] sm:$0xff] }
 0x183   : > { %v1187_v1 = vadd.f32 %v1171_v17, %v5925_v38  ;;  %v2274_v4 = vadd.f32 %v2258_v59, %v2242_v37  ;;  %v6307_v60 = vmul.f32 %v6151_v15, %v6163_v22  ;;  %v3827_v19 = vpop.eup %3826  ;;  %v959_v32 = vmul.f32 %v5876_v53, %v6274_v28  ;;  %v9074_v38 = vld [vmem:[#allocation30_spill] sm:$0xff] }
 0x184   : > { %9073 = vst [vmem:[#allocation89_spill] sm:$0xff] %v6303_v21  ;;  %v1081_v33 = vadd.f32 %v1065_v0, %v1045_v49  ;;  %v1255_v39 = vadd.f32 %v1239_v43, %v1219_v23  ;;  %v3829_v58 = vpop.eup %3828  ;;  %v2737_v51 = vadd.f32 1.0, %v3827_v19  ;;  %v939_v48 = vadd.f32 %v923_v34, %v903_v10  ;;  %v9076_v0 = vld [vmem:[#allocation55_spill] sm:$0xff]  ;;  %v9078_v23 = vld [vmem:[#allocation110_spill] sm:$0xff] }
 0x185   : > { %v1223_v54 = vadd.f32 %v1207_v8, %v1187_v1  ;;  %v2306_v17 = vadd.f32 %v9074_v38, %v2274_v4  ;;  %v1137_v59 = vmul.f32 %v5935_v24, %v6274_v28  ;;  %v1770_v30 = vadd.f32 1.0, %v3829_v58  ;;  %v9077_v43 = vld [vmem:[#allocation39_spill] sm:$0xff]  ;;  %v9080_v1 = vld [vmem:[#allocation112_spill] sm:$0xff] }
 0x186   : > { %v1117_v36 = vadd.f32 %v1101_v56, %v1081_v33  ;;  %v1279_v44 = vmul.f32 %v5967_v6, %v6264_v7  ;;  %v2753_v37 = vmul.f32 %v2737_v51, %v2689_v14  ;;  %v1291_v8 = vadd.f32 %v9076_v0, %v1255_v39  ;;  %v9079_v10 = vld [vmem:[#allocation43_spill] sm:$0xff]  ;;  %v6329_v14 = vld [vmem:[%s8493_s3 + $0x1] ss:$0 sm:$0xff] }
 0x187   : > { %v1259_v27 = vadd.f32 %v1243_v63, %v1223_v54  ;;  %v2338_v21 = vadd.f32 %v9075_v35, %v2306_v17  ;;  %v1347_v49 = vmul.f32 %v9078_v23, %v9077_v43  ;;  %v1786_v4 = vmul.f32 %v1770_v30, %v1722_v12  ;;  %v9081_v54 = vld [vmem:[#allocation45_spill] sm:$0xff]  ;;  %v9082_v33 = vld [vmem:[#allocation35_spill] sm:$0xff]  ;;  %v9084_v12 = vld [vmem:[#allocation56_spill] sm:$0xff] }
 0x188   : > { %v1315_v34 = vmul.f32 %v5973_v62, %v6274_v28  ;;  %v1383_v56 = vmul.f32 %v9080_v1, %v9079_v10  ;;  %v1419_v63 = vmul.f32 %v6087_v40, %v9081_v54  ;;  %v2769_v19 = vmul.f32 %v6329_v14, %v2753_v37  ;;  %v6339_v35 = vld [vmem:[#allocation5 + $0x1b] ss:$0 sm:$0xff]  ;;  %v9086_v0 = vld [vmem:[#allocation44_spill] sm:$0xff]  ;;  %v9089_v54 = vld [vmem:[#allocation49_spill] sm:$0xff] }
 0x189   : > { %v2370_v39 = vadd.f32 %v9082_v33, %v2338_v21  ;;  %v6333_v58 = vadd.f32 %v959_v32, %v939_v48  ;;  %v1327_v51 = vadd.f32 %v9084_v12, %v1291_v8  ;;  %v1806_v38 = vmul.f32 %v6329_v14, %v1786_v4  ;;  %v334_v10 = vld [vmem:[%s4450_s13 + $0x1b8] sm:$0xff]  ;;  %v6347_v21 = vld [vmem:[%s8493_s3 + $0x2] ss:$0 sm:$0xff] }
 0x18a   : > { %v6337_v17 = vadd.f32 %v1137_v59, %v1117_v36  ;;  %v1295_v30 = vadd.f32 %v1279_v44, %v1259_v27  ;;  %v1455_v43 = vmul.f32 %v6339_v35, %v9086_v0  ;;  %v2785_v32 = vadd.f32 %v6347_v21, %v2769_v19  ;;  %v9087_v48 = vld [vmem:[#allocation36_spill] sm:$0xff]  ;;  %v6351_v59 = vld [vmem:[#allocation5 + $0x1c] ss:$0 sm:$0xff]  ;;  %v3987_v0 = vld [vmem:[%s4450_s13 + $0x150] sm:$0xff] }
 0x18b   : > { %9083 = vst [vmem:[#allocation90_spill] sm:$0xff] %v6333_v58  ;;  %v2402_v37 = vadd.f32 %v9087_v48, %v2370_v39  ;;  %v1363_v8 = vadd.f32 %v1347_v49, %v1327_v51  ;;  %v9088_v36 = vld [vmem:[#allocation31_spill] sm:$0xff]  ;;  %v1826_v44 = vadd.f32 %v6347_v21, %v1806_v38  ;;  %v1527_v4 = vmul.f32 %v6021_v31, %v6251_v57  ;;  %v3988_v51 = vld [vmem:[%s4450_s13 + $0x68] sm:$0xff] }
 0x18c   : > { %9085 = vst [vmem:[#allocation27_spill] sm:$0xff] %v6337_v17  ;;  %v1491_v27 = vmul.f32 %v6351_v59, %v9088_v36  ;;  %v412_v33 = vrot.slane %v9089_v54, 6  ;;  %v515_v12 = vrot.slane %v9089_v54, 7  ;;  %v2801_v17 = vadd.f32 %v3987_v0, %v2785_v32  ;;  %v9091_v36 = vld [vmem:[#allocation54_spill] sm:$0xff] }
 0x18d   : > { %v2434_v19 = vadd.f32 %v6222_v16, %v2402_v37  ;;  %v1399_v39 = vadd.f32 %v1383_v56, %v1363_v8  ;;  %v616_v49 = vrot.slane %v334_v10, 1  ;;  %v1842_v48 = vadd.f32 %v3988_v51, %v1826_v44  ;;  %v9096_v16 = vld [vmem:[#allocation38_spill] sm:$0xff]  ;;  %v9097_v44 = vld [vmem:[#allocation73_spill] sm:$0xff] }
 0x18e   : > { %v6363_v58 = vadd.f32 %v1315_v34, %v1295_v30  ;;  %v9092_v38 = vrot.slane %v9091_v36, 6  ;;  %v9094_v22 = vrot.slane %v6116_v18, 7  ;;  %3667 = vmatmul.mubr.f32.vlgmr.msra.gmra.mrb[0].mxu1 %v2801_v17  ;;  %v717_v8 = vrot.slane %v334_v10, 2  ;;  %v9101_v10 = vld [vmem:[#allocation26_spill] sm:$0xff] }
 0x18f   : > { %v2466_v56 = vadd.f32 %v9096_v16, %v2434_v19  ;;  %v1435_v37 = vadd.f32 %v1419_v63, %v1399_v39  ;;  %v1875_v34 = vmul.f32 %v5832_v13, %v9097_v44  ;;  %3645 = vmatprep.mubr.f32.mxu0 %v1842_v48  ;;  %v9098_v30 = vrot.slane %v9089_v54, 1  ;;  %v3989_v39 = vld [vmem:[%s4450_s13 + $0x130] sm:$0xff] }
 0x190   : > { %9090 = vst [vmem:[#allocation25_spill] sm:$0xff] %v6363_v58  ;;  %v6369_v57 = vsel %vm421_vm0, %v9092_v38, %v412_v33  ;;  %v6375_v32 = vsel %vm522_vm1, %v9094_v22, %v515_v12  ;;  %v9100_v22 = vld [vmem:[#allocation42_spill] sm:$0xff]  ;;  %v1939_v48 = vmul.f32 %v3989_v39, %v5853_v45  ;;  %v1947_v36 = vmul.f32 %v5853_v45, %v9089_v54 }
 0x191   : > { %9093 = vst [vmem:[#allocation33_spill] sm:$0xff] %v6369_v57  ;;  %9095 = vst [vmem:[#allocation92_spill] sm:$0xff] %v6375_v32  ;;  %v6384_v33 = vsel %vm623_vm2, %v9098_v30, %v616_v49  ;;  %v1883_v51 = vmul.f32 %v5832_v13, %v6369_v57  ;;  %v1907_v17 = vmul.f32 %v5843_v42, %v9100_v22  ;;  %v9102_v30 = vld [vmem:[#allocation97_spill] sm:$0xff] }
 0x192   : > { %9099 = vst [vmem:[#allocation32_spill] sm:$0xff] %v6384_v33  ;;  %v1915_v63 = vmul.f32 %v5843_v42, %v6375_v32  ;;  %v2498_v12 = vadd.f32 %v9101_v10, %v2466_v56  ;;  %v1471_v19 = vadd.f32 %v1455_v43, %v1435_v37  ;;  %v1563_v49 = vmul.f32 %v6027_v2, %v6257_v29  ;;  %v9105_v29 = vld [vmem:[#allocation104_spill] sm:$0xff] }
 0x193   : > { %v1923_v38 = vadd.f32 %v1907_v17, %v1875_v34  ;;  %v1971_v22 = vmul.f32 %v5865_v55, %v9102_v30  ;;  %v9103_v56 = vrot.slane %v9089_v54, 2  ;;  %v1979_v37 = vmul.f32 %v5865_v55, %v6384_v33 }
 0x194   : > { %v1931_v16 = vadd.f32 %v1915_v63, %v1883_v51  ;;  %v2530_v44 = vadd.f32 %v6226_v3, %v2498_v12  ;;  %v1507_v58 = vadd.f32 %v1491_v27, %v1471_v19  ;;  %v2003_v34 = vmul.f32 %v5876_v53, %v9105_v29  ;;  %v9106_v19 = vld [vmem:[#allocation34_spill] sm:$0xff]  ;;  %v9108_v29 = vld [vmem:[#allocation53_spill] sm:$0xff] }
 0x195   : > { %v6406_v43 = vsel %vm724_vm3, %v9103_v56, %v717_v8  ;;  %v1955_v10 = vadd.f32 %v1939_v48, %v1923_v38  ;;  %v2041_v51 = vmul.f32 %v5891_v47, %v6369_v57  ;;  %v1599_v17 = vmul.f32 %v6044_v50, %v6001_v11 }
 0x196   : > { %9104 = vst [vmem:[#allocation37_spill] sm:$0xff] %v6406_v43  ;;  %v1963_v39 = vadd.f32 %v1947_v36, %v1931_v16  ;;  %v2562_v3 = vadd.f32 %v6230_v46, %v2530_v44  ;;  %v1543_v27 = vadd.f32 %v1527_v4, %v1507_v58  ;;  %v2073_v8 = vmul.f32 %v5901_v61, %v6375_v32  ;;  %v9107_v36 = vld [vmem:[#allocation107_spill] sm:$0xff] }
 0x197   : > { %v1635_v63 = vmul.f32 %v6123_v5, %v6264_v7  ;;  %v1987_v12 = vadd.f32 %v1971_v22, %v1955_v10  ;;  %v2035_v48 = vmul.f32 %v5891_v47, %v9106_v19  ;;  %v2057_v38 = vadd.f32 %v2041_v51, %v9107_v36 }
 0x198   : > { %v2594_v16 = vadd.f32 %v6241_v26, %v2562_v3  ;;  %v1579_v56 = vadd.f32 %v1563_v49, %v1543_v27  ;;  %v2011_v46 = vmul.f32 %v5876_v53, %v6406_v43  ;;  %v2105_v58 = vmul.f32 %v5909_v25, %v9089_v54 }
 0x199   : > { %v1995_v4 = vadd.f32 %v1979_v37, %v1963_v39  ;;  %v2019_v44 = vadd.f32 %v2003_v34, %v1987_v12  ;;  %v2067_v30 = vmul.f32 %v5901_v61, %v9108_v29  ;;  %v2089_v22 = vadd.f32 %v2073_v8, %v2057_v38  ;;  %v9109_v37 = vld [vmem:[#allocation108_spill] sm:$0xff]  ;;  %v9110_v8 = vld [vmem:[#allocation98_spill] sm:$0xff] }
 0x19a   : > { %v2626_v10 = vadd.f32 %v6245_v20, %v2594_v16  ;;  %v1615_v19 = vadd.f32 %v1599_v17, %v1579_v56  ;;  %v1671_v51 = vmul.f32 %v6151_v15, %v6274_v28  ;;  %v2137_v26 = vmul.f32 %v5917_v41, %v6384_v33  ;;  %v9113_v56 = vld [vmem:[#allocation62_spill] sm:$0xff] }
 0x19b   : > { %v2051_v49 = vadd.f32 %v2035_v48, %v2019_v44  ;;  %v2099_v3 = vmul.f32 %v3987_v0, %v5909_v25  ;;  %v2121_v27 = vadd.f32 %v2105_v58, %v2089_v22  ;;  %v2199_v39 = vmul.f32 %v9109_v37, %v6369_v57  ;;  %v9112_v48 = vld [vmem:[#allocation111_spill] sm:$0xff] }
 0x19c   : > { %v2658_v34 = vadd.f32 %v6307_v60, %v2626_v10  ;;  %v1651_v12 = vadd.f32 %v1635_v63, %v1615_v19  ;;  %v2131_v20 = vmul.f32 %v5917_v41, %v9110_v8  ;;  %v2231_v17 = vmul.f32 %v5955_v52, %v6375_v32  ;;  %v9114_v63 = vld [vmem:[#allocation109_spill] sm:$0xff]  ;;  %v9115_v10 = vld [vmem:[#allocation82_spill] sm:$0xff] }
 0x19d   : > { %v6444_v36 = vadd.f32 %v2011_v46, %v1995_v4  ;;  %v2083_v38 = vadd.f32 %v2067_v30, %v2051_v49  ;;  %v2169_v0 = vmul.f32 %v5935_v24, %v6406_v43  ;;  %v2215_v16 = vadd.f32 %v2199_v39, %v9112_v48  ;;  %v9116_v46 = vld [vmem:[#allocation63_spill] sm:$0xff] }
 0x19e   : > { %v2674_v58 = vadd.f32 %v9113_v56, %v2658_v34  ;;  %v1687_v44 = vadd.f32 %v1671_v51, %v1651_v12  ;;  %v2153_v60 = vadd.f32 %v2137_v26, %v2121_v27  ;;  %v2263_v19 = vmul.f32 %v9114_v63, %v9089_v54  ;;  %v9119_v12 = vld [vmem:[#allocation99_spill] sm:$0xff] }
 0x19f   : > { %9111 = vst [vmem:[#allocation30_spill] sm:$0xff] %v6444_v36  ;;  %v2115_v22 = vadd.f32 %v2099_v3, %v2083_v38  ;;  %v2163_v8 = vmul.f32 %v5935_v24, %v9115_v10  ;;  %v2195_v30 = vmul.f32 %v9109_v37, %v9116_v46  ;;  %v2247_v4 = vadd.f32 %v2231_v17, %v2215_v16  ;;  %v9117_v36 = vld [vmem:[#allocation94_spill] sm:$0xff]  ;;  %v9122_v46 = vld [vmem:[#allocation65_spill] sm:$0xff] }
 0x1a0   : > { %v2706_v49 = vmul.f32 0.70710677, %v2674_v58  ;;  %v1707_v29 = vadd.f32 %v9113_v56, %v1687_v44  ;;  %v2227_v39 = vmul.f32 %v5955_v52, %v9117_v36  ;;  %v2295_v51 = vmul.f32 %v5967_v6, %v6384_v33  ;;  %v6462_v3 = vld [vmem:[%s4450_s13 + $0x170] sm:$0xff]  ;;  %v6478_v10 = vld [vmem:[%s4450_s13 + $0xc8] sm:$0xff] }
 0x1a1   : > { %v2147_v26 = vadd.f32 %v2131_v20, %v2115_v22  ;;  %9118 = vst [vmem:[#allocation93_spill] sm:$0xff] %v6462_v3  ;;  %v2259_v27 = vmul.f32 %v6462_v3, %v9114_v63  ;;  %v2279_v34 = vadd.f32 %v2263_v19, %v2247_v4  ;;  %v2291_v17 = vmul.f32 %v5967_v6, %v9119_v12  ;;  %v9121_v36 = vld [vmem:[#allocation102_spill] sm:$0xff]  ;;  %v303_v4 = vld [vmem:[%s4450_s13 + $0xc0] sm:$0xff] }
 0x1a2   : > { %v2690_v38 = vmul.f32 0.5, %v2674_v58  ;;  %3830 = verf.f32 %v2706_v49  ;;  %v1739_v48 = vmul.f32 0.70710677, %v1707_v29  ;;  %v6468_v16 = vadd.f32 %v2169_v0, %v2153_v60  ;;  %9123 = vst [vmem:[#allocation39_spill] sm:$0xff] %v6478_v10  ;;  %v9124_v49 = vld [vmem:[#allocation95_spill] sm:$0xff]  ;;  %v6483_v60 = vld [vmem:[%s4450_s13 + $0x190] sm:$0xff] }
 0x1a3   : > { %v2179_v44 = vadd.f32 %v2163_v8, %v2147_v26  ;;  %v2323_v20 = vmul.f32 %v5973_v62, %v9121_v36  ;;  %v2327_v22 = vmul.f32 %v5973_v62, %v6406_v43  ;;  %v2355_v19 = vmul.f32 %v9078_v23, %v9122_v46  ;;  %9125 = vst [vmem:[#allocation43_spill] sm:$0xff] %v6483_v60  ;;  %v9126_v36 = vld [vmem:[#allocation100_spill] sm:$0xff]  ;;  %v9127_v46 = vld [vmem:[#allocation103_spill] sm:$0xff] }
 0x1a4   : > { %9120 = vst [vmem:[#allocation55_spill] sm:$0xff] %v6468_v16  ;;  %v1723_v12 = vmul.f32 0.5, %v1707_v29  ;;  %3832 = verf.f32 %v1739_v48  ;;  %v2311_v58 = vadd.f32 %v2295_v51, %v2279_v34  ;;  %v2387_v0 = vmul.f32 %v9080_v1, %v9124_v49  ;;  %v6500_v51 = vld [vmem:[%s4450_s13 + $0xd0] sm:$0xff] }
 0x1a5   : > { %v2211_v8 = vadd.f32 %v2195_v30, %v2179_v44  ;;  %v2419_v26 = vmul.f32 %v6483_v60, %v6087_v40  ;;  %v6489_v16 = vmul.f32 %v6339_v35, %v9126_v36  ;;  %v6493_v3 = vmul.f32 %v6351_v59, %v9127_v46  ;;  %9128 = vst [vmem:[#allocation45_spill] sm:$0xff] %v6500_v51 }
 0x1a6   : > { %v6497_v29 = vmul.f32 %v6021_v31, %v6369_v57  ;;  %v365_v30 = vrot.slane %v303_v4, 6  ;;  %v8684_v34 = vrot.slane %v6478_v10, 6  ;;  %v468_v48 = vrot.slane %v303_v4, 7 }
 0x1a7   : > { %v2243_v44 = vadd.f32 %v2227_v39, %v2211_v8  ;;  %v8683_v49 = vrot.slane %v6478_v10, 7  ;;  %v569_v36 = vrot.slane %v6478_v10, 1  ;;  %v6508_v46 = vmul.f32 %v6027_v2, %v6375_v32 }
 0x1a8   : > { %v6514_v57 = vsel %vm421_vm0, %v365_v30, %v8684_v34  ;;  %v670_v28 = vrot.slane %v6478_v10, 2  ;;  %v8693_v39 = vrot.slane %v6500_v51, 2  ;;  %v6518_v8 = vadd.f32 %v2327_v22, %v2311_v58 }
 0x1a9   : > { %9129 = vst [vmem:[#allocation35_spill] sm:$0xff] %v6514_v57  ;;  %v2275_v4 = vadd.f32 %v2259_v27, %v2243_v44  ;;  %v6524_v60 = vsel %vm522_vm1, %v468_v48, %v8683_v49  ;;  %v816_v32 = vmul.f32 %v5832_v13, %v6514_v57  ;;  %v9132_v7 = vrot.slane %v6500_v51, 1 }
 0x1aa   : > { %9130 = vst [vmem:[#allocation56_spill] sm:$0xff] %v6518_v8  ;;  %9131 = vst [vmem:[#allocation44_spill] sm:$0xff] %v6524_v60  ;;  %v852_v27 = vmul.f32 %v5843_v42, %v6524_v60  ;;  %v888_v22 = vmul.f32 %v5853_v45, %v6478_v10  ;;  %v994_v58 = vmul.f32 %v5891_v47, %v6514_v57 }
 0x1ab   : > { %v6532_v30 = vsel %vm623_vm2, %v569_v36, %v9132_v7  ;;  %v2307_v48 = vadd.f32 %v2291_v17, %v2275_v4  ;;  %v6542_v44 = vmul.f32 %v6044_v50, %v9089_v54  ;;  %v6546_v49 = vmul.f32 %v6123_v5, %v6384_v33  ;;  %v9136_v4 = vld [vmem:[#allocation52_spill] sm:$0xff] }
 0x1ac   : > { %9133 = vst [vmem:[#allocation36_spill] sm:$0xff] %v6532_v30  ;;  %v1030_v7 = vmul.f32 %v5901_v61, %v6524_v60  ;;  %v3831_v36 = vpop.eup %3830  ;;  %v6552_v34 = vmul.f32 %v6151_v15, %v6406_v43  ;;  %v6558_v17 = vsel %vm724_vm3, %v670_v28, %v8693_v39  ;;  %v868_v54 = vadd.f32 %v852_v27, %v816_v32 }
 0x1ad   : > { %9135 = vst [vmem:[#allocation49_spill] sm:$0xff] %v6558_v17  ;;  %v1010_v8 = vadd.f32 %v994_v58, %v9136_v4  ;;  %v2738_v11 = vadd.f32 1.0, %v3831_v36  ;;  %v2339_v33 = vadd.f32 %v2323_v20, %v2307_v48  ;;  %v924_v23 = vmul.f32 %v5865_v55, %v6532_v30  ;;  %v9137_v36 = vld [vmem:[#allocation79_spill] sm:$0xff] }
 0x1ae   : > { %9134 = vst [vmem:[#allocation31_spill] sm:$0xff] %v6552_v34  ;;  %v1172_v18 = vmul.f32 %v9109_v37, %v6514_v57  ;;  %v3833_v56 = vpop.eup %3832  ;;  %v904_v43 = vadd.f32 %v888_v22, %v868_v54  ;;  %v1066_v51 = vmul.f32 %v5909_v25, %v6478_v10  ;;  %v1208_v28 = vmul.f32 %v5955_v52, %v6524_v60  ;;  %v9138_v22 = vld [vmem:[#allocation115_spill] sm:$0xff] }
 0x1af   : > { %v1046_v34 = vadd.f32 %v1030_v7, %v1010_v8  ;;  %v2754_v32 = vmul.f32 %v2738_v11, %v2690_v38  ;;  %v1771_v27 = vadd.f32 1.0, %v3833_v56  ;;  %v2371_v58 = vadd.f32 %v2355_v19, %v2339_v33  ;;  %v9139_v38 = vld [vmem:[#allocation57_spill] sm:$0xff] }
 0x1b0   : > { %v1188_v20 = vadd.f32 %v1172_v18, %v9137_v36  ;;  %v960_v48 = vmul.f32 %v5876_v53, %v6558_v17  ;;  %v1102_v4 = vmul.f32 %v5917_v41, %v6532_v30  ;;  %v1138_v8 = vmul.f32 %v5935_v24, %v6558_v17  ;;  %v9140_v36 = vld [vmem:[#allocation114_spill] sm:$0xff] }
 0x1b1   : > { %v1384_v7 = vmul.f32 %v9080_v1, %v9138_v22  ;;  %v2770_v54 = vmul.f32 %v6329_v14, %v2754_v32  ;;  %v1787_v39 = vmul.f32 %v1771_v27, %v1723_v12  ;;  %v2403_v11 = vadd.f32 %v2387_v0, %v2371_v58  ;;  %v9143_v27 = vld [vmem:[#allocation86_spill] sm:$0xff] }
 0x1b2   : > { %v1244_v33 = vmul.f32 %v9114_v63, %v6478_v10  ;;  %v940_v18 = vadd.f32 %v924_v23, %v904_v43  ;;  %v1082_v56 = vadd.f32 %v1066_v51, %v1046_v34  ;;  %v1420_v53 = vmul.f32 %v6087_v40, %v9140_v36  ;;  %v9141_v23 = vld [vmem:[#allocation29_spill] sm:$0xff]  ;;  %v9142_v51 = vld [vmem:[#allocation116_spill] sm:$0xff] }
 0x1b3   : > { %v1400_v19 = vadd.f32 %v1384_v7, %v9139_v38  ;;  %v2786_v24 = vadd.f32 %v6347_v21, %v2770_v54  ;;  %v1807_v22 = vmul.f32 %v6329_v14, %v1787_v39  ;;  %v2435_v1 = vadd.f32 %v2419_v26, %v2403_v11  ;;  %v335_v39 = vld [vmem:[%s4450_s13 + $0x1c0] sm:$0xff] }
 0x1b4   : > { %v1224_v32 = vadd.f32 %v1208_v28, %v1188_v20  ;;  %v1280_v12 = vmul.f32 %v5967_v6, %v6532_v30  ;;  %v1456_v43 = vmul.f32 %v6339_v35, %v9141_v23  ;;  %v1492_v34 = vmul.f32 %v6351_v59, %v9142_v51  ;;  %v6601_v28 = vld [vmem:[%s4450_s13 + $0x1c8] sm:$0xff] }
 0x1b5   : > { %v1436_v0 = vadd.f32 %v1420_v53, %v1400_v19  ;;  %v2802_v58 = vadd.f32 %v9143_v27, %v2786_v24  ;;  %v1827_v7 = vadd.f32 %v6347_v21, %v1807_v22  ;;  %v2467_v54 = vadd.f32 %v6489_v16, %v2435_v1  ;;  %9144 = vst [vmem:[#allocation54_spill] sm:$0xff] %v6601_v28  ;;  %v3992_v24 = vld [vmem:[%s4450_s13 + $0x70] sm:$0xff] }
 0x1b6   : > { %v6597_v26 = vmul.f32 %v5973_v62, %v6558_v17  ;;  %v6603_v53 = vadd.f32 %v960_v48, %v940_v18  ;;  %v1118_v20 = vadd.f32 %v1102_v4, %v1082_v56  ;;  %v1528_v38 = vmul.f32 %v6021_v31, %v6514_v57 }
 0x1b7   : > { %v1472_v11 = vadd.f32 %v1456_v43, %v1436_v0  ;;  %3669 = vmatprep.mubr.f32.mxu1 %v2802_v58  ;;  %v1843_v19 = vadd.f32 %v3992_v24, %v1827_v7  ;;  %v2499_v1 = vadd.f32 %v6493_v3, %v2467_v54  ;;  %v1260_v16 = vadd.f32 %v1244_v33, %v1224_v32  ;;  %v6616_v0 = vld [vmem:[%s4450_s13 + $0x1d0] sm:$0xff] }
 0x1b8   : > { %v1564_v36 = vmul.f32 %v6027_v2, %v6524_v60  ;;  %v1600_v48 = vmul.f32 %v6044_v50, %v6478_v10  ;;  %v373_v18 = vrot.slane %v335_v39, 6  ;;  %v8700_v4 = vrot.slane %v6601_v28, 6  ;;  %9145 = vst [vmem:[#allocation38_spill] sm:$0xff] %v6616_v0 }
 0x1b9   : > { %v1508_v22 = vadd.f32 %v1492_v34, %v1472_v11  ;;  %3646 = vmatmul.mubr.f32.gmra.mrb[2].mxu0 %v1843_v19  ;;  %v2531_v56 = vadd.f32 %v6497_v29, %v2499_v1  ;;  %v476_v23 = vrot.slane %v335_v39, 7  ;;  %v8699_v43 = vrot.slane %v6601_v28, 7 }
 0x1ba   : > { %v577_v3 = vrot.slane %v6601_v28, 1  ;;  %v6624_v32 = vsel %vm421_vm0, %v373_v18, %v8700_v4  ;;  %v8698_v51 = vrot.slane %v6616_v0, 1  ;;  %v678_v34 = vrot.slane %v6601_v28, 2 }
 0x1bb   : > { %v1544_v33 = vadd.f32 %v1528_v38, %v1508_v22  ;;  %9146 = vst [vmem:[#allocation26_spill] sm:$0xff] %v6624_v32  ;;  %v2563_v29 = vadd.f32 %v6508_v46, %v2531_v56  ;;  %v6633_v27 = vsel %vm522_vm1, %v476_v23, %v8699_v43  ;;  %v8697_v58 = vrot.slane %v6616_v0, 2  ;;  %v9179_v43 = vld [vmem:[#allocation90_spill] sm:$0xff] }
 0x1bc   : > { %9147 = vst [vmem:[#allocation107_spill] sm:$0xff] %v6633_v27  ;;  %v1884_v7 = vmul.f32 %v5832_v13, %v6624_v32  ;;  %v1636_v39 = vmul.f32 %v6123_v5, %v6532_v30  ;;  %v1916_v11 = vmul.f32 %v5843_v42, %v6633_v27  ;;  %v1948_v46 = vmul.f32 %v5853_v45, %v6601_v28 }
 0x1bd   : > { %v1580_v54 = vadd.f32 %v1564_v36, %v1544_v33  ;;  %v2595_v38 = vadd.f32 %v6542_v44, %v2563_v29  ;;  %v6645_v24 = vadd.f32 %v1138_v8, %v1118_v20  ;;  %v6651_v19 = vsel %vm623_vm2, %v577_v3, %v8698_v51  ;;  %v9150_v20 = vld [vmem:[#allocation81_spill] sm:$0xff] }
 0x1be   : > { %9148 = vst [vmem:[#allocation108_spill] sm:$0xff] %v6651_v19  ;;  %v2042_v13 = vmul.f32 %v5891_v47, %v6624_v32  ;;  %v1672_v42 = vmul.f32 %v6151_v15, %v6558_v17  ;;  %v1932_v36 = vadd.f32 %v1916_v11, %v1884_v7  ;;  %v2074_v45 = vmul.f32 %v5901_v61, %v6633_v27  ;;  %v9184_v17 = vld [vmem:[#allocation87_spill] sm:$0xff] }
 0x1bf   : > { %v1616_v1 = vadd.f32 %v1600_v48, %v1580_v54  ;;  %v2627_v44 = vadd.f32 %v6546_v49, %v2595_v38  ;;  %v6664_v8 = vsel %vm724_vm3, %v678_v34, %v8697_v58  ;;  %v2106_v47 = vmul.f32 %v5909_v25, %v6601_v28  ;;  %v9151_v49 = vld [vmem:[#allocation31_spill] sm:$0xff]  ;;  %v6774_v58 = vld [vmem:[#allocation5 + $0x3] ss:$0 sm:$0xff] }
 0x1c0   : > { %9149 = vst [vmem:[#allocation111_spill] sm:$0xff] %v6664_v8  ;;  %v2058_v22 = vadd.f32 %v2042_v13, %v9150_v20  ;;  %v1964_v18 = vadd.f32 %v1948_v46, %v1932_v36  ;;  %v1980_v56 = vmul.f32 %v5865_v55, %v6651_v19  ;;  %v2200_v61 = vmul.f32 %v9109_v37, %v6624_v32  ;;  %v9152_v25 = vld [vmem:[#allocation83_spill] sm:$0xff]  ;;  %v9153_v55 = vld [vmem:[#allocation62_spill] sm:$0xff]  ;;  %v9154_v37 = vld [vmem:[#allocation84_spill] sm:$0xff] }
 0x1c1   : > { %v1652_v48 = vadd.f32 %v1636_v39, %v1616_v1  ;;  %v2659_v23 = vadd.f32 %v9151_v49, %v2627_v44  ;;  %v2138_v33 = vmul.f32 %v5917_v41, %v6651_v19  ;;  %v2232_v34 = vmul.f32 %v5955_v52, %v6633_v27  ;;  %v9155_v13 = vld [vmem:[#allocation46_spill] sm:$0xff]  ;;  %v9156_v1 = vld [vmem:[#allocation112_spill] sm:$0xff]  ;;  %9178 = vst [vmem:[#allocation116_spill] sm:$0xff] %v6774_v58 }
 0x1c2   : > { %v2090_v3 = vadd.f32 %v2074_v45, %v2058_v22  ;;  %v1296_v29 = vadd.f32 %v1280_v12, %v1260_v16  ;;  %v2216_v54 = vadd.f32 %v2200_v61, %v9152_v25  ;;  %v2264_v39 = vmul.f32 %v9114_v63, %v6601_v28  ;;  %v9157_v16 = vld [vmem:[#allocation47_spill] sm:$0xff]  ;;  %v9158_v22 = vld [vmem:[#allocation105_spill] sm:$0xff]  ;;  %v9159_v61 = vld [vmem:[#allocation48_spill] sm:$0xff] }
 0x1c3   : > { %v1688_v7 = vadd.f32 %v1672_v42, %v1652_v48  ;;  %v2675_v11 = vadd.f32 %v9153_v55, %v2659_v23  ;;  %v2012_v46 = vmul.f32 %v9154_v37, %v6664_v8  ;;  %v2388_v36 = vmul.f32 %v9156_v1, %v9155_v13  ;;  %v9160_v25 = vld [vmem:[#allocation50_spill] sm:$0xff] }
 0x1c4   : > { %v2122_v38 = vadd.f32 %v2106_v47, %v2090_v3  ;;  %v1996_v45 = vadd.f32 %v1980_v56, %v1964_v18  ;;  %v2248_v12 = vadd.f32 %v2232_v34, %v2216_v54  ;;  %v2420_v42 = vmul.f32 %v9157_v16, %v6087_v40  ;;  %v9162_v34 = vld [vmem:[#allocation51_spill] sm:$0xff] }
 0x1c5   : > { %v1708_v41 = vadd.f32 %v9153_v55, %v1688_v7  ;;  %v2707_v44 = vmul.f32 0.70710677, %v2675_v11  ;;  %v2170_v48 = vmul.f32 %v9158_v22, %v6664_v8  ;;  %v2404_v49 = vadd.f32 %v2388_v36, %v9159_v61  ;;  %v306_v54 = vld [vmem:[%s4450_s13 + $0xd8] sm:$0xff] }
 0x1c6   : > { %v2154_v20 = vadd.f32 %v2138_v33, %v2122_v38  ;;  %v2280_v47 = vadd.f32 %v2264_v39, %v2248_v12  ;;  %v2296_v3 = vmul.f32 %v5967_v6, %v6651_v19  ;;  %v2452_v7 = vmul.f32 %v6339_v35, %v9160_v25  ;;  %v9165_v12 = vld [vmem:[#allocation45_spill] sm:$0xff] }
 0x1c7   : > { %v1740_v23 = vmul.f32 0.70710677, %v1708_v41  ;;  %3834 = verf.f32 %v2707_v44  ;;  %v6697_v18 = vadd.f32 %v6597_v26, %v1296_v29  ;;  %v2436_v56 = vadd.f32 %v2420_v42, %v2404_v49 }
 0x1c8   : > { %v2484_v33 = vmul.f32 %v6351_v59, %v9162_v34  ;;  %v2691_v37 = vmul.f32 0.5, %v2675_v11  ;;  %v6702_v38 = vadd.f32 %v2012_v46, %v1996_v45  ;;  %v6706_v39 = vmul.f32 %v5973_v62, %v6664_v8 }
 0x1c9   : > { %9161 = vst [vmem:[#allocation109_spill] sm:$0xff] %v6697_v18  ;;  %3836 = verf.f32 %v1740_v23  ;;  %v1724_v6 = vmul.f32 0.5, %v1708_v41  ;;  %v6708_v13 = vadd.f32 %v2170_v48, %v2154_v20  ;;  %v2468_v36 = vadd.f32 %v2452_v7, %v2436_v56  ;;  %v6748_v7 = vld [vmem:[#allocation5 + $0x1] ss:$0 sm:$0xff]  ;;  %v6779_v18 = vld [vmem:[#allocation5 + $0x10] ss:$0 sm:$0xff] }
 0x1ca   : > { %9163 = vst [vmem:[#allocation65_spill] sm:$0xff] %v6702_v38  ;;  %v2516_v26 = vmul.f32 %v6021_v31, %v6624_v32  ;;  %v6712_v29 = vadd.f32 %v2296_v3, %v2280_v47  ;;  %v405_v16 = vrot.slane %v9165_v12, 6  ;;  %v508_v11 = vrot.slane %v9165_v12, 7  ;;  %v6744_v3 = vld [vmem:[#allocation5] ss:$0 sm:$0xff]  ;;  %9180 = vst [vmem:[#allocation86_spill] sm:$0xff] %v6779_v18 }
 0x1cb   : > { %9164 = vst [vmem:[#allocation95_spill] sm:$0xff] %v6708_v13  ;;  %v609_v42 = vrot.slane %v306_v54, 1  ;;  %v2500_v46 = vadd.f32 %v2484_v33, %v2468_v36  ;;  %v2548_v45 = vmul.f32 %v6027_v2, %v6633_v27  ;;  %v2580_v62 = vmul.f32 %v6044_v50, %v6601_v28  ;;  %v6734_v2 = vld [vmem:[#allocation5 + $0x2] ss:$0 sm:$0xff]  ;;  %v6754_v33 = vld [vmem:[#allocation5 + $0x8] ss:$0 sm:$0xff] }
 0x1cc   : > { %v710_v41 = vrot.slane %v306_v54, 2  ;;  %v2612_v44 = vmul.f32 %v6123_v5, %v6651_v19  ;;  %v9166_v20 = vrot.slane %v6478_v10, 6  ;;  %v9168_v48 = vrot.slane %v6478_v10, 7  ;;  %9170 = vst [vmem:[#allocation52_spill] sm:$0xff] %v6734_v2  ;;  %9173 = vst [vmem:[#allocation115_spill] sm:$0xff] %v6754_v33  ;;  %v9182_v19 = vld [vmem:[#allocation110_spill] sm:$0xff] }
 0x1cd   : > { %v889_v50 = vmul.f32 %v6734_v2, %v9165_v12  ;;  %v2532_v49 = vadd.f32 %v2516_v26, %v2500_v46  ;;  %v9171_v23 = vrot.slane %v9165_v12, 1  ;;  %v2644_v34 = vmul.f32 %v6151_v15, %v6664_v8  ;;  %v6758_v36 = vld [vmem:[#allocation5 + $0x9] ss:$0 sm:$0xff]  ;;  %v9183_v13 = vld [vmem:[#allocation27_spill] sm:$0xff] }
 0x1ce   : > { %v6726_v22 = vsel %vm421_vm0, %v9166_v20, %v405_v16  ;;  %v6732_v61 = vsel %vm522_vm1, %v9168_v48, %v508_v11  ;;  %9174 = vst [vmem:[#allocation57_spill] sm:$0xff] %v6758_v36  ;;  %v6762_v16 = vld [vmem:[#allocation5 + $0xa] ss:$0 sm:$0xff]  ;;  %v9176_v46 = vrot.slane %v9165_v12, 2  ;;  %v1385_v30 = vmul.f32 %v9156_v1, %v9184_v17 }
 0x1cf   : > { %9167 = vst [vmem:[#allocation100_spill] sm:$0xff] %v6726_v22  ;;  %9169 = vst [vmem:[#allocation103_spill] sm:$0xff] %v6732_v61  ;;  %v6742_v47 = vsel %vm623_vm2, %v9171_v23, %v609_v42  ;;  %v817_v25 = vmul.f32 %v6744_v3, %v6726_v22  ;;  %v853_v56 = vmul.f32 %v6748_v7, %v6732_v61  ;;  %v9181_v8 = vld [vmem:[#allocation85_spill] sm:$0xff] }
 0x1d0   : > { %9172 = vst [vmem:[#allocation79_spill] sm:$0xff] %v6742_v47  ;;  %v995_v54 = vmul.f32 %v6754_v33, %v6726_v22  ;;  %v1031_v26 = vmul.f32 %v6758_v36, %v6732_v61  ;;  %9175 = vst [vmem:[#allocation114_spill] sm:$0xff] %v6762_v16  ;;  %v1067_v11 = vmul.f32 %v6762_v16, %v9165_v12 }
 0x1d1   : > { %v2564_v42 = vadd.f32 %v2548_v45, %v2532_v49  ;;  %v6770_v20 = vsel %vm724_vm3, %v9176_v46, %v710_v41  ;;  %v869_v48 = vadd.f32 %v853_v56, %v817_v25  ;;  %v1245_v23 = vmul.f32 %v9114_v63, %v9165_v12  ;;  %v3835_v49 = vpop.eup %3834  ;;  %v6785_v46 = vld [vmem:[#allocation5 + $0xb] ss:$0 sm:$0xff] }
 0x1d2   : > { %9177 = vst [vmem:[#allocation29_spill] sm:$0xff] %v6770_v20  ;;  %v925_v51 = vmul.f32 %v6774_v58, %v6742_v47  ;;  %v1011_v4 = vadd.f32 %v995_v54, %v9179_v43  ;;  %v1173_v45 = vmul.f32 %v6779_v18, %v6726_v22  ;;  %v1209_v41 = vmul.f32 %v5955_v52, %v6732_v61 }
 0x1d3   : > { %v2596_v25 = vadd.f32 %v2580_v62, %v2564_v42  ;;  %v905_v56 = vadd.f32 %v889_v50, %v869_v48  ;;  %v1103_v63 = vmul.f32 %v6785_v46, %v6742_v47  ;;  %v1349_v27 = vmul.f32 %v9182_v19, %v9181_v8  ;;  %v3837_v43 = vpop.eup %3836  ;;  %v6794_v62 = vld [vmem:[#allocation5 + $0x4] ss:$0 sm:$0xff]  ;;  %v9186_v42 = vld [vmem:[#allocation106_spill] sm:$0xff]  ;;  %v9187_v8 = vld [vmem:[#allocation113_spill] sm:$0xff] }
 0x1d4   : > { %v2739_v54 = vadd.f32 1.0, %v3835_v49  ;;  %v1047_v32 = vadd.f32 %v1031_v26, %v1011_v4  ;;  %v1189_v38 = vadd.f32 %v1173_v45, %v9183_v13  ;;  %v1772_v52 = vadd.f32 1.0, %v3837_v43  ;;  %9185 = vst [vmem:[#allocation81_spill] sm:$0xff] %v6794_v62  ;;  %v6801_v45 = vld [vmem:[#allocation5 + $0xc] ss:$0 sm:$0xff]  ;;  %v338_v43 = vld [vmem:[%s4450_s13 + $0x1d8] sm:$0xff] }
 0x1d5   : > { %v2628_v10 = vadd.f32 %v2612_v44, %v2596_v25  ;;  %v961_v50 = vmul.f32 %v6794_v62, %v6770_v20  ;;  %v1365_v48 = vadd.f32 %v1349_v27, %v9186_v42  ;;  %v1421_v4 = vmul.f32 %v6087_v40, %v9187_v8  ;;  %v9188_v27 = vld [vmem:[#allocation88_spill] sm:$0xff] }
 0x1d6   : > { %v2755_v60 = vmul.f32 %v2739_v54, %v2691_v37  ;;  %v1083_v57 = vadd.f32 %v1067_v11, %v1047_v32  ;;  %v1225_v19 = vadd.f32 %v1209_v41, %v1189_v38  ;;  %v1788_v26 = vmul.f32 %v1772_v52, %v1724_v6  ;;  %v9192_v54 = vld [vmem:[#allocation93_spill] sm:$0xff] }
 0x1d7   : > { %v2660_v13 = vadd.f32 %v2644_v34, %v2628_v10  ;;  %v1139_v17 = vmul.f32 %v6801_v45, %v6770_v20  ;;  %v1401_v1 = vadd.f32 %v1385_v30, %v1365_v48  ;;  %v941_v49 = vadd.f32 %v925_v51, %v905_v56  ;;  %v9189_v10 = vld [vmem:[#allocation28_spill] sm:$0xff]  ;;  %v6817_v51 = vld [vmem:[#allocation5 + $0x13] ss:$0 sm:$0xff] }
 0x1d8   : > { %v2771_v44 = vmul.f32 %v6329_v14, %v2755_v60  ;;  %v1119_v25 = vadd.f32 %v1103_v63, %v1083_v57  ;;  %v1457_v32 = vmul.f32 %v6339_v35, %v9188_v27  ;;  %v1808_v37 = vmul.f32 %v6329_v14, %v1788_v26  ;;  %9191 = vst [vmem:[#allocation83_spill] sm:$0xff] %v6817_v51  ;;  %v9196_v48 = vld [vmem:[#allocation40_spill] sm:$0xff] }
 0x1d9   : > { %v2676_v40 = vadd.f32 %v9153_v55, %v2660_v13  ;;  %v1437_v38 = vadd.f32 %v1421_v4, %v1401_v1  ;;  %v1493_v6 = vmul.f32 %v6351_v59, %v9189_v10  ;;  %v6815_v30 = vadd.f32 %v6706_v39, %v6712_v29  ;;  %v6830_v29 = vld [vmem:[#allocation5 + $0x14] ss:$0 sm:$0xff]  ;;  %v6835_v4 = vld [vmem:[#allocation5 + $0x21] ss:$0 sm:$0xff] }
 0x1da   : > { %v2787_v34 = vadd.f32 %v6347_v21, %v2771_v44  ;;  %v1261_v60 = vadd.f32 %v1245_v23, %v1225_v19  ;;  %v1281_v57 = vmul.f32 %v6817_v51, %v6742_v47  ;;  %v1828_v11 = vadd.f32 %v6347_v21, %v1808_v37  ;;  %9195 = vst [vmem:[#allocation46_spill] sm:$0xff] %v6830_v29 }
 0x1db   : > { %9190 = vst [vmem:[#allocation31_spill] sm:$0xff] %v6815_v30  ;;  %v2708_v41 = vmul.f32 0.70710677, %v2676_v40  ;;  %v1473_v56 = vadd.f32 %v1457_v32, %v1437_v38  ;;  %v1529_v63 = vmul.f32 %v6021_v31, %v6726_v22  ;;  %v6826_v42 = vadd.f32 %v961_v50, %v941_v49  ;;  %v6841_v49 = vld [vmem:[#allocation5 + $0x22] ss:$0 sm:$0xff] }
 0x1dc   : > { %v2803_v52 = vadd.f32 %v9192_v54, %v2787_v34  ;;  %v6828_v39 = vadd.f32 %v1139_v17, %v1119_v25  ;;  %v1317_v23 = vmul.f32 %v6830_v29, %v6770_v20  ;;  %v1844_v19 = vadd.f32 %v9196_v48, %v1828_v11  ;;  %v6912_v30 = vld [vmem:[#allocation5 + $0x1a] ss:$0 sm:$0xff] }
 0x1dd   : > { %9193 = vst [vmem:[#allocation62_spill] sm:$0xff] %v6826_v42  ;;  %3838 = verf.f32 %v2708_v41  ;;  %v1509_v8 = vadd.f32 %v1493_v6, %v1473_v56  ;;  %v1565_v31 = vmul.f32 %v6835_v4, %v6732_v61  ;;  %v1297_v26 = vadd.f32 %v1281_v57, %v1261_v60 }
 0x1de   : > { %9194 = vst [vmem:[#allocation84_spill] sm:$0xff] %v6828_v39  ;;  %3670 = vmatmul.mubr.f32.gmra.mrb[2].mxu1 %v2803_v52  ;;  %v413_v50 = vrot.slane %v6616_v0, 6  ;;  %v516_v13 = vrot.slane %v6616_v0, 7  ;;  %v617_v17 = vrot.slane %v338_v43, 1  ;;  %3648 = vmatprep.mubr.f32.mxu0 %v1844_v19  ;;  %v2692_v1 = vmul.f32 0.5, %v2676_v40  ;;  %v9206_v19 = vld [vmem:[#allocation30_spill] sm:$0xff] }
 0x1df   : > { %v1545_v44 = vadd.f32 %v1529_v63, %v1509_v8  ;;  %v1601_v25 = vmul.f32 %v6841_v49, %v9165_v12  ;;  %v718_v27 = vrot.slane %v338_v43, 2  ;;  %v1637_v32 = vmul.f32 %v6123_v5, %v6742_v47 }
 0x1e0   : > { %v9197_v37 = vrot.slane %v6601_v28, 6  ;;  %v9199_v10 = vrot.slane %v6601_v28, 7  ;;  %v9201_v6 = vrot.slane %v6616_v0, 1  ;;  %v1949_v57 = vmul.f32 %v6734_v2, %v6616_v0 }
 0x1e1   : > { %v1581_v34 = vadd.f32 %v1565_v31, %v1545_v44  ;;  %v6871_v11 = vadd.f32 %v1317_v23, %v1297_v26  ;;  %v1673_v41 = vmul.f32 %v6151_v15, %v6770_v20  ;;  %v9204_v54 = vrot.slane %v6616_v0, 2  ;;  %v6892_v26 = vld [vmem:[#allocation5 + $0x11] ss:$0 sm:$0xff]  ;;  %v6896_v44 = vld [vmem:[#allocation5 + $0x12] ss:$0 sm:$0xff] }
 0x1e2   : > { %v6851_v38 = vsel %vm421_vm0, %v9197_v37, %v413_v50  ;;  %v6857_v40 = vsel %vm522_vm1, %v9199_v10, %v516_v13  ;;  %v6863_v12 = vsel %vm623_vm2, %v9201_v6, %v617_v17  ;;  %v2107_v15 = vmul.f32 %v6762_v16, %v6616_v0  ;;  %v9207_v37 = vld [vmem:[#allocation33_spill] sm:$0xff] }
 0x1e3   : > { %9198 = vst [vmem:[#allocation112_spill] sm:$0xff] %v6851_v38  ;;  %9200 = vst [vmem:[#allocation47_spill] sm:$0xff] %v6857_v40  ;;  %v1885_v5 = vmul.f32 %v6744_v3, %v6851_v38  ;;  %v1917_v60 = vmul.f32 %v6748_v7, %v6857_v40  ;;  %v2043_v56 = vmul.f32 %v6754_v33, %v6851_v38 }
 0x1e4   : > { %9202 = vst [vmem:[#allocation105_spill] sm:$0xff] %v6863_v12  ;;  %9203 = vst [vmem:[#allocation48_spill] sm:$0xff] %v6871_v11  ;;  %v2075_v63 = vmul.f32 %v6758_v36, %v6857_v40  ;;  %v1617_v43 = vadd.f32 %v1601_v25, %v1581_v34  ;;  %v6883_v52 = vsel %vm724_vm3, %v9204_v54, %v718_v27  ;;  %v6900_v27 = vld [vmem:[#allocation5 + $0x18] ss:$0 sm:$0xff] }
 0x1e5   : > { %9205 = vst [vmem:[#allocation50_spill] sm:$0xff] %v6883_v52  ;;  %v1933_v48 = vadd.f32 %v1917_v60, %v1885_v5  ;;  %v1981_v23 = vmul.f32 %v6774_v58, %v6863_v12  ;;  %v2059_v8 = vadd.f32 %v2043_v56, %v9206_v19  ;;  %v2201_v31 = vmul.f32 %v6779_v18, %v6851_v38  ;;  %v9208_v5 = vld [vmem:[#allocation55_spill] sm:$0xff]  ;;  %v9210_v19 = vld [vmem:[#allocation117_spill] sm:$0xff] }
 0x1e6   : > { %v2233_v50 = vmul.f32 %v6892_v26, %v6857_v40  ;;  %v1653_v13 = vadd.f32 %v1637_v32, %v1617_v43  ;;  %v2265_v25 = vmul.f32 %v6896_v44, %v6616_v0  ;;  %v2357_v10 = vmul.f32 %v6900_v27, %v9207_v37  ;;  %v6907_v56 = vld [vmem:[#allocation5 + $0x19] ss:$0 sm:$0xff]  ;;  %v9209_v32 = vld [vmem:[#allocation92_spill] sm:$0xff]  ;;  %v6915_v37 = vld [vmem:[%s4450_s13 + $0x1b0] sm:$0xff] }
 0x1e7   : > { %v1965_v17 = vadd.f32 %v1949_v57, %v1933_v48  ;;  %v2013_v6 = vmul.f32 %v6794_v62, %v6883_v52  ;;  %v2091_v34 = vadd.f32 %v2075_v63, %v2059_v8  ;;  %v2217_v60 = vadd.f32 %v2201_v31, %v9208_v5  ;;  %v3839_v43 = vpop.eup %3838  ;;  %9211 = vst [vmem:[#allocation51_spill] sm:$0xff] %v6915_v37 }
 0x1e8   : > { %v2389_v57 = vmul.f32 %v6907_v56, %v9209_v32  ;;  %v1689_v54 = vadd.f32 %v1673_v41, %v1653_v13  ;;  %v2373_v11 = vadd.f32 %v2357_v10, %v9210_v19  ;;  %v2421_v63 = vmul.f32 %v6915_v37, %v6912_v30 }
 0x1e9   : > { %v1997_v48 = vadd.f32 %v1981_v23, %v1965_v17  ;;  %v2740_v8 = vadd.f32 1.0, %v3839_v43  ;;  %v2123_v31 = vadd.f32 %v2107_v15, %v2091_v34  ;;  %v2139_v5 = vmul.f32 %v6785_v46, %v6863_v12  ;;  %v9212_v17 = vld [vmem:[#allocation32_spill] sm:$0xff]  ;;  %v9213_v34 = vld [vmem:[#allocation37_spill] sm:$0xff] }
 0x1ea   : > { %v2249_v32 = vadd.f32 %v2233_v50, %v2217_v60  ;;  %v1709_v41 = vadd.f32 %v9153_v55, %v1689_v54  ;;  %v2171_v23 = vmul.f32 %v6801_v45, %v6883_v52  ;;  %v2405_v13 = vadd.f32 %v2389_v57, %v2373_v11  ;;  %v307_v60 = vld [vmem:[%s4450_s13 + $0xe0] sm:$0xff]  ;;  %v6942_v54 = vld [vmem:[%s4450_s13 + $0xe8] sm:$0xff] }
 0x1eb   : > { %v2453_v10 = vmul.f32 %v6339_v35, %v9212_v17  ;;  %v2756_v19 = vmul.f32 %v2740_v8, %v2692_v1  ;;  %v2297_v37 = vmul.f32 %v6817_v51, %v6863_v12  ;;  %v6930_v15 = vmul.f32 %v6830_v29, %v6883_v52  ;;  %v6937_v57 = vld [vmem:[#allocation5 + $0x20] ss:$0 sm:$0xff]  ;;  %9215 = vst [vmem:[#allocation90_spill] sm:$0xff] %v6942_v54 }
 0x1ec   : > { %v2485_v50 = vmul.f32 %v6351_v59, %v9213_v34  ;;  %v1741_v55 = vmul.f32 0.70710677, %v1709_v41  ;;  %v6935_v43 = vadd.f32 %v2013_v6, %v1997_v48  ;;  %v2437_v11 = vadd.f32 %v2421_v63, %v2405_v13  ;;  %v6951_v13 = vld [vmem:[%s4450_s13 + $0xf0] sm:$0xff] }
 0x1ed   : > { %v2517_v1 = vmul.f32 %v6937_v57, %v6851_v38  ;;  %v2772_v8 = vmul.f32 %v6329_v14, %v2756_v19  ;;  %v2155_v17 = vadd.f32 %v2139_v5, %v2123_v31  ;;  %v2281_v20 = vadd.f32 %v2265_v25, %v2249_v32  ;;  %9216 = vst [vmem:[#allocation85_spill] sm:$0xff] %v6951_v13  ;;  %v9217_v32 = vld [vmem:[#allocation91_spill] sm:$0xff] }
 0x1ee   : > { %9214 = vst [vmem:[#allocation45_spill] sm:$0xff] %v6935_v43  ;;  %v2549_v34 = vmul.f32 %v6835_v4, %v6857_v40  ;;  %v1725_v47 = vmul.f32 0.5, %v1709_v41  ;;  %3840 = verf.f32 %v1741_v55  ;;  %v2469_v61 = vadd.f32 %v2453_v10, %v2437_v11 }
 0x1ef   : > { %v366_v6 = vrot.slane %v307_v60, 6  ;;  %v2788_v48 = vadd.f32 %v6347_v21, %v2772_v8  ;;  %v2581_v63 = vmul.f32 %v6841_v49, %v6616_v0  ;;  %v8718_v38 = vrot.slane %v6942_v54, 6  ;;  %v7018_v0 = vld [vmem:[%s4450_s13 + $0x108] sm:$0xff] }
 0x1f0   : > { %v469_v43 = vrot.slane %v307_v60, 7  ;;  %v2501_v19 = vadd.f32 %v2485_v50, %v2469_v61  ;;  %v8717_v25 = vrot.slane %v6942_v54, 7  ;;  %v570_v31 = vrot.slane %v6942_v54, 1  ;;  %9225 = vst [vmem:[#allocation88_spill] sm:$0xff] %v7018_v0 }
 0x1f1   : > { %v8716_v5 = vrot.slane %v6951_v13, 1  ;;  %v2804_v41 = vadd.f32 %v9217_v32, %v2788_v48  ;;  %v6962_v10 = vsel %vm421_vm0, %v366_v6, %v8718_v38  ;;  %v671_v55 = vrot.slane %v6942_v54, 2  ;;  %v6994_v32 = vld [vmem:[#allocation5 + $0x23] ss:$0 sm:$0xff] }
 0x1f2   : > { %9218 = vst [vmem:[#allocation110_spill] sm:$0xff] %v6962_v10  ;;  %v8715_v11 = vrot.slane %v6951_v13, 2  ;;  %v2533_v60 = vadd.f32 %v2517_v1, %v2501_v19  ;;  %v6970_v61 = vsel %vm522_vm1, %v469_v43, %v8717_v25  ;;  %v818_v8 = vmul.f32 %v6744_v3, %v6962_v10 }
 0x1f3   : > { %9219 = vst [vmem:[#allocation27_spill] sm:$0xff] %v6970_v61  ;;  %v6976_v50 = vsel %vm623_vm2, %v570_v31, %v8716_v5  ;;  %3672 = vmatprep.mubr.f32.mxu1 %v2804_v41  ;;  %v6980_v6 = vadd.f32 %v2171_v23, %v2155_v17  ;;  %v854_v43 = vmul.f32 %v6748_v7, %v6970_v61  ;;  %v7000_v41 = vld [vmem:[#allocation5 + $0x24] ss:$0 sm:$0xff] }
 0x1f4   : > { %9220 = vst [vmem:[#allocation87_spill] sm:$0xff] %v6976_v50  ;;  %v6986_v1 = vsel %vm724_vm3, %v671_v55, %v8715_v11  ;;  %v890_v48 = vmul.f32 %v6734_v2, %v6942_v54  ;;  %v6992_v19 = vadd.f32 %v2297_v37, %v2281_v20  ;;  %v2565_v31 = vadd.f32 %v2549_v34, %v2533_v60 }
 0x1f5   : > { %9221 = vst [vmem:[#allocation106_spill] sm:$0xff] %v6980_v6  ;;  %9222 = vst [vmem:[#allocation113_spill] sm:$0xff] %v6986_v1  ;;  %v2613_v23 = vmul.f32 %v6994_v32, %v6863_v12  ;;  %v996_v17 = vmul.f32 %v6754_v33, %v6962_v10  ;;  %v2645_v55 = vmul.f32 %v7000_v41, %v6883_v52  ;;  %v9223_v12 = vld [vmem:[#allocation58_spill] sm:$0xff] }
 0x1f6   : > { %v870_v11 = vadd.f32 %v854_v43, %v818_v8  ;;  %v926_v20 = vmul.f32 %v6774_v58, %v6976_v50  ;;  %v1032_v37 = vmul.f32 %v6758_v36, %v6970_v61  ;;  %v2597_v34 = vadd.f32 %v2581_v63, %v2565_v31  ;;  %v9224_v8 = vld [vmem:[#allocation64_spill] sm:$0xff] }
 0x1f7   : > { %v962_v60 = vmul.f32 %v6794_v62, %v6986_v1  ;;  %v1012_v5 = vadd.f32 %v996_v17, %v6603_v53  ;;  %v1068_v25 = vmul.f32 %v6762_v16, %v6942_v54  ;;  %v998_v52 = vmul.f32 %v6754_v33, %v9223_v12 }
 0x1f8   : > { %v906_v38 = vadd.f32 %v890_v48, %v870_v11  ;;  %v1034_v43 = vmul.f32 %v6758_v36, %v9224_v8  ;;  %v1070_v63 = vmul.f32 %v7018_v0, %v6762_v16  ;;  %v3841_v31 = vpop.eup %3840  ;;  %v2629_v40 = vadd.f32 %v2613_v23, %v2597_v34 }
 0x1f9   : > { %v1048_v6 = vadd.f32 %v1032_v37, %v1012_v5  ;;  %v1104_v53 = vmul.f32 %v6785_v46, %v6976_v50  ;;  %v1174_v11 = vmul.f32 %v6779_v18, %v6962_v10  ;;  %v1773_v48 = vadd.f32 1.0, %v3841_v31 }
 0x1fa   : > { %v942_v17 = vadd.f32 %v926_v20, %v906_v38  ;;  %v1140_v22 = vmul.f32 %v6801_v45, %v6986_v1  ;;  %v1210_v39 = vmul.f32 %v6892_v26, %v6970_v61  ;;  %v2661_v42 = vadd.f32 %v2645_v55, %v2629_v40  ;;  %v7040_v20 = vld [vmem:[%s8493_s3] ss:$0 sm:$0xff] }
 0x1fb   : > { %v1084_v13 = vadd.f32 %v1068_v25, %v1048_v6  ;;  %v1190_v28 = vadd.f32 %v1174_v11, %v6645_v24  ;;  %v1246_v5 = vmul.f32 %v6896_v44, %v6942_v54  ;;  %v1789_v23 = vmul.f32 %v1773_v48, %v1725_v47  ;;  %9226 = vst [vmem:[#allocation28_spill] sm:$0xff] %v7040_v20  ;;  %v9228_v11 = vld [vmem:[#allocation44_spill] sm:$0xff] }
 0x1fc   : > { %v978_v37 = vadd.f32 %v962_v60, %v942_v17  ;;  %v1176_v34 = vmul.f32 %v6779_v18, %v9223_v12  ;;  %v1212_v38 = vmul.f32 %v6892_v26, %v9224_v8  ;;  %v2677_v40 = vadd.f32 %v7040_v20, %v2661_v42  ;;  %v9227_v60 = vld [vmem:[#allocation35_spill] sm:$0xff]  ;;  %v9232_v20 = vld [vmem:[#allocation36_spill] sm:$0xff] }
 0x1fd   : > { %v1120_v25 = vadd.f32 %v1104_v53, %v1084_v13  ;;  %v1226_v24 = vadd.f32 %v1210_v39, %v1190_v28  ;;  %v1282_v6 = vmul.f32 %v6817_v51, %v6976_v50  ;;  %v1809_v47 = vmul.f32 %v6329_v14, %v1789_v23  ;;  %v9229_v14 = vld [vmem:[#allocation80_spill] sm:$0xff]  ;;  %v9231_v23 = vld [vmem:[#allocation70_spill] sm:$0xff] }
 0x1fe   : > { %v1014_v55 = vadd.f32 %v998_v52, %v978_v37  ;;  %v1350_v31 = vmul.f32 %v6900_v27, %v9227_v60  ;;  %v1386_v48 = vmul.f32 %v6907_v56, %v9228_v11  ;;  %v2709_v17 = vmul.f32 0.70710677, %v2677_v40  ;;  %v9230_v52 = vld [vmem:[#allocation39_spill] sm:$0xff] }
 0x1ff   : > { %v1156_v8 = vadd.f32 %v1140_v22, %v1120_v25  ;;  %v1262_v12 = vadd.f32 %v1246_v5, %v1226_v24  ;;  %v1318_v28 = vmul.f32 %v6830_v29, %v6986_v1  ;;  %v1829_v42 = vadd.f32 %v6347_v21, %v1809_v47  ;;  %v4019_v25 = vld [vmem:[%s4450_s13 + $0x90] sm:$0xff]  ;;  %v339_v21 = vld [vmem:[%s4450_s13 + $0x1e0] sm:$0xff] }
 0x200   : > { %v1050_v39 = vadd.f32 %v1034_v43, %v1014_v55  ;;  %v1366_v13 = vadd.f32 %v1350_v31, %v9229_v14  ;;  %v1422_v53 = vmul.f32 %v6912_v30, %v9230_v52  ;;  %3842 = verf.f32 %v2709_v17  ;;  %v7063_v43 = vld [vmem:[%s4450_s13 + $0x1e8] sm:$0xff]  ;;  %v9235_v31 = vld [vmem:[#allocation74_spill] sm:$0xff] }
 0x201   : > { %v1106_v37 = vmul.f32 %v6785_v46, %v9231_v23  ;;  %v1192_v60 = vadd.f32 %v1176_v34, %v1156_v8  ;;  %v1298_v22 = vadd.f32 %v1282_v6, %v1262_v12  ;;  %v1845_v5 = vadd.f32 %v4019_v25, %v1829_v42  ;;  %9233 = vst [vmem:[#allocation93_spill] sm:$0xff] %v7063_v43 }
 0x202   : > { %v1086_v24 = vadd.f32 %v1070_v63, %v1050_v39  ;;  %v1402_v11 = vadd.f32 %v1386_v48, %v1366_v13  ;;  %v1458_v29 = vmul.f32 %v6339_v35, %v9232_v20  ;;  %v7067_v47 = vadd.f32 %v6930_v15, %v6992_v19  ;;  %v9237_v20 = vld [vmem:[#allocation49_spill] sm:$0xff]  ;;  %v7085_v39 = vld [vmem:[%s4450_s13 + $0x1f0] sm:$0xff]  ;;  %v9252_v23 = vld [vmem:[#allocation28_spill] sm:$0xff] }
 0x203   : > { %v2693_v55 = vmul.f32 0.5, %v2677_v40  ;;  %v7071_v8 = vmul.f32 %v6801_v45, %v9235_v31  ;;  %v1248_v12 = vmul.f32 %v7018_v0, %v6896_v44  ;;  %3649 = vmatmul.mubr.f32.gmra.mrb[4].mxu0 %v1845_v5  ;;  %v1228_v63 = vadd.f32 %v1212_v38, %v1192_v60 }
 0x204   : > { %9234 = vst [vmem:[#allocation40_spill] sm:$0xff] %v7067_v47  ;;  %v7075_v34 = vadd.f32 %v1318_v28, %v1298_v22  ;;  %v1438_v35 = vadd.f32 %v1422_v53, %v1402_v11  ;;  %v1494_v6 = vmul.f32 %v6351_v59, %v9237_v20  ;;  %v1530_v15 = vmul.f32 %v6937_v57, %v6962_v10 }
 0x205   : > { %v1566_v19 = vmul.f32 %v6835_v4, %v6970_v61  ;;  %v374_v40 = vrot.slane %v339_v21, 6  ;;  %v8735_v48 = vrot.slane %v7063_v43, 6  ;;  %v1122_v17 = vadd.f32 %v1106_v37, %v1086_v24 }
 0x206   : > { %9236 = vst [vmem:[#allocation30_spill] sm:$0xff] %v7075_v34  ;;  %v1474_v42 = vadd.f32 %v1458_v29, %v1438_v35  ;;  %v477_v38 = vrot.slane %v339_v21, 7  ;;  %v8734_v28 = vrot.slane %v7063_v43, 7  ;;  %v578_v14 = vrot.slane %v7063_v43, 1 }
 0x207   : > { %v7092_v59 = vsel %vm421_vm0, %v374_v40, %v8735_v48  ;;  %v8733_v13 = vrot.slane %v7085_v39, 1  ;;  %v679_v52 = vrot.slane %v7063_v43, 2  ;;  %v8736_v37 = vrot.slane %v7085_v39, 2 }
 0x208   : > { %9238 = vst [vmem:[#allocation33_spill] sm:$0xff] %v7092_v59  ;;  %v1510_v53 = vadd.f32 %v1494_v6, %v1474_v42  ;;  %v7101_v29 = vsel %vm522_vm1, %v477_v38, %v8734_v28  ;;  %v1886_v60 = vmul.f32 %v6744_v3, %v7092_v59  ;;  %v1950_v5 = vmul.f32 %v6734_v2, %v7063_v43  ;;  %v9242_v38 = vld [vmem:[#allocation65_spill] sm:$0xff] }
 0x209   : > { %9239 = vst [vmem:[#allocation55_spill] sm:$0xff] %v7101_v29  ;;  %v7110_v22 = vsel %vm623_vm2, %v578_v14, %v8733_v13  ;;  %v1918_v25 = vmul.f32 %v6748_v7, %v7101_v29  ;;  %v2044_v24 = vmul.f32 %v6754_v33, %v7092_v59  ;;  %v1602_v21 = vmul.f32 %v6841_v49, %v6942_v54 }
 0x20a   : > { %9240 = vst [vmem:[#allocation92_spill] sm:$0xff] %v7110_v22  ;;  %v1546_v11 = vadd.f32 %v1530_v15, %v1510_v53  ;;  %v1638_v35 = vmul.f32 %v6994_v32, %v6976_v50  ;;  %v2076_v20 = vmul.f32 %v6758_v36, %v7101_v29  ;;  %v3843_v6 = vpop.eup %3842  ;;  %v7128_v40 = vsel %vm724_vm3, %v679_v52, %v8736_v37  ;;  %v9244_v37 = vld [vmem:[#allocation95_spill] sm:$0xff] }
 0x20b   : > { %9241 = vst [vmem:[#allocation117_spill] sm:$0xff] %v7128_v40  ;;  %v1934_v42 = vadd.f32 %v1918_v25, %v1886_v60  ;;  %v2060_v14 = vadd.f32 %v2044_v24, %v9242_v38  ;;  %v2108_v15 = vmul.f32 %v6762_v16, %v7063_v43  ;;  %v2741_v53 = vadd.f32 1.0, %v3843_v6 }
 0x20c   : > { %v1582_v13 = vadd.f32 %v1566_v19, %v1546_v11  ;;  %v1982_v28 = vmul.f32 %v6774_v58, %v7110_v22  ;;  %v2140_v48 = vmul.f32 %v6785_v46, %v7110_v22  ;;  %v2202_v52 = vmul.f32 %v6779_v18, %v7092_v59 }
 0x20d   : > { %v1966_v34 = vadd.f32 %v1950_v5, %v1934_v42  ;;  %v2092_v47 = vadd.f32 %v2076_v20, %v2060_v14  ;;  %v2234_v60 = vmul.f32 %v6892_v26, %v7101_v29  ;;  %v2757_v25 = vmul.f32 %v2741_v53, %v2693_v55  ;;  %v7153_v42 = vld [vmem:[%s8493_s3 + $0x1] ss:$0 sm:$0xff] }
 0x20e   : > { %v7141_v24 = vadd.f32 %v1248_v12, %v1228_v63  ;;  %v1618_v38 = vadd.f32 %v1602_v21, %v1582_v13  ;;  %v1674_v19 = vmul.f32 %v7000_v41, %v6986_v1  ;;  %v2014_v11 = vmul.f32 %v6794_v62, %v7128_v40  ;;  %v9245_v63 = vld [vmem:[#allocation26_spill] sm:$0xff]  ;;  %v9246_v21 = vld [vmem:[#allocation107_spill] sm:$0xff] }
 0x20f   : > { %v2124_v6 = vadd.f32 %v2108_v15, %v2092_v47  ;;  %v2218_v5 = vadd.f32 %v2202_v52, %v9244_v37  ;;  %v2266_v20 = vmul.f32 %v6896_v44, %v7063_v43  ;;  %v2773_v55 = vmul.f32 %v7153_v42, %v2757_v25  ;;  %v7165_v52 = vld [vmem:[%s8493_s3 + $0x2] ss:$0 sm:$0xff] }
 0x210   : > { %9243 = vst [vmem:[#allocation32_spill] sm:$0xff] %v7141_v24  ;;  %v1654_v12 = vadd.f32 %v1638_v35, %v1618_v38  ;;  %v2358_v13 = vmul.f32 %v6900_v27, %v9245_v63  ;;  %v2390_v14 = vmul.f32 %v6907_v56, %v9246_v21  ;;  %v1998_v47 = vadd.f32 %v1982_v28, %v1966_v34  ;;  %v9247_v38 = vld [vmem:[#allocation89_spill] sm:$0xff]  ;;  %v9248_v24 = vld [vmem:[#allocation54_spill] sm:$0xff] }
 0x211   : > { %v2156_v15 = vadd.f32 %v2140_v48, %v2124_v6  ;;  %v2172_v37 = vmul.f32 %v6801_v45, %v7128_v40  ;;  %v2250_v53 = vadd.f32 %v2234_v60, %v2218_v5  ;;  %v2789_v35 = vadd.f32 %v7165_v52, %v2773_v55  ;;  %v9250_v60 = vld [vmem:[#allocation46_spill] sm:$0xff]  ;;  %v9251_v5 = vld [vmem:[#allocation43_spill] sm:$0xff] }
 0x212   : > { %v1690_v25 = vadd.f32 %v1674_v19, %v1654_v12  ;;  %v2374_v63 = vadd.f32 %v2358_v13, %v9247_v38  ;;  %v2422_v21 = vmul.f32 %v6912_v30, %v9248_v24  ;;  %v7172_v34 = vadd.f32 %v7071_v8, %v1122_v17  ;;  %v7180_v12 = vld [vmem:[#allocation5 + $0x1b] ss:$0 sm:$0xff]  ;;  %v9253_v13 = vld [vmem:[#allocation108_spill] sm:$0xff] }
 0x213   : > { %v2282_v48 = vadd.f32 %v2266_v20, %v2250_v53  ;;  %v2298_v28 = vmul.f32 %v6817_v51, %v7110_v22  ;;  %v2330_v6 = vmul.f32 %v9250_v60, %v7128_v40  ;;  %v2805_v31 = vadd.f32 %v9251_v5, %v2789_v35  ;;  %v310_v38 = vld [vmem:[%s4450_s13 + $0xf8] sm:$0xff]  ;;  %v9257_v5 = vld [vmem:[#allocation85_spill] sm:$0xff] }
 0x214   : > { %9249 = vst [vmem:[#allocation37_spill] sm:$0xff] %v7172_v34  ;;  %v1710_v55 = vadd.f32 %v9252_v23, %v1690_v25  ;;  %v2406_v19 = vadd.f32 %v2390_v14, %v2374_v63  ;;  %v2454_v24 = vmul.f32 %v7180_v12, %v9253_v13  ;;  %v7185_v8 = vadd.f32 %v2014_v11, %v1998_v47  ;;  %v7189_v20 = vld [vmem:[#allocation5 + $0x1c] ss:$0 sm:$0xff] }
 0x215   : > { %v7187_v17 = vadd.f32 %v2172_v37, %v2156_v15  ;;  %v9256_v53 = vld [vmem:[#allocation111_spill] sm:$0xff]  ;;  %v2518_v35 = vmul.f32 %v6937_v57, %v7092_v59  ;;  %3673 = vmatmul.mubr.f32.gmra.mrb[4].mxu1 %v2805_v31  ;;  %v2550_v63 = vmul.f32 %v6835_v4, %v7101_v29  ;;  %v406_v13 = vrot.slane %v9257_v5, 6  ;;  %v9267_v29 = vld [vmem:[#allocation41_spill] sm:$0xff] }
 0x216   : > { %9254 = vst [vmem:[#allocation91_spill] sm:$0xff] %v7185_v8  ;;  %v2486_v34 = vmul.f32 %v7189_v20, %v9256_v53  ;;  %v1742_v14 = vmul.f32 0.70710677, %v1710_v55  ;;  %v2438_v25 = vadd.f32 %v2422_v21, %v2406_v19  ;;  %v2314_v11 = vadd.f32 %v2298_v28, %v2282_v48  ;;  %v9268_v8 = vld [vmem:[#allocation62_spill] sm:$0xff] }
 0x217   : > { %9255 = vst [vmem:[#allocation35_spill] sm:$0xff] %v7187_v17  ;;  %v509_v47 = vrot.slane %v9257_v5, 7  ;;  %v610_v15 = vrot.slane %v310_v38, 1  ;;  %v711_v37 = vrot.slane %v310_v38, 2  ;;  %v2582_v53 = vmul.f32 %v6841_v49, %v7063_v43 }
 0x218   : > { %3844 = verf.f32 %v1742_v14  ;;  %v2470_v17 = vadd.f32 %v2454_v24, %v2438_v25  ;;  %v9258_v59 = vrot.slane %v6942_v54, 6  ;;  %v2614_v21 = vmul.f32 %v6994_v32, %v7110_v22 }
 0x219   : > { %v9260_v48 = vrot.slane %v6942_v54, 7  ;;  %v9262_v19 = vrot.slane %v9257_v5, 1  ;;  %v9264_v14 = vrot.slane %v9257_v5, 2  ;;  %v1069_v1 = vmul.f32 %v6762_v16, %v9257_v5 }
 0x21a   : > { %v7205_v31 = vsel %vm421_vm0, %v9258_v59, %v406_v13  ;;  %v2502_v59 = vadd.f32 %v2486_v34, %v2470_v17 }
 0x21b   : > { %9259 = vst [vmem:[#allocation44_spill] sm:$0xff] %v7205_v31  ;;  %v7213_v28 = vsel %vm522_vm1, %v9260_v48, %v509_v47  ;;  %v7219_v24 = vsel %vm623_vm2, %v9262_v19, %v610_v15  ;;  %v819_v38 = vmul.f32 %v6744_v3, %v7205_v31  ;;  %v7227_v25 = vsel %vm724_vm3, %v9264_v14, %v711_v37 }
 0x21c   : > { %9261 = vst [vmem:[#allocation80_spill] sm:$0xff] %v7213_v28  ;;  %9263 = vst [vmem:[#allocation39_spill] sm:$0xff] %v7219_v24  ;;  %v855_v13 = vmul.f32 %v6748_v7, %v7213_v28  ;;  %v891_v47 = vmul.f32 %v6734_v2, %v9257_v5  ;;  %v1726_v48 = vmul.f32 0.5, %v1710_v55  ;;  %v2646_v15 = vmul.f32 %v7000_v41, %v7128_v40 }
 0x21d   : > { %9265 = vst [vmem:[#allocation36_spill] sm:$0xff] %v7227_v25  ;;  %v997_v34 = vmul.f32 %v6754_v33, %v7205_v31  ;;  %v1033_v17 = vmul.f32 %v6758_v36, %v7213_v28  ;;  %v7239_v19 = vadd.f32 %v2330_v6, %v2314_v11  ;;  %v2534_v37 = vadd.f32 %v2518_v35, %v2502_v59  ;;  %v9269_v6 = vld [vmem:[#allocation66_spill] sm:$0xff] }
 0x21e   : > { %v871_v14 = vadd.f32 %v855_v13, %v819_v38  ;;  %v927_v22 = vmul.f32 %v6774_v58, %v7219_v24  ;;  %v963_v55 = vmul.f32 %v6794_v62, %v7227_v25  ;;  %v999_v40 = vmul.f32 %v6754_v33, %v9267_v29  ;;  %v7255_v59 = vld [vmem:[%s4450_s13 + $0x110] sm:$0xff] }
 0x21f   : > { %9266 = vst [vmem:[#allocation49_spill] sm:$0xff] %v7239_v19  ;;  %v1013_v0 = vadd.f32 %v997_v34, %v9268_v8  ;;  %v2566_v50 = vadd.f32 %v2550_v63, %v2534_v37  ;;  %v1035_v35 = vmul.f32 %v6758_v36, %v9269_v6  ;;  %v1175_v11 = vmul.f32 %v6779_v18, %v7205_v31  ;;  %v9271_v37 = vld [vmem:[#allocation84_spill] sm:$0xff] }
 0x220   : > { %v907_v54 = vadd.f32 %v891_v47, %v871_v14  ;;  %9270 = vst [vmem:[#allocation65_spill] sm:$0xff] %v7255_v59  ;;  %v1071_v13 = vmul.f32 %v7255_v59, %v6762_v16  ;;  %v1105_v8 = vmul.f32 %v6785_v46, %v7219_v24  ;;  %v1211_v34 = vmul.f32 %v6892_v26, %v7213_v28 }
 0x221   : > { %v1049_v38 = vadd.f32 %v1033_v17, %v1013_v0  ;;  %v2598_v63 = vadd.f32 %v2582_v53, %v2566_v50  ;;  %v1191_v14 = vadd.f32 %v1175_v11, %v9271_v37  ;;  %v1247_v19 = vmul.f32 %v6896_v44, %v9257_v5 }
 0x222   : > { %v943_v47 = vadd.f32 %v927_v22, %v907_v54  ;;  %v1141_v0 = vmul.f32 %v6801_v45, %v7227_v25  ;;  %v1177_v17 = vmul.f32 %v6779_v18, %v9267_v29  ;;  %v1283_v10 = vmul.f32 %v6817_v51, %v7219_v24  ;;  %v3845_v36 = vpop.eup %3844  ;;  %v9272_v22 = vld [vmem:[#allocation100_spill] sm:$0xff]  ;;  %v9274_v51 = vld [vmem:[#allocation25_spill] sm:$0xff] }
 0x223   : > { %v1085_v61 = vadd.f32 %v1069_v1, %v1049_v38  ;;  %v2630_v33 = vadd.f32 %v2614_v21, %v2598_v63  ;;  %v1227_v54 = vadd.f32 %v1211_v34, %v1191_v14  ;;  %v1351_v53 = vmul.f32 %v6900_v27, %v9272_v22  ;;  %v9273_v38 = vld [vmem:[#allocation103_spill] sm:$0xff]  ;;  %v9275_v21 = vld [vmem:[#allocation96_spill] sm:$0xff]  ;;  %v7284_v63 = vld [vmem:[%s4450_s13 + $0xd0] sm:$0xff] }
 0x224   : > { %v979_v50 = vadd.f32 %v963_v55, %v943_v47  ;;  %v1774_v11 = vadd.f32 1.0, %v3845_v36  ;;  %v1319_v1 = vmul.f32 %v9250_v60, %v7227_v25  ;;  %v1387_v62 = vmul.f32 %v6907_v56, %v9273_v38  ;;  %9277 = vst [vmem:[#allocation26_spill] sm:$0xff] %v7284_v63 }
 0x225   : > { %v1121_v37 = vadd.f32 %v1105_v8, %v1085_v61  ;;  %v2662_v29 = vadd.f32 %v2646_v15, %v2630_v33  ;;  %v1263_v58 = vadd.f32 %v1247_v19, %v1227_v54  ;;  %v1367_v16 = vadd.f32 %v1351_v53, %v9274_v51  ;;  %v9278_v19 = vld [vmem:[#allocation79_spill] sm:$0xff]  ;;  %v4026_v53 = vld [vmem:[%s4450_s13 + $0xa8] sm:$0xff] }
 0x226   : > { %v1015_v18 = vadd.f32 %v999_v40, %v979_v50  ;;  %v1790_v2 = vmul.f32 %v1774_v11, %v1726_v48  ;;  %v7281_v55 = vmul.f32 %v6785_v46, %v9275_v21  ;;  %v1423_v36 = vmul.f32 %v7284_v63, %v6912_v30  ;;  %v9297_v63 = vld [vmem:[#allocation45_spill] sm:$0xff] }
 0x227   : > { %v1157_v34 = vadd.f32 %v1141_v0, %v1121_v37  ;;  %v2678_v61 = vadd.f32 %v9252_v23, %v2662_v29  ;;  %v1299_v33 = vadd.f32 %v1283_v10, %v1263_v58  ;;  %v1403_v40 = vadd.f32 %v1387_v62, %v1367_v16  ;;  %v9279_v0 = vld [vmem:[#allocation101_spill] sm:$0xff] }
 0x228   : > { %9276 = vst [vmem:[#allocation95_spill] sm:$0xff] %v7281_v55  ;;  %v1051_v8 = vadd.f32 %v1035_v35, %v1015_v18  ;;  %v1810_v15 = vmul.f32 %v7153_v42, %v1790_v2  ;;  %v1213_v48 = vmul.f32 %v6892_v26, %v9269_v6  ;;  %v1459_v47 = vmul.f32 %v7180_v12, %v9278_v19  ;;  %v9283_v62 = vld [vmem:[#allocation29_spill] sm:$0xff]  ;;  %v342_v35 = vld [vmem:[%s4450_s13 + $0x1f8] sm:$0xff] }
 0x229   : > { %v1193_v51 = vadd.f32 %v1177_v17, %v1157_v34  ;;  %v2710_v14 = vmul.f32 0.70710677, %v2678_v61  ;;  %v7296_v50 = vmul.f32 %v6801_v45, %v9279_v0  ;;  %v7300_v18 = vmul.f32 %v7255_v59, %v6896_v44 }
 0x22a   : > { %v7302_v58 = vadd.f32 %v1319_v1, %v1299_v33  ;;  %v1830_v2 = vadd.f32 %v7165_v52, %v1810_v15  ;;  %v1439_v16 = vadd.f32 %v1423_v36, %v1403_v40  ;;  %v1495_v10 = vmul.f32 %v7189_v20, %v9283_v62 }
 0x22b   : > { %9280 = vst [vmem:[#allocation107_spill] sm:$0xff] %v7296_v50  ;;  %9281 = vst [vmem:[#allocation89_spill] sm:$0xff] %v7300_v18  ;;  %v1531_v29 = vmul.f32 %v6937_v57, %v7205_v31  ;;  %v2694_v17 = vmul.f32 0.5, %v2678_v61  ;;  %3846 = verf.f32 %v2710_v14  ;;  %v7310_v54 = vadd.f32 %v1071_v13, %v1051_v8 }
 0x22c   : > { %9282 = vst [vmem:[#allocation54_spill] sm:$0xff] %v7302_v58  ;;  %v1567_v22 = vmul.f32 %v6835_v4, %v7213_v28  ;;  %v1846_v11 = vadd.f32 %v4026_v53, %v1830_v2  ;;  %v7315_v37 = vadd.f32 %v1213_v48, %v1193_v51  ;;  %v1475_v1 = vadd.f32 %v1459_v47, %v1439_v16  ;;  %v9290_v53 = vld [vmem:[#allocation52_spill] sm:$0xff]  ;;  %v9301_v28 = vld [vmem:[#allocation47_spill] sm:$0xff] }
 0x22d   : > { %9284 = vst [vmem:[#allocation43_spill] sm:$0xff] %v7310_v54  ;;  %v414_v38 = vrot.slane %v7085_v39, 6  ;;  %v1603_v34 = vmul.f32 %v6841_v49, %v9257_v5  ;;  %v517_v36 = vrot.slane %v7085_v39, 7  ;;  %v618_v33 = vrot.slane %v342_v35, 1 }
 0x22e   : > { %9285 = vst [vmem:[#allocation28_spill] sm:$0xff] %v7315_v37  ;;  %v719_v61 = vrot.slane %v342_v35, 2  ;;  %3651 = vmatprep.mubr.f32.mxu0 %v1846_v11  ;;  %v1511_v13 = vadd.f32 %v1495_v10, %v1475_v1  ;;  %v1639_v8 = vmul.f32 %v6994_v32, %v7219_v24  ;;  %v1675_v40 = vmul.f32 %v7000_v41, %v7227_v25  ;;  %v9291_v1 = vld [vmem:[#allocation114_spill] sm:$0xff] }
 0x22f   : > { %v9286_v15 = vrot.slane %v7063_v43, 6  ;;  %v9287_v48 = vrot.slane %v7063_v43, 7  ;;  %v9288_v47 = vrot.slane %v7085_v39, 1  ;;  %v9289_v2 = vrot.slane %v7085_v39, 2 }
 0x230   : > { %v1547_v10 = vadd.f32 %v1531_v29, %v1511_v13  ;;  %v1951_v11 = vmul.f32 %v9290_v53, %v7085_v39  ;;  %v2267_v21 = vmul.f32 %v6896_v44, %v7085_v39  ;;  %v2391_v31 = vmul.f32 %v6907_v56, %v9301_v28 }
 0x231   : > { %v7329_v51 = vsel %vm421_vm0, %v9286_v15, %v414_v38  ;;  %v7335_v19 = vsel %vm522_vm1, %v9287_v48, %v517_v36  ;;  %v7341_v14 = vsel %vm623_vm2, %v9288_v47, %v618_v33  ;;  %v7347_v16 = vsel %vm724_vm3, %v9289_v2, %v719_v61  ;;  %v9292_v36 = vld [vmem:[#allocation116_spill] sm:$0xff]  ;;  %v9293_v15 = vld [vmem:[#allocation81_spill] sm:$0xff]  ;;  %v9294_v48 = vld [vmem:[#allocation115_spill] sm:$0xff] }
 0x232   : > { %v1887_v62 = vmul.f32 %v6744_v3, %v7329_v51  ;;  %v1919_v35 = vmul.f32 %v6748_v7, %v7335_v19  ;;  %v2109_v38 = vmul.f32 %v9291_v1, %v7085_v39  ;;  %v1983_v33 = vmul.f32 %v9292_v36, %v7341_v14  ;;  %v9295_v3 = vld [vmem:[#allocation57_spill] sm:$0xff]  ;;  %v9296_v2 = vld [vmem:[#allocation86_spill] sm:$0xff] }
 0x233   : > { %v2015_v61 = vmul.f32 %v9293_v15, %v7347_v16  ;;  %v2045_v47 = vmul.f32 %v9294_v48, %v7329_v51  ;;  %v2077_v29 = vmul.f32 %v9295_v3, %v7335_v19  ;;  %v1583_v13 = vadd.f32 %v1567_v22, %v1547_v10 }
 0x234   : > { %v1935_v7 = vadd.f32 %v1919_v35, %v1887_v62  ;;  %v2203_v53 = vmul.f32 %v9296_v2, %v7329_v51  ;;  %v2235_v58 = vmul.f32 %v6892_v26, %v7335_v19  ;;  %v2141_v36 = vmul.f32 %v6785_v46, %v7341_v14  ;;  %v9298_v62 = vld [vmem:[#allocation106_spill] sm:$0xff]  ;;  %v9299_v35 = vld [vmem:[#allocation112_spill] sm:$0xff] }
 0x235   : > { %v2061_v0 = vadd.f32 %v2045_v47, %v9297_v63  ;;  %v2173_v15 = vmul.f32 %v6801_v45, %v7347_v16  ;;  %v1619_v59 = vadd.f32 %v1603_v34, %v1583_v13  ;;  %v2359_v6 = vmul.f32 %v6900_v27, %v9299_v35  ;;  %v3847_v25 = vpop.eup %3846  ;;  %v9300_v63 = vld [vmem:[#allocation83_spill] sm:$0xff] }
 0x236   : > { %v1967_v22 = vadd.f32 %v1951_v11, %v1935_v7  ;;  %v2219_v10 = vadd.f32 %v2203_v53, %v9298_v62  ;;  %v2299_v47 = vmul.f32 %v9300_v63, %v7341_v14  ;;  %v2331_v5 = vmul.f32 %v9250_v60, %v7347_v16  ;;  %v9302_v7 = vld [vmem:[#allocation56_spill] sm:$0xff]  ;;  %v9303_v62 = vld [vmem:[#allocation38_spill] sm:$0xff] }
 0x237   : > { %v2093_v24 = vadd.f32 %v2077_v29, %v2061_v0  ;;  %v2742_v50 = vadd.f32 1.0, %v3847_v25  ;;  %v1655_v18 = vadd.f32 %v1639_v8, %v1619_v59  ;;  %v2375_v53 = vadd.f32 %v2359_v6, %v9302_v7  ;;  %v9304_v0 = vld [vmem:[#allocation105_spill] sm:$0xff]  ;;  %v9305_v25 = vld [vmem:[#allocation50_spill] sm:$0xff] }
 0x238   : > { %v1999_v34 = vadd.f32 %v1983_v33, %v1967_v22  ;;  %v2251_v11 = vadd.f32 %v2235_v58, %v2219_v10  ;;  %v2423_v35 = vmul.f32 %v6912_v30, %v9303_v62  ;;  %v2455_v29 = vmul.f32 %v7180_v12, %v9304_v0  ;;  %v9310_v22 = vld [vmem:[#allocation90_spill] sm:$0xff]  ;;  %v7421_v7 = vld [vmem:[%s4450_s13 + $0x208] sm:$0xff] }
 0x239   : > { %v2125_v13 = vadd.f32 %v2109_v38, %v2093_v24  ;;  %v2758_v37 = vmul.f32 %v2742_v50, %v2694_v17  ;;  %v1691_v43 = vadd.f32 %v1675_v40, %v1655_v18  ;;  %v2407_v28 = vadd.f32 %v2391_v31, %v2375_v53  ;;  %v9306_v17 = vld [vmem:[#allocation110_spill] sm:$0xff] }
 0x23a   : > { %v7390_v55 = vadd.f32 %v2015_v61, %v1999_v34  ;;  %v2283_v60 = vadd.f32 %v2267_v21, %v2251_v11  ;;  %v2487_v59 = vmul.f32 %v7189_v20, %v9305_v25  ;;  %v2519_v24 = vmul.f32 %v6937_v57, %v7329_v51  ;;  %v9308_v61 = vld [vmem:[#allocation109_spill] sm:$0xff]  ;;  %v9313_v25 = vld [vmem:[#allocation58_spill] sm:$0xff] }
 0x23b   : > { %v2157_v54 = vadd.f32 %v2141_v36, %v2125_v13  ;;  %v2774_v6 = vmul.f32 %v7153_v42, %v2758_v37  ;;  %v1711_v58 = vadd.f32 %v9252_v23, %v1691_v43  ;;  %v2551_v50 = vmul.f32 %v6835_v4, %v7335_v19  ;;  %v9309_v36 = vld [vmem:[#allocation27_spill] sm:$0xff]  ;;  %v4027_v34 = vld [vmem:[%s4450_s13 + $0x1a8] sm:$0xff] }
 0x23c   : > { %v2315_v8 = vadd.f32 %v2299_v47, %v2283_v60  ;;  %v2439_v21 = vadd.f32 %v2423_v35, %v2407_v28  ;;  %v2583_v31 = vmul.f32 %v6841_v49, %v7085_v39  ;;  %v1352_v40 = vmul.f32 %v6900_v27, %v9306_v17  ;;  %v343_v47 = vld [vmem:[%s4450_s13 + $0x200] sm:$0xff]  ;;  %v9311_v35 = vld [vmem:[#allocation87_spill] sm:$0xff] }
 0x23d   : > { %v7400_v18 = vadd.f32 %v2173_v15, %v2157_v54  ;;  %v2790_v37 = vadd.f32 %v7165_v52, %v2774_v6  ;;  %v1743_v38 = vmul.f32 0.70710677, %v1711_v58  ;;  %v2615_v43 = vmul.f32 %v6994_v32, %v7341_v14 }
 0x23e   : > { %v7407_v33 = vadd.f32 %v2331_v5, %v2315_v8  ;;  %v2471_v60 = vadd.f32 %v2455_v29, %v2439_v21  ;;  %v1368_v54 = vadd.f32 %v1352_v40, %v9308_v61  ;;  %v1388_v15 = vmul.f32 %v6907_v56, %v9309_v36  ;;  %v9312_v29 = vld [vmem:[#allocation113_spill] sm:$0xff]  ;;  %v9314_v8 = vld [vmem:[#allocation64_spill] sm:$0xff] }
 0x23f   : > { %v1424_v10 = vmul.f32 %v6912_v30, %v9310_v22  ;;  %v2806_v11 = vadd.f32 %v4027_v34, %v2790_v37  ;;  %v1727_v13 = vmul.f32 0.5, %v1711_v58  ;;  %3848 = verf.f32 %v1743_v38  ;;  %v9315_v21 = vld [vmem:[#allocation88_spill] sm:$0xff]  ;;  %v7434_v38 = vld [vmem:[%s4450_s13 + $0x210] sm:$0xff] }
 0x240   : > { %9307 = vst [vmem:[#allocation108_spill] sm:$0xff] %v7407_v33  ;;  %v2647_v5 = vmul.f32 %v7000_v41, %v7347_v16  ;;  %v2503_v53 = vadd.f32 %v2487_v59, %v2471_v60  ;;  %v1404_v62 = vadd.f32 %v1388_v15, %v1368_v54  ;;  %v1460_v0 = vmul.f32 %v7180_v12, %v9311_v35 }
 0x241   : > { %v1496_v28 = vmul.f32 %v7189_v20, %v9312_v29  ;;  %3675 = vmatprep.mubr.f32.mxu1 %v2806_v11  ;;  %v1532_v6 = vmul.f32 %v6937_v57, %v9313_v25  ;;  %v1568_v58 = vmul.f32 %v6835_v4, %v9314_v8  ;;  %v1604_v17 = vmul.f32 %v9315_v21, %v6841_v49 }
 0x242   : > { %v375_v40 = vrot.slane %v343_v47, 6  ;;  %v2535_v37 = vadd.f32 %v2519_v24, %v2503_v53  ;;  %v1440_v59 = vadd.f32 %v1424_v10, %v1404_v62  ;;  %9316 = vst [vmem:[#allocation111_spill] sm:$0xff] %v7434_v38  ;;  %v8776_v60 = vrot.slane %v7421_v7, 6  ;;  %v9317_v53 = vld [vmem:[#allocation70_spill] sm:$0xff] }
 0x243   : > { %v478_v61 = vrot.slane %v343_v47, 7  ;;  %v8773_v54 = vrot.slane %v7421_v7, 7  ;;  %v579_v36 = vrot.slane %v7421_v7, 1  ;;  %v8774_v15 = vrot.slane %v7434_v38, 1 }
 0x244   : > { %v680_v22 = vrot.slane %v7421_v7, 2  ;;  %v2567_v34 = vadd.f32 %v2551_v50, %v2535_v37  ;;  %v1476_v11 = vadd.f32 %v1460_v0, %v1440_v59  ;;  %v7445_v24 = vsel %vm421_vm0, %v375_v40, %v8776_v60  ;;  %v9318_v59 = vld [vmem:[#allocation74_spill] sm:$0xff] }
 0x245   : > { %v8775_v10 = vrot.slane %v7434_v38, 2  ;;  %v1640_v47 = vmul.f32 %v6994_v32, %v9317_v53  ;;  %v7454_v62 = vsel %vm522_vm1, %v478_v61, %v8773_v54  ;;  %v7460_v50 = vsel %vm623_vm2, %v579_v36, %v8774_v15  ;;  %v9319_v54 = vld [vmem:[#allocation91_spill] sm:$0xff] }
 0x246   : > { %v2046_v35 = vmul.f32 %v9294_v48, %v7445_v24  ;;  %v2599_v0 = vadd.f32 %v2583_v31, %v2567_v34  ;;  %v1512_v29 = vadd.f32 %v1496_v28, %v1476_v11  ;;  %v2078_v37 = vmul.f32 %v9295_v3, %v7454_v62 }
 0x247   : > { %v7468_v40 = vsel %vm724_vm3, %v680_v22, %v8775_v10  ;;  %v1676_v61 = vmul.f32 %v7000_v41, %v9318_v59  ;;  %v2110_v15 = vmul.f32 %v9291_v1, %v7421_v7  ;;  %v2204_v48 = vmul.f32 %v9296_v2, %v7445_v24  ;;  %v9323_v59 = vld [vmem:[#allocation31_spill] sm:$0xff] }
 0x248   : > { %v2062_v36 = vadd.f32 %v2046_v35, %v9319_v54  ;;  %v2631_v31 = vadd.f32 %v2615_v43, %v2599_v0  ;;  %v1548_v28 = vadd.f32 %v1532_v6, %v1512_v29  ;;  %v2142_v22 = vmul.f32 %v6785_v46, %v7460_v50  ;;  %v9320_v54 = vld [vmem:[#allocation35_spill] sm:$0xff]  ;;  %v9321_v6 = vld [vmem:[#allocation33_spill] sm:$0xff] }
 0x249   : > { %v2236_v34 = vmul.f32 %v6892_v26, %v7454_v62  ;;  %v3849_v3 = vpop.eup %3848  ;;  %v2174_v10 = vmul.f32 %v6801_v45, %v7468_v40  ;;  %v2220_v35 = vadd.f32 %v2204_v48, %v9320_v54  ;;  %v2268_v1 = vmul.f32 %v6896_v44, %v7421_v7 }
 0x24a   : > { %v2094_v11 = vadd.f32 %v2078_v37, %v2062_v36  ;;  %v1775_v60 = vadd.f32 1.0, %v3849_v3  ;;  %v2663_v2 = vadd.f32 %v2647_v5, %v2631_v31  ;;  %v1584_v43 = vadd.f32 %v1568_v58, %v1548_v28  ;;  %v9322_v37 = vld [vmem:[#allocation55_spill] sm:$0xff] }
 0x24b   : > { %v2360_v0 = vmul.f32 %v6900_v27, %v9321_v6  ;;  %v2252_v29 = vadd.f32 %v2236_v34, %v2220_v35  ;;  %v2300_v33 = vmul.f32 %v9300_v63, %v7460_v50  ;;  %v2392_v36 = vmul.f32 %v6907_v56, %v9322_v37  ;;  %v9324_v3 = vld [vmem:[#allocation43_spill] sm:$0xff]  ;;  %v9326_v6 = vld [vmem:[#allocation93_spill] sm:$0xff] }
 0x24c   : > { %v2126_v46 = vadd.f32 %v2110_v15, %v2094_v11  ;;  %v1791_v45 = vmul.f32 %v1775_v60, %v1727_v13  ;;  %v2679_v48 = vadd.f32 %v9252_v23, %v2663_v2  ;;  %v1620_v54 = vadd.f32 %v1604_v17, %v1584_v43  ;;  %v9325_v5 = vld [vmem:[#allocation95_spill] sm:$0xff]  ;;  %v9327_v13 = vld [vmem:[#allocation46_spill] sm:$0xff]  ;;  %v9328_v2 = vld [vmem:[#allocation92_spill] sm:$0xff] }
 0x24d   : > { %v2376_v53 = vadd.f32 %v2360_v0, %v9323_v59  ;;  %v1123_v58 = vadd.f32 %v9325_v5, %v9324_v3  ;;  %v2284_v28 = vadd.f32 %v2268_v1, %v2252_v29  ;;  %v2424_v15 = vmul.f32 %v6912_v30, %v9326_v6  ;;  %v9330_v1 = vld [vmem:[#allocation89_spill] sm:$0xff]  ;;  %v9332_v37 = vld [vmem:[#allocation107_spill] sm:$0xff] }
 0x24e   : > { %v2158_v31 = vadd.f32 %v2142_v22, %v2126_v46  ;;  %v1811_v34 = vmul.f32 %v7153_v42, %v1791_v45  ;;  %v2711_v63 = vmul.f32 0.70710677, %v2679_v48  ;;  %v1656_v11 = vadd.f32 %v1640_v47, %v1620_v54  ;;  %v9329_v22 = vld [vmem:[#allocation28_spill] sm:$0xff]  ;;  %v4028_v45 = vld [vmem:[%s4450_s13 + $0xb0] sm:$0xff] }
 0x24f   : > { %v2332_v60 = vmul.f32 %v9327_v13, %v7468_v40  ;;  %v2316_v17 = vadd.f32 %v2300_v33, %v2284_v28  ;;  %v2408_v59 = vadd.f32 %v2392_v36, %v2376_v53  ;;  %v2456_v43 = vmul.f32 %v7180_v12, %v9328_v2  ;;  %v9334_v53 = vld [vmem:[#allocation117_spill] sm:$0xff]  ;;  %v346_v2 = vld [vmem:[%s4450_s13 + $0x218] sm:$0xff] }
 0x250   : > { %v7503_v35 = vadd.f32 %v2174_v10, %v2158_v31  ;;  %v7509_v0 = vadd.f32 %v9330_v1, %v9329_v22  ;;  %v1831_v46 = vadd.f32 %v7165_v52, %v1811_v34  ;;  %3850 = verf.f32 %v2711_v63  ;;  %v9335_v34 = vld [vmem:[#allocation44_spill] sm:$0xff]  ;;  %v9338_v1 = vld [vmem:[#allocation85_spill] sm:$0xff] }
 0x251   : > { %v1692_v29 = vadd.f32 %v1676_v61, %v1656_v11  ;;  %v7513_v47 = vadd.f32 %v9332_v37, %v1123_v58  ;;  %v7517_v10 = vmul.f32 %v6900_v27, %v7445_v24  ;;  %v2440_v33 = vadd.f32 %v2424_v15, %v2408_v59  ;;  %v9336_v11 = vld [vmem:[#allocation80_spill] sm:$0xff]  ;;  %v9339_v37 = vld [vmem:[#allocation39_spill] sm:$0xff] }
 0x252   : > { %9331 = vst [vmem:[#allocation62_spill] sm:$0xff] %v7509_v0  ;;  %v2488_v36 = vmul.f32 %v7189_v20, %v9334_v53  ;;  %v1847_v54 = vadd.f32 %v4028_v45, %v1831_v46  ;;  %v2695_v3 = vmul.f32 0.5, %v2679_v48  ;;  %v7525_v61 = vmul.f32 %v6907_v56, %v7454_v62  ;;  %v9340_v53 = vld [vmem:[#allocation36_spill] sm:$0xff]  ;;  %v9341_v45 = vld [vmem:[#allocation41_spill] sm:$0xff] }
 0x253   : > { %9333 = vst [vmem:[#allocation84_spill] sm:$0xff] %v7513_v47  ;;  %v1712_v5 = vadd.f32 %v9252_v23, %v1692_v29  ;;  %v7527_v58 = vadd.f32 %v2332_v60, %v2316_v17  ;;  %v7531_v31 = vmul.f32 %v7180_v12, %v7460_v50  ;;  %v2472_v28 = vadd.f32 %v2456_v43, %v2440_v33 }
 0x254   : > { %v2520_v6 = vmul.f32 %v6937_v57, %v7445_v24  ;;  %3652 = vmatmul.mubr.f32.gmra.mrb[6].mxu0 %v1847_v54  ;;  %v2552_v48 = vmul.f32 %v6835_v4, %v7454_v62  ;;  %v1353_v63 = vmul.f32 %v6900_v27, %v9335_v34  ;;  %v1389_v13 = vmul.f32 %v6907_v56, %v9336_v11  ;;  %v9337_v62 = vld [vmem:[#allocation48_spill] sm:$0xff] }
 0x255   : > { %v1744_v15 = vmul.f32 0.70710677, %v1712_v5  ;;  %v2504_v60 = vadd.f32 %v2488_v36, %v2472_v28  ;;  %v2584_v17 = vmul.f32 %v6841_v49, %v7421_v7  ;;  %v2616_v59 = vmul.f32 %v6994_v32, %v7460_v50 }
 0x256   : > { %v2648_v24 = vmul.f32 %v7000_v41, %v7468_v40  ;;  %v1728_v43 = vmul.f32 0.5, %v1712_v5  ;;  %v1369_v22 = vadd.f32 %v1353_v63, %v9337_v62  ;;  %v1425_v46 = vmul.f32 %v6912_v30, %v9338_v1  ;;  %v9342_v63 = vld [vmem:[#allocation66_spill] sm:$0xff] }
 0x257   : > { %3852 = verf.f32 %v1744_v15  ;;  %v2536_v29 = vadd.f32 %v2520_v6, %v2504_v60  ;;  %v1461_v33 = vmul.f32 %v7180_v12, %v9339_v37  ;;  %v1497_v36 = vmul.f32 %v7189_v20, %v9340_v53  ;;  %v9343_v6 = vld [vmem:[#allocation65_spill] sm:$0xff]  ;;  %v9344_v60 = vld [vmem:[#allocation96_spill] sm:$0xff] }
 0x258   : > { %v1533_v50 = vmul.f32 %v6937_v57, %v9341_v45  ;;  %v1405_v54 = vadd.f32 %v1389_v13, %v1369_v22  ;;  %v415_v28 = vrot.slane %v7434_v38, 6  ;;  %v518_v5 = vrot.slane %v7434_v38, 7  ;;  %v9347_v53 = vld [vmem:[#allocation101_spill] sm:$0xff] }
 0x259   : > { %v619_v15 = vrot.slane %v346_v2, 1  ;;  %v2568_v34 = vadd.f32 %v2552_v48, %v2536_v29  ;;  %v1569_v30 = vmul.f32 %v6835_v4, %v9342_v63  ;;  %v1605_v11 = vmul.f32 %v9343_v6, %v6841_v49 }
 0x25a   : > { %v1641_v62 = vmul.f32 %v6994_v32, %v9344_v60  ;;  %v3851_v1 = vpop.eup %3850  ;;  %v1441_v37 = vadd.f32 %v1425_v46, %v1405_v54  ;;  %v9345_v57 = vrot.slane %v7421_v7, 6  ;;  %v9346_v22 = vrot.slane %v7421_v7, 7  ;;  %v4029_v46 = vld [vmem:[#allocation5 + $0x8] ss:$0 sm:$0xff]  ;;  %v4030_v60 = vld [vmem:[#allocation5 + $0x9] ss:$0 sm:$0xff] }
 0x25b   : > { %v720_v4 = vrot.slane %v346_v2, 2  ;;  %v2743_v29 = vadd.f32 1.0, %v3851_v1  ;;  %v2600_v49 = vadd.f32 %v2584_v17, %v2568_v34  ;;  %v7579_v47 = vmul.f32 %v7000_v41, %v9347_v53  ;;  %v4031_v2 = vld [vmem:[#allocation5 + $0xa] ss:$0 sm:$0xff]  ;;  %v7591_v53 = vld [vmem:[#allocation5 + $0x10] ss:$0 sm:$0xff] }
 0x25c   : > { %v7569_v13 = vsel %vm421_vm0, %v9345_v57, %v415_v28  ;;  %v7575_v48 = vsel %vm522_vm1, %v9346_v22, %v518_v5  ;;  %v1477_v0 = vadd.f32 %v1461_v33, %v1441_v37  ;;  %v9348_v28 = vrot.slane %v7434_v38, 1  ;;  %9349 = vst [vmem:[#allocation100_spill] sm:$0xff] %v7591_v53 }
 0x25d   : > { %v2047_v54 = vmul.f32 %v4029_v46, %v7569_v13  ;;  %v2079_v5 = vmul.f32 %v4030_v60, %v7575_v48  ;;  %v2111_v17 = vmul.f32 %v4031_v2, %v7434_v38  ;;  %v2759_v34 = vmul.f32 %v2743_v29, %v2695_v3 }
 0x25e   : > { %v7586_v57 = vsel %vm623_vm2, %v9348_v28, %v619_v15  ;;  %v2632_v1 = vadd.f32 %v2616_v59, %v2600_v49  ;;  %v2205_v33 = vmul.f32 %v7591_v53, %v7569_v13  ;;  %v1513_v37 = vadd.f32 %v1497_v36, %v1477_v0  ;;  %v4033_v36 = vld [vmem:[#allocation5 + $0xb] ss:$0 sm:$0xff] }
 0x25f   : > { %v2063_v22 = vadd.f32 %v2047_v54, %v7390_v55  ;;  %v9350_v46 = vrot.slane %v7434_v38, 2  ;;  %v2237_v60 = vmul.f32 %v6892_v26, %v7575_v48  ;;  %v2269_v3 = vmul.f32 %v6896_v44, %v7434_v38 }
 0x260   : > { %v2775_v55 = vmul.f32 %v7153_v42, %v2759_v34  ;;  %v2664_v59 = vadd.f32 %v2648_v24, %v2632_v1  ;;  %v2221_v49 = vadd.f32 %v2205_v33, %v7400_v18  ;;  %v1549_v0 = vadd.f32 %v1533_v50, %v1513_v37  ;;  %v4034_v1 = vld [vmem:[#allocation5 + $0xc] ss:$0 sm:$0xff]  ;;  %v9353_v37 = vld [vmem:[#allocation51_spill] sm:$0xff] }
 0x261   : > { %v7599_v15 = vsel %vm724_vm3, %v9350_v46, %v720_v4  ;;  %v2095_v29 = vadd.f32 %v2079_v5, %v2063_v22  ;;  %v3853_v54 = vpop.eup %3852  ;;  %v2143_v28 = vmul.f32 %v4033_v36, %v7586_v57  ;;  %v2361_v4 = vmul.f32 %v6900_v27, %v7329_v51  ;;  %v9352_v22 = vld [vmem:[#allocation40_spill] sm:$0xff]  ;;  %v7617_v51 = vld [vmem:[#allocation5 + $0x13] ss:$0 sm:$0xff] }
 0x262   : > { %9351 = vst [vmem:[#allocation103_spill] sm:$0xff] %v7599_v15  ;;  %v2393_v26 = vmul.f32 %v6907_v56, %v7335_v19  ;;  %v2791_v2 = vadd.f32 %v7165_v52, %v2775_v55  ;;  %v1776_v44 = vadd.f32 1.0, %v3853_v54  ;;  %v2680_v34 = vadd.f32 %v9252_v23, %v2664_v59  ;;  %v7634_v54 = vld [vmem:[#allocation5 + $0x14] ss:$0 sm:$0xff] }
 0x263   : > { %v2127_v24 = vadd.f32 %v2111_v17, %v2095_v29  ;;  %v1585_v5 = vadd.f32 %v1569_v30, %v1549_v0  ;;  %v2175_v18 = vmul.f32 %v4034_v1, %v7599_v15  ;;  %v2253_v50 = vadd.f32 %v2237_v60, %v2221_v49  ;;  %v7622_v60 = vld [vmem:[#allocation5 + $0x1a] ss:$0 sm:$0xff] }
 0x264   : > { %v2377_v33 = vadd.f32 %v2361_v4, %v9352_v22  ;;  %v2807_v46 = vadd.f32 %v9353_v37, %v2791_v2  ;;  %v1792_v36 = vmul.f32 %v1776_v44, %v1728_v43  ;;  %v2712_v27 = vmul.f32 0.70710677, %v2680_v34  ;;  %v7652_v44 = vld [vmem:[#allocation5 + $0x19] ss:$0 sm:$0xff] }
 0x265   : > { %v2301_v56 = vmul.f32 %v7617_v51, %v7586_v57  ;;  %v1621_v19 = vadd.f32 %v1605_v11, %v1585_v5  ;;  %v2159_v55 = vadd.f32 %v2143_v28, %v2127_v24  ;;  %v2285_v59 = vadd.f32 %v2269_v3, %v2253_v50  ;;  %v4040_v5 = vld [vmem:[%s4450_s13 + $0xc8] sm:$0xff]  ;;  %v7659_v50 = vld [vmem:[#allocation5 + $0x20] ss:$0 sm:$0xff] }
 0x266   : > { %v2409_v17 = vadd.f32 %v2393_v26, %v2377_v33  ;;  %3676 = vmatmul.mubr.f32.gmra.mrb[6].mxu1 %v2807_v46  ;;  %v1812_v30 = vmul.f32 %v7153_v42, %v1792_v36  ;;  %3854 = verf.f32 %v2712_v27  ;;  %v2425_v29 = vmul.f32 %v7622_v60, %v7085_v39  ;;  %v7641_v39 = vld [vmem:[#allocation5 + $0x18] ss:$0 sm:$0xff]  ;;  %v7668_v33 = vld [vmem:[#allocation5 + $0x22] ss:$0 sm:$0xff] }
 0x267   : > { %v2457_v43 = vmul.f32 %v7180_v12, %v7341_v14  ;;  %v7630_v49 = vmul.f32 %v7189_v20, %v7468_v40  ;;  %v1657_v11 = vadd.f32 %v1641_v62, %v1621_v19  ;;  %v7632_v3 = vadd.f32 %v2175_v18, %v2159_v55  ;;  %v347_v19 = vld [vmem:[%s4450_s13 + $0x220] sm:$0xff] }
 0x268   : > { %v7638_v0 = vmul.f32 %v7634_v54, %v7599_v15  ;;  %v1832_v28 = vadd.f32 %v7165_v52, %v1812_v30  ;;  %v7645_v14 = vmul.f32 %v7641_v39, %v7569_v13  ;;  %v2441_v4 = vadd.f32 %v2425_v29, %v2409_v17  ;;  %v9357_v17 = vld [vmem:[#allocation70_spill] sm:$0xff] }
 0x269   : > { %v2489_v40 = vmul.f32 %v7189_v20, %v7347_v16  ;;  %v2696_v62 = vmul.f32 0.5, %v2680_v34  ;;  %v1693_v26 = vadd.f32 %v7579_v47, %v1657_v11  ;;  %v7650_v2 = vadd.f32 %v2301_v56, %v2285_v59  ;;  %v7663_v34 = vld [vmem:[#allocation5 + $0x21] ss:$0 sm:$0xff]  ;;  %v9356_v59 = vld [vmem:[#allocation30_spill] sm:$0xff] }
 0x26a   : > { %9354 = vst [vmem:[#allocation25_spill] sm:$0xff] %v7645_v14  ;;  %v7656_v24 = vmul.f32 %v7652_v44, %v7575_v48  ;;  %v1848_v1 = vadd.f32 %v4040_v5, %v1832_v28  ;;  %v2473_v18 = vadd.f32 %v2457_v43, %v2441_v4  ;;  %v2521_v16 = vmul.f32 %v7659_v50, %v7569_v13  ;;  %v9358_v30 = vld [vmem:[#allocation74_spill] sm:$0xff]  ;;  %v7689_v43 = vld [vmem:[%s4450_s13 + $0x228] sm:$0xff]  ;;  %v7692_v11 = vld [vmem:[%s4450_s13 + $0x240] sm:$0xff] }
 0x26b   : > { %v2553_v47 = vmul.f32 %v7663_v34, %v7575_v48  ;;  %v1713_v22 = vadd.f32 %v9252_v23, %v1693_v26  ;;  %v2585_v37 = vmul.f32 %v7668_v33, %v7434_v38  ;;  %v1354_v46 = vmul.f32 %v7641_v39, %v9313_v25  ;;  %9359 = vst [vmem:[#allocation29_spill] sm:$0xff] %v7692_v11  ;;  %v9360_v4 = vld [vmem:[#allocation59_spill] sm:$0xff]  ;;  %v7714_v38 = vld [vmem:[%s4450_s13 + $0x230] sm:$0xff] }
 0x26c   : > { %9355 = vst [vmem:[#allocation79_spill] sm:$0xff] %v7656_v24  ;;  %v1390_v13 = vmul.f32 %v7652_v44, %v9314_v8  ;;  %3654 = vmatprep.mubr.f32.mxu0 %v1848_v1  ;;  %v2505_v36 = vadd.f32 %v2489_v40, %v2473_v18  ;;  %v2617_v48 = vmul.f32 %v6994_v32, %v7586_v57  ;;  %v9361_v40 = vld [vmem:[#allocation67_spill] sm:$0xff]  ;;  %v7701_v1 = vld [vmem:[%s4450_s13 + $0x128] sm:$0xff] }
 0x26d   : > { %v2649_v27 = vmul.f32 %v7000_v41, %v7599_v15  ;;  %v1426_v56 = vmul.f32 %v7622_v60, %v9315_v21  ;;  %v1745_v55 = vmul.f32 0.70710677, %v1713_v22  ;;  %v1370_v25 = vadd.f32 %v1354_v46, %v9356_v59  ;;  %9362 = vst [vmem:[#allocation52_spill] sm:$0xff] %v7701_v1  ;;  %v7706_v46 = vld [vmem:[%s4450_s13 + $0x248] sm:$0xff] }
 0x26e   : > { %v1462_v8 = vmul.f32 %v7180_v12, %v9357_v17  ;;  %v1498_v29 = vmul.f32 %v7189_v20, %v9358_v30  ;;  %v7694_v28 = vmul.f32 0.5, %v1713_v22  ;;  %v2537_v41 = vadd.f32 %v2521_v16, %v2505_v36  ;;  %v9363_v16 = vld [vmem:[#allocation77_spill] sm:$0xff] }
 0x26f   : > { %v1534_v21 = vmul.f32 %v7659_v50, %v9360_v4  ;;  %v1570_v26 = vmul.f32 %v7663_v34, %v9361_v40  ;;  %3856 = verf.f32 %v1745_v55  ;;  %v1406_v5 = vadd.f32 %v1390_v13, %v1370_v25  ;;  %v9367_v24 = vld [vmem:[#allocation49_spill] sm:$0xff] }
 0x270   : > { %v1606_v18 = vmul.f32 %v7701_v1, %v7668_v33  ;;  %v376_v59 = vrot.slane %v347_v19, 6  ;;  %v3855_v22 = vpop.eup %3854  ;;  %v2569_v30 = vadd.f32 %v2553_v47, %v2537_v41  ;;  %v1642_v36 = vmul.f32 %v6994_v32, %v9363_v16 }
 0x271   : > { %v377_v4 = vrot.slane %v7692_v11, 6  ;;  %v8782_v40 = vrot.slane %v7689_v43, 6  ;;  %v2744_v55 = vadd.f32 1.0, %v3855_v22  ;;  %v1442_v17 = vadd.f32 %v1426_v56, %v1406_v5 }
 0x272   : > { %v479_v13 = vrot.slane %v347_v19, 7  ;;  %v8784_v25 = vrot.slane %v7689_v43, 7  ;;  %v2601_v15 = vadd.f32 %v2585_v37, %v2569_v30  ;;  %v8785_v1 = vrot.slane %v7706_v46, 6 }
 0x273   : > { %v459_v47 = vsel %vm421_vm0, %v376_v59, %v8782_v40  ;;  %v580_v32 = vrot.slane %v7689_v43, 1  ;;  %v2760_v41 = vmul.f32 %v2744_v55, %v2696_v62  ;;  %v1478_v11 = vadd.f32 %v1462_v8, %v1442_v17  ;;  %v7737_v17 = vld [vmem:[#allocation5 + $0x11] ss:$0 sm:$0xff] }
 0x274   : > { %v7726_v56 = vsel %vm522_vm1, %v479_v13, %v8784_v25  ;;  %v8783_v37 = vrot.slane %v7714_v38, 1  ;;  %v2633_v19 = vadd.f32 %v2617_v48, %v2601_v15  ;;  %v681_v30 = vrot.slane %v7689_v43, 2  ;;  %9364 = vst [vmem:[#allocation114_spill] sm:$0xff] %v7737_v17  ;;  %v7741_v48 = vld [vmem:[#allocation5 + $0x24] ss:$0 sm:$0xff]  ;;  %v9365_v55 = vld [vmem:[#allocation78_spill] sm:$0xff] }
 0x275   : > { %v8788_v5 = vrot.slane %v7714_v38, 2  ;;  %v2206_v22 = vmul.f32 %v7591_v53, %v459_v47  ;;  %v2776_v59 = vmul.f32 %v7153_v42, %v2760_v41  ;;  %v1514_v40 = vadd.f32 %v1498_v29, %v1478_v11  ;;  %v7746_v29 = vld [vmem:[#allocation5 + $0x12] ss:$0 sm:$0xff] }
 0x276   : > { %v661_v62 = vsel %vm623_vm2, %v580_v32, %v8783_v37  ;;  %v2238_v8 = vmul.f32 %v7737_v17, %v7726_v56  ;;  %v2665_v15 = vadd.f32 %v2649_v27, %v2633_v19  ;;  %v1678_v13 = vmul.f32 %v7741_v48, %v9365_v55  ;;  %9366 = vst [vmem:[#allocation116_spill] sm:$0xff] %v7746_v29 }
 0x277   : > { %v2222_v41 = vadd.f32 %v2206_v22, %v7503_v35  ;;  %v2270_v11 = vmul.f32 %v7746_v29, %v7689_v43  ;;  %v2792_v32 = vadd.f32 %v7165_v52, %v2776_v59  ;;  %v1550_v37 = vadd.f32 %v1534_v21, %v1514_v40  ;;  %v4048_v21 = vld [vmem:[%s4450_s13 + $0x1c8] sm:$0xff] }
 0x278   : > { %v7755_v27 = vsel %vm421_vm0, %v377_v4, %v8785_v1  ;;  %v762_v19 = vsel %vm724_vm3, %v681_v30, %v8788_v5  ;;  %v2681_v35 = vadd.f32 %v9252_v23, %v2665_v15  ;;  %v2302_v25 = vmul.f32 %v7617_v51, %v661_v62 }
 0x279   : > { %v2254_v22 = vadd.f32 %v2238_v8, %v2222_v41  ;;  %v2364_v55 = vmul.f32 %v7641_v39, %v459_v47  ;;  %v3857_v59 = vpop.eup %3856  ;;  %v2808_v40 = vadd.f32 %v4048_v21, %v2792_v32  ;;  %v1586_v16 = vadd.f32 %v1570_v26, %v1550_v37  ;;  %v7815_v21 = vld [vmem:[#allocation5 + $0x23] ss:$0 sm:$0xff] }
 0x27a   : > { %v2378_v4 = vadd.f32 %v7517_v10, %v9367_v24  ;;  %v2396_v1 = vmul.f32 %v7652_v44, %v7726_v56  ;;  %v1777_v14 = vadd.f32 1.0, %v3857_v59  ;;  %v2713_v29 = vmul.f32 0.70710677, %v2681_v35 }
 0x27b   : > { %v2286_v30 = vadd.f32 %v2270_v11, %v2254_v22  ;;  %v2334_v23 = vmul.f32 %v7634_v54, %v762_v19  ;;  %3678 = vmatprep.mubr.f32.mxu1 %v2808_v40  ;;  %v1622_v8 = vadd.f32 %v1606_v18, %v1586_v16  ;;  %v2380_v15 = vadd.f32 %v2364_v55, %v7527_v58  ;;  %v9370_v22 = vld [vmem:[#allocation26_spill] sm:$0xff] }
 0x27c   : > { %v2410_v41 = vadd.f32 %v7525_v61, %v2378_v4  ;;  %v2426_v26 = vmul.f32 %v7622_v60, %v7421_v7  ;;  %v1793_v37 = vmul.f32 %v1777_v14, %v7694_v28  ;;  %3858 = verf.f32 %v2713_v29 }
 0x27d   : > { %v2318_v10 = vadd.f32 %v2302_v25, %v2286_v30  ;;  %v2428_v24 = vmul.f32 %v7622_v60, %v7689_v43  ;;  %v7779_v11 = vmul.f32 %v7180_v12, %v7586_v57  ;;  %v1658_v32 = vadd.f32 %v1642_v36, %v1622_v8 }
 0x27e   : > { %v2412_v18 = vadd.f32 %v2396_v1, %v2380_v15  ;;  %v2442_v16 = vadd.f32 %v2426_v26, %v2410_v41  ;;  %v1813_v58 = vmul.f32 %v7153_v42, %v1793_v37  ;;  %v7784_v61 = vadd.f32 %v7638_v0, %v7650_v2  ;;  %v7802_v2 = vld [vmem:[%s8493_s3] ss:$0 sm:$0xff]  ;;  %v9373_v26 = vld [vmem:[#allocation54_spill] sm:$0xff] }
 0x27f   : > { %v7788_v7 = vmul.f32 %v7641_v39, %v7755_v27  ;;  %v2460_v14 = vmul.f32 %v7180_v12, %v661_v62  ;;  %v1694_v28 = vadd.f32 %v1678_v13, %v1658_v32  ;;  %v2522_v36 = vmul.f32 %v7659_v50, %v459_v47  ;;  %v7810_v47 = vpop.f32.mrb[0].mxu0  ;;  %v9374_v37 = vld [vmem:[#allocation96_spill] sm:$0xff] }
 0x280   : > { %v2444_v25 = vadd.f32 %v2428_v24, %v2412_v18  ;;  %v2474_v57 = vadd.f32 %v7531_v31, %v2442_v16  ;;  %v1833_v1 = vadd.f32 %v7165_v52, %v1813_v58  ;;  %v2697_v55 = vmul.f32 0.5, %v2681_v35  ;;  %9368 = vst [vmem:[#allocation81_spill] sm:$0xff] %v7810_v47  ;;  %v7812_v35 = vpop.f32.mrb[0].mxu1  ;;  %v7822_v4 = vpop.f32.mrb[1].mxu0  ;;  %v7837_v24 = vld [vmem:[%s4450_s13 + $0x250] sm:$0xff]  ;;  %v9375_v18 = vld [vmem:[#allocation101_spill] sm:$0xff] }
 0x281   : > { %v7794_v42 = vadd.f32 %v2334_v23, %v2318_v10  ;;  %v7797_v0 = vmul.f32 %v7189_v20, %v762_v19  ;;  %v1714_v13 = vadd.f32 %v7802_v2, %v1694_v28  ;;  %v2554_v31 = vmul.f32 %v7663_v34, %v7726_v56  ;;  %9369 = vst [vmem:[#allocation115_spill] sm:$0xff] %v7812_v35  ;;  %v7824_v30 = vpop.f32.mrb[1].mxu1  ;;  %v9376_v58 = vld [vmem:[#allocation73_spill] sm:$0xff]  ;;  %v4054_v35 = vld [vmem:[%s4450_s13 + $0x1d0] sm:$0xff] }
 0x282   : > { %v2506_v29 = vadd.f32 %v7630_v49, %v2474_v57  ;;  %v2586_v52 = vmul.f32 %v7668_v33, %v7689_v43  ;;  %v1849_v59 = vadd.f32 %v9370_v22, %v1833_v1  ;;  %v2618_v40 = vmul.f32 %v7815_v21, %v661_v62  ;;  %9371 = vst [vmem:[#allocation57_spill] sm:$0xff] %v7822_v4  ;;  %v9377_v57 = vld [vmem:[#allocation42_spill] sm:$0xff] }
 0x283   : > { %v1355_v49 = vmul.f32 %v7641_v39, %v9341_v45  ;;  %v1391_v56 = vmul.f32 %v7652_v44, %v9342_v63  ;;  %9372 = vst [vmem:[#allocation86_spill] sm:$0xff] %v7824_v30  ;;  %v1746_v23 = vmul.f32 0.70710677, %v1714_v13  ;;  %v7826_v8 = vadd.f32 %v2460_v14, %v2444_v25  ;;  %v350_v14 = vld [vmem:[%s4450_s13 + $0x238] sm:$0xff] }
 0x284   : > { %v2538_v15 = vadd.f32 %v2522_v36, %v2506_v29  ;;  %v2650_v41 = vmul.f32 %v7741_v48, %v762_v19  ;;  %3655 = vmatmul.mubr.f32.gmra.mrb[8].mxu0 %v1849_v59  ;;  %v7829_v62 = vmul.f32 0.5, %v1714_v13  ;;  %v1427_v63 = vmul.f32 %v7622_v60, %v9343_v6  ;;  %v7847_v6 = vld [vmem:[%s4450_s13 + $0x130] sm:$0xff] }
 0x285   : > { %v1371_v45 = vadd.f32 %v1355_v49, %v9373_v26  ;;  %v1463_v10 = vmul.f32 %v7180_v12, %v9374_v37  ;;  %3860 = verf.f32 %v1746_v23  ;;  %v1499_v16 = vmul.f32 %v7189_v20, %v9375_v18  ;;  %9378 = vst [vmem:[#allocation45_spill] sm:$0xff] %v7847_v6 }
 0x286   : > { %v2570_v32 = vadd.f32 %v2554_v31, %v2538_v15  ;;  %v1535_v19 = vmul.f32 %v7659_v50, %v9376_v58  ;;  %v3859_v28 = vpop.eup %3858  ;;  %v1571_v36 = vmul.f32 %v7663_v34, %v9377_v57  ;;  %v1607_v12 = vmul.f32 %v7847_v6, %v7668_v33  ;;  %v7926_v6 = vld [vmem:[#allocation5 + $0x1b] ss:$0 sm:$0xff] }
 0x287   : > { %v1407_v25 = vadd.f32 %v1391_v56, %v1371_v45  ;;  %v416_v1 = vrot.slane %v7714_v38, 6  ;;  %v2745_v13 = vadd.f32 1.0, %v3859_v28  ;;  %v417_v20 = vrot.slane %v7837_v24, 6  ;;  %v9380_v45 = vld [vmem:[#allocation97_spill] sm:$0xff]  ;;  %v9382_v28 = vld [vmem:[#allocation104_spill] sm:$0xff] }
 0x288   : > { %v2602_v29 = vadd.f32 %v2586_v52, %v2570_v32  ;;  %v519_v31 = vrot.slane %v7714_v38, 7  ;;  %v9379_v59 = vrot.slane %v7689_v43, 6  ;;  %v620_v56 = vrot.slane %v350_v14, 1 }
 0x289   : > { %v1443_v22 = vadd.f32 %v1427_v63, %v1407_v25  ;;  %v721_v23 = vrot.slane %v350_v14, 2  ;;  %v2761_v15 = vmul.f32 %v2745_v13, %v2697_v55  ;;  %v1643_v5 = vmul.f32 %v7815_v21, %v9380_v45 }
 0x28a   : > { %v7858_v49 = vsel %vm421_vm0, %v9379_v59, %v416_v1  ;;  %v2634_v26 = vadd.f32 %v2618_v40, %v2602_v29  ;;  %v9381_v52 = vrot.slane %v7689_v43, 7  ;;  %v1679_v25 = vmul.f32 %v7741_v48, %v9382_v28  ;;  %v7881_v43 = vld [vmem:[%s8493_s3 + $0x1] ss:$0 sm:$0xff] }
 0x28b   : > { %v1479_v63 = vadd.f32 %v1463_v10, %v1443_v22  ;;  %v9383_v1 = vrot.slane %v7714_v38, 1  ;;  %v2207_v55 = vmul.f32 %v7591_v53, %v7858_v49  ;;  %v2777_v40 = vmul.f32 %v7881_v43, %v2761_v15 }
 0x28c   : > { %v7866_v32 = vsel %vm522_vm1, %v9381_v52, %v519_v31  ;;  %v2666_v10 = vadd.f32 %v2650_v41, %v2634_v26  ;;  %v9384_v13 = vrot.slane %v7706_v46, 6  ;;  %v9385_v59 = vrot.slane %v7714_v38, 2  ;;  %v9386_v41 = vld [vmem:[#allocation116_spill] sm:$0xff] }
 0x28d   : > { %v7874_v14 = vsel %vm623_vm2, %v9383_v1, %v620_v56  ;;  %v2239_v31 = vmul.f32 %v7737_v17, %v7866_v32  ;;  %v1515_v22 = vadd.f32 %v1499_v16, %v1479_v63  ;;  %v2223_v15 = vadd.f32 %v2207_v55, %v7632_v3  ;;  %v9387_v55 = vld [vmem:[#allocation108_spill] sm:$0xff] }
 0x28e   : > { %v7888_v29 = vsel %vm421_vm0, %v9384_v13, %v417_v20  ;;  %v7896_v56 = vsel %vm724_vm3, %v9385_v59, %v721_v23  ;;  %v2271_v26 = vmul.f32 %v9386_v41, %v7714_v38  ;;  %v7904_v20 = vld [vmem:[%s8493_s3 + $0x2] ss:$0 sm:$0xff]  ;;  %v2682_v16 = vadd.f32 %v7802_v2, %v2666_v10  ;;  %v9388_v13 = vld [vmem:[#allocation25_spill] sm:$0xff] }
 0x28f   : > { %v2793_v52 = vadd.f32 %v7904_v20, %v2777_v40  ;;  %v2303_v63 = vmul.f32 %v7617_v51, %v7874_v14  ;;  %v2365_v23 = vmul.f32 %v7641_v39, %v7858_v49  ;;  %v1551_v1 = vadd.f32 %v1535_v19, %v1515_v22  ;;  %v3861_v4 = vpop.eup %3860  ;;  %v9389_v19 = vld [vmem:[#allocation79_spill] sm:$0xff] }
 0x290   : > { %v2255_v3 = vadd.f32 %v2239_v31, %v2223_v15  ;;  %v2379_v59 = vadd.f32 %v9388_v13, %v9387_v55  ;;  %v2397_v30 = vmul.f32 %v7652_v44, %v7866_v32  ;;  %v2714_v40 = vmul.f32 0.70710677, %v2682_v16  ;;  %v9390_v15 = vld [vmem:[#allocation111_spill] sm:$0xff] }
 0x291   : > { %v2809_v47 = vadd.f32 %v4054_v35, %v2793_v52  ;;  %v2335_v10 = vmul.f32 %v7634_v54, %v7896_v56  ;;  %v2381_v41 = vadd.f32 %v2365_v23, %v7784_v61  ;;  %v1778_v17 = vadd.f32 1.0, %v3861_v4  ;;  %v7930_v4 = vld [vmem:[#allocation5 + $0x1c] ss:$0 sm:$0xff]  ;;  %v7938_v23 = vpop.f32.mrb[2].mxu0 }
 0x292   : > { %v1587_v53 = vadd.f32 %v1571_v36, %v1551_v1  ;;  %v2287_v28 = vadd.f32 %v2271_v26, %v2255_v3  ;;  %v2411_v31 = vadd.f32 %v9389_v19, %v2379_v59  ;;  %3862 = verf.f32 %v2714_v40  ;;  %9392 = vst [vmem:[#allocation106_spill] sm:$0xff] %v7938_v23  ;;  %v9394_v19 = vld [vmem:[#allocation70_spill] sm:$0xff] }
 0x293   : > { %3679 = vmatmul.mubr.f32.gmra.mrb[8].mxu1 %v2809_v47  ;;  %v2413_v22 = vadd.f32 %v2397_v30, %v2381_v41  ;;  %v2427_v55 = vmul.f32 %v7622_v60, %v9390_v15  ;;  %v2429_v35 = vmul.f32 %v7622_v60, %v7714_v38  ;;  %v1794_v52 = vmul.f32 %v1778_v17, %v7829_v62  ;;  %v9391_v47 = vld [vmem:[#allocation103_spill] sm:$0xff] }
 0x294   : > { %v1623_v13 = vadd.f32 %v1607_v12, %v1587_v53  ;;  %v2319_v45 = vadd.f32 %v2303_v63, %v2287_v28  ;;  %v2461_v61 = vmul.f32 %v7926_v6, %v7874_v14  ;;  %v2491_v30 = vmul.f32 %v7930_v4, %v9391_v47  ;;  %v7947_v28 = vpop.f32.mrb[3].mxu0 }
 0x295   : > { %v7936_v36 = vadd.f32 %v7788_v7, %v7794_v42  ;;  %v2443_v41 = vadd.f32 %v2427_v55, %v2411_v31  ;;  %v2445_v26 = vadd.f32 %v2429_v35, %v2413_v22  ;;  %v1814_v53 = vmul.f32 %v7881_v43, %v1794_v52  ;;  %9393 = vst [vmem:[#allocation112_spill] sm:$0xff] %v7947_v28  ;;  %v9397_v52 = vld [vmem:[#allocation59_spill] sm:$0xff]  ;;  %v9412_v28 = vld [vmem:[#allocation53_spill] sm:$0xff] }
 0x296   : > { %v7943_v17 = vadd.f32 %v7797_v0, %v7826_v8  ;;  %v1659_v62 = vadd.f32 %v1643_v5, %v1623_v13  ;;  %v2367_v12 = vmul.f32 %v7641_v39, %v7888_v29  ;;  %v2698_v63 = vmul.f32 0.5, %v2682_v16 }
 0x297   : > { %v2351_v7 = vadd.f32 %v2335_v10, %v2319_v45  ;;  %v2475_v42 = vadd.f32 %v7779_v11, %v2443_v41  ;;  %v2523_v1 = vmul.f32 %v7659_v50, %v7858_v49  ;;  %v1834_v3 = vadd.f32 %v7904_v20, %v1814_v53  ;;  %v9395_v45 = vld [vmem:[#allocation74_spill] sm:$0xff]  ;;  %v4057_v10 = vld [vmem:[%s4450_s13 + $0xe8] sm:$0xff]  ;;  %v9398_v41 = vld [vmem:[#allocation67_spill] sm:$0xff] }
 0x298   : > { %v1695_v59 = vadd.f32 %v1679_v25, %v1659_v62  ;;  %v2477_v40 = vadd.f32 %v2461_v61, %v2445_v26  ;;  %v2493_v0 = vmul.f32 %v7930_v4, %v7896_v56  ;;  %v2555_v8 = vmul.f32 %v7663_v34, %v7866_v32  ;;  %v9396_v32 = vld [vmem:[#allocation32_spill] sm:$0xff] }
 0x299   : > { %v2507_v5 = vadd.f32 %v2491_v30, %v2475_v42  ;;  %v1284_v16 = vmul.f32 %v7617_v51, %v9394_v19  ;;  %v1320_v11 = vmul.f32 %v7634_v54, %v9395_v45  ;;  %v1850_v31 = vadd.f32 %v4057_v10, %v1834_v3  ;;  %v9399_v62 = vld [vmem:[#allocation52_spill] sm:$0xff] }
 0x29a   : > { %v1715_v49 = vadd.f32 %v7802_v2, %v1695_v59  ;;  %v2587_v25 = vmul.f32 %v7668_v33, %v7714_v38  ;;  %v2619_v22 = vmul.f32 %v7815_v21, %v7874_v14  ;;  %v7967_v15 = vadd.f32 %v2367_v12, %v2351_v7  ;;  %v9400_v7 = vld [vmem:[#allocation77_spill] sm:$0xff]  ;;  %v9401_v59 = vld [vmem:[#allocation78_spill] sm:$0xff]  ;;  %v9403_v45 = vld [vmem:[#allocation60_spill] sm:$0xff] }
 0x29b   : > { %v2539_v55 = vadd.f32 %v2523_v1, %v2507_v5  ;;  %v1300_v35 = vadd.f32 %v1284_v16, %v9396_v32  ;;  %v1356_v13 = vmul.f32 %v7641_v39, %v9397_v52  ;;  %3657 = vmatprep.mubr.f32.mxu0 %v1850_v31  ;;  %v7972_v47 = vadd.f32 %v2493_v0, %v2477_v40  ;;  %v9402_v5 = vld [vmem:[#allocation29_spill] sm:$0xff]  ;;  %v9404_v32 = vld [vmem:[#allocation68_spill] sm:$0xff] }
 0x29c   : > { %v1747_v61 = vmul.f32 0.70710677, %v1715_v49  ;;  %v2651_v30 = vmul.f32 %v7741_v48, %v7896_v56  ;;  %v1392_v38 = vmul.f32 %v7652_v44, %v9398_v41  ;;  %v3863_v26 = vpop.eup %3862  ;;  %v1428_v12 = vmul.f32 %v9399_v62, %v7622_v60 }
 0x29d   : > { %v2571_v14 = vadd.f32 %v2555_v8, %v2539_v55  ;;  %v1336_v53 = vadd.f32 %v1320_v11, %v1300_v35  ;;  %v1464_v42 = vmul.f32 %v7926_v6, %v9400_v7  ;;  %v2746_v1 = vadd.f32 1.0, %v3863_v26 }
 0x29e   : > { %v1731_v3 = vmul.f32 0.5, %v1715_v49  ;;  %3864 = verf.f32 %v1747_v61  ;;  %v1500_v40 = vmul.f32 %v7930_v4, %v9401_v59  ;;  %v480_v19 = vrot.slane %v9402_v5, 7 }
 0x29f   : > { %v2603_v0 = vadd.f32 %v2587_v25, %v2571_v14  ;;  %v1372_v56 = vadd.f32 %v1356_v13, %v1336_v53  ;;  %v8795_v8 = vrot.slane %v7706_v46, 7  ;;  %v2762_v16 = vmul.f32 %v2746_v1, %v2698_v63 }
 0x2a0   : > { %v1536_v11 = vmul.f32 %v7659_v50, %v9403_v45  ;;  %v581_v10 = vrot.slane %v7706_v46, 1  ;;  %v8796_v31 = vrot.slane %v7837_v24, 1  ;;  %v1572_v35 = vmul.f32 %v7663_v34, %v9404_v32 }
 0x2a1   : > { %v2635_v49 = vadd.f32 %v2619_v22, %v2603_v0  ;;  %v1408_v55 = vadd.f32 %v1392_v38, %v1372_v56  ;;  %v561_v25 = vsel %vm522_vm1, %v480_v19, %v8795_v8  ;;  %v2778_v13 = vmul.f32 %v7881_v43, %v2762_v16  ;;  %v8001_v38 = vld [vmem:[%s4450_s13 + $0x148] sm:$0xff]  ;;  %v9405_v16 = vld [vmem:[#allocation71_spill] sm:$0xff] }
 0x2a2   : > { %v682_v63 = vrot.slane %v7706_v46, 2  ;;  %v8797_v61 = vrot.slane %v7837_v24, 2  ;;  %v2398_v26 = vmul.f32 %v7652_v44, %v561_v25  ;;  %v1608_v53 = vmul.f32 %v8001_v38, %v7668_v33  ;;  %v4059_v8 = vld [vmem:[%s4450_s13 + $0x1e8] sm:$0xff] }
 0x2a3   : > { %v2667_v14 = vadd.f32 %v2651_v30, %v2635_v49  ;;  %v1444_v22 = vadd.f32 %v1428_v12, %v1408_v55  ;;  %v2430_v1 = vmul.f32 %v7622_v60, %v7706_v46  ;;  %v2794_v0 = vadd.f32 %v7904_v20, %v2778_v13 }
 0x2a4   : > { %v662_v56 = vsel %vm623_vm2, %v581_v10, %v8796_v31  ;;  %v2414_v5 = vadd.f32 %v2398_v26, %v7936_v36  ;;  %v2524_v30 = vmul.f32 %v7659_v50, %v7755_v27  ;;  %v1644_v49 = vmul.f32 %v7815_v21, %v9405_v16 }
 0x2a5   : > { %v2683_v12 = vadd.f32 %v7802_v2, %v2667_v14  ;;  %v1480_v19 = vadd.f32 %v1464_v42, %v1444_v22  ;;  %v2556_v55 = vmul.f32 %v7663_v34, %v561_v25  ;;  %v2810_v13 = vadd.f32 %v4059_v8, %v2794_v0 }
 0x2a6   : > { %v763_v10 = vsel %vm724_vm3, %v682_v63, %v8797_v61  ;;  %v2540_v36 = vadd.f32 %v2524_v30, %v7943_v17  ;;  %v2588_v27 = vmul.f32 %v7668_v33, %v7706_v46  ;;  %v2446_v42 = vadd.f32 %v2430_v1, %v2414_v5  ;;  %v9406_v61 = vld [vmem:[#allocation75_spill] sm:$0xff] }
 0x2a7   : > { %v2715_v26 = vmul.f32 0.70710677, %v2683_v12  ;;  %v1516_v14 = vadd.f32 %v1500_v40, %v1480_v19  ;;  %v2462_v22 = vmul.f32 %v7926_v6, %v662_v56  ;;  %3681 = vmatprep.mubr.f32.mxu1 %v2810_v13  ;;  %v2620_v8 = vmul.f32 %v7815_v21, %v662_v56  ;;  %v9407_v19 = vld [vmem:[#allocation62_spill] sm:$0xff] }
 0x2a8   : > { %v3865_v31 = vpop.eup %3864  ;;  %v2572_v25 = vadd.f32 %v2556_v55, %v2540_v36  ;;  %v1285_v0 = vmul.f32 %v7617_v51, %v9374_v37  ;;  %v1321_v63 = vmul.f32 %v7634_v54, %v9375_v18  ;;  %v1680_v40 = vmul.f32 %v7741_v48, %v9406_v61 }
 0x2a9   : > { %v1779_v17 = vadd.f32 1.0, %v3865_v31  ;;  %3866 = verf.f32 %v2715_v26  ;;  %v1552_v30 = vadd.f32 %v1536_v11, %v1516_v14  ;;  %v2652_v5 = vmul.f32 %v7741_v48, %v763_v10  ;;  %v354_v14 = vld [vmem:[%s4450_s13 + $0x258] sm:$0xff] }
 0x2aa   : > { %v2604_v1 = vadd.f32 %v2588_v27, %v2572_v25  ;;  %v1301_v55 = vadd.f32 %v1285_v0, %v9407_v19  ;;  %v1357_v56 = vmul.f32 %v7641_v39, %v9376_v58  ;;  %v2699_v37 = vmul.f32 0.5, %v2683_v12  ;;  %v9408_v19 = vld [vmem:[#allocation45_spill] sm:$0xff] }
 0x2ab   : > { %v1795_v13 = vmul.f32 %v1779_v17, %v1731_v3  ;;  %v1588_v36 = vadd.f32 %v1572_v35, %v1552_v30  ;;  %v8040_v18 = vmul.f32 %v7930_v4, %v763_v10  ;;  %v8042_v31 = vadd.f32 %v2462_v22, %v2446_v42  ;;  %v9409_v12 = vld [vmem:[#allocation97_spill] sm:$0xff]  ;;  %v9410_v22 = vld [vmem:[#allocation104_spill] sm:$0xff] }
 0x2ac   : > { %v2636_v11 = vadd.f32 %v2620_v8, %v2604_v1  ;;  %v1337_v26 = vadd.f32 %v1321_v63, %v1301_v55  ;;  %v1393_v27 = vmul.f32 %v7652_v44, %v9377_v57  ;;  %v1429_v3 = vmul.f32 %v9408_v19, %v7622_v60  ;;  %v9411_v63 = vld [vmem:[#allocation34_spill] sm:$0xff] }
 0x2ad   : > { %v1815_v25 = vmul.f32 %v7881_v43, %v1795_v13  ;;  %v1624_v0 = vadd.f32 %v1608_v53, %v1588_v36  ;;  %v1465_v35 = vmul.f32 %v7926_v6, %v9409_v12  ;;  %v1501_v8 = vmul.f32 %v7930_v4, %v9410_v22  ;;  %v8063_v22 = vld [vmem:[%s4450_s13 + $0x150] sm:$0xff] }
 0x2ae   : > { %v2668_v10 = vadd.f32 %v2652_v5, %v2636_v11  ;;  %v1373_v42 = vadd.f32 %v1357_v56, %v1337_v26  ;;  %v1537_v17 = vmul.f32 %v7659_v50, %v9411_v63  ;;  %v520_v53 = vrot.slane %v7837_v24, 7  ;;  %v4060_v56 = vld [vmem:[%s4450_s13 + $0xf0] sm:$0xff]  ;;  %9413 = vst [vmem:[#allocation83_spill] sm:$0xff] %v8063_v22 }
 0x2af   : > { %v1835_v30 = vadd.f32 %v7904_v20, %v1815_v25  ;;  %v1660_v1 = vadd.f32 %v1644_v49, %v1624_v0  ;;  %v621_v55 = vrot.slane %v354_v14, 1  ;;  %v1573_v23 = vmul.f32 %v7663_v34, %v9412_v28 }
 0x2b0   : > { %v2684_v13 = vadd.f32 %v7802_v2, %v2668_v10  ;;  %v1409_v36 = vadd.f32 %v1393_v27, %v1373_v42  ;;  %v722_v5 = vrot.slane %v354_v14, 2  ;;  %v1609_v63 = vmul.f32 %v8063_v22, %v7668_v33  ;;  %v9415_v27 = vld [vmem:[#allocation98_spill] sm:$0xff] }
 0x2b1   : > { %v1851_v11 = vadd.f32 %v4060_v56, %v1835_v30  ;;  %v1696_v26 = vadd.f32 %v1680_v40, %v1660_v1  ;;  %v9414_v49 = vrot.slane %v7706_v46, 7  ;;  %v1645_v42 = vmul.f32 %v7815_v21, %v9415_v27 }
 0x2b2   : > { %v2716_v0 = vmul.f32 0.70710677, %v2684_v13  ;;  %v1445_v10 = vadd.f32 %v1429_v3, %v1409_v36  ;;  %v9416_v14 = vrot.slane %v7837_v24, 1  ;;  %v9417_v56 = vrot.slane %v7837_v24, 2 }
 0x2b3   : > { %v541_v25 = vsel %vm522_vm1, %v9414_v49, %v520_v53  ;;  %v3867_v30 = vpop.eup %3866  ;;  %3658 = vmatmul.mubr.f32.gmra.mrb[10].mxu0 %v1851_v11  ;;  %v1716_v1 = vadd.f32 %v7802_v2, %v1696_v26  ;;  %v2431_v3 = vmul.f32 %v7622_v60, %v7837_v24  ;;  %v2589_v28 = vmul.f32 %v7668_v33, %v7837_v24  ;;  %v9419_v24 = vld [vmem:[#allocation114_spill] sm:$0xff] }
 0x2b4   : > { %v642_v40 = vsel %vm623_vm2, %v9416_v14, %v621_v55  ;;  %v743_v46 = vsel %vm724_vm3, %v9417_v56, %v722_v5  ;;  %v2399_v53 = vmul.f32 %v7652_v44, %v541_v25  ;;  %v2747_v36 = vadd.f32 1.0, %v3867_v30 }
 0x2b5   : > { %3868 = verf.f32 %v2716_v0  ;;  %v1481_v49 = vadd.f32 %v1465_v35, %v1445_v10  ;;  %v2525_v55 = vmul.f32 %v7659_v50, %v7888_v29  ;;  %v1748_v14 = vmul.f32 0.70710677, %v1716_v1 }
 0x2b6   : > { %v2415_v11 = vadd.f32 %v2399_v53, %v7967_v15  ;;  %v2463_v26 = vmul.f32 %v7926_v6, %v642_v40  ;;  %v2557_v27 = vmul.f32 %v7663_v34, %v541_v25  ;;  %v2763_v22 = vmul.f32 %v2747_v36, %v2699_v37  ;;  %v9418_v53 = vld [vmem:[#allocation100_spill] sm:$0xff] }
 0x2b7   : > { %v1517_v5 = vadd.f32 %v1501_v8, %v1481_v49  ;;  %v2541_v56 = vadd.f32 %v2525_v55, %v7972_v47  ;;  %3870 = verf.f32 %v1748_v14  ;;  %v2495_v35 = vmul.f32 %v7930_v4, %v743_v46  ;;  %v8098_v8 = vpop.f32.mrb[2].mxu1  ;;  %v9420_v36 = vld [vmem:[#allocation116_spill] sm:$0xff]  ;;  %v9421_v55 = vld [vmem:[#allocation37_spill] sm:$0xff] }
 0x2b8   : > { %v2447_v0 = vadd.f32 %v2431_v3, %v2415_v11  ;;  %v2621_v29 = vmul.f32 %v7815_v21, %v642_v40  ;;  %v2779_v10 = vmul.f32 %v7881_v43, %v2763_v22  ;;  %v1178_v37 = vmul.f32 %v9418_v53, %v9397_v52  ;;  %v8105_v40 = vpop.f32.mrb[3].mxu1  ;;  %v9422_v11 = vld [vmem:[#allocation82_spill] sm:$0xff] }
 0x2b9   : > { %v1553_v15 = vadd.f32 %v1537_v17, %v1517_v5  ;;  %v2573_v30 = vadd.f32 %v2557_v27, %v2541_v56  ;;  %v2653_v25 = vmul.f32 %v7741_v48, %v743_v46  ;;  %v1214_v3 = vmul.f32 %v9419_v24, %v9398_v41 }
 0x2ba   : > { %v2479_v47 = vadd.f32 %v2463_v26, %v2447_v0  ;;  %v1250_v49 = vmul.f32 %v9420_v36, %v9399_v62  ;;  %v2795_v22 = vadd.f32 %v7904_v20, %v2779_v10  ;;  %v1194_v52 = vadd.f32 %v1178_v37, %v9421_v55  ;;  %v4062_v26 = vld [vmem:[%s4450_s13 + $0x1f0] sm:$0xff] }
 0x2bb   : > { %v1589_v17 = vadd.f32 %v1573_v23, %v1553_v15  ;;  %v2605_v27 = vadd.f32 %v2589_v28, %v2573_v30  ;;  %v8111_v14 = vadd.f32 %v8040_v18, %v8042_v31  ;;  %v2700_v46 = vmul.f32 0.5, %v2684_v13  ;;  %v355_v13 = vld [vmem:[%s4450_s13 + $0x260] sm:$0xff] }
 0x2bc   : > { %v1681_v41 = vmul.f32 %v7741_v48, %v9422_v11  ;;  %v1286_v62 = vmul.f32 %v7617_v51, %v9400_v7  ;;  %v2811_v5 = vadd.f32 %v4062_v26, %v2795_v22  ;;  %v1230_v0 = vadd.f32 %v1214_v3, %v1194_v52  ;;  %v9423_v52 = vld [vmem:[#allocation61_spill] sm:$0xff] }
 0x2bd   : > { %v1625_v56 = vadd.f32 %v1609_v63, %v1589_v17  ;;  %v2637_v23 = vadd.f32 %v2621_v29, %v2605_v27  ;;  %v1732_v28 = vmul.f32 0.5, %v1716_v1  ;;  %v8118_v10 = vadd.f32 %v2495_v35, %v2479_v47  ;;  %v8128_v29 = vld [vmem:[%s4450_s13 + $0x268] sm:$0xff] }
 0x2be   : > { %v1322_v18 = vmul.f32 %v7634_v54, %v9401_v59  ;;  %v1358_v31 = vmul.f32 %v7641_v39, %v9403_v45  ;;  %3682 = vmatmul.mubr.f32.gmra.mrb[10].mxu1 %v2811_v5  ;;  %v1266_v37 = vadd.f32 %v1250_v49, %v1230_v0  ;;  %v1394_v63 = vmul.f32 %v7652_v44, %v9404_v32  ;;  %v8152_v0 = vld [vmem:[%s4450_s13 + $0x270] sm:$0xff] }
 0x2bf   : > { %v3869_v15 = vpop.eup %3868  ;;  %v1661_v30 = vadd.f32 %v1645_v42, %v1625_v56  ;;  %v2669_v7 = vadd.f32 %v2653_v25, %v2637_v23  ;;  %v1430_v35 = vmul.f32 %v8001_v38, %v7622_v60  ;;  %v1466_v59 = vmul.f32 %v7926_v6, %v9405_v16 }
 0x2c0   : > { %v2748_v1 = vadd.f32 1.0, %v3869_v15  ;;  %v1502_v45 = vmul.f32 %v7930_v4, %v9406_v61  ;;  %v1302_v25 = vadd.f32 %v1286_v62, %v1266_v37  ;;  %v378_v3 = vrot.slane %v355_v13, 6  ;;  %v9424_v62 = vld [vmem:[#allocation69_spill] sm:$0xff] }
 0x2c1   : > { %v1697_v47 = vadd.f32 %v1681_v41, %v1661_v30  ;;  %v2685_v42 = vadd.f32 %v7802_v2, %v2669_v7  ;;  %v3871_v49 = vpop.eup %3870  ;;  %v398_v22 = vrot.slane %v8128_v29, 6  ;;  %v481_v17 = vrot.slane %v355_v13, 7 }
 0x2c2   : > { %v2764_v32 = vmul.f32 %v2748_v1, %v2700_v46  ;;  %v501_v27 = vrot.slane %v8128_v29, 7  ;;  %v1780_v38 = vadd.f32 1.0, %v3871_v49  ;;  %v1538_v61 = vmul.f32 %v7659_v50, %v9423_v52  ;;  %v4064_v49 = vld [vmem:[%s4450_s13 + $0x168] sm:$0xff] }
 0x2c3   : > { %v1717_v55 = vadd.f32 %v7802_v2, %v1697_v47  ;;  %v2717_v16 = vmul.f32 0.70710677, %v2685_v42  ;;  %v1338_v26 = vadd.f32 %v1322_v18, %v1302_v25  ;;  %v8145_v5 = vmul.f32 %v7663_v34, %v9424_v62  ;;  %v4063_v47 = vld [vmem:[%s4450_s13 + $0x208] sm:$0xff] }
 0x2c4   : > { %v2780_v41 = vmul.f32 %v7881_v43, %v2764_v32  ;;  %v461_v46 = vsel %vm421_vm0, %v378_v3, %v398_v22  ;;  %v1796_v56 = vmul.f32 %v1780_v38, %v1732_v28  ;;  %v562_v18 = vsel %vm522_vm1, %v481_v17, %v501_v27  ;;  %v9425_v38 = vld [vmem:[#allocation72_spill] sm:$0xff] }
 0x2c5   : > { %v1749_v23 = vmul.f32 0.70710677, %v1717_v55  ;;  %3872 = verf.f32 %v2717_v16  ;;  %v1374_v15 = vadd.f32 %v1358_v31, %v1338_v26  ;;  %v582_v30 = vrot.slane %v8128_v29, 1 }
 0x2c6   : > { %v2796_v13 = vadd.f32 %v7904_v20, %v2780_v41  ;;  %v602_v7 = vrot.slane %v8152_v0, 1  ;;  %v1816_v37 = vmul.f32 %v7881_v43, %v1796_v56  ;;  %v683_v28 = vrot.slane %v8128_v29, 2  ;;  %v4065_v56 = vld [vmem:[%s4450_s13 + $0x108] sm:$0xff] }
 0x2c7   : > { %3874 = verf.f32 %v1749_v23  ;;  %v703_v1 = vrot.slane %v8152_v0, 2  ;;  %v1410_v3 = vadd.f32 %v1394_v63, %v1374_v15  ;;  %v1610_v32 = vmul.f32 %v4064_v49, %v7668_v33 }
 0x2c8   : > { %v2812_v25 = vadd.f32 %v4063_v47, %v2796_v13  ;;  %v2526_v31 = vmul.f32 %v7659_v50, %v461_v46  ;;  %v1836_v17 = vadd.f32 %v7904_v20, %v1816_v37  ;;  %v1646_v16 = vmul.f32 %v7815_v21, %v9425_v38  ;;  %v9426_v13 = vld [vmem:[#allocation76_spill] sm:$0xff]  ;;  %v9429_v38 = vld [vmem:[#allocation34_spill] sm:$0xff] }
 0x2c9   : > { %v663_v52 = vsel %vm623_vm2, %v582_v30, %v602_v7  ;;  %v2558_v41 = vmul.f32 %v7663_v34, %v562_v18  ;;  %v1446_v26 = vadd.f32 %v1430_v35, %v1410_v3  ;;  %v764_v63 = vsel %vm724_vm3, %v683_v28, %v703_v1  ;;  %v9427_v3 = vld [vmem:[#allocation84_spill] sm:$0xff] }
 0x2ca   : > { %3684 = vmatprep.mubr.f32.mxu1 %v2812_v25  ;;  %v2542_v62 = vadd.f32 %v2526_v31, %v8111_v14  ;;  %v2590_v46 = vmul.f32 %v7668_v33, %v8128_v29  ;;  %v1852_v23 = vadd.f32 %v4065_v56, %v1836_v17  ;;  %v1682_v15 = vmul.f32 %v7741_v48, %v9426_v13 }
 0x2cb   : > { %v1179_v18 = vmul.f32 %v9418_v53, %v9376_v58  ;;  %v1215_v35 = vmul.f32 %v9419_v24, %v9377_v57  ;;  %v2701_v30 = vmul.f32 0.5, %v2685_v42  ;;  %v1482_v37 = vadd.f32 %v1466_v59, %v1446_v26  ;;  %v9428_v53 = vld [vmem:[#allocation104_spill] sm:$0xff]  ;;  %v9431_v26 = vld [vmem:[#allocation83_spill] sm:$0xff] }
 0x2cc   : > { %v2574_v47 = vadd.f32 %v2558_v41, %v2542_v62  ;;  %v2622_v28 = vmul.f32 %v7815_v21, %v663_v52  ;;  %3660 = vmatprep.mubr.f32.mxu0 %v1852_v23  ;;  %v1733_v14 = vmul.f32 0.5, %v1717_v55  ;;  %v2654_v25 = vmul.f32 %v7741_v48, %v764_v63  ;;  %v9430_v52 = vld [vmem:[#allocation53_spill] sm:$0xff]  ;;  %v9432_v62 = vld [vmem:[#allocation98_spill] sm:$0xff] }
 0x2cd   : > { %v1195_v49 = vadd.f32 %v1179_v18, %v9427_v3  ;;  %v1251_v31 = vmul.f32 %v9408_v19, %v9420_v36  ;;  %v1518_v17 = vadd.f32 %v1502_v45, %v1482_v37  ;;  %v1287_v57 = vmul.f32 %v7617_v51, %v9409_v12  ;;  %v358_v12 = vld [vmem:[%s4450_s13 + $0x278] sm:$0xff] }
 0x2ce   : > { %v2606_v58 = vadd.f32 %v2590_v46, %v2574_v47  ;;  %v1323_v24 = vmul.f32 %v7634_v54, %v9428_v53  ;;  %v1359_v55 = vmul.f32 %v7641_v39, %v9429_v38  ;;  %v1395_v41 = vmul.f32 %v7652_v44, %v9430_v52  ;;  %v4066_v53 = vld [vmem:[%s4450_s13 + $0x210] sm:$0xff] }
 0x2cf   : > { %v3873_v59 = vpop.eup %3872  ;;  %v1231_v42 = vadd.f32 %v1215_v35, %v1195_v49  ;;  %v1431_v63 = vmul.f32 %v9431_v26, %v7622_v60  ;;  %v1554_v36 = vadd.f32 %v1538_v61, %v1518_v17  ;;  %v1467_v51 = vmul.f32 %v7926_v6, %v9432_v62  ;;  %v9433_v35 = vld [vmem:[#allocation63_spill] sm:$0xff]  ;;  %v9434_v17 = vld [vmem:[#allocation94_spill] sm:$0xff] }
 0x2d0   : > { %v2749_v19 = vadd.f32 1.0, %v3873_v59  ;;  %v2638_v45 = vadd.f32 %v2622_v28, %v2606_v58  ;;  %v8210_v56 = vmul.f32 %v7930_v4, %v9422_v11  ;;  %v418_v39 = vrot.slane %v8152_v0, 6 }
 0x2d1   : > { %v3875_v46 = vpop.eup %3874  ;;  %v1267_v54 = vadd.f32 %v1251_v31, %v1231_v42  ;;  %v521_v44 = vrot.slane %v8152_v0, 7  ;;  %v1590_v60 = vadd.f32 %v8145_v5, %v1554_v36  ;;  %v8217_v6 = vmul.f32 %v7659_v50, %v9433_v35  ;;  %v8245_v42 = vld [vmem:[%s8493_s3 + $0x3] ss:$0 sm:$0xff]  ;;  %v9440_v35 = vld [vmem:[#allocation102_spill] sm:$0xff] }
 0x2d2   : > { %v1781_v23 = vadd.f32 1.0, %v3875_v46  ;;  %v2765_v13 = vmul.f32 %v2749_v19, %v2701_v30  ;;  %v2670_v61 = vadd.f32 %v2654_v25, %v2638_v45  ;;  %v441_v4 = vsel %vm421_vm0, %v398_v22, %v418_v39  ;;  %v9436_v45 = vld [vmem:[#allocation115_spill] sm:$0xff] }
 0x2d3   : > { %v1303_v18 = vadd.f32 %v1287_v57, %v1267_v54  ;;  %v622_v11 = vrot.slane %v358_v12, 1  ;;  %v1626_v28 = vadd.f32 %v1610_v32, %v1590_v60  ;;  %v542_v25 = vsel %vm522_vm1, %v501_v27, %v521_v44  ;;  %v9438_v54 = vld [vmem:[#allocation86_spill] sm:$0xff] }
 0x2d4   : > { %v1797_v37 = vmul.f32 %v1781_v23, %v1733_v14  ;;  %v2781_v47 = vmul.f32 %v7881_v43, %v2765_v13  ;;  %v2686_v30 = vadd.f32 %v7802_v2, %v2670_v61  ;;  %v723_v3 = vrot.slane %v358_v12, 2  ;;  %v4068_v23 = vld [vmem:[%s4450_s13 + $0x170] sm:$0xff]  ;;  %v9439_v13 = vld [vmem:[#allocation99_spill] sm:$0xff] }
 0x2d5   : > { %v1339_v5 = vadd.f32 %v1323_v24, %v1303_v18  ;;  %v2527_v49 = vmul.f32 %v7659_v50, %v441_v4  ;;  %v1662_v14 = vadd.f32 %v1646_v16, %v1626_v28  ;;  %v1575_v32 = vmul.f32 %v7663_v34, %v9434_v17 }
 0x2d6   : > { %v1817_v31 = vmul.f32 %v7881_v43, %v1797_v37  ;;  %v2797_v22 = vadd.f32 %v7904_v20, %v2781_v47  ;;  %v2718_v58 = vmul.f32 0.70710677, %v2686_v30  ;;  %v643_v29 = vsel %vm623_vm2, %v602_v7, %v622_v11  ;;  %v3650_v18 = vpop.f32.mrb[4].mxu0 }
 0x2d7   : > { %v1375_v57 = vadd.f32 %v1359_v55, %v1339_v5  ;;  %v2543_v27 = vadd.f32 %v2527_v49, %v8118_v10  ;;  %v1698_v59 = vadd.f32 %v1682_v15, %v1662_v14  ;;  %v2559_v16 = vmul.f32 %v7663_v34, %v542_v25  ;;  %v4067_v55 = vld [vmem:[%s4450_s13 + $0x110] sm:$0xff]  ;;  %v2971_v47 = vpop.f32.mrb[5].mxu0 }
 0x2d8   : > { %v1837_v50 = vadd.f32 %v7904_v20, %v1817_v31  ;;  %v2813_v24 = vadd.f32 %v4066_v53, %v2797_v22  ;;  %3876 = verf.f32 %v2718_v58  ;;  %v744_v7 = vsel %vm724_vm3, %v703_v1, %v723_v3  ;;  %v9437_v1 = vld [vmem:[#allocation57_spill] sm:$0xff]  ;;  %v9441_v3 = vld [vmem:[#allocation106_spill] sm:$0xff]  ;;  %v9442_v31 = vld [vmem:[#allocation112_spill] sm:$0xff] }
 0x2d9   : > { %v1411_v38 = vadd.f32 %v1395_v41, %v1375_v57  ;;  %v2591_v10 = vmul.f32 %v7668_v33, %v8152_v0  ;;  %v1718_v34 = vadd.f32 %v7802_v2, %v1698_v59  ;;  %v2575_v52 = vadd.f32 %v2559_v16, %v2543_v27  ;;  %v9435_v41 = vld [vmem:[#allocation81_spill] sm:$0xff] }
 0x2da   : > { %v1853_v15 = vadd.f32 %v4067_v55, %v1837_v50  ;;  %3685 = vmatmul.mubr.f32.gmra.mrb[12].mxu1 %v2813_v24  ;;  %v2623_v26 = vmul.f32 %v7815_v21, %v643_v29  ;;  %v2957_v36 = vadd.f32 %v9435_v41, %v8245_v42  ;;  %v3037_v9 = vadd.f32 %v9436_v45, %v8245_v42 }
 0x2db   : > { %v1447_v19 = vadd.f32 %v1431_v63, %v1411_v38  ;;  %v2952_v62 = vadd.f32 %v8245_v42, %v9437_v1  ;;  %v1750_v0 = vmul.f32 0.70710677, %v1718_v34  ;;  %v2607_v12 = vadd.f32 %v2591_v10, %v2575_v52 }
 0x2dc   : > { %3661 = vmatmul.mubr.f32.gmra.mrb[12].mxu0 %v1853_v15  ;;  %v2655_v46 = vmul.f32 %v7741_v48, %v744_v7  ;;  %v3032_v39 = vadd.f32 %v8245_v42, %v9438_v54  ;;  %v1611_v63 = vmul.f32 %v4068_v23, %v7668_v33  ;;  %v1647_v60 = vmul.f32 %v7815_v21, %v9439_v13 }
 0x2dd   : > { %v1483_v44 = vadd.f32 %v1467_v51, %v1447_v19  ;;  %v3143_v61 = vmul.f32 0.70710677, %v2957_v36  ;;  %3878 = verf.f32 %v1750_v0  ;;  %v1683_v4 = vmul.f32 %v7741_v48, %v9440_v35 }
 0x2de   : > { %v2639_v11 = vadd.f32 %v2623_v26, %v2607_v12  ;;  %v3159_v37 = vmul.f32 0.70710677, %v3037_v9  ;;  %v2702_v28 = vmul.f32 0.5, %v2686_v30  ;;  %v3142_v51 = vmul.f32 0.70710677, %v2952_v62 }
 0x2df   : > { %v1519_v5 = vadd.f32 %v8210_v56, %v1483_v44  ;;  %3880 = verf.f32 %v3143_v61  ;;  %v3158_v33 = vmul.f32 0.70710677, %v3032_v39  ;;  %v2967_v21 = vadd.f32 %v9441_v3, %v8245_v42 }
 0x2e0   : > { %v2671_v25 = vadd.f32 %v2655_v46, %v2639_v11  ;;  %3882 = verf.f32 %v3159_v37  ;;  %v3047_v48 = vadd.f32 %v8098_v8, %v8245_v42  ;;  %v2962_v22 = vadd.f32 %v8245_v42, %v9442_v31 }
 0x2e1   : > { %v1555_v49 = vadd.f32 %v8217_v6, %v1519_v5  ;;  %3884 = verf.f32 %v3142_v51  ;;  %v1734_v30 = vmul.f32 0.5, %v1718_v34  ;;  %v3145_v14 = vmul.f32 0.70710677, %v2967_v21 }
 0x2e2   : > { %v2687_v56 = vadd.f32 %v7802_v2, %v2671_v25  ;;  %3886 = verf.f32 %v3158_v33  ;;  %v3877_v17 = vpop.eup %3876  ;;  %v3111_v57 = vmul.f32 0.5, %v2957_v36  ;;  %v3127_v29 = vmul.f32 0.5, %v3037_v9 }
 0x2e3   : > { %v1591_v58 = vadd.f32 %v1575_v32, %v1555_v49  ;;  %v3161_v27 = vmul.f32 0.70710677, %v3047_v48  ;;  %v2750_v50 = vadd.f32 1.0, %v3877_v17  ;;  %v3110_v6 = vmul.f32 0.5, %v2952_v62 }
 0x2e4   : > { %v2719_v53 = vmul.f32 0.70710677, %v2687_v56  ;;  %3888 = verf.f32 %v3145_v14  ;;  %v3144_v8 = vmul.f32 0.70710677, %v2962_v22  ;;  %v3042_v59 = vadd.f32 %v8245_v42, %v8105_v40 }
 0x2e5   : > { %v1627_v24 = vadd.f32 %v1611_v63, %v1591_v58  ;;  %3890 = verf.f32 %v3161_v27  ;;  %v2766_v16 = vmul.f32 %v2750_v50, %v2702_v28  ;;  %v2977_v38 = vadd.f32 %v3650_v18, %v8245_v42  ;;  %v4069_v63 = vld [vmem:[%s4450_s13 + $0x228] sm:$0xff] }
 0x2e6   : > { %3892 = verf.f32 %v2719_v53  ;;  %v8284_v7 = vadd.f32 %v8245_v42, %v2971_v47  ;;  %v3126_v10 = vmul.f32 0.5, %v3032_v39  ;;  %v3160_v55 = vmul.f32 0.70710677, %v3042_v59  ;;  %v8295_v39 = vld [vmem:[%s8493_s3 + $0x4] ss:$0 sm:$0xff] }
 0x2e7   : > { %v1663_v32 = vadd.f32 %v1647_v60, %v1627_v24  ;;  %3894 = verf.f32 %v3144_v8  ;;  %v3879_v15 = vpop.eup %3878  ;;  %v2782_v34 = vmul.f32 %v7881_v43, %v2766_v16  ;;  %v3113_v52 = vmul.f32 0.5, %v2967_v21 }
 0x2e8   : > { %v3129_v26 = vmul.f32 0.5, %v3047_v48  ;;  %v3147_v19 = vmul.f32 0.70710677, %v2977_v38  ;;  %v1782_v36 = vadd.f32 1.0, %v3879_v15  ;;  %3896 = verf.f32 %v3160_v55  ;;  %v3674_v48 = vpop.f32.mrb[4].mxu1 }
 0x2e9   : > { %v3881_v41 = vpop.eup %3880  ;;  %v1699_v40 = vadd.f32 %v1683_v4, %v1663_v32  ;;  %v3146_v45 = vmul.f32 0.70710677, %v8284_v7  ;;  %v2798_v1 = vadd.f32 %v7904_v20, %v2782_v34  ;;  %v3112_v0 = vmul.f32 0.5, %v2962_v22  ;;  %v3051_v17 = vpop.f32.mrb[5].mxu1 }
 0x2ea   : > { %v3883_v9 = vpop.eup %3882  ;;  %v3207_v62 = vadd.f32 1.0, %v3881_v41  ;;  %3898 = verf.f32 %v3147_v19  ;;  %v1798_v46 = vmul.f32 %v1782_v36, %v1734_v30  ;;  %v2703_v60 = vmul.f32 0.5, %v2687_v56 }
 0x2eb   : > { %v3885_v12 = vpop.eup %3884  ;;  %v8290_v54 = vadd.f32 %v7802_v2, %v1699_v40  ;;  %v3223_v44 = vadd.f32 1.0, %v3883_v9  ;;  %3900 = verf.f32 %v3146_v45  ;;  %v2814_v13 = vadd.f32 %v4069_v63, %v2798_v1  ;;  %v8303_v2 = vld [vmem:[%s8493_s3 + $0x5] ss:$0 sm:$0xff] }
 0x2ec   : > { %v3887_v23 = vpop.eup %3886  ;;  %v3239_v61 = vmul.f32 %v3207_v62, %v3111_v57  ;;  %v3206_v18 = vadd.f32 1.0, %v3885_v12  ;;  %v1818_v35 = vmul.f32 %v7881_v43, %v1798_v46  ;;  %v3128_v37 = vmul.f32 0.5, %v3042_v59  ;;  %v4070_v57 = vld [vmem:[%s4450_s13 + $0x128] sm:$0xff] }
 0x2ed   : > { %v1751_v4 = vmul.f32 0.70710677, %v8290_v54  ;;  %v3255_v11 = vmul.f32 %v3223_v44, %v3127_v29  ;;  %3687 = vmatprep.mubr.f32.mxu1 %v2814_v13  ;;  %v3222_v51 = vadd.f32 1.0, %v3887_v23  ;;  %v3115_v25 = vmul.f32 0.5, %v2977_v38 }
 0x2ee   : > { %v3889_v47 = vpop.eup %3888  ;;  %v3275_v28 = vmul.f32 %v8295_v39, %v3239_v61  ;;  %v3238_v5 = vmul.f32 %v3206_v18, %v3110_v6  ;;  %v1838_v3 = vadd.f32 %v7904_v20, %v1818_v35  ;;  %v3052_v55 = vadd.f32 %v8245_v42, %v3051_v17  ;;  %v4071_v18 = vld [vmem:[%s4450_s13 + $0x230] sm:$0xff] }
 0x2ef   : > { %v3891_v33 = vpop.eup %3890  ;;  %3902 = verf.f32 %v1751_v4  ;;  %v3291_v21 = vmul.f32 %v8295_v39, %v3255_v11  ;;  %v3209_v49 = vadd.f32 1.0, %v3889_v47  ;;  %v3254_v56 = vmul.f32 %v3222_v51, %v3126_v10 }
 0x2f0   : > { %v3893_v31 = vpop.eup %3892  ;;  %v3311_v22 = vadd.f32 %v8303_v2, %v3275_v28  ;;  %v3274_v30 = vmul.f32 %v8295_v39, %v3238_v5  ;;  %v3225_v14 = vadd.f32 1.0, %v3891_v33  ;;  %v1854_v29 = vadd.f32 %v4070_v57, %v1838_v3 }
 0x2f1   : > { %v3895_v58 = vpop.eup %3894  ;;  %v2751_v27 = vadd.f32 1.0, %v3893_v31  ;;  %v3327_v50 = vadd.f32 %v8303_v2, %v3291_v21  ;;  %v3241_v53 = vmul.f32 %v3209_v49, %v3113_v52  ;;  %v3290_v24 = vmul.f32 %v8295_v39, %v3254_v56  ;;  %v4072_v21 = vld [vmem:[%s4450_s13 + $0x130] sm:$0xff]  ;;  %s3561_s13 = sshll.u32 %s4264_s18, 12  ;;  %s9443_s18 = sand.u32 1, %s4256_s16  }
 0x2f2   : > { %3343 = vst [vmem:[%s4486_s6 + $0x8] sm:$0xff] %v3311_v22  ;;  %v3310_v6 = vadd.f32 %v8303_v2, %v3274_v30  ;;  %v3257_v8 = vmul.f32 %v3225_v14, %v3129_v26  ;;  %v3208_v59 = vadd.f32 1.0, %v3895_v58  ;;  %v3897_v16 = vpop.eup %3896  ;;  %3663 = vmatprep.mubr.f32.mxu0 %v1854_v29  ;;  %v3057_v10 = vadd.f32 %v3674_v48, %v8245_v42  ;;  %s8435_s9 = scalar_lea.hbm %s8494_s4, %s3561_s13  ;;  %s8444_s11 = scalar_lea.sflag [#allocation7], %s9443_s18 }
 0x2f3   : > { %v2767_v38 = vmul.f32 %v2751_v27, %v2703_v60  ;;  %3359 = vst [vmem:[%s4486_s6 + $0x88] sm:$0xff] %v3327_v50  ;;  %v3277_v32 = vmul.f32 %v8295_v39, %v3241_v53  ;;  %v3326_v34 = vadd.f32 %v8303_v2, %v3290_v24  ;;  %v3224_v19 = vadd.f32 1.0, %v3897_v16 }
 0x2f4   : > { %v3899_v15 = vpop.eup %3898  ;;  %3342 = vst [vmem:[%s4486_s6] sm:$0xff] %v3310_v6  ;;  %v3293_v52 = vmul.f32 %v8295_v39, %v3257_v8  ;;  %v3240_v26 = vmul.f32 %v3208_v59, %v3112_v0  ;;  %v3114_v9 = vmul.f32 0.5, %v8284_v7  ;;  %v3163_v46 = vmul.f32 0.70710677, %v3057_v10 }
 0x2f5   : > { %v3901_v41 = vpop.eup %3900  ;;  %v2783_v36 = vmul.f32 %v7881_v43, %v2767_v38  ;;  %v3313_v40 = vadd.f32 %v8303_v2, %v3277_v32  ;;  %v3211_v45 = vadd.f32 1.0, %v3899_v15  ;;  %3358 = vst [vmem:[%s4486_s6 + $0x80] sm:$0xff] %v3326_v34  ;;  %v3256_v12 = vmul.f32 %v3224_v19, %v3128_v37 }
 0x2f6   : > { %v3329_v1 = vadd.f32 %v8303_v2, %v3293_v52  ;;  %v3276_v62 = vmul.f32 %v8295_v39, %v3240_v26  ;;  %v1735_v0 = vmul.f32 0.5, %v8290_v54  ;;  %v3210_v63 = vadd.f32 1.0, %v3901_v41 }
 0x2f7   : > { %v2799_v44 = vadd.f32 %v7904_v20, %v2783_v36  ;;  %3345 = vst [vmem:[%s4486_s6 + $0x18] sm:$0xff] %v3313_v40  ;;  %v3243_v23 = vmul.f32 %v3211_v45, %v3115_v25  ;;  %v3292_v7 = vmul.f32 %v8295_v39, %v3256_v12  ;;  %3904 = verf.f32 %v3163_v46 }
 0x2f8   : > { %3361 = vst [vmem:[%s4486_s6 + $0x98] sm:$0xff] %v3329_v1  ;;  %v3312_v13 = vadd.f32 %v8303_v2, %v3276_v62  ;;  %v3162_v60 = vmul.f32 0.70710677, %v3052_v55  ;;  %v3242_v4 = vmul.f32 %v3210_v63, %v3114_v9  ;;  %v3131_v48 = vmul.f32 0.5, %v3057_v10 }
 0x2f9   : > { %v3903_v61 = vpop.eup %3902  ;;  %v2815_v35 = vadd.f32 %v4071_v18, %v2799_v44  ;;  %v3279_v54 = vmul.f32 %v8295_v39, %v3243_v23  ;;  %v3328_v37 = vadd.f32 %v8303_v2, %v3292_v7  ;;  %v3130_v56 = vmul.f32 0.5, %v3052_v55 }
 0x2fa   : > { %v1783_v11 = vadd.f32 1.0, %v3903_v61  ;;  %3344 = vst [vmem:[%s4486_s6 + $0x10] sm:$0xff] %v3312_v13  ;;  %3906 = verf.f32 %v3162_v60  ;;  %v3278_v28 = vmul.f32 %v8295_v39, %v3242_v4 }
 0x2fb   : > { %3688 = vmatmul.mubr.f32.gmra.mrb[14].mxu1 %v2815_v35  ;;  %v3315_v47 = vadd.f32 %v8303_v2, %v3279_v54  ;;  %3360 = vst [vmem:[%s4486_s6 + $0x90] sm:$0xff] %v3328_v37 }
 0x2fc   : > { %v1799_v5 = vmul.f32 %v1783_v11, %v1735_v0  ;;  %v3314_v51 = vadd.f32 %v8303_v2, %v3278_v28 }
 0x2fd   : > { %3347 = vst [vmem:[%s4486_s6 + $0x28] sm:$0xff] %v3315_v47 }
 0x2fe   : > { %v1819_v25 = vmul.f32 %v7881_v43, %v1799_v5  ;;  %3346 = vst [vmem:[%s4486_s6 + $0x20] sm:$0xff] %v3314_v51 }
 0x300   : > { %v1839_v33 = vadd.f32 %v7904_v20, %v1819_v25 }
 0x301   : > { %v3905_v3 = vpop.eup %3904 }
 0x302   : > { %v1855_v49 = vadd.f32 %v4072_v21, %v1839_v33  ;;  %v3227_v31 = vadd.f32 1.0, %v3905_v3 }
 0x304   : > { %v3907_v22 = vpop.eup %3906  ;;  %3664 = vmatmul.mubr.f32.gmra.mrb[14].mxu0 %v1855_v49  ;;  %v3259_v30 = vmul.f32 %v3227_v31, %v3131_v48 }
 0x305   : > { %v3226_v14 = vadd.f32 1.0, %v3907_v22 }
 0x306   : > { %v3295_v17 = vmul.f32 %v8295_v39, %v3259_v30 }
 0x307   : > { %v3258_v58 = vmul.f32 %v3226_v14, %v3130_v56 }
 0x308   : > { %v3331_v43 = vadd.f32 %v8303_v2, %v3295_v17 }
 0x309   : > { %v3294_v57 = vmul.f32 %v8295_v39, %v3258_v58 }
 0x30a   : > { %3363 = vst [vmem:[%s4486_s6 + $0xa8] sm:$0xff] %v3331_v43 }
 0x30b   : > { %v3330_v20 = vadd.f32 %v8303_v2, %v3294_v57 }
 0x30d   : > { %3362 = vst [vmem:[%s4486_s6 + $0xa0] sm:$0xff] %v3330_v20 }
 0x327   : > { %v3653_v29 = vpop.f32.mrb[6].mxu0 }
 0x328   : > { %v2987_v27 = vadd.f32 %v3653_v29, %v8245_v42  ;;  %v2981_v50 = vpop.f32.mrb[7].mxu0 }
 0x329   : > { %v2982_v53 = vadd.f32 %v8245_v42, %v2981_v50 }
 0x32a   : > { %v3149_v6 = vmul.f32 0.70710677, %v2987_v27  ;;  %v3117_v16 = vmul.f32 0.5, %v2987_v27 }
 0x32b   : > { %v3148_v24 = vmul.f32 0.70710677, %v2982_v53  ;;  %v3116_v10 = vmul.f32 0.5, %v2982_v53 }
 0x32c   : > { %3908 = verf.f32 %v3149_v6 }
 0x32d   : > { %3910 = verf.f32 %v3148_v24 }
 0x336   : > { %v3909_v8 = vpop.eup %3908 }
 0x337   : > { %v3911_v59 = vpop.eup %3910  ;;  %v3213_v38 = vadd.f32 1.0, %v3909_v8 }
 0x338   : > { %v3212_v55 = vadd.f32 1.0, %v3911_v59 }
 0x339   : > { %v3677_v32 = vpop.f32.mrb[6].mxu1  ;;  %v3245_v15 = vmul.f32 %v3213_v38, %v3117_v16 }
 0x33a   : > { %v3067_v34 = vadd.f32 %v3677_v32, %v8245_v42  ;;  %v3061_v52 = vpop.f32.mrb[7].mxu1  ;;  %v3244_v26 = vmul.f32 %v3212_v55, %v3116_v10 }
 0x33b   : > { %v3062_v19 = vadd.f32 %v8245_v42, %v3061_v52  ;;  %v3281_v41 = vmul.f32 %v8295_v39, %v3245_v15 }
 0x33c   : > { %v3165_v36 = vmul.f32 0.70710677, %v3067_v34  ;;  %v3280_v40 = vmul.f32 %v8295_v39, %v3244_v26  ;;  %v3133_v46 = vmul.f32 0.5, %v3067_v34 }
 0x33d   : > { %v3164_v45 = vmul.f32 0.70710677, %v3062_v19  ;;  %v3317_v9 = vadd.f32 %v8303_v2, %v3281_v41  ;;  %v3132_v44 = vmul.f32 0.5, %v3062_v19 }
 0x33e   : > { %3912 = verf.f32 %v3165_v36  ;;  %v3316_v1 = vadd.f32 %v8303_v2, %v3280_v40 }
 0x33f   : > { %3914 = verf.f32 %v3164_v45  ;;  %3349 = vst [vmem:[%s4486_s6 + $0x38] sm:$0xff] %v3317_v9 }
 0x340   : > { %3348 = vst [vmem:[%s4486_s6 + $0x30] sm:$0xff] %v3316_v1 }
 0x348   : > { %v3913_v62 = vpop.eup %3912 }
 0x349   : > { %v3915_v12 = vpop.eup %3914  ;;  %v3229_v0 = vadd.f32 1.0, %v3913_v62 }
 0x34a   : > { %v3228_v23 = vadd.f32 1.0, %v3915_v12 }
 0x34b   : > { %v3261_v63 = vmul.f32 %v3229_v0, %v3133_v46 }
 0x34c   : > { %v3260_v13 = vmul.f32 %v3228_v23, %v3132_v44 }
 0x34d   : > { %v3297_v7 = vmul.f32 %v8295_v39, %v3261_v63 }
 0x34e   : > { %v3296_v60 = vmul.f32 %v8295_v39, %v3260_v13 }
 0x34f   : > { %v3333_v61 = vadd.f32 %v8303_v2, %v3297_v7 }
 0x350   : > { %v3332_v18 = vadd.f32 %v8303_v2, %v3296_v60 }
 0x351   : > { %3365 = vst [vmem:[%s4486_s6 + $0xb8] sm:$0xff] %v3333_v61 }
 0x352   : > { %3364 = vst [vmem:[%s4486_s6 + $0xb0] sm:$0xff] %v3332_v18 }
 0x357   : > { %v3656_v35 = vpop.f32.mrb[8].mxu0 }
 0x358   : > { %v2997_v54 = vadd.f32 %v3656_v35, %v8245_v42  ;;  %v2991_v4 = vpop.f32.mrb[9].mxu0 }
 0x359   : > { %v2992_v11 = vadd.f32 %v8245_v42, %v2991_v4 }
 0x35a   : > { %v3151_v37 = vmul.f32 0.70710677, %v2997_v54  ;;  %v3119_v21 = vmul.f32 0.5, %v2997_v54 }
 0x35b   : > { %v3150_v47 = vmul.f32 0.70710677, %v2992_v11  ;;  %v3118_v31 = vmul.f32 0.5, %v2992_v11 }
 0x35c   : > { %3916 = verf.f32 %v3151_v37 }
 0x35d   : > { %3918 = verf.f32 %v3150_v47 }
 0x366   : > { %v3680_v28 = vpop.f32.mrb[8].mxu1  ;;  %v3917_v25 = vpop.eup %3916 }
 0x367   : > { %v3077_v5 = vadd.f32 %v3680_v28, %v8245_v42  ;;  %v3071_v51 = vpop.f32.mrb[9].mxu1  ;;  %v3919_v3 = vpop.eup %3918  ;;  %v3215_v49 = vadd.f32 1.0, %v3917_v25 }
 0x368   : > { %v3072_v33 = vadd.f32 %v8245_v42, %v3071_v51  ;;  %v3214_v22 = vadd.f32 1.0, %v3919_v3 }
 0x369   : > { %v3167_v48 = vmul.f32 0.70710677, %v3077_v5  ;;  %v3247_v56 = vmul.f32 %v3215_v49, %v3119_v21  ;;  %v3135_v27 = vmul.f32 0.5, %v3077_v5 }
 0x36a   : > { %v3166_v30 = vmul.f32 0.70710677, %v3072_v33  ;;  %v3246_v14 = vmul.f32 %v3214_v22, %v3118_v31  ;;  %v3134_v53 = vmul.f32 0.5, %v3072_v33 }
 0x36b   : > { %3920 = verf.f32 %v3167_v48  ;;  %v3283_v17 = vmul.f32 %v8295_v39, %v3247_v56 }
 0x36c   : > { %3922 = verf.f32 %v3166_v30  ;;  %v3282_v58 = vmul.f32 %v8295_v39, %v3246_v14 }
 0x36d   : > { %v3319_v43 = vadd.f32 %v8303_v2, %v3283_v17 }
 0x36e   : > { %v3318_v57 = vadd.f32 %v8303_v2, %v3282_v58 }
 0x36f   : > { %3351 = vst [vmem:[%s4486_s6 + $0x48] sm:$0xff] %v3319_v43 }
 0x370   : > { %3350 = vst [vmem:[%s4486_s6 + $0x40] sm:$0xff] %v3318_v57 }
 0x375   : > { %v3921_v20 = vpop.eup %3920 }
 0x376   : > { %v3923_v29 = vpop.eup %3922  ;;  %v3231_v50 = vadd.f32 1.0, %v3921_v20 }
 0x377   : > { %v3230_v6 = vadd.f32 1.0, %v3923_v29 }
 0x378   : > { %v3263_v24 = vmul.f32 %v3231_v50, %v3135_v27 }
 0x379   : > { %v3262_v8 = vmul.f32 %v3230_v6, %v3134_v53 }
 0x37a   : > { %v3299_v59 = vmul.f32 %v8295_v39, %v3263_v24 }
 0x37b   : > { %v3298_v16 = vmul.f32 %v8295_v39, %v3262_v8 }
 0x37c   : > { %v3335_v38 = vadd.f32 %v8303_v2, %v3299_v59 }
 0x37d   : > { %v3334_v32 = vadd.f32 %v8303_v2, %v3298_v16 }
 0x37e   : > { %3367 = vst [vmem:[%s4486_s6 + $0xc8] sm:$0xff] %v3335_v38 }
 0x37f   : > { %3366 = vst [vmem:[%s4486_s6 + $0xc0] sm:$0xff] %v3334_v32 }
 0x386   : > { %v3659_v10 = vpop.f32.mrb[10].mxu0 }
 0x387   : > { %v3007_v55 = vadd.f32 %v3659_v10, %v8245_v42  ;;  %v3001_v15 = vpop.f32.mrb[11].mxu0 }
 0x388   : > { %v3002_v34 = vadd.f32 %v8245_v42, %v3001_v15 }
 0x389   : > { %v3153_v52 = vmul.f32 0.70710677, %v3007_v55  ;;  %v3121_v12 = vmul.f32 0.5, %v3007_v55 }
 0x38a   : > { %v3152_v26 = vmul.f32 0.70710677, %v3002_v34  ;;  %v3120_v0 = vmul.f32 0.5, %v3002_v34 }
 0x38b   : > { %3924 = verf.f32 %v3153_v52 }
 0x38c   : > { %3926 = verf.f32 %v3152_v26 }
 0x391   : > { %v3683_v19 = vpop.f32.mrb[10].mxu1 }
 0x392   : > { %v3087_v41 = vadd.f32 %v3683_v19, %v8245_v42  ;;  %v3081_v36 = vpop.f32.mrb[11].mxu1 }
 0x393   : > { %v3082_v40 = vadd.f32 %v8245_v42, %v3081_v36 }
 0x394   : > { %v3169_v45 = vmul.f32 0.70710677, %v3087_v41  ;;  %v3137_v54 = vmul.f32 0.5, %v3087_v41 }
 0x395   : > { %v3925_v9 = vpop.eup %3924  ;;  %v3168_v1 = vmul.f32 0.70710677, %v3082_v40  ;;  %v3136_v11 = vmul.f32 0.5, %v3082_v40 }
 0x396   : > { %v3927_v62 = vpop.eup %3926  ;;  %v3217_v46 = vadd.f32 1.0, %v3925_v9  ;;  %3928 = verf.f32 %v3169_v45 }
 0x397   : > { %v3216_v44 = vadd.f32 1.0, %v3927_v62  ;;  %3930 = verf.f32 %v3168_v1 }
 0x398   : > { %v3249_v23 = vmul.f32 %v3217_v46, %v3121_v12 }
 0x399   : > { %v3248_v63 = vmul.f32 %v3216_v44, %v3120_v0 }
 0x39a   : > { %v3285_v13 = vmul.f32 %v8295_v39, %v3249_v23 }
 0x39b   : > { %v3284_v7 = vmul.f32 %v8295_v39, %v3248_v63 }
 0x39c   : > { %v3321_v60 = vadd.f32 %v8303_v2, %v3285_v13 }
 0x39d   : > { %v3320_v61 = vadd.f32 %v8303_v2, %v3284_v7 }
 0x39e   : > { %3353 = vst [vmem:[%s4486_s6 + $0x58] sm:$0xff] %v3321_v60 }
 0x39f   : > { %3352 = vst [vmem:[%s4486_s6 + $0x50] sm:$0xff] %v3320_v61 }
 0x3a0   : > { %v3929_v18 = vpop.eup %3928 }
 0x3a1   : > { %v3931_v35 = vpop.eup %3930  ;;  %v3233_v4 = vadd.f32 1.0, %v3929_v18 }
 0x3a2   : > { %v3232_v37 = vadd.f32 1.0, %v3931_v35 }
 0x3a3   : > { %v3265_v47 = vmul.f32 %v3233_v4, %v3137_v54 }
 0x3a4   : > { %v3264_v28 = vmul.f32 %v3232_v37, %v3136_v11 }
 0x3a5   : > { %v3301_v5 = vmul.f32 %v8295_v39, %v3265_v47 }
 0x3a6   : > { %v3300_v51 = vmul.f32 %v8295_v39, %v3264_v28 }
 0x3a7   : > { %v3337_v25 = vadd.f32 %v8303_v2, %v3301_v5 }
 0x3a8   : > { %v3336_v33 = vadd.f32 %v8303_v2, %v3300_v51 }
 0x3a9   : > { %3369 = vst [vmem:[%s4486_s6 + $0xd8] sm:$0xff] %v3337_v25 }
 0x3aa   : > { %3368 = vst [vmem:[%s4486_s6 + $0xd0] sm:$0xff] %v3336_v33 }
 0x3ad   : > { %v3686_v3 = vpop.f32.mrb[12].mxu1 }
 0x3ae   : > { %v3097_v21 = vadd.f32 %v3686_v3, %v8245_v42  ;;  %v3091_v49 = vpop.f32.mrb[13].mxu1 }
 0x3af   : > { %v3662_v48 = vpop.f32.mrb[12].mxu0  ;;  %v3092_v31 = vadd.f32 %v8245_v42, %v3091_v49 }
 0x3b0   : > { %v3017_v22 = vadd.f32 %v3662_v48, %v8245_v42  ;;  %v3171_v30 = vmul.f32 0.70710677, %v3097_v21  ;;  %v3011_v56 = vpop.f32.mrb[13].mxu0  ;;  %v3139_v29 = vmul.f32 0.5, %v3097_v21 }
 0x3b1   : > { %v3012_v14 = vadd.f32 %v8245_v42, %v3011_v56  ;;  %v3170_v17 = vmul.f32 0.70710677, %v3092_v31  ;;  %v3138_v53 = vmul.f32 0.5, %v3092_v31 }
 0x3b2   : > { %v3155_v58 = vmul.f32 0.70710677, %v3017_v22  ;;  %3932 = verf.f32 %v3171_v30  ;;  %v3123_v8 = vmul.f32 0.5, %v3017_v22 }
 0x3b3   : > { %v3154_v43 = vmul.f32 0.70710677, %v3012_v14  ;;  %3934 = verf.f32 %v3170_v17  ;;  %v3122_v38 = vmul.f32 0.5, %v3012_v14 }
 0x3b4   : > { %3936 = verf.f32 %v3155_v58 }
 0x3b5   : > { %3938 = verf.f32 %v3154_v43 }
 0x3bc   : > { %v3933_v57 = vpop.eup %3932 }
 0x3bd   : > { %v3935_v20 = vpop.eup %3934  ;;  %v3235_v27 = vadd.f32 1.0, %v3933_v57 }
 0x3be   : > { %v3937_v50 = vpop.eup %3936  ;;  %v3234_v6 = vadd.f32 1.0, %v3935_v20 }
 0x3bf   : > { %v3939_v24 = vpop.eup %3938  ;;  %v3219_v59 = vadd.f32 1.0, %v3937_v50  ;;  %v3267_v16 = vmul.f32 %v3235_v27, %v3139_v29 }
 0x3c0   : > { %v3218_v32 = vadd.f32 1.0, %v3939_v24  ;;  %v3266_v10 = vmul.f32 %v3234_v6, %v3138_v53 }
 0x3c1   : > { %v3251_v55 = vmul.f32 %v3219_v59, %v3123_v8  ;;  %v3303_v15 = vmul.f32 %v8295_v39, %v3267_v16 }
 0x3c2   : > { %v3250_v34 = vmul.f32 %v3218_v32, %v3122_v38  ;;  %v3302_v52 = vmul.f32 %v8295_v39, %v3266_v10 }
 0x3c3   : > { %v3287_v26 = vmul.f32 %v8295_v39, %v3251_v55  ;;  %v3339_v19 = vadd.f32 %v8303_v2, %v3303_v15 }
 0x3c4   : > { %v3286_v41 = vmul.f32 %v8295_v39, %v3250_v34  ;;  %v3338_v36 = vadd.f32 %v8303_v2, %v3302_v52 }
 0x3c5   : > { %v3323_v40 = vadd.f32 %v8303_v2, %v3287_v26  ;;  %3371 = vst [vmem:[%s4486_s6 + $0xe8] sm:$0xff] %v3339_v19 }
 0x3c6   : > { %v3322_v45 = vadd.f32 %v8303_v2, %v3286_v41  ;;  %3370 = vst [vmem:[%s4486_s6 + $0xe0] sm:$0xff] %v3338_v36 }
 0x3c7   : > { %3355 = vst [vmem:[%s4486_s6 + $0x68] sm:$0xff] %v3323_v40 }
 0x3c8   : > { %3354 = vst [vmem:[%s4486_s6 + $0x60] sm:$0xff] %v3322_v45 }
 0x3ce   : > { %v3689_v9 = vpop.f32.mrb[14].mxu1 }
 0x3cf   : > { %v3107_v1 = vadd.f32 %v3689_v9, %v8245_v42  ;;  %v3101_v62 = vpop.f32.mrb[15].mxu1 }
 0x3d0   : > { %v3102_v12 = vadd.f32 %v8245_v42, %v3101_v62 }
 0x3d1   : > { %v3173_v46 = vmul.f32 0.70710677, %v3107_v1  ;;  %v3141_v35 = vmul.f32 0.5, %v3107_v1 }
 0x3d2   : > { %v3172_v0 = vmul.f32 0.70710677, %v3102_v12  ;;  %v3140_v4 = vmul.f32 0.5, %v3102_v12 }
 0x3d3   : > { %3940 = verf.f32 %v3173_v46 }
 0x3d4   : > { %3942 = verf.f32 %v3172_v0 }
 0x3d7   : > { %v3665_v44 = vpop.f32.mrb[14].mxu0 }
 0x3d8   : > { %v3027_v23 = vadd.f32 %v3665_v44, %v8245_v42  ;;  %v3021_v63 = vpop.f32.mrb[15].mxu0 }
 0x3d9   : > { %v3022_v13 = vadd.f32 %v8245_v42, %v3021_v63 }
 0x3da   : > { %v3157_v7 = vmul.f32 0.70710677, %v3027_v23  ;;  %v3125_v3 = vmul.f32 0.5, %v3027_v23 }
 0x3db   : > { %v3156_v60 = vmul.f32 0.70710677, %v3022_v13  ;;  %v3124_v49 = vmul.f32 0.5, %v3022_v13 }
 0x3dc   : > { %3944 = verf.f32 %v3157_v7 }
 0x3dd   : > { %v3941_v61 = vpop.eup %3940  ;;  %3946 = verf.f32 %v3156_v60 }
 0x3de   : > { %v3943_v18 = vpop.eup %3942  ;;  %v3237_v54 = vadd.f32 1.0, %v3941_v61 }
 0x3df   : > { %v3236_v11 = vadd.f32 1.0, %v3943_v18 }
 0x3e0   : > { %v3269_v37 = vmul.f32 %v3237_v54, %v3141_v35 }
 0x3e1   : > { %v3268_v47 = vmul.f32 %v3236_v11, %v3140_v4 }
 0x3e2   : > { %v3305_v28 = vmul.f32 %v8295_v39, %v3269_v37 }
 0x3e3   : > { %v3304_v42 = vmul.f32 %v8295_v39, %v3268_v47 }
 0x3e4   : > { %v3341_v5 = vadd.f32 %v8303_v2, %v3305_v28 }
 0x3e5   : > { %v3340_v51 = vadd.f32 %v8303_v2, %v3304_v42 }
 0x3e6   : > { %v3945_v25 = vpop.eup %3944  ;;  %3373 = vst [vmem:[%s4486_s6 + $0xf8] sm:$0xff] %v3341_v5 }
 0x3e7   : > { %v3947_v33 = vpop.eup %3946  ;;  %v3221_v21 = vadd.f32 1.0, %v3945_v25  ;;  %3372 = vst [vmem:[%s4486_s6 + $0xf0] sm:$0xff] %v3340_v51 }
 0x3e8   : > { %v3220_v48 = vadd.f32 1.0, %v3947_v33 }
 0x3e9   : > { %v3253_v31 = vmul.f32 %v3221_v21, %v3125_v3 }
 0x3ea   : > { %v3252_v22 = vmul.f32 %v3220_v48, %v3124_v49 }
 0x3eb   : > { %v3289_v30 = vmul.f32 %v8295_v39, %v3253_v31 }
 0x3ec   : > { %v3288_v56 = vmul.f32 %v8295_v39, %v3252_v22 }
 0x3ed   : > { %v3325_v14 = vadd.f32 %v8303_v2, %v3289_v30 }
 0x3ee   : > { %v3324_v17 = vadd.f32 %v8303_v2, %v3288_v56 }
 0x3ef   : > { %3357 = vst [vmem:[%s4486_s6 + $0x78] sm:$0xff] %v3325_v14 }
 0x3f0   : > { %3356 = vst [vmem:[%s4486_s6 + $0x70] sm:$0xff] %v3324_v17 }
 0x3f1   : > { %4197 = shalt.err (!%p4194_p0)
}
 0x3f2   : > { %s4198_s6 = scalar_lea.hbm %s8435_s9, 4096  ;;  %s4202_s26 = scalar_lea.hbm %s8494_s4, 8192 }
 0x3f3   : > { %p4199_p4 = scmp.ne.s32.totalorder %s8435_s9, %s4198_s6  ;;  %p4203_p1 = scmp.lt.u32.totalorder %s8435_s9, %s8494_s4 }
 0x3f4   : > { %p4204_p11 = scmp.lt.u32.totalorder %s4202_s26, %s4198_s6  ;;  %p4206_p10 = scmp.lt.u32.totalorder %s4198_s6, %s8435_s9 }
 0x3f5   : > { %p4200_p13 = pnand %p4199_p4, %p9444_p2 }
 0x3f6   : > { %p4205_p3 = por %p4204_p11, %p4203_p1 }
 0x3f7   : > { %p4201_p8 = pneg %p4200_p13 }
 0x3f8   : > { %p4207_p5 = por %p4206_p10, %p4205_p3 }
 0x3fa   : > { %p4208_p6 = pnand %p4207_p5, %p4201_p8 }
 0x3fc   : > { %4211 = shalt.err (!%p4208_p6)
}
 0x3fd   : > { %s4280_s1 = smov 128   ;;  %s4281_s7 = smov 8  }
 0x3fe   : > { %3748 = dma.vmem_to_hbm [thread:$0]  (%p9444_p2), %s8437_s21, 4096, %s8435_s9, %s8444_s11, %s4280_s1, %s4280_s1, %s4281_s7  }
 0x3ff PF: > { %p3765_p7 = scmp.ge.s32.totalorder %s4272_s20, 2  ;;  %s3406_s14 = sand.u32 1, %s4252_s15  }
 0x400   : > { %p9445_p9 = scmp.ne.s32.totalorder %s8804_s27, 0  ;;  %s3407_s30 = scalar_lea.sflag [#allocation7], %s3406_s14 }
 0x402   : > { %p3758_p12 = pnand %p3765_p7, %p9445_p9 }
 0x404   : > { %4247 = dma.done.wait (!%p3758_p12), %s3407_s30, 4096  }
 0x405   : > { %4249 = vsyncadd (!%p3758_p12), %s3407_s30, 4294963200  ;;  %s19_s20 = sadd.s32 1, %s4272_s20   ;;  %s9446_s18 = sld [smem:[#allocation23_spill]] }
 0x406   : > { %p16_p0 = scmp.ge.s32.totalorder %s19_s20, 4   ;;  %s9447_s19 = sld [smem:[#allocation24_spill]] }
 0x407   : > { %s9448_s15 = smov %s4256_s16  ;;  %s9449_s16 = smov %s4260_s17 }
 0x408   : > { %s9450_s17 = smov %s4360_s28  ;;  %18 = sbr.rel (!%p16_p0) target bundleno = 9 (0x9), region = 113 }
 0x40f   :  { %3412 = vsyncpa [#allocation6], 1 }
 0x410   :  { %3414 = vsyncpa [#allocation6 + $0x1], 1 }
 0x411   :  { %3415 = vsyncpa [#allocation9], 1 }
 0x412   :  { %3416 = vsyncpa [#allocation7], 1 }
 0x413   :  { %3418 = vsyncpa [#allocation7 + $0x1], 1 }
 0x414   :  { %3419 = vsyncmov [#allocation4] }
 0x417   :  { %s3420_s25 = vpop.sfrf %3419 }
 0x418   :  { %p3557_p2 = scmp.ne.s32.totalorder %s3420_s25, 0 }
 0x41a   :  { %3424 = shalt.err (%p3557_p2)  }
 0x41b   :  { %3426 = vsyncmov [#allocation4 + $0x1] }
 0x41e   :  { %s3427_s27 = vpop.sfrf %3426 }
 0x41f   :  { %p3558_p4 = scmp.ne.s32.totalorder %s3427_s27, 0 }
 0x421   :  { %3431 = shalt.err (%p3558_p4)  }

</bundles_post_ra>
